<compile_context>
chip_gen: v7x
topology: tpu7x:2x2x1
jax: 0.10.0
libtpu: 0.0.40
codegen_flags: <defaults>
</compile_context>

<pallas_src>
import jax
import jax.numpy as jnp
from jax.experimental import pallas as pl
from jax.experimental.pallas import tpu as pltpu


# -----------------------------------------------------------------------------
# Fused kernel: all encoder layers + CLS pooling + both classifier heads.
# Grid: (num_layers,), "arbitrary" (sequential carry through VMEM scratch).
# -----------------------------------------------------------------------------
def fused_backbone_heads_kernel(
    x_hbm_ref,    # [B, S, H] bf16  embedded input, memory_space=ANY (HBM)
    maskb_ref,    # [B, 1, S] f32   additive key-mask bias ((mask-1)*1e9)
    wqkv_ref,     # [H, 3H]   bf16  fused Q/K/V projection (per layer)
    bqkv_ref,     # [1, 3H]   f32
    wo_ref,       # [H, H]    bf16
    wff1_ref,     # [H, F]    bf16
    bff1_ref,     # [1, F]    f32
    wff2_ref,     # [F, H]    bf16
    vec_ref,      # [6, H]    f32   rows: b_o, ln1_g, ln1_b, b_ff2, ln2_g, ln2_b
    wheads_ref,   # [H, P]    bf16  both classifier heads, fused + lane-padded
    bheads_ref,   # [1, P]    f32
    out_ref,      # [B, P]    f32   fused head logits (written at last layer)
    h_scratch,    # VMEM [B, S, H] bf16 resident activations
    dma_sem,      # DMA semaphore for the one-shot x -> scratch copy
):
    layer = pl.program_id(0)
    num_layers = pl.num_programs(0)

    # One-shot DMA of the embedded input into the resident activation scratch.
    @pl.when(layer == 0)
    def _():
        cp = pltpu.make_async_copy(x_hbm_ref, h_scratch, dma_sem)
        cp.start()
        cp.wait()

    x_bf = h_scratch[...]                              # [B, S, H] bf16
    B, S, H = x_bf.shape
    N = B * S
    x2 = x_bf.reshape(N, H)                            # bf16 MXU operand

    vecs = vec_ref[...]                                # [6, H] f32
    b_o, ln1_g, ln1_b = vecs[0], vecs[1], vecs[2]
    b_ff2, ln2_g, ln2_b = vecs[3], vecs[4], vecs[5]

    # --- fused Q/K/V projection: one [N,H] x [H,3H] bf16 MXU pass -------------
    qkv = jnp.dot(x2, wqkv_ref[...],
                  preferred_element_type=jnp.float32) + bqkv_ref[...]
    # H % 128 == 0 -> lane-tile-aligned slices (no relayout copies).
    q = qkv[:, :H].astype(jnp.bfloat16).reshape(B, S, H)
    k = qkv[:, H:2 * H].astype(jnp.bfloat16).reshape(B, S, H)
    v = qkv[:, 2 * H:].astype(jnp.bfloat16).reshape(B, S, H)

    # --- single-head self-attention (batched, bf16 MXU, f32 softmax) ----------
    scale = 1.0 / jnp.sqrt(jnp.float32(H))
    scores = jnp.einsum('bqd,bkd->bqk', q, k,
                        preferred_element_type=jnp.float32) * scale
    scores = scores + maskb_ref[...]                   # broadcast over query rows

    scores = scores - jnp.max(scores, axis=-1, keepdims=True)
    p = jnp.exp(scores)
    p = p * pl.reciprocal(jnp.sum(p, axis=-1, keepdims=True), approx=True)

    attn = jnp.einsum('bqk,bkd->bqd', p.astype(jnp.bfloat16), v,
                      preferred_element_type=jnp.float32).reshape(N, H)
    attn = jnp.dot(attn.astype(jnp.bfloat16), wo_ref[...],
                   preferred_element_type=jnp.float32) + b_o

    # --- residual + LayerNorm 1 (f32, single-pass variance) -------------------
    h = x2.astype(jnp.float32) + attn
    mu = jnp.mean(h, axis=-1, keepdims=True)
    var = jnp.mean(h * h, axis=-1, keepdims=True) - mu * mu
    h = (h - mu) * jax.lax.rsqrt(var + 1e-5) * ln1_g + ln1_b

    # --- feed-forward (H -> F -> H, GELU), bf16 operands / f32 accum ----------
    f = jnp.dot(h.astype(jnp.bfloat16), wff1_ref[...],
                preferred_element_type=jnp.float32) + bff1_ref[...]
    f = jax.nn.gelu(f, approximate=True)
    f = jnp.dot(f.astype(jnp.bfloat16), wff2_ref[...],
                preferred_element_type=jnp.float32) + b_ff2

    # --- residual + LayerNorm 2 ------------------------------------------------
    h2 = h + f
    mu2 = jnp.mean(h2, axis=-1, keepdims=True)
    var2 = jnp.mean(h2 * h2, axis=-1, keepdims=True) - mu2 * mu2
    out = (h2 - mu2) * jax.lax.rsqrt(var2 + 1e-5) * ln2_g + ln2_b   # [N, H] f32

    h_scratch[...] = out.astype(jnp.bfloat16).reshape(B, S, H)

    # --- last layer: fused CLS pooling + both classifier heads ----------------
    @pl.when(layer == num_layers - 1)
    def _():
        pooled = out.reshape(B, S, H)[:, 0, :].astype(jnp.bfloat16)   # [B, H]
        logits = jnp.dot(pooled, wheads_ref[...],
                         preferred_element_type=jnp.float32) + bheads_ref[...]
        out_ref[...] = logits.astype(out_ref.dtype)


# -----------------------------------------------------------------------------
# VMEM budget: 2x (double-buffered) per-layer weights + resident scratch +
# largest f32 intermediates, with headroom; clamped to a sane range.
# -----------------------------------------------------------------------------
def _vmem_limit_bytes(B, S, H, F, n_out_pad):
    N = B * S
    w_layer = (H * 3 * H + H * H + 2 * H * F) * 2              # bf16 weights
    b_layer = (3 * H + F + 6 * H) * 4                          # f32 biases / LN
    heads = H * n_out_pad * 2 + n_out_pad * 4
    mask = B * S * 4
    scratch = B * S * H * 2
    interm = (N * 3 * H + N * F + B * S * S + 4 * N * H) * 4   # f32 temporaries
    est = 2 * (w_layer + b_layer) + 2 * (heads + mask) + scratch + interm
    est = int(est * 1.5) + (4 << 20)
    return max(32 << 20, min(est, 100 << 20))


# -----------------------------------------------------------------------------
# Wrapper
# -----------------------------------------------------------------------------
def fused_transformer(x_bf16, mask_bias, params):
    """x_bf16: [B,S,H] bf16 embedded input; mask_bias: [B,1,S] f32 additive bias.

    Returns fused (lane-padded) head logits [B, P] f32.
    """
    B, S, H = x_bf16.shape
    L = params["w_qkv"].shape[0]
    F = params["w_ff1"].shape[-1]
    n_out_pad = params["w_heads"].shape[-1]
    N = B * S

    in_specs = [
        pl.BlockSpec(memory_space=pl.ANY),                    # x: stays in HBM
        pl.BlockSpec((B, 1, S), lambda l: (0, 0, 0)),         # mask bias
        pl.BlockSpec((None, H, 3 * H), lambda l: (l, 0, 0)),  # w_qkv
        pl.BlockSpec((None, 1, 3 * H), lambda l: (l, 0, 0)),  # b_qkv
        pl.BlockSpec((None, H, H), lambda l: (l, 0, 0)),      # w_o
        pl.BlockSpec((None, H, F), lambda l: (l, 0, 0)),      # w_ff1
        pl.BlockSpec((None, 1, F), lambda l: (l, 0, 0)),      # b_ff1
        pl.BlockSpec((None, F, H), lambda l: (l, 0, 0)),      # w_ff2
        pl.BlockSpec((None, 6, H), lambda l: (l, 0, 0)),      # packed vectors
        pl.BlockSpec((H, n_out_pad), lambda l: (0, 0)),       # fused head weights
        pl.BlockSpec((1, n_out_pad), lambda l: (0, 0)),       # fused head bias
    ]

    w_layer_bytes = (H * 3 * H + H * H + 2 * H * F) * 2
    flops = 2 * L * N * H * (4 * H + 2 * F) + 4 * L * B * S * S * H \
        + 2 * B * H * n_out_pad
    transcendentals = L * (N * F + B * S * S)
    bytes_accessed = L * w_layer_bytes + H * n_out_pad * 2 \
        + 2 * B * S * H * 2 + B * n_out_pad * 4

    return pl.pallas_call(
        fused_backbone_heads_kernel,
        out_shape=jax.ShapeDtypeStruct((B, n_out_pad), jnp.float32),
        grid=(L,),
        in_specs=in_specs,
        out_specs=pl.BlockSpec((B, n_out_pad), lambda l: (0, 0)),
        scratch_shapes=[
            pltpu.VMEM((B, S, H), jnp.bfloat16),      # resident activations
            pltpu.SemaphoreType.DMA(()),              # one-shot x copy
        ],
        compiler_params=pltpu.CompilerParams(
            dimension_semantics=("arbitrary",),       # sequential layer carry
            vmem_limit_bytes=_vmem_limit_bytes(B, S, H, F, n_out_pad)),
        cost_estimate=pl.CostEstimate(
            flops=int(flops),
            transcendentals=int(transcendentals),
            bytes_accessed=int(bytes_accessed)),
    )(
        x_bf16, mask_bias,
        params["w_qkv"], params["b_qkv"], params["w_o"],
        params["w_ff1"], params["b_ff1"], params["w_ff2"], params["vec_h"],
        params["w_heads"], params["b_heads"],
    )


# -----------------------------------------------------------------------------
# Parameter construction (deterministic, synthetic) — stacked per-layer layout,
# bf16 matmul weights, f32 biases / LayerNorm params.
# -----------------------------------------------------------------------------
def init_params(key, *, vocab, max_seq, hidden, ffn, num_layers,
                num_labels_a, num_labels_b, head_lane_pad=128):
    params = {}
    k_emb, k_pos, key = jax.random.split(key, 3)
    params["tok_emb"] = 0.02 * jax.random.normal(k_emb, (vocab, hidden), jnp.float32)
    params["pos_emb"] = 0.02 * jax.random.normal(k_pos, (max_seq, hidden), jnp.float32)

    zeros_h = jnp.zeros((hidden,), jnp.float32)
    ones_h = jnp.ones((hidden,), jnp.float32)

    w_qkv, b_qkv, w_o, w_ff1, b_ff1, w_ff2, vec_h = [], [], [], [], [], [], []
    for _ in range(num_layers):
        keys = jax.random.split(key, 7)
        key = keys[0]
        wq = 0.02 * jax.random.normal(keys[1], (hidden, hidden), jnp.float32)
        wk = 0.02 * jax.random.normal(keys[2], (hidden, hidden), jnp.float32)
        wv = 0.02 * jax.random.normal(keys[3], (hidden, hidden), jnp.float32)
        wo = 0.02 * jax.random.normal(keys[4], (hidden, hidden), jnp.float32)
        wff1 = 0.02 * jax.random.normal(keys[5], (hidden, ffn), jnp.float32)
        wff2 = 0.02 * jax.random.normal(keys[6], (ffn, hidden), jnp.float32)

        w_qkv.append(jnp.concatenate([wq, wk, wv], axis=1).astype(jnp.bfloat16))
        b_qkv.append(jnp.zeros((1, 3 * hidden), jnp.float32))
        w_o.append(wo.astype(jnp.bfloat16))
        w_ff1.append(wff1.astype(jnp.bfloat16))
        b_ff1.append(jnp.zeros((1, ffn), jnp.float32))
        w_ff2.append(wff2.astype(jnp.bfloat16))
        # rows: b_o, ln1_gamma, ln1_beta, b_ff2, ln2_gamma, ln2_beta
        vec_h.append(jnp.stack(
            [zeros_h, ones_h, zeros_h, zeros_h, ones_h, zeros_h], axis=0))

    params["w_qkv"] = jnp.stack(w_qkv)      # [L, H, 3H] bf16
    params["b_qkv"] = jnp.stack(b_qkv)      # [L, 1, 3H] f32
    params["w_o"] = jnp.stack(w_o)          # [L, H, H]  bf16
    params["w_ff1"] = jnp.stack(w_ff1)      # [L, H, F]  bf16
    params["b_ff1"] = jnp.stack(b_ff1)      # [L, 1, F]  f32
    params["w_ff2"] = jnp.stack(w_ff2)      # [L, F, H]  bf16
    params["vec_h"] = jnp.stack(vec_h)      # [L, 6, H]  f32

    ka, kb = jax.random.split(key)
    wa = 0.02 * jax.random.normal(ka, (hidden, num_labels_a), jnp.float32)
    wb = 0.02 * jax.random.normal(kb, (hidden, num_labels_b), jnp.float32)
    n_out = num_labels_a + num_labels_b
    n_out_pad = ((n_out + head_lane_pad - 1) // head_lane_pad) * head_lane_pad
    w_heads = jnp.concatenate([wa, wb], axis=1)                   # [H, La+Lb]
    w_heads = jnp.pad(w_heads, ((0, 0), (0, n_out_pad - n_out)))  # lane-dense
    params["w_heads"] = w_heads.astype(jnp.bfloat16)              # [H, P]
    params["b_heads"] = jnp.zeros((1, n_out_pad), jnp.float32)
    params["num_labels_a"] = num_labels_a
    params["num_labels_b"] = num_labels_b
    return params


def multi_task_forward(params, input_ids, attention_mask):
    """input_ids: [B, S] int32; attention_mask: [B, S] (1 = attend, 0 = pad)."""
    B, S = input_ids.shape
    # Embedding lookup + positions (glue, plain JAX), then cast to bf16.
    x = jnp.take(params["tok_emb"], input_ids, axis=0)               # [B, S, H]
    x = x + params["pos_emb"][None, :S, :]
    x = x.astype(jnp.bfloat16)
    # Additive key-mask bias, f32, broadcast over query rows inside the kernel.
    mask_bias = (attention_mask.astype(jnp.float32) - 1.0)[:, None, :] * 1e9

    logits = fused_transformer(x, mask_bias, params)                 # [B, P]
    na = params["num_labels_a"]
    nb = params["num_labels_b"]
    return logits[:, :na], logits[:, na:na + nb]


# -----------------------------------------------------------------------------
# Main
# -----------------------------------------------------------------------------
if __name__ == "__main__":
    # Lane/MXU-aligned small shapes (S, H multiples of 128).
    B, S, H = 2, 128, 128
    VOCAB, FFN, NUM_LAYERS = 100, 512, 2
    NUM_LABELS_A, NUM_LABELS_B = 3, 5

    key = jax.random.PRNGKey(0)
    k_params, k_ids = jax.random.split(key)

    params = init_params(
        k_params, vocab=VOCAB, max_seq=S, hidden=H, ffn=FFN,
        num_layers=NUM_LAYERS,
        num_labels_a=NUM_LABELS_A, num_labels_b=NUM_LABELS_B)

    input_ids = jax.random.randint(k_ids, (B, S), 0, VOCAB, dtype=jnp.int32)
    attention_mask = jnp.ones((B, S), jnp.int32).at[1, 96:].set(0)  # pad tail of item 1

    out_a, out_b = multi_task_forward(params, input_ids, attention_mask)
    jax.block_until_ready((out_a, out_b))

    assert out_a.shape == (B, NUM_LABELS_A) and out_b.shape == (B, NUM_LABELS_B)
    assert jnp.all(jnp.isfinite(out_a)) and jnp.all(jnp.isfinite(out_b))
    print("KERNEL_OK")
</pallas_src>

<mosaic_0001>
module attributes {stable_mosaic.version = 11 : i64} {
  func.func @fused_backbone_heads_kernel(%arg0: i32, %arg1: memref<2x128x128xbf16, #tpu.memory_space<any>>, %arg2: memref<2x1x128xf32, #tpu.memory_space<vmem>>, %arg3: memref<1x128x384xbf16, #tpu.memory_space<vmem>>, %arg4: memref<1x1x384xf32, #tpu.memory_space<vmem>>, %arg5: memref<1x128x128xbf16, #tpu.memory_space<vmem>>, %arg6: memref<1x128x512xbf16, #tpu.memory_space<vmem>>, %arg7: memref<1x1x512xf32, #tpu.memory_space<vmem>>, %arg8: memref<1x512x128xbf16, #tpu.memory_space<vmem>>, %arg9: memref<1x6x128xf32, #tpu.memory_space<vmem>>, %arg10: memref<128x128xbf16, #tpu.memory_space<vmem>>, %arg11: memref<1x128xf32, #tpu.memory_space<vmem>>, %arg12: memref<2x128xf32, #tpu.memory_space<vmem>>, %arg13: memref<2x128x128xbf16, #tpu.memory_space<vmem>>, %arg14: memref<!tpu.dma_semaphore, #tpu.memory_space<semaphore_mem>>) attributes {dimension_semantics = [#tpu.dimension_semantics<arbitrary>], iteration_bounds = array<i64: 2>, scalar_prefetch = 0 : i64, scratch_operands = 2 : i64, tpu.core_type = #tpu.core_type<tc>, window_params = [{}, {pipeline_mode = #tpu.pipeline_mode<synchronous>, transform_indices = @transform_1, window_bounds = array<i64: 2, 1, 128>}, {transform_indices = @transform_2, window_bounds = array<i64: 1, 128, 384>}, {transform_indices = @transform_3, window_bounds = array<i64: 1, 1, 384>}, {transform_indices = @transform_4, window_bounds = array<i64: 1, 128, 128>}, {transform_indices = @transform_5, window_bounds = array<i64: 1, 128, 512>}, {transform_indices = @transform_6, window_bounds = array<i64: 1, 1, 512>}, {transform_indices = @transform_7, window_bounds = array<i64: 1, 512, 128>}, {transform_indices = @transform_8, window_bounds = array<i64: 1, 6, 128>}, {pipeline_mode = #tpu.pipeline_mode<synchronous>, transform_indices = @transform_9, window_bounds = array<i64: 128, 128>}, {pipeline_mode = #tpu.pipeline_mode<synchronous>, transform_indices = @transform_10, window_bounds = array<i64: 1, 128>}, {pipeline_mode = #tpu.pipeline_mode<synchronous>, transform_indices = @transform_11, window_bounds = array<i64: 2, 128>}]} {
    %c0_i32 = arith.constant 0 : i32
    %0 = arith.cmpi eq, %arg0, %c0_i32 : i32
    %1 = arith.extui %0 : i1 to i32
    %c0_i32_0 = arith.constant 0 : i32
    %2 = arith.cmpi ne, %1, %c0_i32_0 : i32
    scf.if %2 {
      tpu.enqueue_dma source(%arg1 : memref<2x128x128xbf16, #tpu.memory_space<any>>) target(%arg13 : memref<2x128x128xbf16, #tpu.memory_space<vmem>>) target_semaphore(%arg14 : memref<!tpu.dma_semaphore, #tpu.memory_space<semaphore_mem>>)
      tpu.wait_dma2 semaphore(%arg14 : memref<!tpu.dma_semaphore, #tpu.memory_space<semaphore_mem>>) src(%arg1 : memref<2x128x128xbf16, #tpu.memory_space<any>>) dst(%arg13 : memref<2x128x128xbf16, #tpu.memory_space<vmem>>)
    } else {
    }
    %c0 = arith.constant 0 : index
    %c0_1 = arith.constant 0 : index
    %c0_2 = arith.constant 0 : index
    %3 = vector.load %arg13[%c0, %c0_1, %c0_2] : memref<2x128x128xbf16, #tpu.memory_space<vmem>>, vector<2x128x128xbf16>
    %4 = vector.shape_cast %3 : vector<2x128x128xbf16> to vector<256x128xbf16>
    %c0_3 = arith.constant 0 : index
    %c0_4 = arith.constant 0 : index
    %c0_5 = arith.constant 0 : index
    %5 = vector.load %arg9[%c0_3, %c0_4, %c0_5] : memref<1x6x128xf32, #tpu.memory_space<vmem>>, vector<1x6x128xf32>
    %6 = vector.shape_cast %5 : vector<1x6x128xf32> to vector<6x128xf32>
    %7 = vector.extract_strided_slice %6 {offsets = [0, 0], sizes = [1, 128], strides = [1, 1]} : vector<6x128xf32> to vector<1x128xf32>
    %8 = vector.shape_cast %7 : vector<1x128xf32> to vector<128xf32>
    %9 = vector.extract_strided_slice %6 {offsets = [1, 0], sizes = [1, 128], strides = [1, 1]} : vector<6x128xf32> to vector<1x128xf32>
    %10 = vector.shape_cast %9 : vector<1x128xf32> to vector<128xf32>
    %11 = vector.extract_strided_slice %6 {offsets = [2, 0], sizes = [1, 128], strides = [1, 1]} : vector<6x128xf32> to vector<1x128xf32>
    %12 = vector.shape_cast %11 : vector<1x128xf32> to vector<128xf32>
    %13 = vector.extract_strided_slice %6 {offsets = [3, 0], sizes = [1, 128], strides = [1, 1]} : vector<6x128xf32> to vector<1x128xf32>
    %14 = vector.shape_cast %13 : vector<1x128xf32> to vector<128xf32>
    %15 = vector.extract_strided_slice %6 {offsets = [4, 0], sizes = [1, 128], strides = [1, 1]} : vector<6x128xf32> to vector<1x128xf32>
    %16 = vector.shape_cast %15 : vector<1x128xf32> to vector<128xf32>
    %17 = vector.extract_strided_slice %6 {offsets = [5, 0], sizes = [1, 128], strides = [1, 1]} : vector<6x128xf32> to vector<1x128xf32>
    %18 = vector.shape_cast %17 : vector<1x128xf32> to vector<128xf32>
    %c0_6 = arith.constant 0 : index
    %c0_7 = arith.constant 0 : index
    %c0_8 = arith.constant 0 : index
    %19 = vector.load %arg3[%c0_6, %c0_7, %c0_8] : memref<1x128x384xbf16, #tpu.memory_space<vmem>>, vector<1x128x384xbf16>
    %20 = vector.shape_cast %19 : vector<1x128x384xbf16> to vector<128x384xbf16>
    %cst = arith.constant dense<0.000000e+00> : vector<256x384xf32>
    %21 = tpu.matmul %4, %20, %cst {dimension_numbers = #tpu.dot_dimension_numbers<[1], [0], [0], [1], [0, 0, 1, 1], [], []>} : vector<256x128xbf16>, vector<128x384xbf16>, vector<256x384xf32> -> vector<256x384xf32>
    %c0_9 = arith.constant 0 : index
    %c0_10 = arith.constant 0 : index
    %c0_11 = arith.constant 0 : index
    %22 = vector.load %arg4[%c0_9, %c0_10, %c0_11] : memref<1x1x384xf32, #tpu.memory_space<vmem>>, vector<1x1x384xf32>
    %23 = vector.shape_cast %22 : vector<1x1x384xf32> to vector<1x384xf32>
    %24 = vector.broadcast %23 : vector<1x384xf32> to vector<256x384xf32>
    %25 = arith.addf %21, %24 : vector<256x384xf32>
    %26 = vector.extract_strided_slice %25 {offsets = [0, 0], sizes = [256, 128], strides = [1, 1]} : vector<256x384xf32> to vector<256x128xf32>
    %27 = arith.truncf %26 : vector<256x128xf32> to vector<256x128xbf16>
    %28 = vector.shape_cast %27 : vector<256x128xbf16> to vector<2x128x128xbf16>
    %29 = vector.extract_strided_slice %25 {offsets = [0, 128], sizes = [256, 128], strides = [1, 1]} : vector<256x384xf32> to vector<256x128xf32>
    %30 = arith.truncf %29 : vector<256x128xf32> to vector<256x128xbf16>
    %31 = vector.shape_cast %30 : vector<256x128xbf16> to vector<2x128x128xbf16>
    %32 = vector.extract_strided_slice %25 {offsets = [0, 256], sizes = [256, 128], strides = [1, 1]} : vector<256x384xf32> to vector<256x128xf32>
    %33 = arith.truncf %32 : vector<256x128xf32> to vector<256x128xbf16>
    %34 = vector.shape_cast %33 : vector<256x128xbf16> to vector<2x128x128xbf16>
    %cst_12 = arith.constant 1.280000e+02 : f32
    %35 = math.sqrt %cst_12 : f32
    %cst_13 = arith.constant 1.000000e+00 : f32
    %36 = arith.divf %cst_13, %35 : f32
    "tpu.trace_start"() <{level = 10 : i32, message = "bqd,bkd->bqk"}> : () -> ()
    %cst_14 = arith.constant dense<0.000000e+00> : vector<2x128x128xf32>
    %37 = tpu.matmul %28, %31, %cst_14 {dimension_numbers = #tpu.dot_dimension_numbers<[2], [2], [1], [1], [0, 0, 0, 1, 1, 1], [0], [0]>} : vector<2x128x128xbf16>, vector<2x128x128xbf16>, vector<2x128x128xf32> -> vector<2x128x128xf32>
    "tpu.trace_stop"() : () -> ()
    %38 = vector.broadcast %36 : f32 to vector<2x128x128xf32>
    %39 = arith.mulf %37, %38 : vector<2x128x128xf32>
    %c0_15 = arith.constant 0 : index
    %c0_16 = arith.constant 0 : index
    %c0_17 = arith.constant 0 : index
    %40 = vector.load %arg2[%c0_15, %c0_16, %c0_17] : memref<2x1x128xf32, #tpu.memory_space<vmem>>, vector<2x1x128xf32>
    %41 = vector.broadcast %40 : vector<2x1x128xf32> to vector<2x128x128xf32>
    %42 = arith.addf %39, %41 : vector<2x128x128xf32>
    %cst_18 = arith.constant dense<0xFF800000> : vector<2x128xf32>
    %43 = vector.multi_reduction <maximumf>, %42, %cst_18 [2] : vector<2x128x128xf32> to vector<2x128xf32>
    %44 = vector.shape_cast %43 : vector<2x128xf32> to vector<2x128x1xf32>
    %45 = vector.broadcast %44 : vector<2x128x1xf32> to vector<2x128x128xf32>
    %46 = arith.subf %42, %45 : vector<2x128x128xf32>
    %47 = math.exp %46 : vector<2x128x128xf32>
    %cst_19 = arith.constant dense<0.000000e+00> : vector<2x128xf32>
    %48 = vector.multi_reduction <add>, %47, %cst_19 [2] : vector<2x128x128xf32> to vector<2x128xf32>
    %49 = vector.shape_cast %48 : vector<2x128xf32> to vector<2x128x1xf32>
    %50 = tpu.reciprocal %49 {approx = true} : vector<2x128x1xf32> -> vector<2x128x1xf32>
    %51 = vector.broadcast %50 : vector<2x128x1xf32> to vector<2x128x128xf32>
    %52 = arith.mulf %47, %51 : vector<2x128x128xf32>
    %53 = arith.truncf %52 : vector<2x128x128xf32> to vector<2x128x128xbf16>
    "tpu.trace_start"() <{level = 10 : i32, message = "bqk,bkd->bqd"}> : () -> ()
    %cst_20 = arith.constant dense<0.000000e+00> : vector<2x128x128xf32>
    %54 = tpu.matmul %53, %34, %cst_20 {dimension_numbers = #tpu.dot_dimension_numbers<[2], [1], [1], [2], [0, 0, 0, 1, 1, 2], [0], [0]>} : vector<2x128x128xbf16>, vector<2x128x128xbf16>, vector<2x128x128xf32> -> vector<2x128x128xf32>
    "tpu.trace_stop"() : () -> ()
    %55 = vector.shape_cast %54 : vector<2x128x128xf32> to vector<256x128xf32>
    %56 = arith.truncf %55 : vector<256x128xf32> to vector<256x128xbf16>
    %c0_21 = arith.constant 0 : index
    %c0_22 = arith.constant 0 : index
    %c0_23 = arith.constant 0 : index
    %57 = vector.load %arg5[%c0_21, %c0_22, %c0_23] : memref<1x128x128xbf16, #tpu.memory_space<vmem>>, vector<1x128x128xbf16>
    %58 = vector.shape_cast %57 : vector<1x128x128xbf16> to vector<128x128xbf16>
    %cst_24 = arith.constant dense<0.000000e+00> : vector<256x128xf32>
    %59 = tpu.matmul %56, %58, %cst_24 {dimension_numbers = #tpu.dot_dimension_numbers<[1], [0], [0], [1], [0, 0, 1, 1], [], []>} : vector<256x128xbf16>, vector<128x128xbf16>, vector<256x128xf32> -> vector<256x128xf32>
    %60 = vector.shape_cast %8 : vector<128xf32> to vector<1x128xf32>
    %61 = vector.broadcast %60 : vector<1x128xf32> to vector<256x128xf32>
    %62 = arith.addf %59, %61 : vector<256x128xf32>
    %63 = arith.extf %4 : vector<256x128xbf16> to vector<256x128xf32>
    %64 = arith.addf %63, %62 : vector<256x128xf32>
    %cst_25 = arith.constant dense<0.000000e+00> : vector<256xf32>
    %65 = vector.multi_reduction <add>, %64, %cst_25 [1] : vector<256x128xf32> to vector<256xf32>
    %66 = vector.shape_cast %65 : vector<256xf32> to vector<256x1xf32>
    %cst_26 = arith.constant 1.280000e+02 : f32
    %67 = vector.broadcast %cst_26 : f32 to vector<256x1xf32>
    %68 = arith.divf %66, %67 : vector<256x1xf32>
    %69 = arith.mulf %64, %64 : vector<256x128xf32>
    %cst_27 = arith.constant dense<0.000000e+00> : vector<256xf32>
    %70 = vector.multi_reduction <add>, %69, %cst_27 [1] : vector<256x128xf32> to vector<256xf32>
    %71 = vector.shape_cast %70 : vector<256xf32> to vector<256x1xf32>
    %cst_28 = arith.constant 1.280000e+02 : f32
    %72 = vector.broadcast %cst_28 : f32 to vector<256x1xf32>
    %73 = arith.divf %71, %72 : vector<256x1xf32>
    %74 = arith.mulf %68, %68 : vector<256x1xf32>
    %75 = arith.subf %73, %74 : vector<256x1xf32>
    %76 = vector.broadcast %68 : vector<256x1xf32> to vector<256x128xf32>
    %77 = arith.subf %64, %76 : vector<256x128xf32>
    %cst_29 = arith.constant 9.99999974E-6 : f32
    %78 = vector.broadcast %cst_29 : f32 to vector<256x1xf32>
    %79 = arith.addf %75, %78 : vector<256x1xf32>
    %80 = math.rsqrt %79 : vector<256x1xf32>
    %81 = vector.broadcast %80 : vector<256x1xf32> to vector<256x128xf32>
    %82 = arith.mulf %77, %81 : vector<256x128xf32>
    %83 = vector.shape_cast %10 : vector<128xf32> to vector<1x128xf32>
    %84 = vector.broadcast %83 : vector<1x128xf32> to vector<256x128xf32>
    %85 = arith.mulf %82, %84 : vector<256x128xf32>
    %86 = vector.shape_cast %12 : vector<128xf32> to vector<1x128xf32>
    %87 = vector.broadcast %86 : vector<1x128xf32> to vector<256x128xf32>
    %88 = arith.addf %85, %87 : vector<256x128xf32>
    %89 = arith.truncf %88 : vector<256x128xf32> to vector<256x128xbf16>
    %c0_30 = arith.constant 0 : index
    %c0_31 = arith.constant 0 : index
    %c0_32 = arith.constant 0 : index
    %90 = vector.load %arg6[%c0_30, %c0_31, %c0_32] : memref<1x128x512xbf16, #tpu.memory_space<vmem>>, vector<1x128x512xbf16>
    %91 = vector.shape_cast %90 : vector<1x128x512xbf16> to vector<128x512xbf16>
    %cst_33 = arith.constant dense<0.000000e+00> : vector<256x512xf32>
    %92 = tpu.matmul %89, %91, %cst_33 {dimension_numbers = #tpu.dot_dimension_numbers<[1], [0], [0], [1], [0, 0, 1, 1], [], []>} : vector<256x128xbf16>, vector<128x512xbf16>, vector<256x512xf32> -> vector<256x512xf32>
    %c0_34 = arith.constant 0 : index
    %c0_35 = arith.constant 0 : index
    %c0_36 = arith.constant 0 : index
    %93 = vector.load %arg7[%c0_34, %c0_35, %c0_36] : memref<1x1x512xf32, #tpu.memory_space<vmem>>, vector<1x1x512xf32>
    %94 = vector.shape_cast %93 : vector<1x1x512xf32> to vector<1x512xf32>
    %95 = vector.broadcast %94 : vector<1x512xf32> to vector<256x512xf32>
    %96 = arith.addf %92, %95 : vector<256x512xf32>
    %97 = arith.mulf %96, %96 : vector<256x512xf32>
    %98 = arith.mulf %96, %97 : vector<256x512xf32>
    %cst_37 = arith.constant 4.471500e-02 : f32
    %99 = vector.broadcast %cst_37 : f32 to vector<256x512xf32>
    %100 = arith.mulf %99, %98 : vector<256x512xf32>
    %101 = arith.addf %96, %100 : vector<256x512xf32>
    %cst_38 = arith.constant 0.797884583 : f32
    %102 = vector.broadcast %cst_38 : f32 to vector<256x512xf32>
    %103 = arith.mulf %102, %101 : vector<256x512xf32>
    %104 = math.tanh %103 : vector<256x512xf32>
    %cst_39 = arith.constant 1.000000e+00 : f32
    %105 = vector.broadcast %cst_39 : f32 to vector<256x512xf32>
    %106 = arith.addf %105, %104 : vector<256x512xf32>
    %cst_40 = arith.constant 5.000000e-01 : f32
    %107 = vector.broadcast %cst_40 : f32 to vector<256x512xf32>
    %108 = arith.mulf %107, %106 : vector<256x512xf32>
    %109 = arith.mulf %96, %108 : vector<256x512xf32>
    %110 = arith.truncf %109 : vector<256x512xf32> to vector<256x512xbf16>
    %c0_41 = arith.constant 0 : index
    %c0_42 = arith.constant 0 : index
    %c0_43 = arith.constant 0 : index
    %111 = vector.load %arg8[%c0_41, %c0_42, %c0_43] : memref<1x512x128xbf16, #tpu.memory_space<vmem>>, vector<1x512x128xbf16>
    %112 = vector.shape_cast %111 : vector<1x512x128xbf16> to vector<512x128xbf16>
    %cst_44 = arith.constant dense<0.000000e+00> : vector<256x128xf32>
    %113 = tpu.matmul %110, %112, %cst_44 {dimension_numbers = #tpu.dot_dimension_numbers<[1], [0], [0], [1], [0, 0, 1, 1], [], []>} : vector<256x512xbf16>, vector<512x128xbf16>, vector<256x128xf32> -> vector<256x128xf32>
    %114 = vector.shape_cast %14 : vector<128xf32> to vector<1x128xf32>
    %115 = vector.broadcast %114 : vector<1x128xf32> to vector<256x128xf32>
    %116 = arith.addf %113, %115 : vector<256x128xf32>
    %117 = arith.addf %88, %116 : vector<256x128xf32>
    %cst_45 = arith.constant dense<0.000000e+00> : vector<256xf32>
    %118 = vector.multi_reduction <add>, %117, %cst_45 [1] : vector<256x128xf32> to vector<256xf32>
    %119 = vector.shape_cast %118 : vector<256xf32> to vector<256x1xf32>
    %cst_46 = arith.constant 1.280000e+02 : f32
    %120 = vector.broadcast %cst_46 : f32 to vector<256x1xf32>
    %121 = arith.divf %119, %120 : vector<256x1xf32>
    %122 = arith.mulf %117, %117 : vector<256x128xf32>
    %cst_47 = arith.constant dense<0.000000e+00> : vector<256xf32>
    %123 = vector.multi_reduction <add>, %122, %cst_47 [1] : vector<256x128xf32> to vector<256xf32>
    %124 = vector.shape_cast %123 : vector<256xf32> to vector<256x1xf32>
    %cst_48 = arith.constant 1.280000e+02 : f32
    %125 = vector.broadcast %cst_48 : f32 to vector<256x1xf32>
    %126 = arith.divf %124, %125 : vector<256x1xf32>
    %127 = arith.mulf %121, %121 : vector<256x1xf32>
    %128 = arith.subf %126, %127 : vector<256x1xf32>
    %129 = vector.broadcast %121 : vector<256x1xf32> to vector<256x128xf32>
    %130 = arith.subf %117, %129 : vector<256x128xf32>
    %cst_49 = arith.constant 9.99999974E-6 : f32
    %131 = vector.broadcast %cst_49 : f32 to vector<256x1xf32>
    %132 = arith.addf %128, %131 : vector<256x1xf32>
    %133 = math.rsqrt %132 : vector<256x1xf32>
    %134 = vector.broadcast %133 : vector<256x1xf32> to vector<256x128xf32>
    %135 = arith.mulf %130, %134 : vector<256x128xf32>
    %136 = vector.shape_cast %16 : vector<128xf32> to vector<1x128xf32>
    %137 = vector.broadcast %136 : vector<1x128xf32> to vector<256x128xf32>
    %138 = arith.mulf %135, %137 : vector<256x128xf32>
    %139 = vector.shape_cast %18 : vector<128xf32> to vector<1x128xf32>
    %140 = vector.broadcast %139 : vector<1x128xf32> to vector<256x128xf32>
    %141 = arith.addf %138, %140 : vector<256x128xf32>
    %142 = arith.truncf %141 : vector<256x128xf32> to vector<256x128xbf16>
    %143 = vector.shape_cast %142 : vector<256x128xbf16> to vector<2x128x128xbf16>
    %c0_50 = arith.constant 0 : index
    %c0_51 = arith.constant 0 : index
    %c0_52 = arith.constant 0 : index
    %144 = vector.load %arg13[%c0_50, %c0_51, %c0_52] : memref<2x128x128xbf16, #tpu.memory_space<vmem>>, vector<2x128x128xbf16>
    tpu.vector_store %arg13[%c0_50, %c0_51, %c0_52], %143 {strides = array<i32>} : memref<2x128x128xbf16, #tpu.memory_space<vmem>>, vector<2x128x128xbf16>,
    %c1_i32 = arith.constant 1 : i32
    %145 = arith.cmpi eq, %arg0, %c1_i32 : i32
    %146 = arith.extui %145 : i1 to i32
    %c0_i32_53 = arith.constant 0 : i32
    %147 = arith.cmpi ne, %146, %c0_i32_53 : i32
    scf.if %147 {
      %148 = vector.shape_cast %141 : vector<256x128xf32> to vector<2x128x128xf32>
      %149 = vector.extract_strided_slice %148 {offsets = [0, 0, 0], sizes = [2, 1, 128], strides = [1, 1, 1]} : vector<2x128x128xf32> to vector<2x1x128xf32>
      %150 = vector.shape_cast %149 : vector<2x1x128xf32> to vector<2x128xf32>
      %151 = arith.truncf %150 : vector<2x128xf32> to vector<2x128xbf16>
      %c0_54 = arith.constant 0 : index
      %c0_55 = arith.constant 0 : index
      %152 = vector.load %arg10[%c0_54, %c0_55] : memref<128x128xbf16, #tpu.memory_space<vmem>>, vector<128x128xbf16>
      %cst_56 = arith.constant dense<0.000000e+00> : vector<2x128xf32>
      %153 = tpu.matmul %151, %152, %cst_56 {dimension_numbers = #tpu.dot_dimension_numbers<[1], [0], [0], [1], [0, 0, 1, 1], [], []>} : vector<2x128xbf16>, vector<128x128xbf16>, vector<2x128xf32> -> vector<2x128xf32>
      %c0_57 = arith.constant 0 : index
      %c0_58 = arith.constant 0 : index
      %154 = vector.load %arg11[%c0_57, %c0_58] : memref<1x128xf32, #tpu.memory_space<vmem>>, vector<1x128xf32>
      %155 = vector.broadcast %154 : vector<1x128xf32> to vector<2x128xf32>
      %156 = arith.addf %153, %155 : vector<2x128xf32>
      %c0_59 = arith.constant 0 : index
      %c0_60 = arith.constant 0 : index
      %157 = vector.load %arg12[%c0_59, %c0_60] : memref<2x128xf32, #tpu.memory_space<vmem>>, vector<2x128xf32>
      tpu.vector_store %arg12[%c0_59, %c0_60], %156 {strides = array<i32>} : memref<2x128xf32, #tpu.memory_space<vmem>>, vector<2x128xf32>,
    } else {
    }
    return
  }
  func.func @transform_1(%arg0: i32) -> (i32, i32, i32) {
    %c0_i32 = arith.constant 0 : i32
    %c0_i32_0 = arith.constant 0 : i32
    %c0_i32_1 = arith.constant 0 : i32
    %c0_i32_2 = arith.constant 0 : i32
    return %c0_i32, %c0_i32_0, %c0_i32_1 : i32, i32, i32
  }
  func.func @transform_2(%arg0: i32) -> (i32, i32, i32) {
    %c0_i32 = arith.constant 0 : i32
    %c0_i32_0 = arith.constant 0 : i32
    %c0_i32_1 = arith.constant 0 : i32
    return %arg0, %c0_i32, %c0_i32_0 : i32, i32, i32
  }
  func.func @transform_3(%arg0: i32) -> (i32, i32, i32) {
    %c0_i32 = arith.constant 0 : i32
    %c0_i32_0 = arith.constant 0 : i32
    %c0_i32_1 = arith.constant 0 : i32
    return %arg0, %c0_i32, %c0_i32_0 : i32, i32, i32
  }
  func.func @transform_4(%arg0: i32) -> (i32, i32, i32) {
    %c0_i32 = arith.constant 0 : i32
    %c0_i32_0 = arith.constant 0 : i32
    %c0_i32_1 = arith.constant 0 : i32
    return %arg0, %c0_i32, %c0_i32_0 : i32, i32, i32
  }
  func.func @transform_5(%arg0: i32) -> (i32, i32, i32) {
    %c0_i32 = arith.constant 0 : i32
    %c0_i32_0 = arith.constant 0 : i32
    %c0_i32_1 = arith.constant 0 : i32
    return %arg0, %c0_i32, %c0_i32_0 : i32, i32, i32
  }
  func.func @transform_6(%arg0: i32) -> (i32, i32, i32) {
    %c0_i32 = arith.constant 0 : i32
    %c0_i32_0 = arith.constant 0 : i32
    %c0_i32_1 = arith.constant 0 : i32
    return %arg0, %c0_i32, %c0_i32_0 : i32, i32, i32
  }
  func.func @transform_7(%arg0: i32) -> (i32, i32, i32) {
    %c0_i32 = arith.constant 0 : i32
    %c0_i32_0 = arith.constant 0 : i32
    %c0_i32_1 = arith.constant 0 : i32
    return %arg0, %c0_i32, %c0_i32_0 : i32, i32, i32
  }
  func.func @transform_8(%arg0: i32) -> (i32, i32, i32) {
    %c0_i32 = arith.constant 0 : i32
    %c0_i32_0 = arith.constant 0 : i32
    %c0_i32_1 = arith.constant 0 : i32
    return %arg0, %c0_i32, %c0_i32_0 : i32, i32, i32
  }
  func.func @transform_9(%arg0: i32) -> (i32, i32) {
    %c0_i32 = arith.constant 0 : i32
    %c0_i32_0 = arith.constant 0 : i32
    %c0_i32_1 = arith.constant 0 : i32
    return %c0_i32, %c0_i32_0 : i32, i32
  }
  func.func @transform_10(%arg0: i32) -> (i32, i32) {
    %c0_i32 = arith.constant 0 : i32
    %c0_i32_0 = arith.constant 0 : i32
    %c0_i32_1 = arith.constant 0 : i32
    return %c0_i32, %c0_i32_0 : i32, i32
  }
  func.func @transform_11(%arg0: i32) -> (i32, i32) {
    %c0_i32 = arith.constant 0 : i32
    %c0_i32_0 = arith.constant 0 : i32
    %c0_i32_1 = arith.constant 0 : i32
    return %c0_i32, %c0_i32_0 : i32, i32
  }
}

</mosaic_0001>

<bundles_post_ra>
// kernel: tpu_custom_call.1
= control target key start
LH: loop header
LB: loop body
LE: loop exit
PB: predicated region body
PF: predicated region fallthrough
CT: control target
= control target key end

     0   :  { %s11612_s0 = inlined_call_operand.hbm [shape: bf16[2,128,128], index: 0, kind: input, shape index: {}]   ;;  %s11613_s1 = inlined_call_operand.vmem [shape: f32[2,1,128], index: 1, kind: input, shape index: {}]   ;;  %s11614_s2 = inlined_call_operand.hbm [shape: bf16[2,128,384], index: 2, kind: input, shape index: {}]   ;;  %s11615_s3 = inlined_call_operand.vmem [shape: f32[2,1,384], index: 3, kind: input, shape index: {}]   ;;  %s11616_s4 = inlined_call_operand.hbm [shape: bf16[2,128,128], index: 4, kind: input, shape index: {}]   ;;  %s11617_s5 = inlined_call_operand.hbm [shape: bf16[2,128,512], index: 5, kind: input, shape index: {}]   ;;  %s11618_s6 = inlined_call_operand.vmem [shape: f32[2,1,512], index: 6, kind: input, shape index: {}]   ;;  %s11619_s7 = inlined_call_operand.hbm [shape: bf16[2,512,128], index: 7, kind: input, shape index: {}]   ;;  %s11620_s8 = inlined_call_operand.vmem [shape: f32[2,6,128], index: 8, kind: input, shape index: {}]   ;;  %s11621_s9 = inlined_call_operand.hbm [shape: bf16[128,128], index: 9, kind: input, shape index: {}]   ;;  %s11622_s10 = inlined_call_operand.vmem [shape: f32[1,128], index: 10, kind: input, shape index: {}]   ;;  %s11623_s11 = inlined_call_operand.hbm [shape: f32[2,128], index: 11, kind: output, shape index: {}]  }
   0x1   :  { %11748 = sst [smem:[#allocation145_spill]] %s11614_s2 }
   0x2   :  { %11749 = sst [smem:[#allocation146_spill]] %s11616_s4 }
   0x3   :  { %11750 = sst [smem:[#allocation147_spill]] %s11617_s5 }
   0x4   :  { %11751 = sst [smem:[#allocation148_spill]] %s11621_s9 }
   0x5   :  { %11752 = sst [smem:[#allocation149_spill]] %s11622_s10 }
   0x6   :  { %11753 = sst [smem:[#allocation150_spill]] %s11623_s11 }
   0x7   :  { %16 = vsyncpa [#allocation5], 0 }
   0x8   :  { %18 = vsyncpa [#allocation5 + $0x1], 0 }
   0x9   :  { %19 = vsyncpa [#allocation8], 0 }
   0xa   :  { %21 = vsyncpa [#allocation8 + $0x1], 0 }
   0xb   :  { %22 = vsyncpa [#allocation11], 0 }
   0xc   :  { %24 = vsyncpa [#allocation11 + $0x1], 0 }
   0xd   :  { %25 = vsyncpa [#allocation6], 0  ;;  %s7823_s17 = smov 0   ;;  %s7825_s18 = smov 0  }
   0xe   :  { %s7827_s19 = smov 0   ;;  %s7829_s20 = smov 0  }
   0xf LB: > { %11754 = sst [smem:[#allocation24_spill]] %s7741_s19  ;;  %s7842_s21 = sadd.s32 4294967295, %s7745_s20   ;;  %s7745_s20 = sphi %s7829_s20, %s12209_s20   ;;  %s7741_s19 = sphi %s7827_s19, %s12211_s19   ;;  %s7737_s18 = sphi %s7825_s18, %s12213_s18   ;;  %s7733_s17 = sphi %s7823_s17, %s12212_s17  }
  0x10   : > { %s7845_s22 = sadd.s32 1, %s7745_s20   ;;  %s59_s24 = sadd.s32 1, %s7741_s19 }
  0x11   : > { %11755 = sst [smem:[#allocation25_spill]] %s7845_s22  ;;  %s56_s23 = ssub.s32 %s7745_s20, %s7845_s22 }
  0x12   : > { %p57_p0 = scmp.eq.s32.totalorder %s56_s23, 0  ;;  %p66_p1 = scmp.ne.s32.totalorder %s7741_s19, %s7737_s18 }
  0x13   : > { %p67_p2 = scmp.eq.s32.totalorder %s7745_s20, 0  ;;  %p72_p3 = scmp.ne.s32.totalorder %s7737_s18, %s7733_s17 }
  0x14   : > { %s7855_s25 = scalar_select %p57_p0, %s7741_s19, %s59_s24  }
  0x15   : > { %p7857_p4 = por %p67_p2, %p66_p1  ;;  %p11625_p5 = scmp.eq.s32.totalorder %s7842_s21, 0 }
  0x16   : > { %11756 = sst [smem:[#allocation26_spill]] %s7855_s25  ;;  %p6002_p6 = scmp.ge.s32.totalorder %s7745_s20, 1 }
  0x17   : > { %p302_p7 = scmp.lt.s32.totalorder %s7745_s20, 3  ;;  %p7866_p8 = por %p11625_p5, %p72_p3 }
  0x18   : > { %s7747_s29 = smov [#allocation12]   ;;  %p6785_p12 = scmp.lt.s32.totalorder %s7745_s20, 2 }
  0x19   : > { %s11758_s27 = scalar_select %p7866_p8, 1, 0 }
  0x1a   : > { %p7870_p9 = pnand %p6002_p6, %p302_p7  ;;  %s317_s30 = sshll.u32 %s7747_s29, 4  ;;  %s318_s30 = int_to_ptr.vmem [resolvable:$true] %s317_s30 }
  0x1b   : > { %s7884_s13 = sand.u32 1, %s7741_s19   ;;  %p7889_p13 = pnand %p6785_p12, %p7857_p4 }
  0x1c   : > { %s11759_s28 = scalar_select %p7870_p9, 1, 0 }
  0x1d   : > { %p6767_p10 = pneg %p7870_p9  ;;  %s11762_s9 = sld [smem:[#allocation148_spill]] }
  0x1e   : > { %s11761_s15 = scalar_select %p7889_p13, 1, 0 }
  0x1f   : > { %p7878_p11 = pnand %p6767_p10, %p11625_p5 }
  0x21   : > { %p7493_p1 = pneg %p7878_p11 }
  0x23   : > { %s7491_s23 = scalar_lea.hbm %s11762_s9, 1024 }
  0x24   : > { %p7492_p0 = scmp.ne.s32.totalorder %s11762_s9, %s7491_s23  ;;  %p7498_p6 = scmp.lt.u32.totalorder %s7491_s23, %s11762_s9 }
  0x26   : > { %p7494_p2 = pnand %p7493_p1, %p7492_p0 }
  0x28   : > { %p7495_p3 = pneg %p7494_p2 }
  0x2a   : > { %p7500_p4 = pnand %p7498_p6, %p7495_p3 }
  0x2c   : > { %7503 = shalt.err (!%p7500_p4)
}
  0x2d   : > { %s7504_s26 = scalar_lea.vmem %s318_s30, 1024  ;;  %p7512_p5 = scmp.lt.s32.totalorder %s318_s30, %s318_s30 }
  0x2e   : > { %p7505_p7 = scmp.ne.s32.totalorder %s318_s30, %s7504_s26  ;;  %p7513_p8 = scmp.lt.s32.totalorder %s7504_s26, %s7504_s26 }
  0x30   : > { %p7507_p10 = pnand %p7505_p7, %p7493_p1  ;;  %p7514_p9 = por %p7513_p8, %p7512_p5 }
  0x32   : > { %p7508_p12 = pneg %p7507_p10 }
  0x34   : > { %p7515_p13 = pnand %p7514_p9, %p7508_p12 }
  0x36   : > { %7518 = shalt.err (!%p7515_p13)
}
  0x37   : > { %s11632_s16 = smov 64   ;;  %s11633_s17 = smov 4  }
  0x38   : > { %6770 = dma.hbm_to_vmem [thread:$0]  (!%p7878_p11), %s11762_s9, 1024, %s318_s30, [#allocation11], %s11632_s16, %s11632_s16, %s11633_s17  }
  0x39   : > { %s6006_s23 = sshll.u32 %s7884_s13, 6  ;;  %s6136_s24 = sshll.u32 %s7745_s20, 10 }
  0x3a   : > { %s11763_s4 = sld [smem:[#allocation146_spill]]  ;;  %s366_s22 = scalar_lea.vmem [#allocation7], %s6006_s23 }
  0x3b   : > { %s373_s12 = sshll.u32 %s366_s22, 4  ;;  %s11764_s11 = sand.u32 1, %s7745_s20   ;;  %s7919_s12 = int_to_ptr.vmem [resolvable:$true] %s373_s12 }
  0x3c   : > { %s7923_s10 = scalar_lea.sflag [#allocation8], %s11764_s11  ;;  %p11765_p8 = scmp.ne.s32.totalorder %s11761_s15, 0 }
  0x3e   : > { %p7929_p9 = pneg %p11765_p8 }
  0x40   : > { %s7917_s14 = scalar_lea.hbm %s11763_s4, %s6136_s24  ;;  %s7524_s22 = scalar_lea.hbm %s11763_s4, 2048 }
  0x41   : > { %s7519_s19 = scalar_lea.hbm %s7917_s14, 1024  ;;  %p7525_p0 = scmp.lt.u32.totalorder %s7917_s14, %s11763_s4 }
  0x42   : > { %p7520_p5 = scmp.ne.s32.totalorder %s7917_s14, %s7519_s19  ;;  %p7526_p1 = scmp.lt.u32.totalorder %s7524_s22, %s7519_s19 }
  0x43   : > { %p7528_p3 = scmp.lt.u32.totalorder %s7519_s19, %s7917_s14 }
  0x44   : > { %p7522_p11 = pnand %p7929_p9, %p7520_p5  ;;  %p7527_p2 = por %p7526_p1, %p7525_p0 }
  0x46   : > { %p7523_p13 = pneg %p7522_p11  ;;  %p7529_p6 = por %p7528_p3, %p7527_p2 }
  0x48   : > { %p7530_p4 = pnand %p7529_p6, %p7523_p13 }
  0x4a   : > { %7533 = shalt.err (!%p7530_p4)
}
  0x4b   : > { %s7534_s11 = scalar_lea.vmem %s7919_s12, 1024  ;;  %s7750_s26 = smov [#allocation7]  }
  0x4c   : > { %p7535_p7 = scmp.ne.s32.totalorder %s7919_s12, %s7534_s11  ;;  %s7539_s25 = sshll.u32 %s7750_s26, 4  ;;  %s7540_s25 = int_to_ptr.vmem [resolvable:$false] %s7539_s25 }
  0x4d   : > { %s7541_s24 = scalar_lea.vmem %s7540_s25, 2048  ;;  %p7542_p5 = scmp.lt.s32.totalorder %s7919_s12, %s7540_s25 }
  0x4e   : > { %p7537_p10 = pnand %p7535_p7, %p7929_p9  ;;  %p7543_p11 = scmp.lt.s32.totalorder %s7541_s24, %s7534_s11 }
  0x50   : > { %p7538_p12 = pneg %p7537_p10  ;;  %p7544_p0 = por %p7543_p11, %p7542_p5 }
  0x52   : > { %p7545_p1 = pnand %p7544_p0, %p7538_p12 }
  0x54   : > { %7548 = shalt.err (!%p7545_p1)
}
  0x55   : > { %6777 = dma.hbm_to_vmem [thread:$0]  (!%p11765_p8), %s7917_s14, 1024, %s7919_s12, %s7923_s10, %s11632_s16, %s11632_s16, %s11633_s17  }
  0x56   : > { %s6744_s19 = smul.u32 192, %s7884_s13  ;;  %s6009_s23 = sshll.u32 %s7884_s13, 8 }
  0x57   : > { %s6745_s22 = smul.u32 3072, %s7745_s20  ;;  %s11767_s2 = sld [smem:[#allocation145_spill]] }
  0x58   : > { %s338_s25 = scalar_lea.vmem [#allocation4], %s6744_s19  ;;  %s335_s4 = scalar_lea.sflag [#allocation5], %s7884_s13 }
  0x59   : > { %s345_s24 = sshll.u32 %s338_s25, 4  ;;  %s7964_s24 = int_to_ptr.vmem [resolvable:$true] %s345_s24 }
  0x5d   : > { %s7962_s26 = scalar_lea.hbm %s11767_s2, %s6745_s22  ;;  %s7554_s29 = scalar_lea.hbm %s11767_s2, 6144 }
  0x5e   : > { %s7549_s9 = scalar_lea.hbm %s7962_s26, 3072  ;;  %p7555_p6 = scmp.lt.u32.totalorder %s7962_s26, %s11767_s2 }
  0x5f   : > { %p7550_p13 = scmp.ne.s32.totalorder %s7962_s26, %s7549_s9  ;;  %p7556_p4 = scmp.lt.u32.totalorder %s7554_s29, %s7549_s9 }
  0x60   : > { %p7558_p10 = scmp.lt.u32.totalorder %s7549_s9, %s7962_s26 }
  0x61   : > { %p7552_p2 = pnand %p7550_p13, %p7929_p9  ;;  %p7557_p7 = por %p7556_p4, %p7555_p6 }
  0x63   : > { %p7553_p3 = pneg %p7552_p2  ;;  %p7559_p12 = por %p7558_p10, %p7557_p7 }
  0x65   : > { %p7560_p5 = pnand %p7559_p12, %p7553_p3 }
  0x67   : > { %7563 = shalt.err (!%p7560_p5)
}
  0x68   : > { %s7564_s19 = scalar_lea.vmem %s7964_s24, 3072  ;;  %s7751_s25 = smov [#allocation4]  }
  0x69   : > { %p7565_p11 = scmp.ne.s32.totalorder %s7964_s24, %s7564_s19  ;;  %s7569_s14 = sshll.u32 %s7751_s25, 4  ;;  %s7570_s14 = int_to_ptr.vmem [resolvable:$false] %s7569_s14 }
  0x6a   : > { %s7571_s12 = scalar_lea.vmem %s7570_s14, 6144  ;;  %p7572_p13 = scmp.lt.s32.totalorder %s7964_s24, %s7570_s14 }
  0x6b   : > { %p7567_p0 = pnand %p7565_p11, %p7929_p9  ;;  %p7573_p2 = scmp.lt.s32.totalorder %s7571_s12, %s7564_s19 }
  0x6d   : > { %p7568_p1 = pneg %p7567_p0  ;;  %p7574_p6 = por %p7573_p2, %p7572_p13 }
  0x6f   : > { %p7575_p4 = pnand %p7574_p6, %p7568_p1 }
  0x71   : > { %7578 = shalt.err (!%p7575_p4)
}
  0x72   : > { %s7752_s9 = smov 192   ;;  %s7753_s29 = smov 12  }
  0x73   : > { %6774 = dma.hbm_to_vmem [thread:$0]  (!%p11765_p8), %s7962_s26, 3072, %s7964_s24, %s335_s4, %s7752_s9, %s7752_s9, %s7753_s29  }
  0x74   : > { %s6137_s22 = sshll.u32 %s7745_s20, 12  ;;  %s387_s11 = scalar_lea.vmem [#allocation9], %s6009_s23 }
  0x75   : > { %s394_s19 = sshll.u32 %s387_s11, 4  ;;  %s11768_s5 = sld [smem:[#allocation147_spill]]  ;;  %s8000_s19 = int_to_ptr.vmem [resolvable:$true] %s394_s19 }
  0x7b   : > { %s7998_s12 = scalar_lea.hbm %s11768_s5, %s6137_s22  ;;  %s7584_s24 = scalar_lea.hbm %s11768_s5, 8192 }
  0x7c   : > { %s7579_s16 = scalar_lea.hbm %s7998_s12, 4096  ;;  %p7585_p12 = scmp.lt.u32.totalorder %s7998_s12, %s11768_s5 }
  0x7d   : > { %p7580_p3 = scmp.ne.s32.totalorder %s7998_s12, %s7579_s16  ;;  %p7586_p5 = scmp.lt.u32.totalorder %s7584_s24, %s7579_s16 }
  0x7e   : > { %p7588_p0 = scmp.lt.u32.totalorder %s7579_s16, %s7998_s12 }
  0x7f   : > { %p7582_p7 = pnand %p7580_p3, %p7929_p9  ;;  %p7587_p11 = por %p7586_p5, %p7585_p12 }
  0x81   : > { %p7583_p10 = pneg %p7582_p7  ;;  %p7589_p1 = por %p7588_p0, %p7587_p11 }
  0x83   : > { %p7590_p13 = pnand %p7589_p1, %p7583_p10 }
  0x85   : > { %7593 = shalt.err (!%p7590_p13)
}
  0x86   : > { %s7594_s11 = scalar_lea.vmem %s8000_s19, 4096  ;;  %s7754_s25 = smov [#allocation9]  }
  0x87   : > { %p7595_p2 = scmp.ne.s32.totalorder %s8000_s19, %s7594_s11  ;;  %s7599_s14 = sshll.u32 %s7754_s25, 4  ;;  %s7600_s14 = int_to_ptr.vmem [resolvable:$false] %s7599_s14 }
  0x88   : > { %s7601_s4 = scalar_lea.vmem %s7600_s14, 8192  ;;  %p7602_p3 = scmp.lt.s32.totalorder %s8000_s19, %s7600_s14 }
  0x89   : > { %p7597_p6 = pnand %p7595_p2, %p7929_p9  ;;  %p7603_p7 = scmp.lt.s32.totalorder %s7601_s4, %s7594_s11 }
  0x8b   : > { %p7598_p4 = pneg %p7597_p6  ;;  %p7604_p12 = por %p7603_p7, %p7602_p3 }
  0x8d   : > { %p7605_p5 = pnand %p7604_p12, %p7598_p4 }
  0x8f   : > { %7608 = shalt.err (!%p7605_p5)
}
  0x90   : > { %s7755_s16 = smov 256   ;;  %s7756_s26 = smov 16  }
  0x91   : > { %6780 = dma.hbm_to_vmem [thread:$0]  (!%p11765_p8), %s7998_s12, 4096, %s8000_s19, %s7923_s10, %s7755_s16, %s7755_s16, %s7756_s26  }
  0x92   : > { %s8029_s29 = scalar_lea.hbm %s11619_s7, %s6137_s22  ;;  %s415_s11 = scalar_lea.vmem [#allocation10], %s6009_s23 }
  0x93   : > { %s422_s25 = sshll.u32 %s415_s11, 4  ;;  %s11769_s14 = sand.u32 1, %s7745_s20   ;;  %s8033_s25 = int_to_ptr.vmem [resolvable:$true] %s422_s25 }
  0x94   : > { %s8037_s4 = scalar_lea.sflag [#allocation11], %s11769_s14  ;;  %s7609_s17 = scalar_lea.hbm %s8029_s29, 4096 }
  0x95   : > { %p7610_p10 = scmp.ne.s32.totalorder %s8029_s29, %s7609_s17  ;;  %s7614_s13 = scalar_lea.hbm %s11619_s7, 8192 }
  0x96   : > { %p7615_p1 = scmp.lt.u32.totalorder %s8029_s29, %s11619_s7  ;;  %p7616_p13 = scmp.lt.u32.totalorder %s7614_s13, %s7609_s17 }
  0x97   : > { %p7612_p11 = pnand %p7610_p10, %p7929_p9  ;;  %p7618_p6 = scmp.lt.u32.totalorder %s7609_s17, %s8029_s29 }
  0x98   : > { %p7617_p2 = por %p7616_p13, %p7615_p1 }
  0x99   : > { %p7613_p0 = pneg %p7612_p11 }
  0x9a   : > { %p7619_p4 = por %p7618_p6, %p7617_p2 }
  0x9c   : > { %p7620_p3 = pnand %p7619_p4, %p7613_p0 }
  0x9e   : > { %7623 = shalt.err (!%p7620_p3)
}
  0x9f   : > { %s7624_s20 = scalar_lea.vmem %s8033_s25, 4096  ;;  %s7757_s23 = smov [#allocation10]  }
  0xa0   : > { %p7625_p7 = scmp.ne.s32.totalorder %s8033_s25, %s7624_s20  ;;  %s7629_s16 = sshll.u32 %s7757_s23, 4  ;;  %s7630_s16 = int_to_ptr.vmem [resolvable:$false] %s7629_s16 }
  0xa1   : > { %s7631_s26 = scalar_lea.vmem %s7630_s16, 8192  ;;  %p7632_p10 = scmp.lt.s32.totalorder %s8033_s25, %s7630_s16 }
  0xa2   : > { %p7627_p12 = pnand %p7625_p7, %p7929_p9  ;;  %p7633_p11 = scmp.lt.s32.totalorder %s7631_s26, %s7624_s20 }
  0xa4   : > { %p7628_p5 = pneg %p7627_p12  ;;  %p7634_p1 = por %p7633_p11, %p7632_p10 }
  0xa6   : > { %p7635_p13 = pnand %p7634_p1, %p7628_p5 }
  0xa8   : > { %7638 = shalt.err (!%p7635_p13)
}
  0xa9   : > { %s11770_s17 = smov 4   ;;  %s11771_s24 = smov 64  }
  0xaa   : > { %6783 = dma.hbm_to_vmem [thread:$0]  (!%p11765_p8), %s8029_s29, 4096, %s8033_s25, %s8037_s4, %s11771_s24, %s11771_s24, %s11770_s17  }
  0xab   : > { %p11772_p9 = scmp.ne.s32.totalorder %s11759_s28, 0 }
  0xad   : > { %441 = sbr.rel (%p11772_p9) target bundleno = 2902 (0xb56), region = 60 }
  0xb4   : > { %s443_s30 = sand.u32 1, %s7737_s18   ;;  %p11773_p0 = scmp.ne.s32.totalorder %s11758_s27, 0 }
  0xb5   : > { %s6746_s9 = smul.u32 192, %s443_s30  ;;  %s444_s11 = scalar_lea.sflag [#allocation5], %s443_s30 }
  0xb7   : > { %s8067_s14 = scalar_lea.vmem [#allocation4], %s6746_s9 }
  0xb8   : > { %7708 = dma.done.wait (%p11773_p0), %s444_s11, 3072  }
  0xb9   : > { %7710 = vsyncadd (%p11773_p0), %s444_s11, 4294964224  ;;  %s452_s15 = sand.u32 1, %s7842_s21   ;;  %s6016_s10 = sshll.u32 %s443_s30, 6 }
  0xba   : > { %s453_s29 = scalar_lea.sflag [#allocation8], %s452_s15  ;;  %s8074_s25 = scalar_lea.vmem [#allocation7], %s6016_s10 }
  0xbb   : > { %7712 = dma.done.wait (%p11773_p0), %s453_s29, 5120  }
  0xbc   : > { %7714 = vsyncadd (%p11773_p0), %s453_s29, 4294962176  ;;  %s6017_s28 = sshll.u32 %s443_s30, 8  ;;  %s471_s22 = scalar_lea.sflag [#allocation11], %s452_s15 }
  0xbd   : > { %s8080_s4 = scalar_lea.vmem [#allocation9], %s6017_s28  ;;  %s8082_s13 = scalar_lea.vmem [#allocation10], %s6017_s28 }
  0xbe   : > { %7716 = dma.done.wait (%p11773_p0), %s471_s22, 4096  }
  0xbf   : > { %7718 = vsyncadd (%p11773_p0), %s471_s22, 4294963200  ;;  %p11774_p8 = scmp.eq.s32.totalorder %s7842_s21, 0 }
  0xc1   : > { %7720 = dma.done.wait (%p11774_p8), [#allocation11], 1024   ;;  %p11775_p2 = pmov %p11774_p8 }
  0xc2   : > { %p537_p6 = scmp.lt.s32.totalorder %s7842_s21, 1  ;;  %s7758_s19 = smov [#allocation2]  }
  0xc3   : > { %7722 = vsyncadd (%p11775_p2), [#allocation11], 4294966272  ;;  %s561_s12 = sshll.u32 %s7758_s19, 4  ;;  %s7639_s19 = scalar_lea.hbm %s11612_s0, 2048  ;;  %s562_s12 = int_to_ptr.vmem [resolvable:$true] %s561_s12 }
  0xc4   : > { %s538_s20 = scalar_select %p537_p6, %s7842_s21, 1 }
  0xc5   : > { %p7640_p4 = scmp.ne.s32.totalorder %s11612_s0, %s7639_s19  ;;  %p11776_p3 = pmov %p11775_p2 }
  0xc6   : > { %s6747_s23 = smul.u32 3, %s538_s20  ;;  %s6020_s16 = sshll.u32 %s538_s20, 2 }
  0xc7   : > { %s8097_s27 = scalar_lea.vmem %s11618_s6, %s6020_s16  ;;  %s6021_s24 = sshll.u32 %s538_s20, 3 }
  0xc8   : > { %s8102_s11 = scalar_lea.vmem %s11615_s3, %s6747_s23  ;;  %s8107_s29 = scalar_lea.vmem %s11620_s8, %s6021_s24 }
  0xc9   : > { %p7641_p7 = pnand %p7640_p4, %p11776_p3  ;;  %p7645_p5 = scmp.lt.u32.totalorder %s7639_s19, %s11612_s0 }
  0xcb   : > { %p7642_p12 = pneg %p7641_p7 }
  0xcd   : > { %p7647_p10 = pnand %p7645_p5, %p7642_p12 }
  0xcf   : > { %7650 = shalt.err (!%p7647_p10)  }
  0xd0   : > { %s7651_s23 = scalar_lea.vmem %s562_s12, 2048  ;;  %p11777_p1 = pmov %p11775_p2 }
  0xd1   : > { %p7652_p11 = scmp.ne.s32.totalorder %s562_s12, %s7651_s23  ;;  %p7658_p0 = scmp.lt.s32.totalorder %s562_s12, %s562_s12 }
  0xd2   : > { %p7659_p8 = scmp.lt.s32.totalorder %s7651_s23, %s7651_s23 }
  0xd3   : > { %p7653_p13 = pnand %p7652_p11, %p11777_p1 }
  0xd4   : > { %p7660_p2 = por %p7659_p8, %p7658_p0 }
  0xd5   : > { %p7654_p9 = pneg %p7653_p13 }
  0xd7   : > { %p7661_p6 = pnand %p7660_p2, %p7654_p9 }
  0xd9   : > { %7664 = shalt.err (!%p7661_p6)  }
  0xda   : > { %p11778_p4 = pmov %p11777_p1  ;;  %p11779_p3 = pmov %p11777_p1 }
  0xdc   : > { %6761 = dma.hbm_to_vmem [thread:$0]  (%p11778_p4), %s11612_s0, 2048, %s562_s12, [#allocation3] }
  0xdd   : > { %7724 = dma.done.wait (%p11779_p3), [#allocation3], 2048  ;;  %p11780_p7 = pmov %p11777_p1 }
  0xde   : > { %v11634_v0 = vmov 0   ;;  %v6834_v1 = vld [vmem:[%s8067_s14 + $0x4] ss:$12 sps:$4 sm:$0xff]   ;;  %v6836_v2 = vld [vmem:[%s8067_s14] ss:$12 sps:$4 sm:$0xff]   ;;  %v573_v30 = vld [vmem:[#allocation2 + $0x18] sm:$0xff]  ;;  %v621_v41 = vlaneseq }
  0xdf   : > { %7726 = vsyncadd (%p11780_p7), [#allocation3], 4294965248  ;;  %796 = vmatprep.mubr.bf16.mxu0 %v11634_v0  ;;  %916 = vmatprep.mubr.bf16.mxu1 %v11634_v0  ;;  %v6837_v3 = vld [vmem:[%s8067_s14 + $0x1c] ss:$12 sps:$4 sm:$0xff]   ;;  %v6839_v4 = vld [vmem:[%s8067_s14 + $0x18] ss:$12 sps:$4 sm:$0xff]  }
  0xe0   : > { %764 = vmatprep.subr.bf16.mxu0 %v6834_v1  ;;  %6728 = vmatprep.subr.bf16.mxu1 %v6834_v1  ;;  %v6840_v5 = vld [vmem:[%s8067_s14 + $0x34] ss:$12 sps:$4 sm:$0xff]   ;;  %v6842_v6 = vld [vmem:[%s8067_s14 + $0x30] ss:$12 sps:$4 sm:$0xff]   ;;  %v6843_v7 = vld [vmem:[%s8067_s14 + $0x4c] ss:$12 sps:$4 sm:$0xff]  }
  0xe1   : > { %765 = vmatpush1.bf16.msra.mxu0 %v6836_v2  ;;  %6736 = vmatpush1.bf16.msra.mxu1 %v6836_v2  ;;  %v6845_v8 = vld [vmem:[%s8067_s14 + $0x48] ss:$12 sps:$4 sm:$0xff]   ;;  %v6846_v9 = vld [vmem:[%s8067_s14 + $0x64] ss:$12 sps:$4 sm:$0xff]   ;;  %v6848_v10 = vld [vmem:[%s8067_s14 + $0x60] ss:$12 sps:$4 sm:$0xff]  }
  0xe2   : > { %766 = vmatprep.subr.bf16.mxu0 %v6837_v3  ;;  %6729 = vmatprep.subr.bf16.mxu1 %v6837_v3  ;;  %v6849_v11 = vld [vmem:[%s8067_s14 + $0x7c] ss:$12 sps:$4 sm:$0xff]   ;;  %v6851_v12 = vld [vmem:[%s8067_s14 + $0x78] ss:$12 sps:$4 sm:$0xff]   ;;  %v6852_v13 = vld [vmem:[%s8067_s14 + $0x94] ss:$12 sps:$4 sm:$0xff]  }
  0xe3   : > { %v6854_v14 = vld [vmem:[%s8067_s14 + $0x90] ss:$12 sps:$4 sm:$0xff]   ;;  %v6855_v15 = vld [vmem:[%s8067_s14 + $0xac] ss:$12 sps:$4 sm:$0xff]   ;;  %v6857_v16 = vld [vmem:[%s8067_s14 + $0xa8] ss:$12 sps:$4 sm:$0xff]  }
  0xe4   : > { %v6858_v17 = vld [vmem:[%s8067_s14 + $0x8] ss:$12 sps:$4 sm:$0xff]   ;;  %v570_v18 = vld [vmem:[#allocation2] sm:$0xff]  ;;  %v6861_v24 = vld [vmem:[%s8067_s14 + $0x50] ss:$12 sps:$4 sm:$0xff]   ;;  %v8179_v42 = vshrl.u32 %v621_v41, 7 }
  0xe5   : > { %767 = vmatpush1.bf16.msra.mxu0 %v6839_v4  ;;  %6737 = vmatpush1.bf16.msra.mxu1 %v6839_v4  ;;  %v8150_v19 = vld [vmem:[#allocation2 + $0x60] sm:$0xff]  ;;  %v571_v22 = vld [vmem:[#allocation2 + $0x8] sm:$0xff]  ;;  %v572_v26 = vld [vmem:[#allocation2 + $0x10] sm:$0xff]  ;;  %p6121_p12 = scmp.ne.s32.totalorder %s7842_s21, 1 }
  0xe6   : > { %768 = vmatprep.subr.bf16.mxu0 %v6840_v5  ;;  %6730 = vmatprep.subr.bf16.mxu1 %v6840_v5  ;;  %v6859_v20 = vld [vmem:[%s8067_s14 + $0x20] ss:$12 sps:$4 sm:$0xff]   ;;  %v6860_v21 = vld [vmem:[%s8067_s14 + $0x38] ss:$12 sps:$4 sm:$0xff]   ;;  %v6862_v25 = vld [vmem:[%s8067_s14 + $0x68] ss:$12 sps:$4 sm:$0xff]  }
  0xe7   : > { %v8157_v23 = vld [vmem:[#allocation2 + $0x68] sm:$0xff]  ;;  %v584_v27 = vld [vmem:[#allocation2 + $0x70] sm:$0xff]  ;;  %v6864_v29 = vld [vmem:[%s8067_s14 + $0x98] ss:$12 sps:$4 sm:$0xff]   ;;  %11781 = vst [vmem:[#allocation27_spill] sm:$0xff] %v8179_v42  ;;  %v8182_v43 = vsub.s32 0, %v8179_v42 }
  0xe8   : > { %v6863_v28 = vld [vmem:[%s8067_s14 + $0x80] ss:$12 sps:$4 sm:$0xff]   ;;  %v585_v31 = vld [vmem:[#allocation2 + $0x78] sm:$0xff]  ;;  %v576_v35 = vld [vmem:[#allocation2 + $0x30] sm:$0xff]  ;;  %v8188_v45 = vsub.s32 1, %v8179_v42  ;;  %vm7761_vm0 = vmmov (!%p6121_p12), 0  }
  0xe9   : > { %769 = vmatpush1.bf16.msra.mxu0 %v6842_v6  ;;  %6738 = vmatpush1.bf16.msra.mxu1 %v6842_v6  ;;  %v6865_v32 = vld [vmem:[%s8067_s14 + $0xb0] ss:$12 sps:$4 sm:$0xff]   ;;  %v574_v33 = vld [vmem:[#allocation2 + $0x20] sm:$0xff]  ;;  %v575_v34 = vld [vmem:[#allocation2 + $0x28] sm:$0xff]  ;;  %vm5734_vm1 = vcmask (!%p6121_p12), 1041409  }
  0xea   : > { %770 = vmatprep.subr.bf16.mxu0 %v6843_v7  ;;  %6731 = vmatprep.subr.bf16.mxu1 %v6843_v7  ;;  %v577_v36 = vld [vmem:[#allocation2 + $0x38] sm:$0xff]  ;;  %v578_v37 = vld [vmem:[#allocation2 + $0x40] sm:$0xff]  ;;  %v579_v38 = vld [vmem:[#allocation2 + $0x48] sm:$0xff] }
  0xeb   : > { %v580_v39 = vld [vmem:[#allocation2 + $0x50] sm:$0xff]  ;;  %v581_v40 = vld [vmem:[#allocation2 + $0x58] sm:$0xff]  ;;  %v8185_v44 = vld [vmem:[%s8102_s11] sm:$0x7] }
  0xec   : > { %v8192_v46 = vrot.slane %v8185_v44, %v8182_v43  ;;  %v8196_v48 = vrot.slane %v8185_v44, %v8188_v45 }
  0xed   : > { %771 = vmatpush1.bf16.msra.mxu0 %v6845_v8  ;;  %6739 = vmatpush1.bf16.msra.mxu1 %v6845_v8 }
  0xee   : > { %772 = vmatprep.subr.bf16.mxu0 %v6846_v9  ;;  %6732 = vmatprep.subr.bf16.mxu1 %v6846_v9 }
  0xf1   : > { %773 = vmatpush1.bf16.msra.mxu0 %v6848_v10  ;;  %6740 = vmatpush1.bf16.msra.mxu1 %v6848_v10 }
  0xf2   : > { %774 = vmatprep.subr.bf16.mxu0 %v6849_v11  ;;  %6733 = vmatprep.subr.bf16.mxu1 %v6849_v11 }
  0xf5   : > { %775 = vmatpush1.bf16.msra.mxu0 %v6851_v12  ;;  %6741 = vmatpush1.bf16.msra.mxu1 %v6851_v12 }
  0xf6   : > { %776 = vmatprep.subr.bf16.mxu0 %v6852_v13  ;;  %6734 = vmatprep.subr.bf16.mxu1 %v6852_v13 }
  0xf9   : > { %777 = vmatpush1.bf16.msra.mxu0 %v6854_v14  ;;  %6742 = vmatpush1.bf16.msra.mxu1 %v6854_v14 }
  0xfa   : > { %778 = vmatprep.subr.bf16.mxu0 %v6855_v15  ;;  %6735 = vmatprep.subr.bf16.mxu1 %v6855_v15 }
  0xfd   : > { %779 = vmatpush1.bf16.msra.mxu0 %v6857_v16  ;;  %6743 = vmatpush1.bf16.msra.mxu1 %v6857_v16 }
  0xfe   : > { %6484 = vmatprep.subr.bf16.mxu1 %v6858_v17 }
 0x100   : > { %797 = vmatmul.mubr.bf16.vlgmr.msra.gmra.mrb[0].mxu0 %v570_v18  ;;  %917 = vmatmul.mubr.bf16.vlgmr.msra.gmra.mrb[0].mxu1 %v8150_v19 }
 0x101   : > { %806 = vmatprep.mubr.bf16.mxu0 %v11634_v0  ;;  %926 = vmatprep.mubr.bf16.mxu1 %v11634_v0 }
 0x102   : > { %6485 = vmatpush3.bf16.msra.mxu1 %v6858_v17 }
 0x103   : > { %6486 = vmatprep.subr.bf16.mxu1 %v6859_v20 }
 0x106   : > { %6487 = vmatpush3.bf16.msra.mxu1 %v6859_v20 }
 0x107   : > { %6488 = vmatprep.subr.bf16.mxu1 %v6860_v21 }
 0x108   : > { %807 = vmatmul.mubr.bf16.gmra.mrb[4].mxu0 %v571_v22  ;;  %927 = vmatmul.mubr.bf16.gmra.mrb[4].mxu1 %v8157_v23 }
 0x109   : > { %816 = vmatprep.mubr.bf16.mxu0 %v11634_v0  ;;  %936 = vmatprep.mubr.bf16.mxu1 %v11634_v0 }
 0x10a   : > { %6489 = vmatpush3.bf16.msra.mxu1 %v6860_v21 }
 0x10b   : > { %6490 = vmatprep.subr.bf16.mxu1 %v6861_v24 }
 0x10e   : > { %6491 = vmatpush3.bf16.msra.mxu1 %v6861_v24 }
 0x10f   : > { %6492 = vmatprep.subr.bf16.mxu1 %v6862_v25 }
 0x110   : > { %817 = vmatmul.mubr.bf16.gmra.mrb[8].mxu0 %v572_v26  ;;  %937 = vmatmul.mubr.bf16.gmra.mrb[8].mxu1 %v584_v27 }
 0x111   : > { %826 = vmatprep.mubr.bf16.mxu0 %v11634_v0  ;;  %946 = vmatprep.mubr.bf16.mxu1 %v11634_v0 }
 0x112   : > { %6493 = vmatpush3.bf16.msra.mxu1 %v6862_v25 }
 0x113   : > { %6494 = vmatprep.subr.bf16.mxu1 %v6863_v28 }
 0x116   : > { %6495 = vmatpush3.bf16.msra.mxu1 %v6863_v28 }
 0x117   : > { %6496 = vmatprep.subr.bf16.mxu1 %v6864_v29 }
 0x118   : > { %827 = vmatmul.mubr.bf16.gmra.mrb[12].mxu0 %v573_v30  ;;  %947 = vmatmul.mubr.bf16.gmra.mrb[12].mxu1 %v585_v31 }
 0x119   : > { %836 = vmatprep.mubr.bf16.mxu0 %v11634_v0  ;;  %6500 = vmatprep.mubr.bf16.mxu1 %v570_v18 }
 0x11a   : > { %6497 = vmatpush3.bf16.msra.mxu1 %v6864_v29 }
 0x11b   : > { %6498 = vmatprep.subr.bf16.mxu1 %v6865_v32 }
 0x11e   : > { %6499 = vmatpush3.bf16.msra.mxu1 %v6865_v32 }
 0x120   : > { %837 = vmatmul.mubr.bf16.gmra.mrb[16].mxu0 %v574_v33 }
 0x121   : > { %846 = vmatprep.mubr.bf16.mxu0 %v11634_v0  ;;  %6501 = vmatmul.mubr.bf16.vlgmr.msra.gmra.mrb[16].mxu1 %v571_v22 }
 0x122   : > { %6504 = vmatprep.mubr.bf16.mxu1 %v572_v26 }
 0x128   : > { %847 = vmatmul.mubr.bf16.gmra.mrb[20].mxu0 %v575_v34 }
 0x129   : > { %856 = vmatprep.mubr.bf16.mxu0 %v11634_v0  ;;  %6505 = vmatmul.mubr.bf16.gmra.mrb[20].mxu1 %v573_v30 }
 0x12a   : > { %6508 = vmatprep.mubr.bf16.mxu1 %v574_v33 }
 0x130   : > { %857 = vmatmul.mubr.bf16.gmra.mrb[24].mxu0 %v576_v35 }
 0x131   : > { %866 = vmatprep.mubr.bf16.mxu0 %v11634_v0  ;;  %6509 = vmatmul.mubr.bf16.gmra.mrb[24].mxu1 %v575_v34 }
 0x132   : > { %6512 = vmatprep.mubr.bf16.mxu1 %v576_v35 }
 0x138   : > { %867 = vmatmul.mubr.bf16.gmra.mrb[28].mxu0 %v577_v36 }
 0x139   : > { %876 = vmatprep.mubr.bf16.mxu0 %v11634_v0  ;;  %6513 = vmatmul.mubr.bf16.gmra.mrb[28].mxu1 %v577_v36 }
 0x13a   : > { %6516 = vmatprep.mubr.bf16.mxu1 %v578_v37 }
 0x140   : > { %877 = vmatmul.mubr.bf16.gmra.mrb[32].mxu0 %v578_v37 }
 0x141   : > { %886 = vmatprep.mubr.bf16.mxu0 %v11634_v0  ;;  %6517 = vmatmul.mubr.bf16.gmra.mrb[32].mxu1 %v579_v38 }
 0x142   : > { %6520 = vmatprep.mubr.bf16.mxu1 %v580_v39 }
 0x148   : > { %887 = vmatmul.mubr.bf16.gmra.mrb[36].mxu0 %v579_v38 }
 0x149   : > { %896 = vmatprep.mubr.bf16.mxu0 %v11634_v0  ;;  %6521 = vmatmul.mubr.bf16.gmra.mrb[36].mxu1 %v581_v40 }
 0x14a   : > { %6524 = vmatprep.mubr.bf16.mxu1 %v8150_v19 }
 0x150   : > { %897 = vmatmul.mubr.bf16.gmra.mrb[40].mxu0 %v580_v39 }
 0x151   : > { %906 = vmatprep.mubr.bf16.mxu0 %v11634_v0  ;;  %6525 = vmatmul.mubr.bf16.gmra.mrb[40].mxu1 %v8157_v23 }
 0x152   : > { %6528 = vmatprep.mubr.bf16.mxu1 %v584_v27 }
 0x158   : > { %907 = vmatmul.mubr.bf16.gmra.mrb[44].mxu0 %v581_v40 }
 0x159   : > { %6529 = vmatmul.mubr.bf16.gmra.mrb[44].mxu1 %v585_v31 }
 0x1d3   : > { %v798_v47 = vpop.f32.mrb[0].mxu0  ;;  %v918_v49 = vpop.f32.mrb[0].mxu1 }
 0x1d4   : > { %v800_v50 = vpop.f32.mrb[1].mxu0  ;;  %v8199_v51 = vadd.f32 %v918_v49, %v8192_v46  ;;  %v920_v52 = vpop.f32.mrb[1].mxu1  ;;  %v799_v56 = vadd.f32 %v798_v47, %v8192_v46 }
 0x1d5   : > { %v802_v53 = vpop.f32.mrb[2].mxu0  ;;  %v921_v54 = vadd.f32 %v920_v52, %v8196_v48  ;;  %v922_v55 = vpop.f32.mrb[2].mxu1  ;;  %v801_v61 = vadd.f32 %v800_v50, %v8196_v48 }
 0x1d6   : > { %v803_v57 = vadd.f32 %v802_v53, %v8192_v46  ;;  %v804_v58 = vpop.f32.mrb[3].mxu0  ;;  %v8205_v59 = vadd.f32 %v922_v55, %v8192_v46  ;;  %v924_v60 = vpop.f32.mrb[3].mxu1 }
 0x1d7   : > { %v805_v62 = vadd.f32 %v804_v58, %v8196_v48  ;;  %v925_v63 = vadd.f32 %v924_v60, %v8196_v48 }
 0x1d8   : > { %v1118_v1 = vpack.c.bf16 %v803_v57, %v799_v56 }
 0x1d9   : > { %v1134_v3 = vpack.c.bf16 %v805_v62, %v801_v61  ;;  %v8212_v4 = vpack.c.bf16 %v925_v63, %v921_v54 }
 0x1da   : > { %6548 = vmatprep.mubr.bf16.mxu1 %v1118_v1 }
 0x1db   : > { %v808_v5 = vpop.f32.mrb[4].mxu0  ;;  %6532 = vmatprep.subr.bf16.mxu1 %v1134_v3  ;;  %v928_v6 = vpop.f32.mrb[4].mxu1 }
 0x1dc   : > { %v810_v7 = vpop.f32.mrb[5].mxu0  ;;  %6533 = vmatpush3.bf16.xpose.msra.mxu1 %v1134_v3  ;;  %v8215_v8 = vadd.f32 %v928_v6, %v8192_v46  ;;  %v930_v9 = vpop.f32.mrb[5].mxu1  ;;  %v8219_v13 = vadd.f32 %v808_v5, %v8192_v46 }
 0x1dd   : > { %v812_v10 = vpop.f32.mrb[6].mxu0  ;;  %v931_v11 = vadd.f32 %v930_v9, %v8196_v48  ;;  %v932_v12 = vpop.f32.mrb[6].mxu1  ;;  %v811_v18 = vadd.f32 %v810_v7, %v8196_v48 }
 0x1de   : > { %v8222_v14 = vadd.f32 %v812_v10, %v8192_v46  ;;  %v814_v15 = vpop.f32.mrb[7].mxu0  ;;  %v8225_v16 = vadd.f32 %v932_v12, %v8192_v46  ;;  %v934_v17 = vpop.f32.mrb[7].mxu1 }
 0x1df   : > { %v815_v19 = vadd.f32 %v814_v15, %v8196_v48  ;;  %v935_v20 = vadd.f32 %v934_v17, %v8196_v48  ;;  %v8281_v17 = vsub.s32 2, %v8179_v42 }
 0x1e0   : > { %v1119_v21 = vpack.c.bf16 %v8222_v14, %v8219_v13 }
 0x1e1   : > { %v1135_v23 = vpack.c.bf16 %v815_v19, %v811_v18  ;;  %v8234_v24 = vpack.c.bf16 %v935_v20, %v931_v11 }
 0x1e3   : > { %v818_v25 = vpop.f32.mrb[8].mxu0  ;;  %6534 = vmatprep.subr.bf16.mxu1 %v1135_v23  ;;  %v938_v26 = vpop.f32.mrb[8].mxu1 }
 0x1e4   : > { %v820_v27 = vpop.f32.mrb[9].mxu0  ;;  %6535 = vmatpush3.bf16.xpose.msra.mxu1 %v1135_v23  ;;  %v8237_v28 = vadd.f32 %v938_v26, %v8192_v46  ;;  %v940_v29 = vpop.f32.mrb[9].mxu1  ;;  %v8241_v33 = vadd.f32 %v818_v25, %v8192_v46  ;;  %v8285_v23 = vrot.slane %v8185_v44, %v8281_v17 }
 0x1e5   : > { %v822_v30 = vpop.f32.mrb[10].mxu0  ;;  %v941_v31 = vadd.f32 %v940_v29, %v8196_v48  ;;  %v942_v32 = vpop.f32.mrb[10].mxu1  ;;  %v821_v38 = vadd.f32 %v820_v27, %v8196_v48 }
 0x1e6   : > { %v8244_v34 = vadd.f32 %v822_v30, %v8192_v46  ;;  %v824_v35 = vpop.f32.mrb[11].mxu0  ;;  %v8247_v36 = vadd.f32 %v942_v32, %v8192_v46  ;;  %v944_v37 = vpop.f32.mrb[11].mxu1 }
 0x1e7   : > { %v825_v39 = vadd.f32 %v824_v35, %v8196_v48  ;;  %v945_v40 = vadd.f32 %v944_v37, %v8196_v48 }
 0x1e8   : > { %v1120_v41 = vpack.c.bf16 %v8244_v34, %v8241_v33 }
 0x1e9   : > { %v1136_v49 = vpack.c.bf16 %v825_v39, %v821_v38  ;;  %v8256_v50 = vpack.c.bf16 %v945_v40, %v941_v31 }
 0x1eb   : > { %v828_v52 = vpop.f32.mrb[12].mxu0  ;;  %6536 = vmatprep.subr.bf16.mxu1 %v1136_v49  ;;  %v948_v53 = vpop.f32.mrb[12].mxu1 }
 0x1ec   : > { %v830_v54 = vpop.f32.mrb[13].mxu0  ;;  %6537 = vmatpush3.bf16.xpose.msra.mxu1 %v1136_v49  ;;  %v8259_v55 = vadd.f32 %v948_v53, %v8192_v46  ;;  %v950_v56 = vpop.f32.mrb[13].mxu1  ;;  %v8263_v61 = vadd.f32 %v828_v52, %v8192_v46 }
 0x1ed   : > { %v832_v57 = vpop.f32.mrb[14].mxu0  ;;  %v951_v58 = vadd.f32 %v950_v56, %v8196_v48  ;;  %v952_v60 = vpop.f32.mrb[14].mxu1  ;;  %v831_v5 = vadd.f32 %v830_v54, %v8196_v48 }
 0x1ee   : > { %v8266_v62 = vadd.f32 %v832_v57, %v8192_v46  ;;  %v834_v63 = vpop.f32.mrb[15].mxu0  ;;  %v8269_v1 = vadd.f32 %v952_v60, %v8192_v46  ;;  %v954_v3 = vpop.f32.mrb[15].mxu1 }
 0x1ef   : > { %v835_v6 = vadd.f32 %v834_v63, %v8196_v48  ;;  %v955_v7 = vadd.f32 %v954_v3, %v8196_v48 }
 0x1f0   : > { %v1121_v9 = vpack.c.bf16 %v8266_v62, %v8263_v61 }
 0x1f1   : > { %v1137_v11 = vpack.c.bf16 %v835_v6, %v831_v5  ;;  %v8278_v12 = vpack.c.bf16 %v955_v7, %v951_v58 }
 0x1f3   : > { %v838_v15 = vpop.f32.mrb[16].mxu0  ;;  %6538 = vmatprep.subr.bf16.mxu1 %v1137_v11 }
 0x1f4   : > { %v840_v18 = vpop.f32.mrb[17].mxu0  ;;  %6539 = vmatpush3.bf16.xpose.msra.mxu1 %v1137_v11  ;;  %v6502_v19 = vpop.f32.mrb[16].mxu1  ;;  %v8288_v26 = vadd.f32 %v838_v15, %v8192_v46 }
 0x1f5   : > { %v842_v20 = vpop.f32.mrb[18].mxu0  ;;  %v991_v25 = vpop.f32.mrb[17].mxu1  ;;  %v841_v27 = vadd.f32 %v840_v18, %v8196_v48  ;;  %v1000_v35 = vadd.f32 %v6502_v19, %v8285_v23 }
 0x1f6   : > { %v8292_v29 = vadd.f32 %v842_v20, %v8192_v46  ;;  %v844_v30 = vpop.f32.mrb[19].mxu0  ;;  %v6503_v31 = vpop.f32.mrb[18].mxu1  ;;  %v992_v37 = vadd.f32 %v991_v25, %v8285_v23 }
 0x1f7   : > { %v845_v32 = vadd.f32 %v844_v30, %v8196_v48  ;;  %v1003_v44 = vadd.f32 %v6503_v31, %v8285_v23  ;;  %v994_v38 = vpop.f32.mrb[19].mxu1 }
 0x1f8   : > { %v1122_v39 = vpack.c.bf16 %v8292_v29, %v8288_v26  ;;  %v995_v40 = vadd.f32 %v994_v38, %v8285_v23 }
 0x1f9   : > { %v1138_v49 = vpack.c.bf16 %v845_v32, %v841_v27  ;;  %v8301_v52 = vpack.c.bf16 %v1003_v44, %v1000_v35 }
 0x1fa   : > { %v8303_v53 = vpack.c.bf16 %v995_v40, %v992_v37 }
 0x1fb   : > { %v848_v54 = vpop.f32.mrb[20].mxu0  ;;  %6540 = vmatprep.subr.bf16.mxu1 %v1138_v49 }
 0x1fc   : > { %v850_v56 = vpop.f32.mrb[21].mxu0  ;;  %6541 = vmatpush3.bf16.xpose.msra.mxu1 %v1138_v49  ;;  %v6506_v57 = vpop.f32.mrb[20].mxu1  ;;  %v8307_v3 = vadd.f32 %v848_v54, %v8192_v46 }
 0x1fd   : > { %v852_v58 = vpop.f32.mrb[22].mxu0  ;;  %v1016_v60 = vadd.f32 %v6506_v57, %v8285_v23  ;;  %v1007_v63 = vpop.f32.mrb[21].mxu1  ;;  %v851_v15 = vadd.f32 %v850_v56, %v8196_v48 }
 0x1fe   : > { %v8310_v5 = vadd.f32 %v852_v58, %v8192_v46  ;;  %v854_v6 = vpop.f32.mrb[23].mxu0  ;;  %v1008_v7 = vadd.f32 %v1007_v63, %v8285_v23  ;;  %v6507_v11 = vpop.f32.mrb[22].mxu1 }
 0x1ff   : > { %v855_v18 = vadd.f32 %v854_v6, %v8196_v48  ;;  %v1019_v19 = vadd.f32 %v6507_v11, %v8285_v23  ;;  %v1010_v20 = vpop.f32.mrb[23].mxu1 }
 0x200   : > { %v1123_v25 = vpack.c.bf16 %v8310_v5, %v8307_v3  ;;  %v1011_v27 = vadd.f32 %v1010_v20, %v8285_v23 }
 0x201   : > { %v1139_v30 = vpack.c.bf16 %v855_v18, %v851_v15  ;;  %v8319_v31 = vpack.c.bf16 %v1019_v19, %v1016_v60 }
 0x202   : > { %v8321_v32 = vpack.c.bf16 %v1011_v27, %v1008_v7 }
 0x203   : > { %v858_v35 = vpop.f32.mrb[24].mxu0  ;;  %6542 = vmatprep.subr.bf16.mxu1 %v1139_v30 }
 0x204   : > { %v860_v37 = vpop.f32.mrb[25].mxu0  ;;  %6543 = vmatpush3.bf16.xpose.msra.mxu1 %v1139_v30  ;;  %v6510_v44 = vpop.f32.mrb[24].mxu1  ;;  %v8325_v54 = vadd.f32 %v858_v35, %v8192_v46 }
 0x205   : > { %v862_v38 = vpop.f32.mrb[26].mxu0  ;;  %v1032_v40 = vadd.f32 %v6510_v44, %v8285_v23  ;;  %v1023_v49 = vpop.f32.mrb[25].mxu1  ;;  %v861_v63 = vadd.f32 %v860_v37, %v8196_v48 }
 0x206   : > { %v8328_v56 = vadd.f32 %v862_v38, %v8192_v46  ;;  %v864_v57 = vpop.f32.mrb[27].mxu0  ;;  %v1024_v58 = vadd.f32 %v1023_v49, %v8285_v23  ;;  %v6511_v60 = vpop.f32.mrb[26].mxu1 }
 0x207   : > { %v865_v6 = vadd.f32 %v864_v57, %v8196_v48  ;;  %v1035_v7 = vadd.f32 %v6511_v60, %v8285_v23  ;;  %v1026_v11 = vpop.f32.mrb[27].mxu1 }
 0x208   : > { %v1027_v18 = vadd.f32 %v1026_v11, %v8285_v23 }
 0x209   : > { %v1140_v19 = vpack.c.bf16 %v865_v6, %v861_v63  ;;  %v8337_v20 = vpack.c.bf16 %v1035_v7, %v1032_v40 }
 0x20a   : > { %v8339_v27 = vpack.c.bf16 %v1027_v18, %v1024_v58 }
 0x20b   : > { %v868_v30 = vpop.f32.mrb[28].mxu0  ;;  %6544 = vmatprep.subr.bf16.mxu1 %v1140_v19 }
 0x20c   : > { %v870_v35 = vpop.f32.mrb[29].mxu0  ;;  %6545 = vmatpush3.bf16.xpose.msra.mxu1 %v1140_v19  ;;  %v6514_v37 = vpop.f32.mrb[28].mxu1  ;;  %v8343_v57 = vadd.f32 %v868_v30, %v8192_v46 }
 0x20d   : > { %v872_v44 = vpop.f32.mrb[30].mxu0  ;;  %v1048_v38 = vadd.f32 %v6514_v37, %v8285_v23  ;;  %v1039_v49 = vpop.f32.mrb[29].mxu1  ;;  %v871_v6 = vadd.f32 %v870_v35, %v8196_v48 }
 0x20e   : > { %v8346_v60 = vadd.f32 %v872_v44, %v8192_v46  ;;  %v874_v63 = vpop.f32.mrb[31].mxu0  ;;  %v1040_v40 = vadd.f32 %v1039_v49, %v8285_v23  ;;  %v6515_v58 = vpop.f32.mrb[30].mxu1 }
 0x20f   : > { %v875_v7 = vadd.f32 %v874_v63, %v8196_v48  ;;  %v1051_v11 = vadd.f32 %v6515_v58, %v8285_v23  ;;  %v1042_v18 = vpop.f32.mrb[31].mxu1 }
 0x210   : > { %v1043_v30 = vadd.f32 %v1042_v18, %v8285_v23 }
 0x211   : > { %v1141_v37 = vpack.c.bf16 %v875_v7, %v871_v6  ;;  %v8355_v0 = vpack.c.bf16 %v1051_v11, %v1048_v38 }
 0x212   : > { %v8357_v44 = vpack.c.bf16 %v1043_v30, %v1040_v40 }
 0x213   : > { %v878_v10 = vpop.f32.mrb[32].mxu0  ;;  %6546 = vmatprep.subr.bf16.mxu1 %v1141_v37 }
 0x214   : > { %v879_v49 = vadd.f32 %v878_v10, %v8192_v46  ;;  %v880_v35 = vpop.f32.mrb[33].mxu0  ;;  %6547 = vmatpush3.bf16.xpose.msra.mxu1 %v1141_v37  ;;  %v6518_v63 = vpop.f32.mrb[32].mxu1 }
 0x215   : > { %v881_v58 = vadd.f32 %v880_v35, %v8196_v48  ;;  %v882_v47 = vpop.f32.mrb[34].mxu0  ;;  %6596 = vmatprep.subr.bf16.mxu1 %v8303_v53  ;;  %v1064_v22 = vadd.f32 %v6518_v63, %v8285_v23  ;;  %v1055_v18 = vpop.f32.mrb[33].mxu1 }
 0x216   : > { %v883_v38 = vadd.f32 %v882_v47, %v8192_v46  ;;  %v884_v6 = vpop.f32.mrb[35].mxu0  ;;  %v1056_v40 = vadd.f32 %v1055_v18, %v8285_v23  ;;  %v6519_v7 = vpop.f32.mrb[34].mxu1 }
 0x217   : > { %v885_v11 = vadd.f32 %v884_v6, %v8196_v48  ;;  %v1067_v10 = vadd.f32 %v6519_v7, %v8285_v23  ;;  %v1058_v30 = vpop.f32.mrb[35].mxu1 }
 0x218   : > { %v1126_v37 = vpack.c.bf16 %v883_v38, %v879_v49  ;;  %v1059_v35 = vadd.f32 %v1058_v30, %v8285_v23 }
 0x219   : > { %v1142_v2 = vpack.c.bf16 %v885_v11, %v881_v58  ;;  %v8368_v19 = vpack.c.bf16 %v1067_v10, %v1064_v22 }
 0x21a   : > { %6580 = vmatprep.mubr.bf16.mxu0 %v1126_v37  ;;  %v8370_v63 = vpack.c.bf16 %v1059_v35, %v1056_v40 }
 0x21b   : > { %v888_v15 = vpop.f32.mrb[36].mxu0  ;;  %6549 = vmatmul.mubr.bf16.vlgmr.msra.gmra.mrb[48].mxu1 %v1119_v21  ;;  %6564 = vmatprep.subr.bf16.mxu0 %v1142_v2 }
 0x21c   : > { %v8376_v47 = vadd.f32 %v888_v15, %v8192_v46  ;;  %v890_v18 = vpop.f32.mrb[37].mxu0  ;;  %6552 = vmatprep.mubr.bf16.mxu1 %v1120_v41  ;;  %6565 = vmatpush3.bf16.xpose.msra.mxu0 %v1142_v2  ;;  %v6522_v22 = vpop.f32.mrb[36].mxu1 }
 0x21d   : > { %v891_v49 = vadd.f32 %v890_v18, %v8196_v48  ;;  %v892_v58 = vpop.f32.mrb[38].mxu0  ;;  %6597 = vmatpush3.bf16.msra.mxu1 %v8303_v53  ;;  %v1080_v38 = vadd.f32 %v6522_v22, %v8285_v23  ;;  %v1071_v13 = vpop.f32.mrb[37].mxu1 }
 0x21e   : > { %v8385_v14 = vadd.f32 %v892_v58, %v8192_v46  ;;  %v894_v21 = vpop.f32.mrb[39].mxu0  ;;  %6598 = vmatprep.subr.bf16.mxu1 %v8301_v52  ;;  %v1072_v15 = vadd.f32 %v1071_v13, %v8285_v23  ;;  %v6523_v33 = vpop.f32.mrb[38].mxu1 }
 0x21f   : > { %v895_v2 = vadd.f32 %v894_v21, %v8196_v48  ;;  %v1083_v34 = vadd.f32 %v6523_v33, %v8285_v23  ;;  %v1074_v41 = vpop.f32.mrb[39].mxu1 }
 0x220   : > { %v1127_v53 = vpack.c.bf16 %v8385_v14, %v8376_v47  ;;  %v1075_v6 = vadd.f32 %v1074_v41, %v8285_v23  ;;  %v11782_v41 = vpack.c.bf16 %v8328_v56, %v8325_v54 }
 0x221   : > { %v1143_v40 = vpack.c.bf16 %v895_v2, %v891_v49  ;;  %6599 = vmatpush3.bf16.msra.mxu1 %v8301_v52  ;;  %v8395_v7 = vpack.c.bf16 %v1083_v34, %v1080_v38 }
 0x222   : > { %6600 = vmatprep.subr.bf16.mxu1 %v8321_v32  ;;  %v8398_v11 = vpack.c.bf16 %v1075_v6, %v1072_v15 }
 0x223   : > { %v898_v10 = vpop.f32.mrb[40].mxu0  ;;  %6553 = vmatmul.mubr.bf16.gmra.mrb[52].mxu1 %v1121_v9  ;;  %6566 = vmatprep.subr.bf16.mxu0 %v1143_v40 }
 0x224   : > { %v8404_v30 = vadd.f32 %v898_v10, %v8192_v46  ;;  %v900_v37 = vpop.f32.mrb[41].mxu0  ;;  %6556 = vmatprep.mubr.bf16.mxu1 %v1122_v39  ;;  %6567 = vmatpush3.bf16.xpose.msra.mxu0 %v1143_v40  ;;  %v6526_v52 = vpop.f32.mrb[40].mxu1 }
 0x225   : > { %v901_v35 = vadd.f32 %v900_v37, %v8196_v48  ;;  %v902_v18 = vpop.f32.mrb[42].mxu0  ;;  %6601 = vmatpush3.bf16.msra.mxu1 %v8321_v32  ;;  %v1096_v22 = vadd.f32 %v6526_v52, %v8285_v23  ;;  %v1087_v61 = vpop.f32.mrb[41].mxu1 }
 0x226   : > { %v903_v62 = vadd.f32 %v902_v18, %v8192_v46  ;;  %v904_v9 = vpop.f32.mrb[43].mxu0  ;;  %6602 = vmatprep.subr.bf16.mxu1 %v8319_v31  ;;  %v1088_v49 = vadd.f32 %v1087_v61, %v8285_v23  ;;  %v6527_v58 = vpop.f32.mrb[42].mxu1  ;;  %v11783_v61 = vpack.c.bf16 %v8346_v60, %v8343_v57 }
 0x227   : > { %v905_v26 = vadd.f32 %v904_v9, %v8196_v48  ;;  %v1099_v29 = vadd.f32 %v6527_v58, %v8285_v23  ;;  %v1090_v39 = vpop.f32.mrb[43].mxu1 }
 0x228   : > { %v1128_v38 = vpack.c.bf16 %v903_v62, %v8404_v30  ;;  %v1091_v32 = vadd.f32 %v1090_v39, %v8285_v23 }
 0x229   : > { %v1144_v13 = vpack.c.bf16 %v905_v26, %v901_v35  ;;  %6603 = vmatpush3.bf16.msra.mxu1 %v8319_v31  ;;  %v8420_v21 = vpack.c.bf16 %v1099_v29, %v1096_v22 }
 0x22a   : > { %6604 = vmatprep.subr.bf16.mxu1 %v8339_v27  ;;  %v8423_v15 = vpack.c.bf16 %v1091_v32, %v1088_v49 }
 0x22b   : > { %v908_v33 = vpop.f32.mrb[44].mxu0  ;;  %6557 = vmatmul.mubr.bf16.gmra.mrb[56].mxu1 %v1123_v25  ;;  %6568 = vmatprep.subr.bf16.mxu0 %v1144_v13 }
 0x22c   : > { %v909_v2 = vadd.f32 %v908_v33, %v8192_v46  ;;  %v910_v34 = vpop.f32.mrb[45].mxu0  ;;  %6560 = vmatprep.mubr.bf16.mxu1 %v11782_v41  ;;  %6569 = vmatpush3.bf16.xpose.msra.mxu0 %v1144_v13  ;;  %v6530_v31 = vpop.f32.mrb[44].mxu1 }
 0x22d   : > { %v911_v6 = vadd.f32 %v910_v34, %v8196_v48  ;;  %v912_v40 = vpop.f32.mrb[46].mxu0  ;;  %6605 = vmatpush3.bf16.msra.mxu1 %v8339_v27  ;;  %v1112_v10 = vadd.f32 %v6530_v31, %v8285_v23  ;;  %v1103_v30 = vpop.f32.mrb[45].mxu1 }
 0x22e   : > { %v913_v3 = vadd.f32 %v912_v40, %v8192_v46  ;;  %v914_v5 = vpop.f32.mrb[47].mxu0  ;;  %6606 = vmatprep.subr.bf16.mxu1 %v8337_v20  ;;  %v1104_v25 = vadd.f32 %v1103_v30, %v8285_v23  ;;  %v6531_v37 = vpop.f32.mrb[46].mxu1 }
 0x22f   : > { %v915_v54 = vadd.f32 %v914_v5, %v8196_v48  ;;  %v1115_v56 = vadd.f32 %v6531_v37, %v8285_v23  ;;  %v1106_v52 = vpop.f32.mrb[47].mxu1  ;;  %v11785_v48 = vpack.c.bf16 %v8225_v16, %v8215_v8 }
 0x230   : > { %v1129_v35 = vpack.c.bf16 %v913_v3, %v909_v2  ;;  %v1107_v18 = vadd.f32 %v1106_v52, %v8285_v23 }
 0x231   : > { %v1145_v27 = vpack.c.bf16 %v915_v54, %v911_v6  ;;  %6607 = vmatpush3.bf16.msra.mxu1 %v8337_v20  ;;  %v8442_v22 = vpack.c.bf16 %v1115_v56, %v1112_v10 }
 0x232   : > { %6608 = vmatprep.subr.bf16.mxu1 %v8357_v44  ;;  %v8445_v46 = vpack.c.bf16 %v1107_v18, %v1104_v25 }
 0x233   : > { %6561 = vmatmul.mubr.bf16.gmra.mrb[60].mxu1 %v11783_v61  ;;  %6570 = vmatprep.subr.bf16.mxu0 %v1145_v27 }
 0x234   : > { %6571 = vmatpush3.bf16.xpose.msra.mxu0 %v1145_v27 }
 0x235   : > { %6572 = vmatprep.subr.bf16.mxu0 %v8212_v4  ;;  %6609 = vmatpush3.bf16.msra.mxu1 %v8357_v44 }
 0x236   : > { %6610 = vmatprep.subr.bf16.mxu1 %v8355_v0 }
 0x239   : > { %6611 = vmatpush3.bf16.msra.mxu1 %v8355_v0  ;;  %v11784_v0 = vpack.c.bf16 %v8205_v59, %v8199_v51 }
 0x23a   : > { %6628 = vmatprep.subr.bf16.mxu1 %v8370_v63 }
 0x23c   : > { %6573 = vmatpush3.bf16.xpose.msra.mxu0 %v8212_v4  ;;  %v11786_v4 = vpack.c.bf16 %v8247_v36, %v8237_v28 }
 0x23d   : > { %6574 = vmatprep.subr.bf16.mxu0 %v8234_v24 }
 0x244   : > { %6575 = vmatpush3.bf16.xpose.msra.mxu0 %v8234_v24  ;;  %v11787_v24 = vpack.c.bf16 %v8269_v1, %v8259_v55 }
 0x245   : > { %6576 = vmatprep.subr.bf16.mxu0 %v8256_v50 }
 0x24c   : > { %6577 = vmatpush3.bf16.xpose.msra.mxu0 %v8256_v50 }
 0x24d   : > { %6578 = vmatprep.subr.bf16.mxu0 %v8278_v12 }
 0x254   : > { %6579 = vmatpush3.bf16.xpose.msra.mxu0 %v8278_v12  ;;  %v6047_v12 = vld [vmem:[%s11613_s1] ss:$0 sm:$0xff] }
 0x25b   : > { %6581 = vmatmul.mubr.bf16.vlgmr.msra.gmra.mrb[48].mxu0 %v1127_v53 }
 0x25c   : > { %6584 = vmatprep.mubr.bf16.mxu0 %v1128_v38 }
 0x263   : > { %6585 = vmatmul.mubr.bf16.gmra.mrb[52].mxu0 %v1129_v35 }
 0x264   : > { %6588 = vmatprep.mubr.bf16.mxu0 %v11784_v0 }
 0x26b   : > { %6589 = vmatmul.mubr.bf16.gmra.mrb[56].mxu0 %v11785_v48 }
 0x26c   : > { %6592 = vmatprep.mubr.bf16.mxu0 %v11786_v4 }
 0x273   : > { %6593 = vmatmul.mubr.bf16.gmra.mrb[60].mxu0 %v11787_v24  ;;  %v6048_v24 = vld [vmem:[%s11613_s1 + $0x1] ss:$0 sm:$0xff] }
 0x2ee   : > { %v6550_v50 = vpop.f32.mrb[48].mxu1 }
 0x2ef   : > { %v1362_v23 = vmul.f32 0.088388346, %v6550_v50  ;;  %v1200_v51 = vpop.f32.mrb[49].mxu1 }
 0x2f0   : > { %v1360_v59 = vmul.f32 0.088388346, %v1200_v51  ;;  %v6551_v20 = vpop.f32.mrb[50].mxu1 }
 0x2f1   : > { %v1363_v57 = vmul.f32 0.088388346, %v6551_v20  ;;  %v1203_v8 = vpop.f32.mrb[51].mxu1  ;;  %v8480_v16 = vadd.f32 %v6047_v12, %v1362_v23 }
 0x2f2   : > { %v1361_v60 = vmul.f32 0.088388346, %v1203_v8  ;;  %v8482_v28 = vadd.f32 %v6047_v12, %v1360_v59 }
 0x2f3   : > { %1442 = vmax.xlane.f32.xlu1 %v8480_v16  ;;  %v8486_v36 = vadd.f32 %v6047_v12, %v1363_v57 }
 0x2f4   : > { %1438 = vmax.xlane.f32.xlu0 %v8482_v28  ;;  %v8488_v1 = vadd.f32 %v6047_v12, %v1361_v60 }
 0x2f6   : > { %v6554_v55 = vpop.f32.mrb[52].mxu1 }
 0x2f7   : > { %1444 = vmax.xlane.f32.xlu1 %v8486_v36  ;;  %v1216_v44 = vpop.f32.mrb[53].mxu1  ;;  %v1366_v62 = vmul.f32 0.088388346, %v6554_v55 }
 0x2f8   : > { %v1364_v47 = vmul.f32 0.088388346, %v1216_v44  ;;  %1440 = vmax.xlane.f32.xlu0 %v8488_v1  ;;  %v6555_v14 = vpop.f32.mrb[54].mxu1 }
 0x2f9   : > { %v1219_v53 = vpop.f32.mrb[55].mxu1  ;;  %v1367_v58 = vmul.f32 0.088388346, %v6555_v14  ;;  %v8498_v39 = vadd.f32 %v6047_v12, %v1366_v62 }
 0x2fa   : > { %v1365_v9 = vmul.f32 0.088388346, %v1219_v53  ;;  %v8492_v49 = vadd.f32 %v6047_v12, %v1364_v47 }
 0x2fb   : > { %v8501_v33 = vadd.f32 %v6047_v12, %v1367_v58 }
 0x2fc   : > { %1446 = vmax.xlane.f32.xlu0 %v8492_v49  ;;  %v8495_v26 = vadd.f32 %v6047_v12, %v1365_v9 }
 0x2fe   : > { %1448 = vmax.xlane.f32.xlu1 %v8495_v26  ;;  %v6558_v29 = vpop.f32.mrb[56].mxu1 }
 0x2ff   : > { %v1232_v38 = vpop.f32.mrb[57].mxu1  ;;  %v1370_v34 = vmul.f32 0.088388346, %v6558_v29 }
 0x300   : > { %v1368_v32 = vmul.f32 0.088388346, %v1232_v38  ;;  %1450 = vmax.xlane.f32.xlu0 %v8498_v39  ;;  %v6559_v13 = vpop.f32.mrb[58].mxu1 }
 0x301   : > { %v1235_v2 = vpop.f32.mrb[59].mxu1  ;;  %v1371_v6 = vmul.f32 0.088388346, %v6559_v13  ;;  %v8510_v30 = vadd.f32 %v6047_v12, %v1370_v34 }
 0x302   : > { %v1369_v41 = vmul.f32 0.088388346, %v1235_v2  ;;  %1452 = vmax.xlane.f32.xlu1 %v8501_v33  ;;  %v8504_v31 = vadd.f32 %v6047_v12, %v1368_v32 }
 0x303   : > { %v8513_v37 = vadd.f32 %v6047_v12, %v1371_v6 }
 0x304   : > { %1454 = vmax.xlane.f32.xlu0 %v8504_v31  ;;  %v8507_v40 = vadd.f32 %v6047_v12, %v1369_v41 }
 0x306   : > { %1456 = vmax.xlane.f32.xlu1 %v8507_v40  ;;  %v6562_v10 = vpop.f32.mrb[60].mxu1 }
 0x307   : > { %v1248_v3 = vpop.f32.mrb[61].mxu1  ;;  %v1374_v56 = vmul.f32 0.088388346, %v6562_v10 }
 0x308   : > { %v1372_v5 = vmul.f32 0.088388346, %v1248_v3  ;;  %1458 = vmax.xlane.f32.xlu0 %v8510_v30  ;;  %v6563_v25 = vpop.f32.mrb[62].mxu1 }
 0x309   : > { %v1251_v54 = vpop.f32.mrb[63].mxu1  ;;  %v1375_v18 = vmul.f32 0.088388346, %v6563_v25  ;;  %v8522_v61 = vadd.f32 %v6047_v12, %v1374_v56 }
 0x30a   : > { %v1373_v52 = vmul.f32 0.088388346, %v1251_v54  ;;  %1460 = vmax.xlane.f32.xlu1 %v8513_v37  ;;  %v8516_v35 = vadd.f32 %v6047_v12, %v1372_v5 }
 0x30b   : > { %v8525_v0 = vadd.f32 %v6047_v12, %v1375_v18 }
 0x30c   : > { %1462 = vmax.xlane.f32.xlu0 %v8516_v35  ;;  %v8519_v27 = vadd.f32 %v6047_v12, %v1373_v52 }
 0x30e   : > { %1464 = vmax.xlane.f32.xlu1 %v8519_v27 }
 0x310   : > { %1466 = vmax.xlane.f32.xlu0 %v8522_v61 }
 0x312   : > { %1468 = vmax.xlane.f32.xlu1 %v8525_v0 }
 0x32e   : > { %v6582_v48 = vpop.f32.mrb[48].mxu0 }
 0x32f   : > { %v1297_v4 = vpop.f32.mrb[49].mxu0  ;;  %v1378_v50 = vmul.f32 0.088388346, %v6582_v48 }
 0x330   : > { %v1376_v23 = vmul.f32 0.088388346, %v1297_v4  ;;  %v6583_v51 = vpop.f32.mrb[50].mxu0 }
 0x331   : > { %v1300_v59 = vpop.f32.mrb[51].mxu0  ;;  %v1379_v20 = vmul.f32 0.088388346, %v6583_v51  ;;  %v8536_v60 = vadd.f32 %v6048_v24, %v1378_v50 }
 0x332   : > { %v1377_v57 = vmul.f32 0.088388346, %v1300_v59  ;;  %v8531_v8 = vadd.f32 %v6048_v24, %v1376_v23 }
 0x333   : > { %v8539_v44 = vadd.f32 %v6048_v24, %v1379_v20 }
 0x334   : > { %1470 = vmax.xlane.f32.xlu0 %v8531_v8  ;;  %v8534_v12 = vadd.f32 %v6048_v24, %v1377_v57 }
 0x336   : > { %v6586_v55 = vpop.f32.mrb[52].mxu0  ;;  %1472 = vmax.xlane.f32.xlu1 %v8534_v12 }
 0x337   : > { %v1382_v47 = vmul.f32 0.088388346, %v6586_v55  ;;  %v1313_v14 = vpop.f32.mrb[53].mxu0 }
 0x338   : > { %v1380_v53 = vmul.f32 0.088388346, %v1313_v14  ;;  %v6587_v62 = vpop.f32.mrb[54].mxu0  ;;  %1474 = vmax.xlane.f32.xlu0 %v8536_v60 }
 0x339   : > { %v1383_v9 = vmul.f32 0.088388346, %v6587_v62  ;;  %v1316_v58 = vpop.f32.mrb[55].mxu0  ;;  %v8542_v29 = vadd.f32 %v6048_v24, %v1382_v47 }
 0x33a   : > { %v1381_v38 = vmul.f32 0.088388346, %v1316_v58  ;;  %1476 = vmax.xlane.f32.xlu1 %v8539_v44  ;;  %v8548_v13 = vadd.f32 %v6048_v24, %v1380_v53 }
 0x33b   : > { %v8545_v32 = vadd.f32 %v6048_v24, %v1383_v9 }
 0x33c   : > { %1482 = vmax.xlane.f32.xlu0 %v8542_v29  ;;  %v8551_v2 = vadd.f32 %v6048_v24, %v1381_v38 }
 0x33e   : > { %1484 = vmax.xlane.f32.xlu1 %v8545_v32  ;;  %v6590_v34 = vpop.f32.mrb[56].mxu0 }
 0x33f   : > { %v1386_v41 = vmul.f32 0.088388346, %v6590_v34  ;;  %v1329_v6 = vpop.f32.mrb[57].mxu0 }
 0x340   : > { %1478 = vmax.xlane.f32.xlu0 %v8548_v13  ;;  %v1384_v10 = vmul.f32 0.088388346, %v1329_v6  ;;  %v6591_v3 = vpop.f32.mrb[58].mxu0 }
 0x341   : > { %v1387_v5 = vmul.f32 0.088388346, %v6591_v3  ;;  %v1332_v25 = vpop.f32.mrb[59].mxu0  ;;  %v8554_v54 = vadd.f32 %v6048_v24, %v1386_v41 }
 0x342   : > { %1480 = vmax.xlane.f32.xlu1 %v8551_v2  ;;  %v1385_v56 = vmul.f32 0.088388346, %v1332_v25  ;;  %v8557_v52 = vadd.f32 %v6048_v24, %v1384_v10 }
 0x343   : > { %v8559_v18 = vadd.f32 %v6048_v24, %v1387_v5 }
 0x344   : > { %v8561_v48 = vadd.f32 %v6048_v24, %v1385_v56 }
 0x346   : > { %v6594_v4 = vpop.f32.mrb[60].mxu0 }
 0x347   : > { %v1390_v50 = vmul.f32 0.088388346, %v6594_v4  ;;  %v1345_v23 = vpop.f32.mrb[61].mxu0 }
 0x348   : > { %v1388_v51 = vmul.f32 0.088388346, %v1345_v23  ;;  %v6595_v59 = vpop.f32.mrb[62].mxu0 }
 0x349   : > { %v1391_v20 = vmul.f32 0.088388346, %v6595_v59  ;;  %v1348_v57 = vpop.f32.mrb[63].mxu0  ;;  %v8563_v55 = vadd.f32 %v6048_v24, %v1390_v50 }
 0x34a   : > { %v1389_v47 = vmul.f32 0.088388346, %v1348_v57  ;;  %v8565_v14 = vadd.f32 %v6048_v24, %v1388_v51 }
 0x34b   : > { %v8567_v53 = vadd.f32 %v6048_v24, %v1391_v20 }
 0x34c   : > { %v8569_v62 = vadd.f32 %v6048_v24, %v1389_v47 }
 0x380   : > { %v1443_v9 = vpop.xlane.xlu1 %1442 }
 0x381   : > { %v1504_v58 = vsub.f32 %v8480_v16, %v1443_v9  ;;  %v1439_v38 = vpop.xlane.xlu0 %1438 }
 0x382   : > { %v1502_v34 = vsub.f32 %v8482_v28, %v1439_v38 }
 0x383   : > { %v1538_v10 = vmul.f32 1.442695, %v1504_v58 }
 0x384   : > { %v1534_v41 = vmul.f32 1.442695, %v1502_v34  ;;  %v1445_v6 = vpop.xlane.xlu1 %1444 }
 0x385   : > { %v1441_v3 = vpop.xlane.xlu0 %1440  ;;  %v1505_v5 = vsub.f32 %v8486_v36, %v1445_v6 }
 0x386   : > { %6954 = vpow2.f32 %v1534_v41  ;;  %v1503_v25 = vsub.f32 %v8488_v1, %v1441_v3 }
 0x387   : > { %6956 = vpow2.f32 %v1538_v10  ;;  %v1540_v24 = vmul.f32 1.442695, %v1505_v5 }
 0x388   : > { %v1536_v56 = vmul.f32 1.442695, %v1503_v25 }
 0x389   : > { %v1447_v4 = vpop.xlane.xlu0 %1446 }
 0x38a   : > { %6958 = vpow2.f32 %v1536_v56  ;;  %v1506_v16 = vsub.f32 %v8492_v49, %v1447_v4 }
 0x38b   : > { %v1449_v50 = vpop.xlane.xlu1 %1448  ;;  %6960 = vpow2.f32 %v1540_v24 }
 0x38c   : > { %v1507_v51 = vsub.f32 %v8495_v26, %v1449_v50  ;;  %v1542_v59 = vmul.f32 1.442695, %v1506_v16 }
 0x38d   : > { %v1451_v23 = vpop.xlane.xlu0 %1450 }
 0x38e   : > { %v1508_v36 = vsub.f32 %v8498_v39, %v1451_v23  ;;  %v1544_v47 = vmul.f32 1.442695, %v1507_v51  ;;  %6962 = vpow2.f32 %v1542_v59 }
 0x38f   : > { %v1453_v20 = vpop.xlane.xlu1 %1452 }
 0x390   : > { %v8576_v28 = vpop.eup %6954  ;;  %v1546_v49 = vmul.f32 1.442695, %v1508_v36  ;;  %v1509_v26 = vsub.f32 %v8501_v33, %v1453_v20  ;;  %6964 = vpow2.f32 %v1544_v47 }
 0x391   : > { %1598 = vadd.xlane.f32.xlu0 %v8576_v28  ;;  %v8581_v1 = vpop.eup %6956  ;;  %v1455_v9 = vpop.xlane.xlu0 %1454 }
 0x392   : > { %6966 = vpow2.f32 %v1546_v49  ;;  %v1548_v39 = vmul.f32 1.442695, %v1509_v26  ;;  %v1510_v41 = vsub.f32 %v8504_v31, %v1455_v9 }
 0x393   : > { %v1457_v38 = vpop.xlane.xlu1 %1456 }
 0x394   : > { %v8583_v57 = vpop.eup %6958  ;;  %6968 = vpow2.f32 %v1548_v39  ;;  %v1511_v10 = vsub.f32 %v8507_v40, %v1457_v38  ;;  %v1550_v5 = vmul.f32 1.442695, %v1510_v41 }
 0x395   : > { %1602 = vadd.xlane.f32.xlu0 %v8581_v1  ;;  %1600 = vadd.xlane.f32.xlu1 %v8583_v57  ;;  %v8588_v58 = vpop.eup %6960  ;;  %v1459_v34 = vpop.xlane.xlu0 %1458 }
 0x396   : > { %v1512_v25 = vsub.f32 %v8510_v30, %v1459_v34  ;;  %v1552_v24 = vmul.f32 1.442695, %v1511_v10  ;;  %6970 = vpow2.f32 %v1550_v5 }
 0x397   : > { %v1461_v6 = vpop.xlane.xlu1 %1460 }
 0x398   : > { %v8595_v33 = vpop.eup %6962  ;;  %v1513_v31 = vsub.f32 %v8513_v37, %v1461_v6  ;;  %v1554_v40 = vmul.f32 1.442695, %v1512_v25  ;;  %6972 = vpow2.f32 %v1552_v24 }
 0x399   : > { %1486 = vmax.xlane.f32.xlu0 %v8557_v52  ;;  %1604 = vadd.xlane.f32.xlu1 %v8588_v58  ;;  %v1463_v3 = vpop.xlane.xlu0 %1462 }
 0x39a   : > { %v8601_v56 = vpop.eup %6964  ;;  %v1514_v16 = vsub.f32 %v8516_v35, %v1463_v3  ;;  %v1556_v30 = vmul.f32 1.442695, %v1513_v31  ;;  %6974 = vpow2.f32 %v1554_v40 }
 0x39b   : > { %v1465_v50 = vpop.xlane.xlu1 %1464 }
 0x39c   : > { %v8603_v4 = vpop.eup %6966  ;;  %v1515_v59 = vsub.f32 %v8519_v27, %v1465_v50  ;;  %v1558_v37 = vmul.f32 1.442695, %v1514_v16  ;;  %6976 = vpow2.f32 %v1556_v30 }
 0x39d   : > { %1490 = vmax.xlane.f32.xlu0 %v8554_v54  ;;  %1488 = vmax.xlane.f32.xlu1 %v8561_v48  ;;  %v1467_v23 = vpop.xlane.xlu0 %1466 }
 0x39e   : > { %v8609_v51 = vpop.eup %6968  ;;  %v1516_v36 = vsub.f32 %v8522_v61, %v1467_v23  ;;  %v1560_v47 = vmul.f32 1.442695, %v1515_v59  ;;  %6978 = vpow2.f32 %v1558_v37 }
 0x39f   : > { %v1469_v20 = vpop.xlane.xlu1 %1468 }
 0x3a0   : > { %v1562_v35 = vmul.f32 1.442695, %v1516_v36  ;;  %v1517_v9 = vsub.f32 %v8525_v0, %v1469_v20  ;;  %v8618_v27 = vpop.eup %6970  ;;  %6980 = vpow2.f32 %v1560_v47 }
 0x3a1   : > { %1606 = vadd.xlane.f32.xlu0 %v8595_v33  ;;  %1492 = vmax.xlane.f32.xlu1 %v8559_v18 }
 0x3a2   : > { %6982 = vpow2.f32 %v1562_v35  ;;  %v1564_v61 = vmul.f32 1.442695, %v1517_v9  ;;  %v8622_v49 = vpop.eup %6972 }
 0x3a4   : > { %v8624_v26 = vpop.eup %6974  ;;  %6984 = vpow2.f32 %v1564_v61 }
 0x3a5   : > { %1610 = vadd.xlane.f32.xlu0 %v8603_v4  ;;  %1608 = vadd.xlane.f32.xlu1 %v8601_v56 }
 0x3a6   : > { %v8628_v38 = vpop.eup %6976 }
 0x3a8   : > { %v8630_v0 = vpop.eup %6978 }
 0x3a9   : > { %1494 = vmax.xlane.f32.xlu0 %v8565_v14  ;;  %1612 = vadd.xlane.f32.xlu1 %v8609_v51 }
 0x3aa   : > { %v8634_v39 = vpop.eup %6980 }
 0x3ac   : > { %v8636_v34 = vpop.eup %6982 }
 0x3ad   : > { %1498 = vmax.xlane.f32.xlu0 %v8563_v55  ;;  %1496 = vmax.xlane.f32.xlu1 %v8569_v62 }
 0x3ae   : > { %v8640_v41 = vpop.eup %6984 }
 0x3b1   : > { %1614 = vadd.xlane.f32.xlu0 %v8618_v27  ;;  %1500 = vmax.xlane.f32.xlu1 %v8567_v53 }
 0x3b5   : > { %1618 = vadd.xlane.f32.xlu0 %v8624_v26  ;;  %1616 = vadd.xlane.f32.xlu1 %v8622_v49 }
 0x3b9   : > { %1622 = vadd.xlane.f32.xlu0 %v8630_v0  ;;  %1620 = vadd.xlane.f32.xlu1 %v8628_v38 }
 0x3bd   : > { %1626 = vadd.xlane.f32.xlu0 %v8636_v34  ;;  %1624 = vadd.xlane.f32.xlu1 %v8634_v39 }
 0x3c1   : > { %v1471_v6 = vpop.xlane.xlu0 %1470  ;;  %1628 = vadd.xlane.f32.xlu1 %v8640_v41 }
 0x3c2   : > { %v1518_v10 = vsub.f32 %v8531_v8, %v1471_v6 }
 0x3c3   : > { %v1473_v3 = vpop.xlane.xlu1 %1472 }
 0x3c4   : > { %v1566_v5 = vmul.f32 1.442695, %v1518_v10  ;;  %v1519_v25 = vsub.f32 %v8534_v12, %v1473_v3 }
 0x3c5   : > { %v1475_v24 = vpop.xlane.xlu0 %1474 }
 0x3c6   : > { %6986 = vpow2.f32 %v1566_v5  ;;  %v1568_v31 = vmul.f32 1.442695, %v1519_v25  ;;  %v1520_v50 = vsub.f32 %v8536_v60, %v1475_v24 }
 0x3c7   : > { %v1477_v40 = vpop.xlane.xlu1 %1476 }
 0x3c8   : > { %6988 = vpow2.f32 %v1568_v31  ;;  %v1570_v16 = vmul.f32 1.442695, %v1520_v50  ;;  %v1521_v23 = vsub.f32 %v8539_v44, %v1477_v40 }
 0x3c9   : > { %v1483_v30 = vpop.xlane.xlu0 %1482 }
 0x3ca   : > { %6990 = vpow2.f32 %v1570_v16  ;;  %v1572_v59 = vmul.f32 1.442695, %v1521_v23  ;;  %v1524_v36 = vsub.f32 %v8542_v29, %v1483_v30 }
 0x3cb   : > { %v1485_v37 = vpop.xlane.xlu1 %1484 }
 0x3cc   : > { %6992 = vpow2.f32 %v1572_v59  ;;  %v1525_v60 = vsub.f32 %v8545_v32, %v1485_v37  ;;  %v1578_v61 = vmul.f32 1.442695, %v1524_v36 }
 0x3cd   : > { %v1479_v8 = vpop.xlane.xlu0 %1478 }
 0x3ce   : > { %v1522_v12 = vsub.f32 %v8548_v13, %v1479_v8  ;;  %v1580_v13 = vmul.f32 1.442695, %v1525_v60 }
 0x3cf   : > { %v1481_v20 = vpop.xlane.xlu1 %1480 }
 0x3d0   : > { %v8649_v47 = vpop.eup %6986  ;;  %v1574_v35 = vmul.f32 1.442695, %v1522_v12  ;;  %v1523_v9 = vsub.f32 %v8551_v2, %v1481_v20 }
 0x3d1   : > { %1630 = vadd.xlane.f32.xlu0 %v8649_v47 }
 0x3d2   : > { %v8654_v44 = vpop.eup %6988  ;;  %6994 = vpow2.f32 %v1574_v35  ;;  %v1576_v6 = vmul.f32 1.442695, %v1523_v9 }
 0x3d3   : > { %1632 = vadd.xlane.f32.xlu1 %v8654_v44 }
 0x3d4   : > { %v8657_v29 = vpop.eup %6990  ;;  %6996 = vpow2.f32 %v1576_v6 }
 0x3d5   : > { %1634 = vadd.xlane.f32.xlu0 %v8657_v29  ;;  %6998 = vpow2.f32 %v1578_v61 }
 0x3d6   : > { %v8660_v10 = vpop.eup %6992  ;;  %7000 = vpow2.f32 %v1580_v13 }
 0x3d7   : > { %1636 = vadd.xlane.f32.xlu1 %v8660_v10 }
 0x3dc   : > { %v8663_v32 = vpop.eup %6994 }
 0x3dd   : > { %1638 = vadd.xlane.f32.xlu0 %v8663_v32 }
 0x3de   : > { %v8666_v2 = vpop.eup %6996 }
 0x3df   : > { %1640 = vadd.xlane.f32.xlu1 %v8666_v2  ;;  %v8669_v3 = vpop.eup %6998 }
 0x3e0   : > { %v8672_v5 = vpop.eup %7000 }
 0x3e1   : > { %1642 = vadd.xlane.f32.xlu0 %v8669_v3 }
 0x3e3   : > { %1644 = vadd.xlane.f32.xlu1 %v8672_v5 }
 0x41e   : > { %v1599_v25 = vpop.xlane.xlu0 %1598 }
 0x41f   : > { %7002 = vrcp.f32 %v1599_v25 }
 0x422   : > { %v1603_v24 = vpop.xlane.xlu0 %1602  ;;  %v1601_v31 = vpop.xlane.xlu1 %1600 }
 0x423   : > { %7004 = vrcp.f32 %v1601_v31 }
 0x424   : > { %7006 = vrcp.f32 %v1603_v24 }
 0x426   : > { %v1487_v50 = vpop.xlane.xlu0 %1486  ;;  %v1605_v40 = vpop.xlane.xlu1 %1604 }
 0x427   : > { %v1526_v16 = vsub.f32 %v8557_v52, %v1487_v50  ;;  %7008 = vrcp.f32 %v1605_v40 }
 0x429   : > { %v1582_v23 = vmul.f32 1.442695, %v1526_v16  ;;  %v7003_v36 = vpop.eup %7002 }
 0x42a   : > { %v1491_v30 = vpop.xlane.xlu0 %1490  ;;  %v1489_v59 = vpop.xlane.xlu1 %1488  ;;  %v1694_v52 = vmul.f32 %v7003_v36, %v8576_v28 }
 0x42b   : > { %7010 = vpow2.f32 %v1582_v23  ;;  %v1528_v37 = vsub.f32 %v8554_v54, %v1491_v30  ;;  %v1527_v8 = vsub.f32 %v8561_v48, %v1489_v59 }
 0x42d   : > { %v1586_v12 = vmul.f32 1.442695, %v1528_v37  ;;  %v1584_v20 = vmul.f32 1.442695, %v1527_v8  ;;  %v7005_v60 = vpop.eup %7004 }
 0x42e   : > { %v1607_v35 = vpop.xlane.xlu0 %1606  ;;  %v1493_v9 = vpop.xlane.xlu1 %1492  ;;  %v1695_v13 = vmul.f32 %v7005_v60, %v8583_v57 }
 0x42f   : > { %v7007_v61 = vpop.eup %7006  ;;  %7012 = vpow2.f32 %v1586_v12  ;;  %v1529_v6 = vsub.f32 %v8559_v18, %v1493_v9 }
 0x430   : > { %7014 = vpow2.f32 %v1584_v20  ;;  %v1726_v54 = vpack.c.bf16 %v1695_v13, %v1694_v52  ;;  %v1696_v48 = vmul.f32 %v7007_v61, %v8581_v1 }
 0x431   : > { %v7009_v25 = vpop.eup %7008  ;;  %v1588_v24 = vmul.f32 1.442695, %v1529_v6  ;;  %7016 = vrcp.f32 %v1607_v35 }
 0x432   : > { %v1697_v31 = vmul.f32 %v7009_v25, %v8588_v58  ;;  %v1611_v50 = vpop.xlane.xlu0 %1610  ;;  %v1609_v40 = vpop.xlane.xlu1 %1608  ;;  %6612 = vmatprep.mubr.bf16.mxu1 %v1726_v54 }
 0x433   : > { %7018 = vpow2.f32 %v1588_v24 }
 0x434   : > { %7020 = vrcp.f32 %v1611_v50  ;;  %v1727_v16 = vpack.c.bf16 %v1697_v31, %v1696_v48 }
 0x435   : > { %v8683_v18 = vpop.eup %7010  ;;  %7022 = vrcp.f32 %v1609_v40 }
 0x436   : > { %1646 = vadd.xlane.f32.xlu0 %v8683_v18  ;;  %v1495_v28 = vpop.xlane.xlu0 %1494  ;;  %6613 = vmatmul.mubr.bf16.vlgmr.msra.gmra.mrb[64].mxu1 %v1727_v16  ;;  %v1613_v57 = vpop.xlane.xlu1 %1612 }
 0x437   : > { %v1530_v23 = vsub.f32 %v8565_v14, %v1495_v28  ;;  %6629 = vmatpush3.bf16.msra.mxu1 %v8370_v63  ;;  %7024 = vrcp.f32 %v1613_v57 }
 0x438   : > { %6630 = vmatprep.subr.bf16.mxu1 %v8368_v19 }
 0x439   : > { %v8689_v1 = vpop.eup %7012  ;;  %v1590_v58 = vmul.f32 1.442695, %v1530_v23 }
 0x43a   : > { %v8691_v30 = vpop.eup %7014  ;;  %1650 = vadd.xlane.f32.xlu0 %v8689_v1  ;;  %v1499_v59 = vpop.xlane.xlu0 %1498 }
 0x43b   : > { %v1497_v37 = vpop.xlane.xlu1 %1496  ;;  %7026 = vpow2.f32 %v1590_v58  ;;  %v1532_v8 = vsub.f32 %v8563_v55, %v1499_v59  ;;  %6631 = vmatpush3.bf16.msra.mxu1 %v8368_v19  ;;  %1648 = vadd.xlane.f32.xlu1 %v8691_v30  ;;  %v7017_v14 = vpop.eup %7016 }
 0x43c   : > { %v1531_v63 = vsub.f32 %v8569_v62, %v1497_v37  ;;  %6632 = vmatprep.subr.bf16.mxu1 %v8398_v11  ;;  %v1698_v55 = vmul.f32 %v7017_v14, %v8595_v33 }
 0x43d   : > { %v8699_v36 = vpop.eup %7018  ;;  %v1594_v12 = vmul.f32 1.442695, %v1532_v8 }
 0x43e   : > { %v1592_v20 = vmul.f32 1.442695, %v1531_v63  ;;  %v7021_v60 = vpop.eup %7020  ;;  %v1615_v35 = vpop.xlane.xlu0 %1614 }
 0x43f   : > { %v1501_v9 = vpop.xlane.xlu1 %1500  ;;  %v7023_v61 = vpop.eup %7022  ;;  %7028 = vpow2.f32 %v1594_v12  ;;  %6633 = vmatpush3.bf16.msra.mxu1 %v8398_v11  ;;  %1652 = vadd.xlane.f32.xlu1 %v8699_v36  ;;  %v1700_v54 = vmul.f32 %v7021_v60, %v8603_v4 }
 0x440   : > { %v1533_v19 = vsub.f32 %v8567_v53, %v1501_v9  ;;  %7030 = vpow2.f32 %v1592_v20  ;;  %6634 = vmatprep.subr.bf16.mxu1 %v8395_v7  ;;  %v1699_v62 = vmul.f32 %v7023_v61, %v8601_v56 }
 0x441   : > { %v7025_v6 = vpop.eup %7024  ;;  %7032 = vrcp.f32 %v1615_v35 }
 0x442   : > { %v1596_v52 = vmul.f32 1.442695, %v1533_v19  ;;  %v1619_v13 = vpop.xlane.xlu0 %1618  ;;  %v1728_v25 = vpack.c.bf16 %v1699_v62, %v1698_v55  ;;  %v1701_v11 = vmul.f32 %v7025_v6, %v8609_v51  ;;  %v6866_v62 = vld [vmem:[%s8074_s25] sm:$0xff]   ;;  %v6867_v6 = vld [vmem:[%s8074_s25 + $0x8] sm:$0xff]  }
 0x443   : > { %v1617_v24 = vpop.xlane.xlu1 %1616  ;;  %6635 = vmatpush3.bf16.msra.mxu1 %v8395_v7  ;;  %6660 = vmatprep.subr.bf16.mxu0 %v6866_v62 }
 0x444   : > { %7034 = vpow2.f32 %v1596_v52  ;;  %6616 = vmatprep.mubr.bf16.mxu1 %v1728_v25  ;;  %6636 = vmatprep.subr.bf16.mxu1 %v8423_v15  ;;  %v1729_v53 = vpack.c.bf16 %v1701_v11, %v1700_v54 }
 0x445   : > { %v8711_v33 = vpop.eup %7026  ;;  %7036 = vrcp.f32 %v1617_v24  ;;  %6661 = vmatpush3.bf16.msra.mxu0 %v6866_v62 }
 0x446   : > { %7038 = vrcp.f32 %v1619_v13  ;;  %1654 = vadd.xlane.f32.xlu0 %v8711_v33  ;;  %v1623_v56 = vpop.xlane.xlu0 %1622  ;;  %6617 = vmatmul.mubr.bf16.gmra.mrb[68].mxu1 %v1729_v53 }
 0x447   : > { %v1621_v48 = vpop.xlane.xlu1 %1620  ;;  %6637 = vmatpush3.bf16.msra.mxu1 %v8423_v15  ;;  %6662 = vmatprep.subr.bf16.mxu0 %v6867_v6 }
 0x448   : > { %7040 = vrcp.f32 %v1621_v48  ;;  %6638 = vmatprep.subr.bf16.mxu1 %v8420_v21 }
 0x449   : > { %v8716_v4 = vpop.eup %7028  ;;  %7042 = vrcp.f32 %v1623_v56  ;;  %6663 = vmatpush3.bf16.msra.mxu0 %v6867_v6  ;;  %v6869_v56 = vld [vmem:[%s8074_s25 + $0x18] sm:$0xff]  }
 0x44a   : > { %v8718_v7 = vpop.eup %7030  ;;  %1658 = vadd.xlane.f32.xlu0 %v8716_v4  ;;  %v1627_v51 = vpop.xlane.xlu0 %1626 }
 0x44b   : > { %v1625_v31 = vpop.xlane.xlu1 %1624  ;;  %6639 = vmatpush3.bf16.msra.mxu1 %v8420_v21  ;;  %1656 = vadd.xlane.f32.xlu1 %v8718_v7  ;;  %v7033_v50 = vpop.eup %7032 }
 0x44c   : > { %7044 = vrcp.f32 %v1625_v31  ;;  %6640 = vmatprep.subr.bf16.mxu1 %v8445_v46  ;;  %v1702_v21 = vmul.f32 %v7033_v50, %v8618_v27 }
 0x44d   : > { %7046 = vrcp.f32 %v1627_v51 }
 0x44e   : > { %v8724_v15 = vpop.eup %7034 }
 0x44f   : > { %v1629_v40 = vpop.xlane.xlu1 %1628  ;;  %v7037_v16 = vpop.eup %7036  ;;  %6641 = vmatpush3.bf16.msra.mxu1 %v8445_v46  ;;  %1660 = vadd.xlane.f32.xlu1 %v8724_v15 }
 0x450   : > { %7048 = vrcp.f32 %v1629_v40  ;;  %v7039_v28 = vpop.eup %7038  ;;  %6642 = vmatprep.subr.bf16.mxu1 %v8442_v22  ;;  %v1703_v57 = vmul.f32 %v7037_v16, %v8622_v49 }
 0x451   : > { %v1704_v59 = vmul.f32 %v7039_v28, %v8624_v26 }
 0x452   : > { %v7041_v23 = vpop.eup %7040  ;;  %v1730_v58 = vpack.c.bf16 %v1703_v57, %v1702_v21  ;;  %v6871_v57 = vld [vmem:[%s8074_s25 + $0x28] sm:$0xff]  }
 0x453   : > { %6643 = vmatpush3.bf16.msra.mxu1 %v8442_v22  ;;  %v1705_v37 = vmul.f32 %v7041_v23, %v8628_v38  ;;  %v7043_v8 = vpop.eup %7042 }
 0x454   : > { %6620 = vmatprep.mubr.bf16.mxu1 %v1730_v58  ;;  %v1706_v12 = vmul.f32 %v7043_v8, %v8630_v0 }
 0x455   : > { %v1731_v46 = vpack.c.bf16 %v1705_v37, %v1704_v59 }
 0x456   : > { %v7045_v63 = vpop.eup %7044 }
 0x457   : > { %v7047_v14 = vpop.eup %7046  ;;  %6621 = vmatmul.mubr.bf16.gmra.mrb[72].mxu1 %v1731_v46  ;;  %v1707_v27 = vmul.f32 %v7045_v63, %v8634_v39 }
 0x458   : > { %v1708_v60 = vmul.f32 %v7047_v14, %v8636_v34 }
 0x459   : > { %v1732_v49 = vpack.c.bf16 %v1707_v27, %v1706_v12 }
 0x45a   : > { %v7049_v20 = vpop.eup %7048 }
 0x45b   : > { %v1709_v22 = vmul.f32 %v7049_v20, %v8640_v41  ;;  %6624 = vmatprep.mubr.bf16.mxu1 %v1732_v49 }
 0x45d   : > { %v1733_v26 = vpack.c.bf16 %v1709_v22, %v1708_v60 }
 0x45e   : > { %v1631_v35 = vpop.xlane.xlu0 %1630 }
 0x45f   : > { %7050 = vrcp.f32 %v1631_v35  ;;  %6625 = vmatmul.mubr.bf16.gmra.mrb[76].mxu1 %v1733_v26 }
 0x460   : > { %v1633_v38 = vpop.xlane.xlu1 %1632 }
 0x461   : > { %7052 = vrcp.f32 %v1633_v38 }
 0x462   : > { %v1635_v9 = vpop.xlane.xlu0 %1634 }
 0x463   : > { %7054 = vrcp.f32 %v1635_v9 }
 0x464   : > { %v1637_v0 = vpop.xlane.xlu1 %1636 }
 0x465   : > { %7056 = vrcp.f32 %v1637_v0 }
 0x469   : > { %v7051_v39 = vpop.eup %7050 }
 0x46a   : > { %v1639_v61 = vpop.xlane.xlu0 %1638  ;;  %v1710_v41 = vmul.f32 %v7051_v39, %v8649_v47 }
 0x46b   : > { %v7053_v19 = vpop.eup %7052  ;;  %7058 = vrcp.f32 %v1639_v61 }
 0x46c   : > { %v1641_v34 = vpop.xlane.xlu1 %1640  ;;  %v1711_v55 = vmul.f32 %v7053_v19, %v8654_v44  ;;  %v6868_v44 = vld [vmem:[%s8074_s25 + $0x10] sm:$0xff]  }
 0x46d   : > { %v7055_v52 = vpop.eup %7054  ;;  %7060 = vrcp.f32 %v1641_v34  ;;  %6664 = vmatprep.subr.bf16.mxu0 %v6868_v44 }
 0x46e   : > { %v1643_v13 = vpop.xlane.xlu0 %1642  ;;  %v1734_v25 = vpack.c.bf16 %v1711_v55, %v1710_v41  ;;  %v1712_v54 = vmul.f32 %v7055_v52, %v8657_v29  ;;  %6665 = vmatpush3.bf16.msra.mxu0 %v6868_v44  ;;  %v11788_v41 = vmov 0  }
 0x46f   : > { %v7057_v24 = vpop.eup %7056  ;;  %7062 = vrcp.f32 %v1643_v13  ;;  %6666 = vmatprep.subr.bf16.mxu0 %v6869_v56 }
 0x470   : > { %v1713_v11 = vmul.f32 %v7057_v24, %v8660_v10  ;;  %6644 = vmatprep.mubr.bf16.mxu1 %v1734_v25  ;;  %v1645_v47 = vpop.xlane.xlu1 %1644  ;;  %v6870_v10 = vld [vmem:[%s8074_s25 + $0x20] sm:$0xff]  }
 0x471   : > { %7064 = vrcp.f32 %v1645_v47 }
 0x472   : > { %v1735_v53 = vpack.c.bf16 %v1713_v11, %v1712_v54  ;;  %6667 = vmatpush3.bf16.msra.mxu0 %v6869_v56 }
 0x473   : > { %6668 = vmatprep.subr.bf16.mxu0 %v6870_v10 }
 0x474   : > { %6645 = vmatmul.mubr.bf16.vlgmr.msra.gmra.mrb[80].mxu1 %v1735_v53 }
 0x475   : > { %v7059_v48 = vpop.eup %7058 }
 0x476   : > { %v1714_v31 = vmul.f32 %v7059_v48, %v8663_v32  ;;  %6669 = vmatpush3.bf16.msra.mxu0 %v6870_v10  ;;  %v6872_v32 = vld [vmem:[%s8074_s25 + $0x30] sm:$0xff]  }
 0x477   : > { %v7061_v51 = vpop.eup %7060  ;;  %6670 = vmatprep.subr.bf16.mxu0 %v6871_v57 }
 0x478   : > { %v1715_v29 = vmul.f32 %v7061_v51, %v8666_v2  ;;  %v6873_v2 = vld [vmem:[%s8074_s25 + $0x38] sm:$0xff]  }
 0x479   : > { %v7063_v50 = vpop.eup %7062 }
 0x47a   : > { %v1736_v40 = vpack.c.bf16 %v1715_v29, %v1714_v31  ;;  %v1716_v28 = vmul.f32 %v7063_v50, %v8669_v3  ;;  %6671 = vmatpush3.bf16.msra.mxu0 %v6871_v57 }
 0x47b   : > { %v7065_v16 = vpop.eup %7064  ;;  %6672 = vmatprep.subr.bf16.mxu0 %v6872_v32 }
 0x47c   : > { %6648 = vmatprep.mubr.bf16.mxu1 %v1736_v40  ;;  %v1717_v21 = vmul.f32 %v7065_v16, %v8672_v5 }
 0x47e   : > { %v1737_v23 = vpack.c.bf16 %v1717_v21, %v1716_v28  ;;  %6673 = vmatpush3.bf16.msra.mxu0 %v6872_v32 }
 0x47f   : > { %6674 = vmatprep.subr.bf16.mxu0 %v6873_v2 }
 0x480   : > { %6649 = vmatmul.mubr.bf16.gmra.mrb[84].mxu1 %v1737_v23 }
 0x482   : > { %6675 = vmatpush3.bf16.msra.mxu0 %v6873_v2 }
 0x4c3   : > { %v1647_v58 = vpop.xlane.xlu0 %1646 }
 0x4c4   : > { %7066 = vrcp.f32 %v1647_v58 }
 0x4c7   : > { %v1651_v59 = vpop.xlane.xlu0 %1650 }
 0x4c8   : > { %v1649_v37 = vpop.xlane.xlu1 %1648 }
 0x4c9   : > { %7068 = vrcp.f32 %v1649_v37 }
 0x4ca   : > { %7070 = vrcp.f32 %v1651_v59 }
 0x4cc   : > { %v1653_v3 = vpop.xlane.xlu1 %1652 }
 0x4cd   : > { %7072 = vrcp.f32 %v1653_v3 }
 0x4ce   : > { %v7067_v5 = vpop.eup %7066 }
 0x4cf   : > { %v1718_v63 = vmul.f32 %v7067_v5, %v8683_v18 }
 0x4d3   : > { %v7069_v8 = vpop.eup %7068  ;;  %v1655_v46 = vpop.xlane.xlu0 %1654 }
 0x4d4   : > { %v1719_v14 = vmul.f32 %v7069_v8, %v8691_v30  ;;  %v7071_v12 = vpop.eup %7070  ;;  %7074 = vrcp.f32 %v1655_v46 }
 0x4d5   : > { %v1720_v22 = vmul.f32 %v7071_v12, %v8689_v1 }
 0x4d6   : > { %v1738_v27 = vpack.c.bf16 %v1719_v14, %v1718_v63 }
 0x4d7   : > { %v7073_v20 = vpop.eup %7072  ;;  %v1659_v49 = vpop.xlane.xlu0 %1658 }
 0x4d8   : > { %6652 = vmatprep.mubr.bf16.mxu1 %v1738_v27  ;;  %v1657_v60 = vpop.xlane.xlu1 %1656  ;;  %v1721_v26 = vmul.f32 %v7073_v20, %v8699_v36 }
 0x4d9   : > { %7076 = vrcp.f32 %v1657_v60 }
 0x4da   : > { %v1739_v35 = vpack.c.bf16 %v1721_v26, %v1720_v22  ;;  %7078 = vrcp.f32 %v1659_v49 }
 0x4dc   : > { %6653 = vmatmul.mubr.bf16.gmra.mrb[88].mxu1 %v1739_v35  ;;  %v1661_v38 = vpop.xlane.xlu1 %1660 }
 0x4dd   : > { %7080 = vrcp.f32 %v1661_v38  ;;  %v6874_v38 = vld [vmem:[%s8080_s4] ss:$16 sps:$4 sm:$0xff]  }
 0x4de   : > { %v7075_v18 = vpop.eup %7074 }
 0x4df   : > { %v1722_v30 = vmul.f32 %v7075_v18, %v8711_v33  ;;  %v6876_v18 = vld [vmem:[%s8080_s4 + $0x4] ss:$16 sps:$4 sm:$0xff]  }
 0x4e0   : > { %2964 = vmatprep.subr.bf16.mxu1 %v6876_v18  ;;  %v6895_v18 = vld [vmem:[%s8080_s4 + $0x60] ss:$16 sps:$4 sm:$0xff]  }
 0x4e1   : > { %2965 = vmatpush1.bf16.msra.mxu1 %v6874_v38  ;;  %v6892_v38 = vld [vmem:[%s8080_s4 + $0x68] ss:$16 sps:$4 sm:$0xff]  }
 0x4e3   : > { %v7077_v9 = vpop.eup %7076 }
 0x4e4   : > { %v1723_v0 = vmul.f32 %v7077_v9, %v8718_v7  ;;  %v7079_v39 = vpop.eup %7078  ;;  %v6877_v9 = vld [vmem:[%s8080_s4 + $0x8] ss:$16 sps:$4 sm:$0xff]  }
 0x4e5   : > { %v1724_v1 = vmul.f32 %v7079_v39, %v8716_v4 }
 0x4e6   : > { %v1740_v61 = vpack.c.bf16 %v1723_v0, %v1722_v30  ;;  %v6879_v30 = vld [vmem:[%s8080_s4 + $0xc] ss:$16 sps:$4 sm:$0xff]   ;;  %v8769_v0 = vld [vmem:[%s8107_s29] sm:$0x3f] }
 0x4e7   : > { %v7081_v19 = vpop.eup %7080  ;;  %3157 = vmatprep.subr.bf16.mxu0 %v6879_v30  ;;  %v8773_v39 = vrot.slane %v8769_v0, %v8182_v43  ;;  %v7470_v30 = vld [vmem:[#allocation2 + $0x20] sm:$0xff] }
 0x4e8   : > { %6656 = vmatprep.mubr.bf16.mxu1 %v1740_v61  ;;  %v1725_v36 = vmul.f32 %v7081_v19, %v8724_v15  ;;  %v7466_v19 = vld [vmem:[#allocation2] sm:$0xff] }
 0x4ea   : > { %v1741_v34 = vpack.c.bf16 %v1725_v36, %v1724_v1  ;;  %v2181_v1 = vunpack.c.l.bf16 %v7466_v19 }
 0x4ec   : > { %6657 = vmatmul.mubr.bf16.gmra.mrb[92].mxu1 %v1741_v34 }
 0x4ed   : > { %2996 = vmatprep.mubr.bf16.mxu1 %v11788_v41 }
 0x509   : > { %v6614_v55 = vpop.f32.mrb[64].mxu1 }
 0x50a   : > { %v1776_v62 = vpop.f32.mrb[65].mxu1 }
 0x50b   : > { %v6615_v6 = vpop.f32.mrb[66].mxu1 }
 0x50c   : > { %v1937_v52 = vpack.c.bf16 %v6615_v6, %v6614_v55  ;;  %v1779_v13 = vpop.f32.mrb[67].mxu1 }
 0x50d   : > { %v1936_v33 = vpack.c.bf16 %v1779_v13, %v1776_v62  ;;  %v2182_v62 = vunpack.c.h.bf16 %v7466_v19 }
 0x50f   : > { %6676 = vmatprep.mubr.bf16.mxu0 %v1936_v33 }
 0x510   : > { %6677 = vmatmul.mubr.bf16.vlgmr.msra.gmra.mrb[64].mxu0 %v1937_v52 }
 0x511   : > { %3158 = vmatpush1.bf16.msra.mxu0 %v6877_v9 }
 0x519   : > { %v6618_v7 = vpop.f32.mrb[68].mxu1 }
 0x51a   : > { %v1792_v25 = vpop.f32.mrb[69].mxu1 }
 0x51b   : > { %v6619_v24 = vpop.f32.mrb[70].mxu1 }
 0x51c   : > { %v1939_v54 = vpack.c.bf16 %v6619_v24, %v6618_v7  ;;  %v1795_v11 = vpop.f32.mrb[71].mxu1 }
 0x51d   : > { %v1938_v4 = vpack.c.bf16 %v1795_v11, %v1792_v25  ;;  %v7467_v25 = vld [vmem:[#allocation2 + $0x8] sm:$0xff] }
 0x51e   : > { %v2183_v24 = vunpack.c.l.bf16 %v7467_v25 }
 0x51f   : > { %6680 = vmatprep.mubr.bf16.mxu0 %v1938_v4  ;;  %v2184_v4 = vunpack.c.h.bf16 %v7467_v25  ;;  %v6901_v25 = vld [vmem:[%s8080_s4 + $0x80] ss:$16 sps:$4 sm:$0xff]  }
 0x520   : > { %6681 = vmatmul.mubr.bf16.gmra.mrb[68].mxu0 %v1939_v54 }
 0x52a   : > { %v6622_v15 = vpop.f32.mrb[72].mxu1 }
 0x52b   : > { %v1808_v47 = vpop.f32.mrb[73].mxu1 }
 0x52c   : > { %v6623_v44 = vpop.f32.mrb[74].mxu1 }
 0x52d   : > { %v1941_v53 = vpack.c.bf16 %v6623_v44, %v6622_v15  ;;  %v1811_v56 = vpop.f32.mrb[75].mxu1 }
 0x52e   : > { %v1940_v48 = vpack.c.bf16 %v1811_v56, %v1808_v47  ;;  %v7468_v56 = vld [vmem:[#allocation2 + $0x10] sm:$0xff] }
 0x530   : > { %6684 = vmatprep.mubr.bf16.mxu0 %v1940_v48  ;;  %v2185_v48 = vunpack.c.l.bf16 %v7468_v56 }
 0x531   : > { %6685 = vmatmul.mubr.bf16.gmra.mrb[72].mxu0 %v1941_v53 }
 0x532   : > { %v6626_v51 = vpop.f32.mrb[76].mxu1 }
 0x533   : > { %v1824_v31 = vpop.f32.mrb[77].mxu1 }
 0x534   : > { %v6627_v29 = vpop.f32.mrb[78].mxu1 }
 0x535   : > { %v1943_v10 = vpack.c.bf16 %v6627_v29, %v6626_v51  ;;  %v1827_v50 = vpop.f32.mrb[79].mxu1 }
 0x536   : > { %v1942_v40 = vpack.c.bf16 %v1827_v50, %v1824_v31  ;;  %v2186_v50 = vunpack.c.h.bf16 %v7468_v56  ;;  %v6907_v56 = vld [vmem:[%s8080_s4 + $0xa0] ss:$16 sps:$4 sm:$0xff]  }
 0x538   : > { %6688 = vmatprep.mubr.bf16.mxu0 %v1942_v40 }
 0x539   : > { %6689 = vmatmul.mubr.bf16.gmra.mrb[76].mxu0 %v1943_v10 }
 0x547   : > { %v6646_v16 = vpop.f32.mrb[80].mxu1 }
 0x548   : > { %v1873_v28 = vpop.f32.mrb[81].mxu1 }
 0x549   : > { %v6647_v21 = vpop.f32.mrb[82].mxu1 }
 0x54a   : > { %v1945_v57 = vpack.c.bf16 %v6647_v21, %v6646_v16  ;;  %v1876_v23 = vpop.f32.mrb[83].mxu1 }
 0x54b   : > { %v1944_v32 = vpack.c.bf16 %v1876_v23, %v1873_v28  ;;  %v6882_v23 = vld [vmem:[%s8080_s4 + $0x2c] ss:$16 sps:$4 sm:$0xff]  }
 0x54c   : > { %3159 = vmatprep.subr.bf16.mxu0 %v6882_v23 }
 0x54d   : > { %6692 = vmatprep.mubr.bf16.mxu0 %v1944_v32  ;;  %v6885_v32 = vld [vmem:[%s8080_s4 + $0x24] ss:$16 sps:$4 sm:$0xff]  }
 0x54e   : > { %6693 = vmatmul.mubr.bf16.gmra.mrb[80].mxu0 %v1945_v57  ;;  %2966 = vmatprep.subr.bf16.mxu1 %v6885_v32  ;;  %v6912_v32 = vld [vmem:[%s8080_s4 + $0xcc] ss:$16 sps:$4 sm:$0xff]  }
 0x553   : > { %v6650_v2 = vpop.f32.mrb[84].mxu1 }
 0x554   : > { %v1889_v58 = vpop.f32.mrb[85].mxu1 }
 0x555   : > { %v6651_v59 = vpop.f32.mrb[86].mxu1 }
 0x556   : > { %v1947_v37 = vpack.c.bf16 %v6651_v59, %v6650_v2  ;;  %v1892_v3 = vpop.f32.mrb[87].mxu1 }
 0x557   : > { %v1946_v5 = vpack.c.bf16 %v1892_v3, %v1889_v58  ;;  %v7469_v58 = vld [vmem:[#allocation2 + $0x18] sm:$0xff] }
 0x558   : > { %v2187_v59 = vunpack.c.l.bf16 %v7469_v58  ;;  %v6880_v3 = vld [vmem:[%s8080_s4 + $0x28] ss:$16 sps:$4 sm:$0xff]  }
 0x559   : > { %6696 = vmatprep.mubr.bf16.mxu0 %v1946_v5  ;;  %v6883_v5 = vld [vmem:[%s8080_s4 + $0x20] ss:$16 sps:$4 sm:$0xff]   ;;  %3160 = vmatpush1.bf16.msra.mxu0 %v6880_v3 }
 0x55a   : > { %6697 = vmatmul.mubr.bf16.gmra.mrb[84].mxu0 %v1947_v37  ;;  %2967 = vmatpush1.bf16.msra.mxu1 %v6883_v5 }
 0x5af   : > { %v6654_v8 = vpop.f32.mrb[88].mxu1 }
 0x5b0   : > { %v1905_v46 = vpop.f32.mrb[89].mxu1 }
 0x5b1   : > { %v6655_v63 = vpop.f32.mrb[90].mxu1 }
 0x5b2   : > { %v1949_v14 = vpack.c.bf16 %v6655_v63, %v6654_v8  ;;  %v1908_v12 = vpop.f32.mrb[91].mxu1 }
 0x5b3   : > { %v1948_v27 = vpack.c.bf16 %v1908_v12, %v1905_v46  ;;  %v2188_v46 = vunpack.c.h.bf16 %v7469_v58  ;;  %v6891_v12 = vld [vmem:[%s8080_s4 + $0x44] ss:$16 sps:$4 sm:$0xff]  }
 0x5b4   : > { %2968 = vmatprep.subr.bf16.mxu1 %v6891_v12 }
 0x5b5   : > { %6700 = vmatprep.mubr.bf16.mxu0 %v1948_v27 }
 0x5b6   : > { %6701 = vmatmul.mubr.bf16.gmra.mrb[88].mxu0 %v1949_v14  ;;  %v6888_v14 = vld [vmem:[%s8080_s4 + $0x4c] ss:$16 sps:$4 sm:$0xff]  }
 0x5b7   : > { %3161 = vmatprep.subr.bf16.mxu0 %v6888_v14  ;;  %v6919_v14 = vld [vmem:[%s8080_s4 + $0xe0] ss:$16 sps:$4 sm:$0xff]  }
 0x5bf   : > { %v6658_v20 = vpop.f32.mrb[92].mxu1 }
 0x5c0   : > { %v1921_v49 = vpop.f32.mrb[93].mxu1 }
 0x5c1   : > { %v6659_v60 = vpop.f32.mrb[94].mxu1 }
 0x5c2   : > { %v1951_v22 = vpack.c.bf16 %v6659_v60, %v6658_v20  ;;  %v1924_v26 = vpop.f32.mrb[95].mxu1  ;;  %v6886_v20 = vld [vmem:[%s8080_s4 + $0x48] ss:$16 sps:$4 sm:$0xff]  }
 0x5c3   : > { %v1950_v35 = vpack.c.bf16 %v1924_v26, %v1921_v49  ;;  %v6889_v49 = vld [vmem:[%s8080_s4 + $0x40] ss:$16 sps:$4 sm:$0xff]   ;;  %3162 = vmatpush1.bf16.msra.mxu0 %v6886_v20  ;;  %v6897_v26 = vld [vmem:[%s8080_s4 + $0x64] ss:$16 sps:$4 sm:$0xff]  }
 0x5c4   : > { %2969 = vmatpush1.bf16.msra.mxu1 %v6889_v49  ;;  %v7472_v20 = vld [vmem:[#allocation2 + $0x30] sm:$0xff] }
 0x5c5   : > { %6704 = vmatprep.mubr.bf16.mxu0 %v1950_v35  ;;  %2970 = vmatprep.subr.bf16.mxu1 %v6897_v26  ;;  %v2193_v49 = vunpack.c.l.bf16 %v7472_v20 }
 0x5c6   : > { %6705 = vmatmul.mubr.bf16.gmra.mrb[92].mxu0 %v1951_v22  ;;  %v6894_v22 = vld [vmem:[%s8080_s4 + $0x6c] ss:$16 sps:$4 sm:$0xff]  }
 0x5c7   : > { %3189 = vmatprep.mubr.bf16.mxu0 %v11788_v41  ;;  %3163 = vmatprep.subr.bf16.mxu0 %v6894_v22 }
 0x5c8   : > { %2971 = vmatpush1.bf16.msra.mxu1 %v6895_v18  ;;  %3164 = vmatpush1.bf16.msra.mxu0 %v6892_v38 }
 0x5e3   : > { %v6678_v61 = vpop.f32.mrb[64].mxu0 }
 0x5e4   : > { %v2054_v36 = vpop.f32.mrb[65].mxu0  ;;  %v2063_v7 = vadd.f32 %v6678_v61, %v8773_v39  ;;  %v2189_v61 = vunpack.c.l.bf16 %v7470_v30 }
 0x5e5   : > { %v2055_v34 = vadd.f32 %v2054_v36, %v8773_v39  ;;  %v6679_v55 = vpop.f32.mrb[66].mxu0 }
 0x5e6   : > { %v2057_v6 = vpop.f32.mrb[67].mxu0  ;;  %v2066_v11 = vadd.f32 %v6679_v55, %v8773_v39  ;;  %v8789_v47 = vadd.f32 %v2183_v24, %v2063_v7  ;;  %v2190_v55 = vunpack.c.h.bf16 %v7470_v30  ;;  %v6898_v7 = vld [vmem:[%s8080_s4 + $0x88] ss:$16 sps:$4 sm:$0xff]  }
 0x5e7   : > { %v8776_v52 = vadd.f32 %v2181_v1, %v2055_v34  ;;  %v2058_v13 = vadd.f32 %v2057_v6, %v8773_v39  ;;  %v6903_v6 = vld [vmem:[%s8080_s4 + $0x84] ss:$16 sps:$4 sm:$0xff]  }
 0x5e8   : > { %v8791_v44 = vadd.f32 %v2184_v4, %v2066_v11  ;;  %v2344_v51 = vmul.f32 %v8789_v47, %v8789_v47  ;;  %2972 = vmatprep.subr.bf16.mxu1 %v6903_v6  ;;  %v6906_v4 = vld [vmem:[%s8080_s4 + $0xac] ss:$16 sps:$4 sm:$0xff]  }
 0x5e9   : > { %v8779_v33 = vadd.f32 %v2182_v62, %v2058_v13  ;;  %2245 = vadd.xlane.f32.xlu0 %v8776_v52  ;;  %v2342_v54 = vmul.f32 %v8776_v52, %v8776_v52  ;;  %v6900_v62 = vld [vmem:[%s8080_s4 + $0x8c] ss:$16 sps:$4 sm:$0xff]   ;;  %2973 = vmatpush1.bf16.msra.mxu1 %v6901_v25 }
 0x5ea   : > { %v2345_v40 = vmul.f32 %v8791_v44, %v8791_v44  ;;  %3165 = vmatprep.subr.bf16.mxu0 %v6900_v62 }
 0x5eb   : > { %2247 = vadd.xlane.f32.xlu1 %v8779_v33  ;;  %v2343_v15 = vmul.f32 %v8779_v33, %v8779_v33  ;;  %3166 = vmatpush1.bf16.msra.mxu0 %v6898_v7 }
 0x5ec   : > { %3167 = vmatprep.subr.bf16.mxu0 %v6906_v4  ;;  %v7474_v4 = vld [vmem:[#allocation2 + $0x40] sm:$0xff] }
 0x5ed   : > { %2374 = vadd.xlane.f32.xlu0 %v2342_v54 }
 0x5ef   : > { %2376 = vadd.xlane.f32.xlu1 %v2343_v15  ;;  %v6909_v15 = vld [vmem:[%s8080_s4 + $0xa4] ss:$16 sps:$4 sm:$0xff]  }
 0x5f0   : > { %2974 = vmatprep.subr.bf16.mxu1 %v6909_v15  ;;  %v2197_v15 = vunpack.c.l.bf16 %v7474_v4 }
 0x5f1   : > { %2249 = vadd.xlane.f32.xlu0 %v8789_v47  ;;  %2975 = vmatpush1.bf16.msra.mxu1 %v6907_v56 }
 0x5f3   : > { %v6682_v53 = vpop.f32.mrb[68].mxu0  ;;  %2251 = vadd.xlane.f32.xlu1 %v8791_v44 }
 0x5f4   : > { %v2070_v31 = vpop.f32.mrb[69].mxu0  ;;  %v2079_v2 = vadd.f32 %v6682_v53, %v8773_v39  ;;  %v6904_v53 = vld [vmem:[%s8080_s4 + $0xa8] ss:$16 sps:$4 sm:$0xff]  }
 0x5f5   : > { %v2071_v29 = vadd.f32 %v2070_v31, %v8773_v39  ;;  %2378 = vadd.xlane.f32.xlu0 %v2344_v51  ;;  %v6683_v10 = vpop.f32.mrb[70].mxu0  ;;  %v7471_v51 = vld [vmem:[#allocation2 + $0x28] sm:$0xff]  ;;  %3168 = vmatpush1.bf16.msra.mxu0 %v6904_v53 }
 0x5f6   : > { %v2073_v16 = vpop.f32.mrb[71].mxu0  ;;  %v2082_v8 = vadd.f32 %v6683_v10, %v8773_v39  ;;  %v8819_v27 = vadd.f32 %v2187_v59, %v2079_v2  ;;  %v2191_v31 = vunpack.c.l.bf16 %v7471_v51  ;;  %v6915_v2 = vld [vmem:[%s8080_s4 + $0xc4] ss:$16 sps:$4 sm:$0xff]   ;;  %v6910_v59 = vld [vmem:[%s8080_s4 + $0xc8] ss:$16 sps:$4 sm:$0xff]   ;;  %3169 = vmatprep.subr.bf16.mxu0 %v6912_v32 }
 0x5f7   : > { %v8800_v28 = vadd.f32 %v2185_v48, %v2071_v29  ;;  %v2074_v21 = vadd.f32 %v2073_v16, %v8773_v39  ;;  %2380 = vadd.xlane.f32.xlu1 %v2345_v40  ;;  %v2192_v16 = vunpack.c.h.bf16 %v7471_v51  ;;  %2976 = vmatprep.subr.bf16.mxu1 %v6915_v2  ;;  %v2198_v51 = vunpack.c.h.bf16 %v7474_v4 }
 0x5f8   : > { %v8823_v60 = vadd.f32 %v2188_v46, %v2082_v8  ;;  %v2348_v35 = vmul.f32 %v8819_v27, %v8819_v27  ;;  %v6918_v8 = vld [vmem:[%s8080_s4 + $0xec] ss:$16 sps:$4 sm:$0xff]   ;;  %v6921_v46 = vld [vmem:[%s8080_s4 + $0xe4] ss:$16 sps:$4 sm:$0xff]  }
 0x5f9   : > { %v8803_v57 = vadd.f32 %v2186_v50, %v2074_v21  ;;  %2253 = vadd.xlane.f32.xlu0 %v8800_v28  ;;  %v2346_v37 = vmul.f32 %v8800_v28, %v8800_v28  ;;  %3170 = vmatpush1.bf16.msra.mxu0 %v6910_v59 }
 0x5fa   : > { %v2349_v1 = vmul.f32 %v8823_v60, %v8823_v60  ;;  %3171 = vmatprep.subr.bf16.mxu0 %v6918_v8 }
 0x5fb   : > { %2255 = vadd.xlane.f32.xlu1 %v8803_v57  ;;  %v2347_v63 = vmul.f32 %v8803_v57, %v8803_v57 }
 0x5fd   : > { %2382 = vadd.xlane.f32.xlu0 %v2346_v37  ;;  %v6913_v37 = vld [vmem:[%s8080_s4 + $0xc0] ss:$16 sps:$4 sm:$0xff]  }
 0x5fe   : > { %2977 = vmatpush1.bf16.msra.mxu1 %v6913_v37 }
 0x5ff   : > { %2384 = vadd.xlane.f32.xlu1 %v2347_v63  ;;  %v6916_v63 = vld [vmem:[%s8080_s4 + $0xe8] ss:$16 sps:$4 sm:$0xff]   ;;  %2978 = vmatprep.subr.bf16.mxu1 %v6921_v46 }
 0x600   : > { %3172 = vmatpush1.bf16.msra.mxu0 %v6916_v63 }
 0x601   : > { %2257 = vadd.xlane.f32.xlu0 %v8819_v27 }
 0x602   : > { %2979 = vmatpush1.bf16.msra.mxu1 %v6919_v14 }
 0x603   : > { %2259 = vadd.xlane.f32.xlu1 %v8823_v60 }
 0x604   : > { %v6686_v9 = vpop.f32.mrb[72].mxu0 }
 0x605   : > { %v2086_v19 = vpop.f32.mrb[73].mxu0  ;;  %2386 = vadd.xlane.f32.xlu0 %v2348_v35  ;;  %v2095_v48 = vadd.f32 %v6686_v9, %v8773_v39  ;;  %v2194_v35 = vunpack.c.h.bf16 %v7472_v20 }
 0x606   : > { %v2087_v36 = vadd.f32 %v2086_v19, %v8773_v39  ;;  %v6687_v34 = vpop.f32.mrb[74].mxu0 }
 0x607   : > { %v2089_v13 = vpop.f32.mrb[75].mxu0  ;;  %2388 = vadd.xlane.f32.xlu1 %v2349_v1  ;;  %v2098_v40 = vadd.f32 %v6687_v34, %v8773_v39  ;;  %v8861_v3 = vadd.f32 %v2191_v31, %v2095_v48 }
 0x608   : > { %v8840_v24 = vadd.f32 %v2189_v61, %v2087_v36  ;;  %v2090_v54 = vadd.f32 %v2089_v13, %v8773_v39  ;;  %v7473_v61 = vld [vmem:[#allocation2 + $0x38] sm:$0xff] }
 0x609   : > { %v8863_v5 = vadd.f32 %v2192_v16, %v2098_v40  ;;  %v2352_v22 = vmul.f32 %v8861_v3, %v8861_v3  ;;  %v2195_v19 = vunpack.c.l.bf16 %v7473_v61  ;;  %v2196_v34 = vunpack.c.h.bf16 %v7473_v61  ;;  %v7475_v40 = vld [vmem:[#allocation2 + $0x48] sm:$0xff] }
 0x60a   : > { %v8843_v11 = vadd.f32 %v2190_v55, %v2090_v54  ;;  %2261 = vadd.xlane.f32.xlu0 %v8840_v24  ;;  %v2350_v10 = vmul.f32 %v8840_v24, %v8840_v24  ;;  %v2199_v16 = vunpack.c.l.bf16 %v7475_v40  ;;  %v2200_v2 = vunpack.c.h.bf16 %v7475_v40 }
 0x60b   : > { %v2353_v38 = vmul.f32 %v8863_v5, %v8863_v5 }
 0x60c   : > { %2263 = vadd.xlane.f32.xlu1 %v8843_v11  ;;  %v6690_v29 = vpop.f32.mrb[76].mxu0  ;;  %v2351_v23 = vmul.f32 %v8843_v11, %v8843_v11 }
 0x60d   : > { %v2102_v50 = vpop.f32.mrb[77].mxu0  ;;  %v2111_v30 = vadd.f32 %v6690_v29, %v8773_v39 }
 0x60e   : > { %2390 = vadd.xlane.f32.xlu0 %v2350_v10  ;;  %v6691_v21 = vpop.f32.mrb[78].mxu0  ;;  %v2103_v12 = vadd.f32 %v2102_v50, %v8773_v39 }
 0x60f   : > { %v2105_v58 = vpop.f32.mrb[79].mxu0  ;;  %v2114_v36 = vadd.f32 %v6691_v21, %v8773_v39  ;;  %v8889_v62 = vadd.f32 %v2195_v19, %v2111_v30  ;;  %v7477_v19 = vld [vmem:[#allocation2 + $0x58] sm:$0xff] }
 0x610   : > { %2392 = vadd.xlane.f32.xlu1 %v2351_v23  ;;  %v2106_v26 = vadd.f32 %v2105_v58, %v8773_v39  ;;  %v8877_v18 = vadd.f32 %v2193_v49, %v2103_v12  ;;  %v7476_v12 = vld [vmem:[#allocation2 + $0x50] sm:$0xff] }
 0x611   : > { %v8891_v13 = vadd.f32 %v2196_v34, %v2114_v36  ;;  %v2356_v56 = vmul.f32 %v8889_v62, %v8889_v62  ;;  %v2201_v20 = vunpack.c.l.bf16 %v7476_v12 }
 0x612   : > { %2265 = vadd.xlane.f32.xlu0 %v8861_v3  ;;  %v8879_v9 = vadd.f32 %v2194_v35, %v2106_v26  ;;  %v2354_v1 = vmul.f32 %v8877_v18, %v8877_v18  ;;  %v2202_v26 = vunpack.c.h.bf16 %v7476_v12 }
 0x613   : > { %v2357_v31 = vmul.f32 %v8891_v13, %v8891_v13 }
 0x614   : > { %2267 = vadd.xlane.f32.xlu1 %v8863_v5  ;;  %v2355_v55 = vmul.f32 %v8879_v9, %v8879_v9 }
 0x616   : > { %2394 = vadd.xlane.f32.xlu0 %v2352_v22 }
 0x618   : > { %2396 = vadd.xlane.f32.xlu1 %v2353_v38 }
 0x61a   : > { %2269 = vadd.xlane.f32.xlu0 %v8877_v18 }
 0x61c   : > { %2271 = vadd.xlane.f32.xlu1 %v8879_v9 }
 0x61e   : > { %2398 = vadd.xlane.f32.xlu0 %v2354_v1  ;;  %v2203_v1 = vunpack.c.l.bf16 %v7477_v19 }
 0x620   : > { %2400 = vadd.xlane.f32.xlu1 %v2355_v55  ;;  %v2204_v55 = vunpack.c.h.bf16 %v7477_v19 }
 0x621   : > { %v6694_v6 = vpop.f32.mrb[80].mxu0 }
 0x622   : > { %2273 = vadd.xlane.f32.xlu0 %v8889_v62  ;;  %v2118_v7 = vpop.f32.mrb[81].mxu0  ;;  %v2127_v50 = vadd.f32 %v6694_v6, %v8773_v39 }
 0x623   : > { %v6695_v25 = vpop.f32.mrb[82].mxu0  ;;  %v2119_v54 = vadd.f32 %v2118_v7, %v8773_v39 }
 0x624   : > { %2275 = vadd.xlane.f32.xlu1 %v8891_v13  ;;  %v2121_v53 = vpop.f32.mrb[83].mxu0  ;;  %v2130_v32 = vadd.f32 %v6695_v25, %v8773_v39  ;;  %v8913_v8 = vadd.f32 %v2199_v16, %v2127_v50 }
 0x625   : > { %v2122_v48 = vadd.f32 %v2121_v53, %v8773_v39  ;;  %v8901_v29 = vadd.f32 %v2197_v15, %v2119_v54 }
 0x626   : > { %2402 = vadd.xlane.f32.xlu0 %v2356_v56  ;;  %v8915_v63 = vadd.f32 %v2200_v2, %v2130_v32  ;;  %v2360_v49 = vmul.f32 %v8913_v8, %v8913_v8 }
 0x627   : > { %v8903_v10 = vadd.f32 %v2198_v51, %v2122_v48  ;;  %v2358_v21 = vmul.f32 %v8901_v29, %v8901_v29 }
 0x628   : > { %2404 = vadd.xlane.f32.xlu1 %v2357_v31  ;;  %v2361_v35 = vmul.f32 %v8915_v63, %v8915_v63 }
 0x629   : > { %v2359_v59 = vmul.f32 %v8903_v10, %v8903_v10 }
 0x62a   : > { %2277 = vadd.xlane.f32.xlu0 %v8901_v29 }
 0x62c   : > { %2279 = vadd.xlane.f32.xlu1 %v8903_v10 }
 0x62d   : > { %v6698_v23 = vpop.f32.mrb[84].mxu0 }
 0x62e   : > { %2406 = vadd.xlane.f32.xlu0 %v2358_v21  ;;  %v2134_v58 = vpop.f32.mrb[85].mxu0  ;;  %v2143_v61 = vadd.f32 %v6698_v23, %v8773_v39 }
 0x62f   : > { %v6699_v37 = vpop.f32.mrb[86].mxu0  ;;  %v2135_v14 = vadd.f32 %v2134_v58, %v8773_v39 }
 0x630   : > { %2408 = vadd.xlane.f32.xlu1 %v2359_v59  ;;  %v2137_v46 = vpop.f32.mrb[87].mxu0  ;;  %v2146_v34 = vadd.f32 %v6699_v37, %v8773_v39  ;;  %v8937_v7 = vadd.f32 %v2203_v1, %v2143_v61 }
 0x631   : > { %v2138_v22 = vadd.f32 %v2137_v46, %v8773_v39  ;;  %v8925_v38 = vadd.f32 %v2201_v20, %v2135_v14 }
 0x632   : > { %2281 = vadd.xlane.f32.xlu0 %v8913_v8  ;;  %v8939_v25 = vadd.f32 %v2204_v55, %v2146_v34  ;;  %v2364_v54 = vmul.f32 %v8937_v7, %v8937_v7 }
 0x633   : > { %v8927_v30 = vadd.f32 %v2202_v26, %v2138_v22  ;;  %v2362_v36 = vmul.f32 %v8925_v38, %v8925_v38 }
 0x634   : > { %2283 = vadd.xlane.f32.xlu1 %v8915_v63  ;;  %v2365_v4 = vmul.f32 %v8939_v25, %v8939_v25 }
 0x635   : > { %v2363_v6 = vmul.f32 %v8927_v30, %v8927_v30 }
 0x636   : > { %2410 = vadd.xlane.f32.xlu0 %v2360_v49 }
 0x638   : > { %2412 = vadd.xlane.f32.xlu1 %v2361_v35 }
 0x63a   : > { %2285 = vadd.xlane.f32.xlu0 %v8925_v38 }
 0x63c   : > { %2287 = vadd.xlane.f32.xlu1 %v8927_v30 }
 0x63e   : > { %2414 = vadd.xlane.f32.xlu0 %v2362_v36 }
 0x640   : > { %2416 = vadd.xlane.f32.xlu1 %v2363_v6 }
 0x642   : > { %2289 = vadd.xlane.f32.xlu0 %v8937_v7 }
 0x644   : > { %2291 = vadd.xlane.f32.xlu1 %v8939_v25 }
 0x646   : > { %2418 = vadd.xlane.f32.xlu0 %v2364_v54 }
 0x648   : > { %2420 = vadd.xlane.f32.xlu1 %v2365_v4  ;;  %v7478_v4 = vld [vmem:[#allocation2 + $0x60] sm:$0xff] }
 0x676   : > { %v2246_v15 = vpop.xlane.xlu0 %2245 }
 0x677   : > { %v2310_v53 = vmul.f32 0.0078125, %v2246_v15  ;;  %v2205_v15 = vunpack.c.l.bf16 %v7478_v4 }
 0x678   : > { %v2248_v56 = vpop.xlane.xlu1 %2247 }
 0x679   : > { %v2311_v48 = vmul.f32 0.0078125, %v2248_v56  ;;  %v2470_v31 = vmul.f32 %v2310_v53, %v2310_v53  ;;  %v8959_v56 = vrot.slane %v8769_v0, %v8188_v45 }
 0x67a   : > { %v2375_v51 = vpop.xlane.xlu0 %2374 }
 0x67b   : > { %v2438_v50 = vmul.f32 0.0078125, %v2375_v51  ;;  %v2471_v16 = vmul.f32 %v2311_v48, %v2311_v48  ;;  %v2534_v51 = vsub.f32 %v8776_v52, %v2310_v53 }
 0x67c   : > { %v2377_v40 = vpop.xlane.xlu1 %2376 }
 0x67d   : > { %v2502_v21 = vsub.f32 %v2438_v50, %v2470_v31  ;;  %v2439_v23 = vmul.f32 0.0078125, %v2377_v40 }
 0x67e   : > { %v2250_v32 = vpop.xlane.xlu0 %2249 }
 0x67f   : > { %v2566_v2 = vadd.f32 1e-05, %v2502_v21  ;;  %v2503_v58 = vsub.f32 %v2439_v23, %v2471_v16  ;;  %v8947_v59 = vmul.f32 0.0078125, %v2250_v32  ;;  %v2206_v16 = vunpack.c.h.bf16 %v7478_v4 }
 0x680   : > { %v2252_v37 = vpop.xlane.xlu1 %2251 }
 0x681   : > { %7082 = vrsqrt.f32 %v2566_v2  ;;  %v2567_v46 = vadd.f32 1e-05, %v2503_v58  ;;  %v8949_v14 = vmul.f32 0.0078125, %v2252_v37  ;;  %v2472_v20 = vmul.f32 %v8947_v59, %v8947_v59 }
 0x682   : > { %v2379_v12 = vpop.xlane.xlu0 %2378  ;;  %v2535_v37 = vsub.f32 %v8779_v33, %v2311_v48  ;;  %v7479_v48 = vld [vmem:[#allocation2 + $0x68] sm:$0xff] }
 0x683   : > { %7084 = vrsqrt.f32 %v2567_v46  ;;  %v2440_v49 = vmul.f32 0.0078125, %v2379_v12  ;;  %v2473_v26 = vmul.f32 %v8949_v14, %v8949_v14 }
 0x684   : > { %v2381_v22 = vpop.xlane.xlu1 %2380 }
 0x685   : > { %v2504_v35 = vsub.f32 %v2440_v49, %v2472_v20  ;;  %v2441_v61 = vmul.f32 0.0078125, %v2381_v22 }
 0x686   : > { %v2254_v19 = vpop.xlane.xlu0 %2253 }
 0x687   : > { %v2568_v1 = vadd.f32 1e-05, %v2504_v35  ;;  %v2505_v36 = vsub.f32 %v2441_v61, %v2473_v26  ;;  %v8955_v34 = vmul.f32 0.0078125, %v2254_v19  ;;  %v8973_v26 = vrot.slane %v8769_v0, %v8281_v17 }
 0x688   : > { %v2256_v55 = vpop.xlane.xlu1 %2255  ;;  %v2536_v0 = vsub.f32 %v8789_v47, %v8947_v59 }
 0x689   : > { %7086 = vrsqrt.f32 %v2568_v1  ;;  %v2569_v6 = vadd.f32 1e-05, %v2505_v36  ;;  %v6702_v54 = vpop.f32.mrb[88].mxu0  ;;  %v8962_v31 = vmul.f32 0.0078125, %v2256_v55  ;;  %v2474_v23 = vmul.f32 %v8955_v34, %v8955_v34 }
 0x68a   : > { %v2150_v50 = vpop.f32.mrb[89].mxu0  ;;  %v2383_v40 = vpop.xlane.xlu0 %2382  ;;  %v2207_v36 = vunpack.c.l.bf16 %v7479_v48 }
 0x68b   : > { %v7083_v21 = vpop.eup %7082  ;;  %7088 = vrsqrt.f32 %v2569_v6  ;;  %v2151_v32 = vadd.f32 %v2150_v50, %v8773_v39  ;;  %v2442_v2 = vmul.f32 0.0078125, %v2383_v40  ;;  %v6703_v58 = vpop.f32.mrb[90].mxu0  ;;  %v2475_v61 = vmul.f32 %v8962_v31, %v8962_v31 }
 0x68c   : > { %v2630_v46 = vmul.f32 %v7083_v21, %v2534_v51  ;;  %v2153_v12 = vpop.f32.mrb[91].mxu0  ;;  %v2385_v20 = vpop.xlane.xlu1 %2384  ;;  %v2159_v21 = vadd.f32 %v6702_v54, %v8773_v39 }
 0x68d   : > { %v7085_v52 = vpop.eup %7084  ;;  %v8968_v53 = vadd.f32 %v2205_v15, %v2151_v32  ;;  %v2506_v49 = vsub.f32 %v2442_v2, %v2474_v23  ;;  %v2154_v22 = vadd.f32 %v2153_v12, %v8773_v39  ;;  %v2443_v19 = vmul.f32 0.0078125, %v2385_v20 }
 0x68e   : > { %v2631_v35 = vmul.f32 %v7085_v52, %v2535_v37  ;;  %v2258_v1 = vpop.xlane.xlu0 %2257  ;;  %v2666_v33 = vmul.f32 %v8959_v56, %v2630_v46  ;;  %v2208_v15 = vunpack.c.h.bf16 %v7479_v48  ;;  %v2162_v32 = vadd.f32 %v6703_v58, %v8773_v39 }
 0x68f   : > { %v2570_v55 = vadd.f32 1e-05, %v2506_v49  ;;  %v8978_v6 = vadd.f32 %v2206_v16, %v2154_v22  ;;  %v8980_v4 = vmul.f32 0.0078125, %v2258_v1  ;;  %2293 = vadd.xlane.f32.xlu0 %v8968_v53  ;;  %v2507_v51 = vsub.f32 %v2443_v19, %v2475_v61 }
 0x690   : > { %v2260_v50 = vpop.xlane.xlu1 %2259  ;;  %v2667_v40 = vmul.f32 %v8959_v56, %v2631_v35  ;;  %v2366_v16 = vmul.f32 %v8968_v53, %v8968_v53  ;;  %v8994_v47 = vadd.f32 %v8973_v26, %v2666_v33  ;;  %v2537_v58 = vsub.f32 %v8791_v44, %v8949_v14 }
 0x691   : > { %7090 = vrsqrt.f32 %v2570_v55  ;;  %2295 = vadd.xlane.f32.xlu1 %v8978_v6  ;;  %v8988_v23 = vmul.f32 0.0078125, %v2260_v50  ;;  %v2571_v2 = vadd.f32 1e-05, %v2507_v51  ;;  %v2476_v54 = vmul.f32 %v8980_v4, %v8980_v4 }
 0x692   : > { %v2387_v37 = vpop.xlane.xlu0 %2386  ;;  %11789 = vst [vmem:[#allocation28_spill] sm:$0xff] %v8994_v47  ;;  %v8997_v59 = vadd.f32 %v8973_v26, %v2667_v40  ;;  %v2367_v20 = vmul.f32 %v8978_v6, %v8978_v6  ;;  %v9007_v61 = vadd.f32 %v2207_v36, %v2159_v21  ;;  %v9011_v48 = vadd.f32 %v2208_v15, %v2162_v32 }
 0x693   : > { %v7087_v46 = vpop.eup %7086  ;;  %v2444_v12 = vmul.f32 0.0078125, %v2387_v37  ;;  %2422 = vadd.xlane.f32.xlu0 %v2366_v16  ;;  %7092 = vrsqrt.f32 %v2571_v2  ;;  %v2477_v19 = vmul.f32 %v8988_v23, %v8988_v23  ;;  %v7480_v16 = vld [vmem:[#allocation2 + $0x70] sm:$0xff] }
 0x694   : > { %11790 = vst [vmem:[#allocation29_spill] sm:$0xff] %v8997_v59  ;;  %v2389_v52 = vpop.xlane.xlu1 %2388  ;;  %v2734_v49 = vpack.c.bf16 %v8997_v59, %v8994_v47  ;;  %v2632_v22 = vmul.f32 %v7087_v46, %v2536_v0  ;;  %v2209_v32 = vunpack.c.l.bf16 %v7480_v16  ;;  %v2368_v2 = vmul.f32 %v9007_v61, %v9007_v61 }
 0x695   : > { %v7089_v35 = vpop.eup %7088  ;;  %v2508_v1 = vsub.f32 %v2444_v12, %v2476_v54  ;;  %2424 = vadd.xlane.f32.xlu1 %v2367_v20  ;;  %v2445_v33 = vmul.f32 0.0078125, %v2389_v52  ;;  %v2210_v54 = vunpack.c.h.bf16 %v7480_v16  ;;  %v2369_v12 = vmul.f32 %v9011_v48, %v9011_v48 }
 0x696   : > { %2997 = vmatmul.mubr.bf16.vlgmr.msra.gmra.mrb[96].mxu1 %v2734_v49  ;;  %3190 = vmatmul.mubr.bf16.vlgmr.msra.gmra.mrb[96].mxu0 %v2734_v49  ;;  %v2633_v44 = vmul.f32 %v7089_v35, %v2537_v58  ;;  %v2668_v36 = vmul.f32 %v8959_v56, %v2632_v22 }
 0x697   : > { %v2572_v14 = vadd.f32 1e-05, %v2508_v1  ;;  %v2509_v55 = vsub.f32 %v2445_v33, %v2477_v19  ;;  %v2262_v51 = vpop.xlane.xlu0 %2261  ;;  %2297 = vadd.xlane.f32.xlu0 %v9007_v61  ;;  %3006 = vmatprep.mubr.bf16.mxu1 %v11788_v41  ;;  %v2538_v19 = vsub.f32 %v8800_v28, %v8955_v34 }
 0x698   : > { %v9016_v0 = vmul.f32 0.0078125, %v2262_v51  ;;  %3199 = vmatprep.mubr.bf16.mxu0 %v11788_v41  ;;  %v2669_v50 = vmul.f32 %v8959_v56, %v2633_v44  ;;  %v9029_v22 = vadd.f32 %v8973_v26, %v2668_v36 }
 0x699   : > { %7094 = vrsqrt.f32 %v2572_v14  ;;  %v2573_v15 = vadd.f32 1e-05, %v2509_v55  ;;  %2299 = vadd.xlane.f32.xlu1 %v9011_v48  ;;  %v6706_v40 = vpop.f32.mrb[92].mxu0  ;;  %v2264_v21 = vpop.xlane.xlu1 %2263  ;;  %v2539_v14 = vsub.f32 %v8803_v57, %v8962_v31 }
 0x69a   : > { %v9023_v37 = vmul.f32 0.0078125, %v2264_v21  ;;  %v2166_v46 = vpop.f32.mrb[93].mxu0  ;;  %11791 = vst [vmem:[#allocation30_spill] sm:$0xff] %v9029_v22  ;;  %v9032_v35 = vadd.f32 %v8973_v26, %v2669_v50  ;;  %v2478_v1 = vmul.f32 %v9016_v0, %v9016_v0 }
 0x69b   : > { %v7091_v20 = vpop.eup %7090  ;;  %7096 = vrsqrt.f32 %v2573_v15  ;;  %v2167_v58 = vadd.f32 %v2166_v46, %v8773_v39  ;;  %v2391_v52 = vpop.xlane.xlu0 %2390  ;;  %2426 = vadd.xlane.f32.xlu0 %v2368_v2  ;;  %v7481_v2 = vld [vmem:[#allocation2 + $0x78] sm:$0xff] }
 0x69c   : > { %v6707_v49 = vpop.f32.mrb[94].mxu0  ;;  %11792 = vst [vmem:[#allocation31_spill] sm:$0xff] %v9032_v35  ;;  %v2446_v33 = vmul.f32 0.0078125, %v2391_v52  ;;  %v2735_v50 = vpack.c.bf16 %v9032_v35, %v9029_v22  ;;  %v2479_v28 = vmul.f32 %v9023_v37, %v9023_v37  ;;  %v2634_v16 = vmul.f32 %v7091_v20, %v2538_v19 }
 0x69d   : > { %v2169_v44 = vpop.f32.mrb[95].mxu0  ;;  %v9040_v55 = vadd.f32 %v2209_v32, %v2167_v58  ;;  %2428 = vadd.xlane.f32.xlu1 %v2369_v12  ;;  %v2393_v36 = vpop.xlane.xlu1 %2392  ;;  %v2211_v46 = vunpack.c.l.bf16 %v7481_v2 }
 0x69e   : > { %v2170_v51 = vadd.f32 %v2169_v44, %v8773_v39  ;;  %v7093_v15 = vpop.eup %7092  ;;  %v2510_v34 = vsub.f32 %v2446_v33, %v2478_v1  ;;  %v2447_v21 = vmul.f32 0.0078125, %v2393_v36  ;;  %3007 = vmatmul.mubr.bf16.gmra.mrb[100].mxu1 %v2735_v50  ;;  %3200 = vmatmul.mubr.bf16.gmra.mrb[100].mxu0 %v2735_v50  ;;  %v2175_v1 = vadd.f32 %v6706_v40, %v8773_v39 }
 0x69f   : > { %v2266_v57 = vpop.xlane.xlu0 %2265  ;;  %2301 = vadd.xlane.f32.xlu0 %v9040_v55  ;;  %3016 = vmatprep.mubr.bf16.mxu1 %v11788_v41  ;;  %v2635_v58 = vmul.f32 %v7093_v15, %v2539_v14  ;;  %v2212_v33 = vunpack.c.h.bf16 %v7481_v2  ;;  %v2670_v19 = vmul.f32 %v8959_v56, %v2634_v16  ;;  %v2540_v44 = vsub.f32 %v8819_v27, %v8980_v4 }
 0x6a0   : > { %v9047_v52 = vadd.f32 %v2210_v54, %v2170_v51  ;;  %v2574_v31 = vadd.f32 1e-05, %v2510_v34  ;;  %v2511_v32 = vsub.f32 %v2447_v21, %v2479_v28  ;;  %v9050_v12 = vmul.f32 0.0078125, %v2266_v57  ;;  %3209 = vmatprep.mubr.bf16.mxu0 %v11788_v41 }
 0x6a1   : > { %v2268_v20 = vpop.xlane.xlu1 %2267  ;;  %v2370_v54 = vmul.f32 %v9040_v55, %v9040_v55  ;;  %v2541_v51 = vsub.f32 %v8823_v60, %v8988_v23  ;;  %v2178_v36 = vadd.f32 %v6707_v49, %v8773_v39  ;;  %v2671_v34 = vmul.f32 %v8959_v56, %v2635_v58 }
 0x6a2   : > { %2303 = vadd.xlane.f32.xlu1 %v9047_v52  ;;  %7098 = vrsqrt.f32 %v2574_v31  ;;  %v2575_v14 = vadd.f32 1e-05, %v2511_v32  ;;  %v9064_v50 = vmul.f32 0.0078125, %v2268_v20  ;;  %v2371_v28 = vmul.f32 %v9047_v52, %v9047_v52 }
 0x6a3   : > { %v7095_v40 = vpop.eup %7094  ;;  %v2395_v15 = vpop.xlane.xlu0 %2394  ;;  %2430 = vadd.xlane.f32.xlu0 %v2370_v54  ;;  %v2480_v27 = vmul.f32 %v9050_v12, %v9050_v12  ;;  %v9071_v21 = vadd.f32 %v2211_v46, %v2175_v1  ;;  %v9074_v49 = vadd.f32 %v8973_v26, %v2670_v19  ;;  %v9077_v16 = vadd.f32 %v8973_v26, %v2671_v34 }
 0x6a4   : > { %7100 = vrsqrt.f32 %v2575_v14  ;;  %v2448_v4 = vmul.f32 0.0078125, %v2395_v15  ;;  %v2636_v60 = vmul.f32 %v7095_v40, %v2540_v44  ;;  %v2481_v2 = vmul.f32 %v9064_v50, %v9064_v50 }
 0x6a5   : > { %v7097_v23 = vpop.eup %7096  ;;  %v2397_v39 = vpop.xlane.xlu1 %2396  ;;  %11793 = vst [vmem:[#allocation32_spill] sm:$0xff] %v9074_v49  ;;  %11794 = vst [vmem:[#allocation33_spill] sm:$0xff] %v9077_v16  ;;  %v9081_v58 = vadd.f32 %v2212_v33, %v2178_v36  ;;  %v2736_v46 = vpack.c.bf16 %v9077_v16, %v9074_v49  ;;  %v2372_v33 = vmul.f32 %v9071_v21, %v9071_v21 }
 0x6a6   : > { %2432 = vadd.xlane.f32.xlu1 %v2371_v28  ;;  %v2512_v57 = vsub.f32 %v2448_v4, %v2480_v27  ;;  %v2449_v31 = vmul.f32 0.0078125, %v2397_v39  ;;  %v2637_v32 = vmul.f32 %v7097_v23, %v2541_v51  ;;  %v2672_v1 = vmul.f32 %v8959_v56, %v2636_v60 }
 0x6a7   : > { %v2270_v20 = vpop.xlane.xlu0 %2269  ;;  %2305 = vadd.xlane.f32.xlu0 %v9071_v21  ;;  %3017 = vmatmul.mubr.bf16.gmra.mrb[104].mxu1 %v2736_v46  ;;  %v2542_v36 = vsub.f32 %v8840_v24, %v9016_v0  ;;  %v2373_v24 = vmul.f32 %v9081_v58, %v9081_v58  ;;  %v2543_v0 = vsub.f32 %v8843_v11, %v9023_v37 }
 0x6a8   : > { %v2576_v54 = vadd.f32 1e-05, %v2512_v57  ;;  %v2513_v19 = vsub.f32 %v2449_v31, %v2481_v2  ;;  %v9087_v44 = vmul.f32 0.0078125, %v2270_v20  ;;  %v2673_v14 = vmul.f32 %v8959_v56, %v2637_v32  ;;  %3210 = vmatmul.mubr.bf16.gmra.mrb[104].mxu0 %v2736_v46  ;;  %3026 = vmatprep.mubr.bf16.mxu1 %v11788_v41 }
 0x6a9   : > { %v2272_v40 = vpop.xlane.xlu1 %2271  ;;  %3219 = vmatprep.mubr.bf16.mxu0 %v11788_v41  ;;  %v9100_v34 = vadd.f32 %v8973_v26, %v2672_v1 }
 0x6aa   : > { %7102 = vrsqrt.f32 %v2576_v54  ;;  %v2577_v51 = vadd.f32 1e-05, %v2513_v19  ;;  %2307 = vadd.xlane.f32.xlu1 %v9081_v58  ;;  %v9096_v15 = vmul.f32 0.0078125, %v2272_v40  ;;  %v9103_v27 = vadd.f32 %v8973_v26, %v2673_v14 }
 0x6ab   : > { %v2399_v28 = vpop.xlane.xlu0 %2398  ;;  %2434 = vadd.xlane.f32.xlu0 %v2372_v33  ;;  %11795 = vst [vmem:[#allocation34_spill] sm:$0xff] %v9100_v34  ;;  %v2482_v60 = vmul.f32 %v9087_v44, %v9087_v44 }
 0x6ac   : > { %11796 = vst [vmem:[#allocation35_spill] sm:$0xff] %v9103_v27  ;;  %v7099_v4 = vpop.eup %7098  ;;  %7104 = vrsqrt.f32 %v2577_v51  ;;  %v2450_v23 = vmul.f32 0.0078125, %v2399_v28  ;;  %v2737_v2 = vpack.c.bf16 %v9103_v27, %v9100_v34  ;;  %v2483_v32 = vmul.f32 %v9096_v15, %v9096_v15 }
 0x6ad   : > { %v2401_v39 = vpop.xlane.xlu1 %2400  ;;  %v2638_v57 = vmul.f32 %v7099_v4, %v2542_v36  ;;  %v2544_v36 = vsub.f32 %v8861_v3, %v9050_v12 }
 0x6ae   : > { %v7101_v31 = vpop.eup %7100  ;;  %v2514_v20 = vsub.f32 %v2450_v23, %v2482_v60  ;;  %2436 = vadd.xlane.f32.xlu1 %v2373_v24  ;;  %v2451_v46 = vmul.f32 0.0078125, %v2401_v39 }
 0x6af   : > { %v2274_v1 = vpop.xlane.xlu0 %2273  ;;  %v2639_v54 = vmul.f32 %v7101_v31, %v2543_v0  ;;  %v2674_v19 = vmul.f32 %v8959_v56, %v2638_v57  ;;  %3027 = vmatmul.mubr.bf16.gmra.mrb[108].mxu1 %v2737_v2 }
 0x6b0   : > { %v2578_v14 = vadd.f32 1e-05, %v2514_v20  ;;  %v2515_v40 = vsub.f32 %v2451_v46, %v2483_v32  ;;  %v9116_v33 = vmul.f32 0.0078125, %v2274_v1  ;;  %3220 = vmatmul.mubr.bf16.gmra.mrb[108].mxu0 %v2737_v2  ;;  %3036 = vmatprep.mubr.bf16.mxu1 %v11788_v41  ;;  %v2545_v2 = vsub.f32 %v8863_v5, %v9064_v50 }
 0x6b1   : > { %v2276_v11 = vpop.xlane.xlu1 %2275  ;;  %v2675_v37 = vmul.f32 %v8959_v56, %v2639_v54  ;;  %3229 = vmatprep.mubr.bf16.mxu0 %v11788_v41  ;;  %v9126_v60 = vadd.f32 %v8973_v26, %v2674_v19 }
 0x6b2   : > { %7106 = vrsqrt.f32 %v2578_v14  ;;  %v2579_v51 = vadd.f32 1e-05, %v2515_v40  ;;  %v9123_v28 = vmul.f32 0.0078125, %v2276_v11  ;;  %v2484_v0 = vmul.f32 %v9116_v33, %v9116_v33 }
 0x6b3   : > { %v2403_v4 = vpop.xlane.xlu0 %2402  ;;  %11797 = vst [vmem:[#allocation36_spill] sm:$0xff] %v9126_v60  ;;  %v9129_v23 = vadd.f32 %v8973_v26, %v2675_v37 }
 0x6b4   : > { %v7103_v24 = vpop.eup %7102  ;;  %7108 = vrsqrt.f32 %v2579_v51  ;;  %v2452_v39 = vmul.f32 0.0078125, %v2403_v4  ;;  %v2485_v32 = vmul.f32 %v9123_v28, %v9123_v28  ;;  %v2546_v51 = vsub.f32 %v8877_v18, %v9087_v44 }
 0x6b5   : > { %11798 = vst [vmem:[#allocation37_spill] sm:$0xff] %v9129_v23  ;;  %v2405_v57 = vpop.xlane.xlu1 %2404  ;;  %v2738_v3 = vpack.c.bf16 %v9129_v23, %v9126_v60  ;;  %v2640_v12 = vmul.f32 %v7103_v24, %v2544_v36 }
 0x6b6   : > { %v7105_v31 = vpop.eup %7104  ;;  %v2516_v20 = vsub.f32 %v2452_v39, %v2484_v0  ;;  %v2453_v46 = vmul.f32 0.0078125, %v2405_v57 }
 0x6b7   : > { %v2278_v1 = vpop.xlane.xlu0 %2277  ;;  %v2641_v54 = vmul.f32 %v7105_v31, %v2545_v2  ;;  %v2676_v19 = vmul.f32 %v8959_v56, %v2640_v12  ;;  %3037 = vmatmul.mubr.bf16.gmra.mrb[112].mxu1 %v2738_v3 }
 0x6b8   : > { %v2580_v14 = vadd.f32 1e-05, %v2516_v20  ;;  %v2517_v40 = vsub.f32 %v2453_v46, %v2485_v32  ;;  %v9140_v11 = vmul.f32 0.0078125, %v2278_v1  ;;  %3230 = vmatmul.mubr.bf16.gmra.mrb[112].mxu0 %v2738_v3  ;;  %3046 = vmatprep.mubr.bf16.mxu1 %v11788_v41  ;;  %v2547_v3 = vsub.f32 %v8879_v9, %v9096_v15 }
 0x6b9   : > { %v2280_v5 = vpop.xlane.xlu1 %2279  ;;  %v2677_v50 = vmul.f32 %v8959_v56, %v2641_v54  ;;  %3239 = vmatprep.mubr.bf16.mxu0 %v11788_v41  ;;  %v9150_v24 = vadd.f32 %v8973_v26, %v2676_v19 }
 0x6ba   : > { %7110 = vrsqrt.f32 %v2580_v14  ;;  %v2581_v37 = vadd.f32 1e-05, %v2517_v40  ;;  %v9147_v36 = vmul.f32 0.0078125, %v2280_v5  ;;  %v2486_v2 = vmul.f32 %v9140_v11, %v9140_v11 }
 0x6bb   : > { %v2407_v4 = vpop.xlane.xlu0 %2406  ;;  %11799 = vst [vmem:[#allocation38_spill] sm:$0xff] %v9150_v24  ;;  %v9153_v0 = vadd.f32 %v8973_v26, %v2677_v50 }
 0x6bc   : > { %v7107_v39 = vpop.eup %7106  ;;  %7112 = vrsqrt.f32 %v2581_v37  ;;  %v2454_v57 = vmul.f32 0.0078125, %v2407_v4  ;;  %v2487_v32 = vmul.f32 %v9147_v36, %v9147_v36  ;;  %v2548_v37 = vsub.f32 %v8889_v62, %v9116_v33 }
 0x6bd   : > { %11800 = vst [vmem:[#allocation39_spill] sm:$0xff] %v9153_v0  ;;  %v2409_v12 = vpop.xlane.xlu1 %2408  ;;  %v2739_v18 = vpack.c.bf16 %v9153_v0, %v9150_v24  ;;  %v2642_v44 = vmul.f32 %v7107_v39, %v2546_v51 }
 0x6be   : > { %v7109_v31 = vpop.eup %7108  ;;  %v2518_v20 = vsub.f32 %v2454_v57, %v2486_v2  ;;  %v2455_v46 = vmul.f32 0.0078125, %v2409_v12 }
 0x6bf   : > { %v2282_v1 = vpop.xlane.xlu0 %2281  ;;  %v2643_v54 = vmul.f32 %v7109_v31, %v2547_v3  ;;  %v2678_v19 = vmul.f32 %v8959_v56, %v2642_v44  ;;  %3047 = vmatmul.mubr.bf16.gmra.mrb[116].mxu1 %v2739_v18 }
 0x6c0   : > { %v2582_v14 = vadd.f32 1e-05, %v2518_v20  ;;  %v2519_v40 = vsub.f32 %v2455_v46, %v2487_v32  ;;  %v9164_v5 = vmul.f32 0.0078125, %v2282_v1  ;;  %3240 = vmatmul.mubr.bf16.gmra.mrb[116].mxu0 %v2739_v18  ;;  %3056 = vmatprep.mubr.bf16.mxu1 %v11788_v41  ;;  %v2549_v18 = vsub.f32 %v8891_v13, %v9123_v28 }
 0x6c1   : > { %v2284_v9 = vpop.xlane.xlu1 %2283  ;;  %v2679_v15 = vmul.f32 %v8959_v56, %v2643_v54  ;;  %3249 = vmatprep.mubr.bf16.mxu0 %v11788_v41  ;;  %v9174_v39 = vadd.f32 %v8973_v26, %v2678_v19 }
 0x6c2   : > { %7114 = vrsqrt.f32 %v2582_v14  ;;  %v2583_v50 = vadd.f32 1e-05, %v2519_v40  ;;  %v9171_v51 = vmul.f32 0.0078125, %v2284_v9  ;;  %v2488_v3 = vmul.f32 %v9164_v5, %v9164_v5 }
 0x6c3   : > { %v2411_v4 = vpop.xlane.xlu0 %2410  ;;  %11801 = vst [vmem:[#allocation40_spill] sm:$0xff] %v9174_v39  ;;  %v9177_v2 = vadd.f32 %v8973_v26, %v2679_v15 }
 0x6c4   : > { %v7111_v57 = vpop.eup %7110  ;;  %7116 = vrsqrt.f32 %v2583_v50  ;;  %v2456_v12 = vmul.f32 0.0078125, %v2411_v4  ;;  %v2489_v32 = vmul.f32 %v9171_v51, %v9171_v51  ;;  %v2550_v50 = vsub.f32 %v8901_v29, %v9140_v11 }
 0x6c5   : > { %11802 = vst [vmem:[#allocation41_spill] sm:$0xff] %v9177_v2  ;;  %v2413_v44 = vpop.xlane.xlu1 %2412  ;;  %v2740_v62 = vpack.c.bf16 %v9177_v2, %v9174_v39  ;;  %v2644_v33 = vmul.f32 %v7111_v57, %v2548_v37 }
 0x6c6   : > { %v7113_v31 = vpop.eup %7112  ;;  %v2520_v20 = vsub.f32 %v2456_v12, %v2488_v3  ;;  %v2457_v46 = vmul.f32 0.0078125, %v2413_v44 }
 0x6c7   : > { %v2286_v1 = vpop.xlane.xlu0 %2285  ;;  %v2645_v54 = vmul.f32 %v7113_v31, %v2549_v18  ;;  %v2680_v19 = vmul.f32 %v8959_v56, %v2644_v33  ;;  %3057 = vmatmul.mubr.bf16.gmra.mrb[120].mxu1 %v2740_v62  ;;  %v6922_v31 = vld [vmem:[%s8082_s13 + $0x40] sm:$0xff]  }
 0x6c8   : > { %v2584_v14 = vadd.f32 1e-05, %v2520_v20  ;;  %v2521_v40 = vsub.f32 %v2457_v46, %v2489_v32  ;;  %v9188_v9 = vmul.f32 0.0078125, %v2286_v1  ;;  %3250 = vmatmul.mubr.bf16.gmra.mrb[120].mxu0 %v2740_v62  ;;  %3066 = vmatprep.mubr.bf16.mxu1 %v11788_v41  ;;  %v2551_v62 = vsub.f32 %v8903_v10, %v9147_v36 }
 0x6c9   : > { %v2288_v13 = vpop.xlane.xlu1 %2287  ;;  %v2681_v28 = vmul.f32 %v8959_v56, %v2645_v54  ;;  %3259 = vmatprep.mubr.bf16.mxu0 %v11788_v41  ;;  %v9198_v57 = vadd.f32 %v8973_v26, %v2680_v19  ;;  %6251 = vmatprep.subr.bf16.mxu1 %v6922_v31 }
 0x6ca   : > { %7118 = vrsqrt.f32 %v2584_v14  ;;  %v2585_v15 = vadd.f32 1e-05, %v2521_v40  ;;  %v9195_v37 = vmul.f32 0.0078125, %v2288_v13  ;;  %v2490_v18 = vmul.f32 %v9188_v9, %v9188_v9 }
 0x6cb   : > { %v2415_v4 = vpop.xlane.xlu0 %2414  ;;  %11803 = vst [vmem:[#allocation42_spill] sm:$0xff] %v9198_v57  ;;  %v9201_v3 = vadd.f32 %v8973_v26, %v2681_v28 }
 0x6cc   : > { %v7115_v12 = vpop.eup %7114  ;;  %7120 = vrsqrt.f32 %v2585_v15  ;;  %v2458_v44 = vmul.f32 0.0078125, %v2415_v4  ;;  %v2491_v20 = vmul.f32 %v9195_v37, %v9195_v37 }
 0x6cd   : > { %11804 = vst [vmem:[#allocation43_spill] sm:$0xff] %v9201_v3  ;;  %v2417_v33 = vpop.xlane.xlu1 %2416  ;;  %v2741_v29 = vpack.c.bf16 %v9201_v3, %v9198_v57  ;;  %v2646_v11 = vmul.f32 %v7115_v12, %v2550_v50  ;;  %v2552_v50 = vsub.f32 %v8913_v8, %v9164_v5 }
 0x6ce   : > { %v7117_v32 = vpop.eup %7116  ;;  %v2522_v46 = vsub.f32 %v2458_v44, %v2490_v18  ;;  %v2459_v1 = vmul.f32 0.0078125, %v2417_v33 }
 0x6cf   : > { %v2290_v54 = vpop.xlane.xlu0 %2289  ;;  %v2647_v19 = vmul.f32 %v7117_v32, %v2551_v62  ;;  %v2682_v14 = vmul.f32 %v8959_v56, %v2646_v11  ;;  %3067 = vmatmul.mubr.bf16.gmra.mrb[124].mxu1 %v2741_v29  ;;  %v2553_v11 = vsub.f32 %v8915_v63, %v9171_v51  ;;  %v6923_v32 = vld [vmem:[%s8082_s13] sm:$0xff]   ;;  %v6927_v51 = vld [vmem:[%s8082_s13 + $0x8] sm:$0xff]  }
 0x6d0   : > { %v2586_v40 = vadd.f32 1e-05, %v2522_v46  ;;  %v2523_v13 = vsub.f32 %v2459_v1, %v2491_v20  ;;  %v9213_v10 = vmul.f32 0.0078125, %v2290_v54  ;;  %3260 = vmatmul.mubr.bf16.gmra.mrb[124].mxu0 %v2741_v29  ;;  %3076 = vmatprep.mubr.bf16.mxu1 %v11788_v41  ;;  %v6924_v20 = vld [vmem:[%s8082_s13 + $0xc0] sm:$0xff]  }
 0x6d1   : > { %v2292_v36 = vpop.xlane.xlu1 %2291  ;;  %v2683_v28 = vmul.f32 %v8959_v56, %v2647_v19  ;;  %3269 = vmatprep.mubr.bf16.mxu0 %v11788_v41  ;;  %v9223_v18 = vadd.f32 %v8973_v26, %v2682_v14  ;;  %v6925_v46 = vld [vmem:[%s8082_s13 + $0x80] sm:$0xff]   ;;  %6252 = vmatpush3.bf16.msra.mxu1 %v6923_v32 }
 0x6d2   : > { %7122 = vrsqrt.f32 %v2586_v40  ;;  %v2587_v15 = vadd.f32 1e-05, %v2523_v13  ;;  %v9220_v4 = vmul.f32 0.0078125, %v2292_v36  ;;  %v2492_v33 = vmul.f32 %v9213_v10, %v9213_v10  ;;  %v6926_v40 = vld [vmem:[%s8082_s13 + $0x48] sm:$0xff]   ;;  %6363 = vmatprep.subr.bf16.mxu0 %v6924_v20 }
 0x6d3   : > { %v2419_v12 = vpop.xlane.xlu0 %2418  ;;  %11805 = vst [vmem:[#allocation44_spill] sm:$0xff] %v9223_v18  ;;  %v9226_v44 = vadd.f32 %v8973_v26, %v2683_v28  ;;  %v6928_v36 = vld [vmem:[%s8082_s13 + $0xc8] sm:$0xff]   ;;  %6364 = vmatpush3.bf16.msra.mxu0 %v6925_v46  ;;  %6253 = vmatprep.subr.bf16.mxu1 %v6926_v40 }
 0x6d4   : > { %v7119_v62 = vpop.eup %7118  ;;  %7124 = vrsqrt.f32 %v2587_v15  ;;  %v2460_v29 = vmul.f32 0.0078125, %v2419_v12  ;;  %v2493_v54 = vmul.f32 %v9220_v4, %v9220_v4  ;;  %6365 = vmatprep.subr.bf16.mxu0 %v6928_v36  ;;  %v6930_v36 = vld [vmem:[%s8082_s13 + $0x50] sm:$0xff]  }
 0x6d5   : > { %11806 = vst [vmem:[#allocation45_spill] sm:$0xff] %v9226_v44  ;;  %v2421_v8 = vpop.xlane.xlu1 %2420  ;;  %v2742_v5 = vpack.c.bf16 %v9226_v44, %v9223_v18  ;;  %v2648_v31 = vmul.f32 %v7119_v62, %v2552_v50  ;;  %v6929_v50 = vld [vmem:[%s8082_s13 + $0x88] sm:$0xff]   ;;  %6254 = vmatpush3.bf16.msra.mxu1 %v6927_v51 }
 0x6d6   : > { %v7121_v1 = vpop.eup %7120  ;;  %v2524_v19 = vsub.f32 %v2460_v29, %v2492_v33  ;;  %v2461_v14 = vmul.f32 0.0078125, %v2421_v8  ;;  %v2554_v33 = vsub.f32 %v8925_v38, %v9188_v9  ;;  %6255 = vmatprep.subr.bf16.mxu1 %v6930_v36 }
 0x6d7   : > { %v2649_v13 = vmul.f32 %v7121_v1, %v2553_v11  ;;  %v2684_v63 = vmul.f32 %v8959_v56, %v2648_v31  ;;  %3077 = vmatmul.mubr.bf16.gmra.mrb[128].mxu1 %v2742_v5  ;;  %6366 = vmatpush3.bf16.msra.mxu0 %v6929_v50  ;;  %v2556_v1 = vsub.f32 %v8937_v7, %v9213_v10  ;;  %v6933_v50 = vld [vmem:[%s8082_s13 + $0x90] sm:$0xff]  }
 0x6d8   : > { %v2588_v28 = vadd.f32 1e-05, %v2524_v19  ;;  %v2525_v15 = vsub.f32 %v2461_v14, %v2493_v54  ;;  %3270 = vmatmul.mubr.bf16.gmra.mrb[128].mxu0 %v2742_v5  ;;  %3086 = vmatprep.mubr.bf16.mxu1 %v11788_v41  ;;  %v2555_v5 = vsub.f32 %v8927_v30, %v9195_v37  ;;  %v2557_v19 = vsub.f32 %v8939_v25, %v9220_v4 }
 0x6d9   : > { %v2685_v12 = vmul.f32 %v8959_v56, %v2649_v13  ;;  %3279 = vmatprep.mubr.bf16.mxu0 %v11788_v41  ;;  %v9250_v29 = vadd.f32 %v8973_v26, %v2684_v63 }
 0x6da   : > { %7126 = vrsqrt.f32 %v2588_v28  ;;  %v2589_v62 = vadd.f32 1e-05, %v2525_v15  ;;  %v6931_v28 = vld [vmem:[%s8082_s13 + $0x10] sm:$0xff]  }
 0x6db   : > { %11807 = vst [vmem:[#allocation46_spill] sm:$0xff] %v9250_v29  ;;  %v9253_v11 = vadd.f32 %v8973_v26, %v2685_v12  ;;  %6256 = vmatpush3.bf16.msra.mxu1 %v6931_v28  ;;  %v6932_v15 = vld [vmem:[%s8082_s13 + $0xd0] sm:$0xff]   ;;  %v6934_v12 = vld [vmem:[%s8082_s13 + $0x58] sm:$0xff]  }
 0x6dc   : > { %v7123_v8 = vpop.eup %7122  ;;  %7128 = vrsqrt.f32 %v2589_v62  ;;  %6367 = vmatprep.subr.bf16.mxu0 %v6932_v15  ;;  %v6935_v62 = vld [vmem:[%s8082_s13 + $0xd8] sm:$0xff]   ;;  %6257 = vmatprep.subr.bf16.mxu1 %v6934_v12 }
 0x6dd   : > { %11808 = vst [vmem:[#allocation47_spill] sm:$0xff] %v9253_v11  ;;  %v2743_v31 = vpack.c.bf16 %v9253_v11, %v9250_v29  ;;  %v2650_v32 = vmul.f32 %v7123_v8, %v2554_v33  ;;  %6368 = vmatpush3.bf16.msra.mxu0 %v6933_v50  ;;  %v6936_v33 = vld [vmem:[%s8082_s13 + $0x18] sm:$0xff]  }
 0x6de   : > { %v7125_v20 = vpop.eup %7124  ;;  %6369 = vmatprep.subr.bf16.mxu0 %v6935_v62  ;;  %v6937_v8 = vld [vmem:[%s8082_s13 + $0x98] sm:$0xff]  }
 0x6df   : > { %v2651_v38 = vmul.f32 %v7125_v20, %v2555_v5  ;;  %v2686_v9 = vmul.f32 %v8959_v56, %v2650_v32  ;;  %3087 = vmatmul.mubr.bf16.gmra.mrb[132].mxu1 %v2743_v31  ;;  %v6938_v5 = vld [vmem:[%s8082_s13 + $0x60] sm:$0xff]   ;;  %v6950_v15 = vld [vmem:[%s8082_s13 + $0x78] sm:$0xff]  }
 0x6e0   : > { %3280 = vmatmul.mubr.bf16.gmra.mrb[132].mxu0 %v2743_v31  ;;  %3096 = vmatprep.mubr.bf16.mxu1 %v11788_v41  ;;  %v6939_v31 = vld [vmem:[%s8082_s13 + $0xe0] sm:$0xff]   ;;  %v6951_v50 = vld [vmem:[%s8082_s13 + $0xf8] sm:$0xff]  }
 0x6e1   : > { %v2687_v46 = vmul.f32 %v8959_v56, %v2651_v38  ;;  %3289 = vmatprep.mubr.bf16.mxu0 %v11788_v41  ;;  %v9266_v30 = vadd.f32 %v8973_v26, %v2686_v9  ;;  %6258 = vmatpush3.bf16.msra.mxu1 %v6936_v33  ;;  %v6940_v32 = vld [vmem:[%s8082_s13 + $0x20] sm:$0xff]   ;;  %v6942_v38 = vld [vmem:[%s8082_s13 + $0x68] sm:$0xff]  }
 0x6e2   : > { %6370 = vmatpush3.bf16.msra.mxu0 %v6937_v8  ;;  %v6941_v20 = vld [vmem:[%s8082_s13 + $0xa0] sm:$0xff]   ;;  %6259 = vmatprep.subr.bf16.mxu1 %v6938_v5  ;;  %v6943_v9 = vld [vmem:[%s8082_s13 + $0xe8] sm:$0xff]   ;;  %v6952_v5 = vld [vmem:[%s8082_s13 + $0x38] sm:$0xff]  }
 0x6e3   : > { %11809 = vst [vmem:[#allocation48_spill] sm:$0xff] %v9266_v30  ;;  %v9269_v37 = vadd.f32 %v8973_v26, %v2687_v46  ;;  %6371 = vmatprep.subr.bf16.mxu0 %v6939_v31  ;;  %v6944_v46 = vld [vmem:[%s8082_s13 + $0x28] sm:$0xff]   ;;  %v6953_v31 = vld [vmem:[%s8082_s13 + $0xb8] sm:$0xff]  }
 0x6e4   : > { %v7127_v54 = vpop.eup %7126 }
 0x6e5   : > { %11810 = vst [vmem:[#allocation49_spill] sm:$0xff] %v9269_v37  ;;  %v2744_v14 = vpack.c.bf16 %v9269_v37, %v9266_v30  ;;  %v2652_v40 = vmul.f32 %v7127_v54, %v2556_v1  ;;  %6260 = vmatpush3.bf16.msra.mxu1 %v6940_v32  ;;  %v6945_v1 = vld [vmem:[%s8082_s13 + $0xa8] sm:$0xff]  }
 0x6e6   : > { %v7129_v13 = vpop.eup %7128  ;;  %6372 = vmatpush3.bf16.msra.mxu0 %v6941_v20  ;;  %6261 = vmatprep.subr.bf16.mxu1 %v6942_v38 }
 0x6e7   : > { %v2653_v63 = vmul.f32 %v7129_v13, %v2557_v19  ;;  %v2688_v7 = vmul.f32 %v8959_v56, %v2652_v40  ;;  %3097 = vmatmul.mubr.bf16.gmra.mrb[136].mxu1 %v2744_v14  ;;  %6373 = vmatprep.subr.bf16.mxu0 %v6943_v9  ;;  %v6947_v40 = vld [vmem:[%s8082_s13 + $0xf0] sm:$0xff]  }
 0x6e8   : > { %3290 = vmatmul.mubr.bf16.gmra.mrb[136].mxu0 %v2744_v14  ;;  %3106 = vmatprep.mubr.bf16.mxu1 %v11788_v41  ;;  %v6946_v14 = vld [vmem:[%s8082_s13 + $0x70] sm:$0xff]  }
 0x6e9   : > { %v2689_v10 = vmul.f32 %v8959_v56, %v2653_v63  ;;  %3299 = vmatprep.mubr.bf16.mxu0 %v11788_v41  ;;  %v9280_v25 = vadd.f32 %v8973_v26, %v2688_v7  ;;  %6262 = vmatpush3.bf16.msra.mxu1 %v6944_v46  ;;  %v6948_v63 = vld [vmem:[%s8082_s13 + $0x30] sm:$0xff]  }
 0x6ea   : > { %6374 = vmatpush3.bf16.msra.mxu0 %v6945_v1  ;;  %v6949_v7 = vld [vmem:[%s8082_s13 + $0xb0] sm:$0xff]   ;;  %6263 = vmatprep.subr.bf16.mxu1 %v6946_v14  ;;  %s12207_s13 = sld [smem:[#allocation149_spill]] (!%p6121_p12) }
 0x6eb   : > { %11811 = vst [vmem:[#allocation50_spill] sm:$0xff] %v9280_v25  ;;  %v9283_v4 = vadd.f32 %v8973_v26, %v2689_v10  ;;  %6375 = vmatprep.subr.bf16.mxu0 %v6947_v40 }
 0x6ed   : > { %11812 = vst [vmem:[#allocation51_spill] sm:$0xff] %v9283_v4  ;;  %v2745_v51 = vpack.c.bf16 %v9283_v4, %v9280_v25  ;;  %6264 = vmatpush3.bf16.msra.mxu1 %v6948_v63 }
 0x6ee   : > { %6376 = vmatpush3.bf16.msra.mxu0 %v6949_v7  ;;  %6265 = vmatprep.subr.bf16.mxu1 %v6950_v15 }
 0x6ef   : > { %3107 = vmatmul.mubr.bf16.gmra.mrb[140].mxu1 %v2745_v51  ;;  %6377 = vmatprep.subr.bf16.mxu0 %v6951_v50 }
 0x6f0   : > { %3300 = vmatmul.mubr.bf16.gmra.mrb[140].mxu0 %v2745_v51  ;;  %3116 = vmatprep.mubr.bf16.mxu1 %v11788_v41 }
 0x6f1   : > { %3309 = vmatprep.mubr.bf16.mxu0 %v11788_v41  ;;  %6266 = vmatpush3.bf16.msra.mxu1 %v6952_v5 }
 0x6f2   : > { %6378 = vmatpush3.bf16.msra.mxu0 %v6953_v31 }
 0x71c   : > { %v2294_v54 = vpop.xlane.xlu0 %2293 }
 0x71d   : > { %v2334_v19 = vmul.f32 0.0078125, %v2294_v54 }
 0x71e   : > { %v2296_v13 = vpop.xlane.xlu1 %2295 }
 0x71f   : > { %v2335_v10 = vmul.f32 0.0078125, %v2296_v13  ;;  %v2494_v36 = vmul.f32 %v2334_v19, %v2334_v19 }
 0x720   : > { %v2423_v51 = vpop.xlane.xlu0 %2422 }
 0x721   : > { %v2462_v28 = vmul.f32 0.0078125, %v2423_v51  ;;  %v2495_v62 = vmul.f32 %v2335_v10, %v2335_v10 }
 0x722   : > { %v2425_v12 = vpop.xlane.xlu1 %2424 }
 0x723   : > { %v2526_v33 = vsub.f32 %v2462_v28, %v2494_v36  ;;  %v2463_v8 = vmul.f32 0.0078125, %v2425_v12 }
 0x724   : > { %v2298_v32 = vpop.xlane.xlu0 %2297 }
 0x725   : > { %v2590_v20 = vadd.f32 1e-05, %v2526_v33  ;;  %v2527_v38 = vsub.f32 %v2463_v8, %v2495_v62  ;;  %v2336_v9 = vmul.f32 0.0078125, %v2298_v32  ;;  %v2558_v8 = vsub.f32 %v8968_v53, %v2334_v19 }
 0x726   : > { %v2300_v46 = vpop.xlane.xlu1 %2299 }
 0x727   : > { %7130 = vrsqrt.f32 %v2590_v20  ;;  %v2591_v1 = vadd.f32 1e-05, %v2527_v38  ;;  %v2337_v54 = vmul.f32 0.0078125, %v2300_v46  ;;  %v2496_v40 = vmul.f32 %v2336_v9, %v2336_v9 }
 0x728   : > { %v2427_v14 = vpop.xlane.xlu0 %2426  ;;  %v2559_v46 = vsub.f32 %v8978_v6, %v2335_v10  ;;  %v2560_v10 = vsub.f32 %v9007_v61, %v2336_v9 }
 0x729   : > { %7132 = vrsqrt.f32 %v2591_v1  ;;  %v2464_v13 = vmul.f32 0.0078125, %v2427_v14  ;;  %v2497_v7 = vmul.f32 %v2337_v54, %v2337_v54 }
 0x72a   : > { %v2429_v63 = vpop.xlane.xlu1 %2428 }
 0x72b   : > { %v2528_v51 = vsub.f32 %v2464_v13, %v2496_v40  ;;  %v2465_v36 = vmul.f32 0.0078125, %v2429_v63 }
 0x72c   : > { %v2302_v28 = vpop.xlane.xlu0 %2301 }
 0x72d   : > { %v2592_v15 = vadd.f32 1e-05, %v2528_v51  ;;  %v2529_v50 = vsub.f32 %v2465_v36, %v2497_v7  ;;  %v9313_v12 = vmul.f32 0.0078125, %v2302_v28 }
 0x72f   : > { %v2304_v62 = vpop.xlane.xlu1 %2303  ;;  %7134 = vrsqrt.f32 %v2592_v15  ;;  %v2593_v33 = vadd.f32 1e-05, %v2529_v50  ;;  %v2498_v20 = vmul.f32 %v9313_v12, %v9313_v12 }
 0x730   : > { %v9316_v5 = vmul.f32 0.0078125, %v2304_v62  ;;  %v2431_v31 = vpop.xlane.xlu0 %2430 }
 0x731   : > { %v7131_v32 = vpop.eup %7130  ;;  %7136 = vrsqrt.f32 %v2593_v33  ;;  %v2466_v38 = vmul.f32 0.0078125, %v2431_v31 }
 0x732   : > { %v2654_v14 = vmul.f32 %v7131_v32, %v2558_v8  ;;  %v2499_v13 = vmul.f32 %v9316_v5, %v9316_v5 }
 0x733   : > { %v2433_v1 = vpop.xlane.xlu1 %2432  ;;  %v7133_v40 = vpop.eup %7132  ;;  %v2530_v63 = vsub.f32 %v2466_v38, %v2498_v20 }
 0x734   : > { %v2467_v7 = vmul.f32 0.0078125, %v2433_v1  ;;  %v2306_v53 = vpop.xlane.xlu0 %2305  ;;  %v2655_v19 = vmul.f32 %v7133_v40, %v2559_v46  ;;  %v2690_v51 = vmul.f32 %v8959_v56, %v2654_v14  ;;  %v2561_v1 = vsub.f32 %v9011_v48, %v2337_v54 }
 0x735   : > { %v2594_v36 = vadd.f32 1e-05, %v2530_v63  ;;  %v2340_v15 = vmul.f32 0.0078125, %v2306_v53 }
 0x736   : > { %v2531_v28 = vsub.f32 %v2467_v7, %v2499_v13  ;;  %v2691_v50 = vmul.f32 %v8959_v56, %v2655_v19  ;;  %v9327_v31 = vadd.f32 %v8973_v26, %v2690_v51 }
 0x737   : > { %7138 = vrsqrt.f32 %v2594_v36  ;;  %v2308_v6 = vpop.xlane.xlu1 %2307  ;;  %v2500_v38 = vmul.f32 %v2340_v15, %v2340_v15  ;;  %v2562_v36 = vsub.f32 %v9040_v55, %v9313_v12 }
 0x738   : > { %v2595_v62 = vadd.f32 1e-05, %v2531_v28  ;;  %v2341_v33 = vmul.f32 0.0078125, %v2308_v6  ;;  %v2435_v8 = vpop.xlane.xlu0 %2434  ;;  %11813 = vst [vmem:[#allocation52_spill] sm:$0xff] %v9327_v31  ;;  %v9330_v32 = vadd.f32 %v8973_v26, %v2691_v50 }
 0x739   : > { %v7135_v20 = vpop.eup %7134  ;;  %v2468_v46 = vmul.f32 0.0078125, %v2435_v8 }
 0x73a   : > { %11814 = vst [vmem:[#allocation53_spill] sm:$0xff] %v9330_v32  ;;  %7140 = vrsqrt.f32 %v2595_v62  ;;  %v2746_v14 = vpack.c.bf16 %v9330_v32, %v9327_v31  ;;  %v2656_v40 = vmul.f32 %v7135_v20, %v2560_v10  ;;  %v2501_v63 = vmul.f32 %v2341_v33, %v2341_v33 }
 0x73b   : > { %v7137_v13 = vpop.eup %7136  ;;  %v2532_v61 = vsub.f32 %v2468_v46, %v2500_v38  ;;  %v2437_v9 = vpop.xlane.xlu1 %2436  ;;  %v2563_v10 = vsub.f32 %v9047_v52, %v9316_v5 }
 0x73c   : > { %v2469_v7 = vmul.f32 0.0078125, %v2437_v9  ;;  %3117 = vmatmul.mubr.bf16.gmra.mrb[144].mxu1 %v2746_v14  ;;  %3310 = vmatmul.mubr.bf16.gmra.mrb[144].mxu0 %v2746_v14  ;;  %v2657_v53 = vmul.f32 %v7137_v13, %v2561_v1  ;;  %v2692_v19 = vmul.f32 %v8959_v56, %v2656_v40  ;;  %v2564_v1 = vsub.f32 %v9071_v21, %v2340_v15 }
 0x73d   : > { %v2596_v51 = vadd.f32 1e-05, %v2532_v61  ;;  %3126 = vmatprep.mubr.bf16.mxu1 %v11788_v41  ;;  %3319 = vmatprep.mubr.bf16.mxu0 %v11788_v41  ;;  %v2565_v61 = vsub.f32 %v9081_v58, %v2341_v33  ;;  %v2782_v33 = vld [vmem:[%s8097_s27] sm:$0xf] }
 0x73e   : > { %v2533_v48 = vsub.f32 %v2469_v7, %v2501_v63  ;;  %v2693_v54 = vmul.f32 %v8959_v56, %v2657_v53  ;;  %v9342_v50 = vadd.f32 %v8973_v26, %v2692_v19  ;;  %v11636_v19 = vsub.s32 3, %v8179_v42 }
 0x73f   : > { %7142 = vrsqrt.f32 %v2596_v51  ;;  %v9383_v51 = vrot.slane %v2782_v33, %v8281_v17 }
 0x740   : > { %v2597_v28 = vadd.f32 1e-05, %v2533_v48  ;;  %11815 = vst [vmem:[#allocation54_spill] sm:$0xff] %v9342_v50  ;;  %v9345_v62 = vadd.f32 %v8973_v26, %v2693_v54 }
 0x741   : > { %v7139_v6 = vpop.eup %7138  ;;  %11822 = vst [vmem:[#allocation61_spill] sm:$0xff] %v9383_v51 }
 0x742   : > { %11816 = vst [vmem:[#allocation55_spill] sm:$0xff] %v9345_v62  ;;  %7144 = vrsqrt.f32 %v2597_v28  ;;  %v2747_v8 = vpack.c.bf16 %v9345_v62, %v9342_v50  ;;  %v2658_v20 = vmul.f32 %v7139_v6, %v2562_v36 }
 0x744   : > { %v7141_v38 = vpop.eup %7140  ;;  %3127 = vmatmul.mubr.bf16.gmra.mrb[148].mxu1 %v2747_v8  ;;  %3320 = vmatmul.mubr.bf16.gmra.mrb[148].mxu0 %v2747_v8  ;;  %v2694_v12 = vmul.f32 %v8959_v56, %v2658_v20 }
 0x745   : > { %v2659_v55 = vmul.f32 %v7141_v38, %v2563_v10  ;;  %3136 = vmatprep.mubr.bf16.mxu1 %v11788_v41  ;;  %3329 = vmatprep.mubr.bf16.mxu0 %v11788_v41 }
 0x746   : > { %v9357_v52 = vadd.f32 %v8973_v26, %v2694_v12 }
 0x747   : > { %v2695_v46 = vmul.f32 %v8959_v56, %v2659_v55 }
 0x748   : > { %11817 = vst [vmem:[#allocation56_spill] sm:$0xff] %v9357_v52 }
 0x749   : > { %v9360_v5 = vadd.f32 %v8973_v26, %v2695_v46  ;;  %v7143_v14 = vpop.eup %7142 }
 0x74a   : > { %v2660_v13 = vmul.f32 %v7143_v14, %v2564_v1 }
 0x74b   : > { %11818 = vst [vmem:[#allocation57_spill] sm:$0xff] %v9360_v5  ;;  %v2748_v40 = vpack.c.bf16 %v9360_v5, %v9357_v52 }
 0x74c   : > { %v7145_v9 = vpop.eup %7144  ;;  %v2696_v15 = vmul.f32 %v8959_v56, %v2660_v13 }
 0x74d   : > { %3137 = vmatmul.mubr.bf16.gmra.mrb[152].mxu1 %v2748_v40  ;;  %3330 = vmatmul.mubr.bf16.gmra.mrb[152].mxu0 %v2748_v40  ;;  %v2661_v21 = vmul.f32 %v7145_v9, %v2565_v61 }
 0x74e   : > { %3146 = vmatprep.mubr.bf16.mxu1 %v11788_v41  ;;  %3339 = vmatprep.mubr.bf16.mxu0 %v11788_v41  ;;  %v9370_v7 = vadd.f32 %v8973_v26, %v2696_v15  ;;  %v9380_v41 = vrot.slane %v2782_v33, %v8182_v43 }
 0x74f   : > { %v2697_v63 = vmul.f32 %v8959_v56, %v2661_v21  ;;  %v9386_v56 = vrot.slane %v2782_v33, %v8188_v45 }
 0x750   : > { %11819 = vst [vmem:[#allocation58_spill] sm:$0xff] %v9370_v7  ;;  %11821 = vst [vmem:[#allocation60_spill] sm:$0xff] %v9380_v41 }
 0x751   : > { %v9373_v53 = vadd.f32 %v8973_v26, %v2697_v63  ;;  %11823 = vst [vmem:[#allocation62_spill] sm:$0xff] %v9386_v56  ;;  %v9390_v26 = vrot.slane %v2782_v33, %v11636_v19 }
 0x753   : > { %11820 = vst [vmem:[#allocation59_spill] sm:$0xff] %v9373_v53  ;;  %v2749_v58 = vpack.c.bf16 %v9373_v53, %v9370_v7  ;;  %11824 = vst [vmem:[#allocation63_spill] sm:$0xff] %v9390_v26 }
 0x755   : > { %3147 = vmatmul.mubr.bf16.gmra.mrb[156].mxu1 %v2749_v58  ;;  %3340 = vmatmul.mubr.bf16.gmra.mrb[156].mxu0 %v2749_v58 }
 0x769   : > { %v2998_v48 = vpop.f32.mrb[96].mxu1  ;;  %v3191_v54 = vpop.f32.mrb[96].mxu0 }
 0x76a   : > { %v9393_v36 = vadd.f32 %v2998_v48, %v9380_v41  ;;  %v9396_v28 = vadd.f32 %v3191_v54, %v9383_v51  ;;  %v3000_v43 = vpop.f32.mrb[97].mxu1  ;;  %v3193_v6 = vpop.f32.mrb[97].mxu0 }
 0x76b   : > { %v9399_v17 = vadd.f32 %v3000_v43, %v9386_v56  ;;  %v9402_v45 = vadd.f32 %v3193_v6, %v9390_v26  ;;  %v3002_v10 = vpop.f32.mrb[98].mxu1  ;;  %v3195_v8 = vpop.f32.mrb[98].mxu0 }
 0x76c   : > { %v3350_v20 = vmul.f32 %v9393_v36, %v9393_v36  ;;  %v3352_v38 = vmul.f32 %v9396_v28, %v9396_v28  ;;  %v9409_v55 = vadd.f32 %v3002_v10, %v9380_v41  ;;  %v9412_v12 = vadd.f32 %v3195_v8, %v9383_v51  ;;  %v3004_v46 = vpop.f32.mrb[99].mxu1  ;;  %v3197_v1 = vpop.f32.mrb[99].mxu0 }
 0x76d   : > { %v3351_v14 = vmul.f32 %v9399_v17, %v9399_v17  ;;  %v3353_v40 = vmul.f32 %v9402_v45, %v9402_v45  ;;  %v9419_v13 = vadd.f32 %v3004_v46, %v9386_v56  ;;  %v9422_v61 = vadd.f32 %v3197_v1, %v9390_v26 }
 0x76e   : > { %v3478_v9 = vmul.f32 %v3350_v20, %v9393_v36  ;;  %v3480_v21 = vmul.f32 %v3352_v38, %v9396_v28  ;;  %v3354_v15 = vmul.f32 %v9409_v55, %v9409_v55  ;;  %v3356_v63 = vmul.f32 %v9412_v12, %v9412_v12 }
 0x76f   : > { %v3479_v58 = vmul.f32 %v3351_v14, %v9399_v17  ;;  %v3481_v33 = vmul.f32 %v3353_v40, %v9402_v45  ;;  %v3355_v48 = vmul.f32 %v9419_v13, %v9419_v13  ;;  %v3357_v54 = vmul.f32 %v9422_v61, %v9422_v61 }
 0x770   : > { %v3606_v43 = vmul.f32 0.044715, %v3478_v9  ;;  %v3608_v6 = vmul.f32 0.044715, %v3480_v21  ;;  %v3482_v10 = vmul.f32 %v3354_v15, %v9409_v55  ;;  %v3484_v8 = vmul.f32 %v3356_v63, %v9412_v12 }
 0x771   : > { %v3607_v20 = vmul.f32 0.044715, %v3479_v58  ;;  %v3609_v38 = vmul.f32 0.044715, %v3481_v33  ;;  %v3483_v46 = vmul.f32 %v3355_v48, %v9419_v13  ;;  %v3485_v1 = vmul.f32 %v3357_v54, %v9422_v61  ;;  %v3008_v7 = vpop.f32.mrb[100].mxu1  ;;  %v3201_v63 = vpop.f32.mrb[100].mxu0 }
 0x772   : > { %v3734_v14 = vadd.f32 %v3606_v43, %v9393_v36  ;;  %v3736_v40 = vadd.f32 %v3608_v6, %v9396_v28  ;;  %v3610_v19 = vmul.f32 0.044715, %v3482_v10  ;;  %v3612_v53 = vmul.f32 0.044715, %v3484_v8  ;;  %v3010_v58 = vpop.f32.mrb[101].mxu1  ;;  %v3203_v43 = vpop.f32.mrb[101].mxu0 }
 0x773   : > { %v3735_v9 = vadd.f32 %v3607_v20, %v9399_v17  ;;  %v3737_v21 = vadd.f32 %v3609_v38, %v9402_v45  ;;  %v3611_v15 = vmul.f32 0.044715, %v3483_v46  ;;  %v3613_v5 = vmul.f32 0.044715, %v3485_v1  ;;  %v3012_v62 = vpop.f32.mrb[102].mxu1  ;;  %v3205_v50 = vpop.f32.mrb[102].mxu0 }
 0x774   : > { %v3862_v33 = vmul.f32 0.7978846, %v3734_v14  ;;  %v3864_v52 = vmul.f32 0.7978846, %v3736_v40  ;;  %v3738_v48 = vadd.f32 %v3610_v19, %v9409_v55  ;;  %v3740_v54 = vadd.f32 %v3612_v53, %v9412_v12  ;;  %v3014_v38 = vpop.f32.mrb[103].mxu1  ;;  %v3207_v40 = vpop.f32.mrb[103].mxu0 }
 0x775   : > { %v3863_v6 = vmul.f32 0.7978846, %v3735_v9  ;;  %v3865_v10 = vmul.f32 0.7978846, %v3737_v21  ;;  %v3739_v8 = vadd.f32 %v3611_v15, %v9419_v13  ;;  %v3741_v20 = vadd.f32 %v3613_v5, %v9422_v61 }
 0x776   : > { %7146 = vtanh.f32 %v3862_v33  ;;  %v3866_v46 = vmul.f32 0.7978846, %v3738_v48  ;;  %v3868_v1 = vmul.f32 0.7978846, %v3740_v54  ;;  %v9449_v14 = vadd.f32 %v3008_v7, %v9380_v41 }
 0x777   : > { %7148 = vtanh.f32 %v3864_v52  ;;  %v3867_v19 = vmul.f32 0.7978846, %v3739_v8  ;;  %v3869_v53 = vmul.f32 0.7978846, %v3741_v20  ;;  %v9452_v32 = vadd.f32 %v3201_v63, %v9383_v51 }
 0x778   : > { %11825 = vst [vmem:[#allocation64_spill] sm:$0xff] %v9449_v14  ;;  %7150 = vtanh.f32 %v3863_v6  ;;  %v3358_v9 = vmul.f32 %v9449_v14, %v9449_v14  ;;  %v9457_v5 = vadd.f32 %v3010_v58, %v9386_v56  ;;  %v9460_v21 = vadd.f32 %v3203_v43, %v9390_v26 }
 0x779   : > { %11826 = vst [vmem:[#allocation65_spill] sm:$0xff] %v9452_v32  ;;  %7152 = vtanh.f32 %v3865_v10  ;;  %v3360_v7 = vmul.f32 %v9452_v32, %v9452_v32  ;;  %v9465_v52 = vadd.f32 %v3012_v62, %v9380_v41  ;;  %v9468_v15 = vadd.f32 %v3205_v50, %v9383_v51 }
 0x77a   : > { %7154 = vtanh.f32 %v3866_v46  ;;  %v3486_v63 = vmul.f32 %v3358_v9, %v9449_v14  ;;  %v3359_v58 = vmul.f32 %v9457_v5, %v9457_v5  ;;  %v3361_v33 = vmul.f32 %v9460_v21, %v9460_v21  ;;  %v3018_v10 = vpop.f32.mrb[104].mxu1 }
 0x77b   : > { %11827 = vst [vmem:[#allocation66_spill] sm:$0xff] %v9465_v52  ;;  %11828 = vst [vmem:[#allocation67_spill] sm:$0xff] %v9468_v15  ;;  %7156 = vtanh.f32 %v3868_v1  ;;  %v3488_v48 = vmul.f32 %v3360_v7, %v9452_v32  ;;  %v3362_v54 = vmul.f32 %v9465_v52, %v9465_v52  ;;  %v3364_v62 = vmul.f32 %v9468_v15, %v9468_v15  ;;  %v9482_v8 = vpop.f32.mrb[104].mxu0  ;;  %v9486_v9 = vpop.f32.mrb[105].mxu1 }
 0x77c   : > { %7158 = vtanh.f32 %v3867_v19  ;;  %v3614_v50 = vmul.f32 0.044715, %v3486_v63  ;;  %v3487_v43 = vmul.f32 %v3359_v58, %v9457_v5  ;;  %v3489_v6 = vmul.f32 %v3361_v33, %v9460_v21  ;;  %v9488_v7 = vpop.f32.mrb[105].mxu0  ;;  %v9494_v33 = vpop.f32.mrb[106].mxu1 }
 0x77d   : > { %7160 = vtanh.f32 %v3869_v53  ;;  %v3616_v20 = vmul.f32 0.044715, %v3488_v48  ;;  %v3490_v46 = vmul.f32 %v3362_v54, %v9465_v52  ;;  %v3492_v1 = vmul.f32 %v3364_v62, %v9468_v15  ;;  %v9496_v4 = vpop.f32.mrb[106].mxu0  ;;  %v9502_v25 = vpop.f32.mrb[107].mxu1 }
 0x77e   : > { %v3742_v19 = vadd.f32 %v3614_v50, %v9449_v14  ;;  %v3615_v63 = vmul.f32 0.044715, %v3487_v43  ;;  %v3617_v31 = vmul.f32 0.044715, %v3489_v6  ;;  %v9492_v58 = vadd.f32 %v3014_v38, %v9386_v56  ;;  %v9504_v37 = vpop.f32.mrb[107].mxu0 }
 0x77f   : > { %v3744_v53 = vadd.f32 %v3616_v20, %v9452_v32  ;;  %v3618_v48 = vmul.f32 0.044715, %v3490_v46  ;;  %v3620_v54 = vmul.f32 0.044715, %v3492_v1  ;;  %v9500_v62 = vadd.f32 %v3207_v40, %v9390_v26 }
 0x780   : > { %v7147_v50 = vpop.eup %7146  ;;  %v3870_v43 = vmul.f32 0.7978846, %v3742_v19  ;;  %v3743_v38 = vadd.f32 %v3615_v63, %v9457_v5  ;;  %v3745_v6 = vadd.f32 %v3617_v31, %v9460_v21  ;;  %v3363_v30 = vmul.f32 %v9492_v58, %v9492_v58 }
 0x781   : > { %11829 = vst [vmem:[#allocation68_spill] sm:$0xff] %v9500_v62  ;;  %v7149_v11 = vpop.eup %7148  ;;  %v4118_v20 = vadd.f32 1.0, %v7147_v50  ;;  %v3872_v46 = vmul.f32 0.7978846, %v3744_v53  ;;  %v3746_v1 = vadd.f32 %v3618_v48, %v9465_v52  ;;  %v3748_v40 = vadd.f32 %v3620_v54, %v9468_v15 }
 0x782   : > { %v9512_v29 = vpop.eup %7150  ;;  %v4120_v44 = vadd.f32 1.0, %v7149_v11  ;;  %7162 = vtanh.f32 %v3870_v43  ;;  %v3871_v18 = vmul.f32 0.7978846, %v3743_v38  ;;  %v3873_v19 = vmul.f32 0.7978846, %v3745_v6  ;;  %v9519_v54 = vpop.f32.mrb[108].mxu1 }
 0x783   : > { %v9514_v3 = vpop.eup %7152  ;;  %v4246_v63 = vmul.f32 0.5, %v4118_v20  ;;  %7164 = vtanh.f32 %v3872_v46  ;;  %v3874_v31 = vmul.f32 0.7978846, %v3746_v1  ;;  %v3876_v57 = vmul.f32 0.7978846, %v3748_v40  ;;  %v9521_v11 = vpop.f32.mrb[108].mxu0 }
 0x784   : > { %v7155_v2 = vpop.eup %7154  ;;  %v4248_v39 = vmul.f32 0.5, %v4120_v44  ;;  %7166 = vtanh.f32 %v3871_v18  ;;  %v3491_v53 = vmul.f32 %v3363_v30, %v9492_v58  ;;  %v3365_v48 = vmul.f32 %v9500_v62, %v9500_v62  ;;  %v9529_v44 = vpop.f32.mrb[109].mxu1 }
 0x785   : > { %v7157_v50 = vpop.eup %7156  ;;  %v9524_v43 = vmul.f32 %v4246_v63, %v9393_v36  ;;  %v4122_v38 = vadd.f32 1.0, %v7155_v2  ;;  %7168 = vtanh.f32 %v3873_v19  ;;  %v9527_v6 = vadd.f32 %v3018_v10, %v9380_v41  ;;  %v9531_v18 = vpop.f32.mrb[109].mxu0 }
 0x786   : > { %v9533_v30 = vpop.eup %7158  ;;  %v9536_v20 = vmul.f32 %v4248_v39, %v9396_v28  ;;  %v4124_v46 = vadd.f32 1.0, %v7157_v50  ;;  %7170 = vtanh.f32 %v3874_v31  ;;  %v3619_v1 = vmul.f32 0.044715, %v3491_v53  ;;  %v9538_v40 = vpop.f32.mrb[110].mxu1 }
 0x787   : > { %11830 = vst [vmem:[#allocation69_spill] sm:$0xff] %v9527_v6  ;;  %v9540_v36 = vpop.f32.mrb[110].mxu0  ;;  %v9542_v2 = vpop.eup %7160  ;;  %v4250_v10 = vmul.f32 0.5, %v4122_v38  ;;  %7172 = vtanh.f32 %v3876_v57  ;;  %v3493_v19 = vmul.f32 %v3365_v48, %v9500_v62  ;;  %v3366_v63 = vmul.f32 %v9527_v6, %v9527_v6 }
 0x788   : > { %v9547_v0 = vpop.f32.mrb[111].mxu1  ;;  %v9549_v39 = vpop.f32.mrb[111].mxu0  ;;  %v4252_v28 = vmul.f32 0.5, %v4124_v46  ;;  %v3747_v31 = vadd.f32 %v3619_v1, %v9492_v58  ;;  %v9554_v53 = vadd.f32 %v9482_v8, %v9383_v51  ;;  %v9558_v50 = vadd.f32 %v9486_v9, %v9386_v56 }
 0x789   : > { %v9561_v57 = vmul.f32 %v4250_v10, %v9409_v55  ;;  %v3621_v48 = vmul.f32 0.044715, %v3493_v19  ;;  %v3494_v38 = vmul.f32 %v3366_v63, %v9527_v6  ;;  %v9566_v24 = vadd.f32 %v9488_v7, %v9390_v26 }
 0x78a   : > { %11831 = vst [vmem:[#allocation70_spill] sm:$0xff] %v9554_v53  ;;  %11832 = vst [vmem:[#allocation71_spill] sm:$0xff] %v9558_v50  ;;  %v9569_v46 = vmul.f32 %v4252_v28, %v9412_v12  ;;  %v3875_v1 = vmul.f32 0.7978846, %v3747_v31  ;;  %v3368_v8 = vmul.f32 %v9554_v53, %v9554_v53  ;;  %v3367_v9 = vmul.f32 %v9558_v50, %v9558_v50  ;;  %v9586_v23 = vpop.f32.mrb[112].mxu1 }
 0x78b   : > { %11833 = vst [vmem:[#allocation72_spill] sm:$0xff] %v9566_v24  ;;  %v3749_v10 = vadd.f32 %v3621_v48, %v9500_v62  ;;  %v3622_v19 = vmul.f32 0.044715, %v3494_v38  ;;  %v3369_v7 = vmul.f32 %v9566_v24, %v9566_v24  ;;  %v9588_v60 = vpop.f32.mrb[112].mxu0  ;;  %v9596_v34 = vadd.f32 %v9494_v33, %v9380_v41 }
 0x78c   : > { %v9580_v63 = vpop.eup %7162  ;;  %7174 = vtanh.f32 %v3875_v1  ;;  %v3496_v28 = vmul.f32 %v3368_v8, %v9554_v53  ;;  %v3495_v31 = vmul.f32 %v3367_v9, %v9558_v50  ;;  %v9598_v1 = vpop.f32.mrb[113].mxu1  ;;  %v9606_v49 = vadd.f32 %v9496_v4, %v9383_v51 }
 0x78d   : > { %v9590_v55 = vpop.eup %7164  ;;  %v3877_v48 = vmul.f32 0.7978846, %v3749_v10  ;;  %v3750_v38 = vadd.f32 %v3622_v19, %v9527_v6  ;;  %v3497_v27 = vmul.f32 %v3369_v7, %v9566_v24  ;;  %11835 = vst [vmem:[#allocation74_spill] sm:$0xff] %v9596_v34  ;;  %v9600_v8 = vpop.f32.mrb[113].mxu0  ;;  %v9610_v10 = vadd.f32 %v9502_v25, %v9386_v56 }
 0x78e   : > { %11834 = vst [vmem:[#allocation73_spill] sm:$0xff] %v9590_v55  ;;  %v9602_v9 = vpop.eup %7166  ;;  %v3624_v12 = vmul.f32 0.044715, %v3496_v28  ;;  %v3623_v16 = vmul.f32 0.044715, %v3495_v31  ;;  %11836 = vst [vmem:[#allocation75_spill] sm:$0xff] %v9606_v49  ;;  %v3370_v28 = vmul.f32 %v9596_v34, %v9596_v34  ;;  %v3372_v42 = vmul.f32 %v9606_v49, %v9606_v49 }
 0x78f   : > { %11837 = vst [vmem:[#allocation76_spill] sm:$0xff] %v9610_v10  ;;  %v9612_v19 = vpop.f32.mrb[114].mxu1  ;;  %v9614_v33 = vpop.f32.mrb[114].mxu0  ;;  %7176 = vtanh.f32 %v3877_v48  ;;  %v3878_v35 = vmul.f32 0.7978846, %v3750_v38  ;;  %v3371_v48 = vmul.f32 %v9610_v10, %v9610_v10  ;;  %v9638_v15 = vadd.f32 %v9504_v37, %v9390_v26 }
 0x790   : > { %v9616_v7 = vpop.eup %7168  ;;  %v3625_v22 = vmul.f32 0.044715, %v3497_v27  ;;  %v9620_v31 = vpop.f32.mrb[115].mxu1  ;;  %v3752_v25 = vadd.f32 %v3624_v12, %v9554_v53  ;;  %v3751_v47 = vadd.f32 %v3623_v16, %v9558_v50  ;;  %v3498_v6 = vmul.f32 %v3370_v28, %v9596_v34 }
 0x791   : > { %v9622_v4 = vpop.f32.mrb[115].mxu0  ;;  %v9624_v59 = vpop.eup %7170  ;;  %7178 = vtanh.f32 %v3878_v35  ;;  %11839 = vst [vmem:[#allocation78_spill] sm:$0xff] %v9638_v15  ;;  %v3500_v16 = vmul.f32 %v3372_v42, %v9606_v49  ;;  %v3499_v50 = vmul.f32 %v3371_v48, %v9610_v10  ;;  %v3373_v14 = vmul.f32 %v9638_v15, %v9638_v15 }
 0x792   : > { %v9632_v27 = vpop.eup %7172  ;;  %v3753_v38 = vadd.f32 %v3625_v22, %v9566_v24  ;;  %v3880_v12 = vmul.f32 0.7978846, %v3752_v25  ;;  %v3879_v53 = vmul.f32 0.7978846, %v3751_v47  ;;  %v3626_v52 = vmul.f32 0.044715, %v3498_v6 }
 0x793   : > { %11838 = vst [vmem:[#allocation77_spill] sm:$0xff] %v9632_v27  ;;  %v9646_v22 = vadd.f32 %v9519_v54, %v9380_v41  ;;  %v3628_v35 = vmul.f32 0.044715, %v3500_v16  ;;  %v3627_v28 = vmul.f32 0.044715, %v3499_v50  ;;  %v9650_v37 = vadd.f32 %v9521_v11, %v9383_v51  ;;  %v9652_v47 = vpop.f32.mrb[116].mxu1 }
 0x794   : > { %v3881_v32 = vmul.f32 0.7978846, %v3753_v38  ;;  %7180 = vtanh.f32 %v3880_v12  ;;  %v9654_v42 = vpop.f32.mrb[116].mxu0  ;;  %v3754_v6 = vadd.f32 %v3626_v52, %v9596_v34  ;;  %v3501_v25 = vmul.f32 %v3373_v14, %v9638_v15  ;;  %v9660_v48 = vpop.f32.mrb[117].mxu1 }
 0x795   : > { %11840 = vst [vmem:[#allocation79_spill] sm:$0xff] %v9646_v22  ;;  %11841 = vst [vmem:[#allocation80_spill] sm:$0xff] %v9650_v37  ;;  %7182 = vtanh.f32 %v3879_v53  ;;  %v3374_v54 = vmul.f32 %v9646_v22, %v9646_v22  ;;  %v9662_v38 = vpop.f32.mrb[117].mxu0  ;;  %v3756_v11 = vadd.f32 %v3628_v35, %v9606_v49  ;;  %v3755_v12 = vadd.f32 %v3627_v28, %v9610_v10  ;;  %v9670_v52 = vpop.f32.mrb[118].mxu1 }
 0x796   : > { %v9664_v50 = vpop.eup %7174  ;;  %7184 = vtanh.f32 %v3881_v32  ;;  %v3376_v53 = vmul.f32 %v9650_v37, %v9650_v37  ;;  %v9672_v14 = vpop.f32.mrb[118].mxu0  ;;  %v3882_v16 = vmul.f32 0.7978846, %v3754_v6  ;;  %v3629_v34 = vmul.f32 0.044715, %v3501_v25 }
 0x797   : > { %v3502_v24 = vmul.f32 %v3374_v54, %v9646_v22  ;;  %v9677_v27 = vadd.f32 %v9529_v44, %v9386_v56  ;;  %v9679_v32 = vpop.f32.mrb[119].mxu1  ;;  %v9681_v35 = vpop.f32.mrb[119].mxu0  ;;  %v3884_v28 = vmul.f32 0.7978846, %v3756_v11  ;;  %v3883_v49 = vmul.f32 0.7978846, %v3755_v12 }
 0x798   : > { %v3504_v10 = vmul.f32 %v3376_v53, %v9650_v37  ;;  %v9686_v55 = vadd.f32 %v9531_v18, %v9390_v26  ;;  %7186 = vtanh.f32 %v3882_v16  ;;  %v3757_v25 = vadd.f32 %v3629_v34, %v9638_v15 }
 0x799   : > { %11842 = vst [vmem:[#allocation81_spill] sm:$0xff] %v9677_v27  ;;  %v9688_v6 = vpop.eup %7176  ;;  %v3630_v54 = vmul.f32 0.044715, %v3502_v24  ;;  %v3375_v44 = vmul.f32 %v9677_v27, %v9677_v27  ;;  %7188 = vtanh.f32 %v3884_v28  ;;  %v9697_v12 = vadd.f32 %v9538_v40, %v9380_v41 }
 0x79a   : > { %11843 = vst [vmem:[#allocation82_spill] sm:$0xff] %v9686_v55  ;;  %v3632_v62 = vmul.f32 0.044715, %v3504_v10  ;;  %v3377_v11 = vmul.f32 %v9686_v55, %v9686_v55  ;;  %7190 = vtanh.f32 %v3883_v49  ;;  %v3885_v53 = vmul.f32 0.7978846, %v3757_v25  ;;  %v9711_v40 = vpop.f32.mrb[120].mxu1 }
 0x79b   : > { %11844 = vst [vmem:[#allocation83_spill] sm:$0xff] %v9697_v12  ;;  %v9699_v18 = vpop.eup %7178  ;;  %v3758_v16 = vadd.f32 %v3630_v54, %v9646_v22  ;;  %v3503_v34 = vmul.f32 %v3375_v44, %v9677_v27  ;;  %v3378_v10 = vmul.f32 %v9697_v12, %v9697_v12  ;;  %v9709_v15 = vadd.f32 %v9540_v36, %v9383_v51 }
 0x79c   : > { %11845 = vst [vmem:[#allocation84_spill] sm:$0xff] %v9699_v18  ;;  %v3760_v24 = vadd.f32 %v3632_v62, %v9650_v37  ;;  %v3505_v28 = vmul.f32 %v3377_v11, %v9686_v55  ;;  %v9713_v18 = vpop.f32.mrb[120].mxu0  ;;  %7192 = vtanh.f32 %v3885_v53  ;;  %v9717_v54 = vadd.f32 %v9547_v0, %v9386_v56  ;;  %v9719_v62 = vpop.f32.mrb[121].mxu1 }
 0x79d   : > { %11846 = vst [vmem:[#allocation85_spill] sm:$0xff] %v9709_v15  ;;  %11847 = vst [vmem:[#allocation86_spill] sm:$0xff] %v9713_v18  ;;  %v3886_v49 = vmul.f32 0.7978846, %v3758_v16  ;;  %v3631_v25 = vmul.f32 0.044715, %v3503_v34  ;;  %v3506_v22 = vmul.f32 %v3378_v10, %v9697_v12  ;;  %v3380_v18 = vmul.f32 %v9709_v15, %v9709_v15 }
 0x79e   : > { %11848 = vst [vmem:[#allocation87_spill] sm:$0xff] %v9717_v54  ;;  %v9721_v44 = vpop.f32.mrb[121].mxu0  ;;  %v9723_v11 = vpop.eup %7180  ;;  %v3888_v37 = vmul.f32 0.7978846, %v3760_v24  ;;  %v3633_v36 = vmul.f32 0.044715, %v3505_v28  ;;  %v9739_v24 = vadd.f32 %v9549_v39, %v9390_v26  ;;  %v9754_v39 = vadd.f32 %v9586_v23, %v9380_v41 }
 0x79f   : > { %11849 = vst [vmem:[#allocation88_spill] sm:$0xff] %v9721_v44  ;;  %11850 = vst [vmem:[#allocation89_spill] sm:$0xff] %v9723_v11  ;;  %v9728_v53 = vpop.f32.mrb[122].mxu1  ;;  %v9730_v16 = vpop.f32.mrb[122].mxu0  ;;  %7194 = vtanh.f32 %v3886_v49  ;;  %v3759_v0 = vadd.f32 %v3631_v25, %v9677_v27  ;;  %v3379_v44 = vmul.f32 %v9717_v54, %v9717_v54  ;;  %v3508_v49 = vmul.f32 %v3380_v18, %v9709_v15 }
 0x7a0   : > { %11851 = vst [vmem:[#allocation90_spill] sm:$0xff] %v9728_v53  ;;  %11852 = vst [vmem:[#allocation91_spill] sm:$0xff] %v9730_v16  ;;  %v9732_v34 = vpop.eup %7182  ;;  %v9741_v28 = vpop.f32.mrb[123].mxu1  ;;  %7196 = vtanh.f32 %v3888_v37  ;;  %v3761_v16 = vadd.f32 %v3633_v36, %v9686_v55  ;;  %v3381_v53 = vmul.f32 %v9739_v24, %v9739_v24  ;;  %v9759_v37 = vadd.f32 %v9588_v60, %v9383_v51 }
 0x7a1   : > { %11853 = vst [vmem:[#allocation92_spill] sm:$0xff] %v9732_v34  ;;  %11854 = vst [vmem:[#allocation93_spill] sm:$0xff] %v9739_v24  ;;  %v9743_v10 = vpop.f32.mrb[123].mxu0  ;;  %v9745_v11 = vpop.eup %7184  ;;  %v3634_v34 = vmul.f32 0.044715, %v3506_v22  ;;  %v3507_v27 = vmul.f32 %v3379_v44, %v9717_v54  ;;  %v3382_v36 = vmul.f32 %v9754_v39, %v9754_v39 }
 0x7a2   : > { %11855 = vst [vmem:[#allocation94_spill] sm:$0xff] %v9741_v28  ;;  %11856 = vst [vmem:[#allocation95_spill] sm:$0xff] %v9743_v10  ;;  %v3887_v25 = vmul.f32 0.7978846, %v3759_v0  ;;  %v3889_v28 = vmul.f32 0.7978846, %v3761_v16  ;;  %v9761_v22 = vpop.eup %7186  ;;  %v3509_v44 = vmul.f32 %v3381_v53, %v9739_v24 }
 0x7a3   : > { %11857 = vst [vmem:[#allocation96_spill] sm:$0xff] %v9745_v11  ;;  %11858 = vst [vmem:[#allocation97_spill] sm:$0xff] %v9754_v39  ;;  %v3762_v10 = vadd.f32 %v3634_v34, %v9697_v12  ;;  %v3636_v11 = vmul.f32 0.044715, %v3508_v49  ;;  %v3635_v18 = vmul.f32 0.044715, %v3507_v27  ;;  %v9766_v0 = vpop.eup %7188  ;;  %v3384_v34 = vmul.f32 %v9759_v37, %v9759_v37 }
 0x7a4   : > { %11859 = vst [vmem:[#allocation98_spill] sm:$0xff] %v9759_v37  ;;  %7198 = vtanh.f32 %v3887_v25  ;;  %v9771_v60 = vpop.f32.mrb[124].mxu1  ;;  %v9773_v49 = vpop.f32.mrb[124].mxu0  ;;  %v3637_v53 = vmul.f32 0.044715, %v3509_v44  ;;  %v3510_v12 = vmul.f32 %v3382_v36, %v9754_v39 }
 0x7a5   : > { %7200 = vtanh.f32 %v3889_v28  ;;  %v3890_v23 = vmul.f32 0.7978846, %v3762_v10  ;;  %v3764_v16 = vadd.f32 %v3636_v11, %v9709_v15  ;;  %11860 = vst [vmem:[#allocation99_spill] sm:$0xff] %v9773_v49  ;;  %v9775_v25 = vpop.eup %7190  ;;  %v3763_v27 = vadd.f32 %v3635_v18, %v9717_v54  ;;  %v9783_v10 = vpop.f32.mrb[125].mxu1 }
 0x7a6   : > { %v9781_v28 = vadd.f32 %v9598_v1, %v9386_v56  ;;  %11862 = vst [vmem:[#allocation101_spill] sm:$0xff] %v9783_v10  ;;  %v9785_v11 = vpop.f32.mrb[125].mxu0  ;;  %v3512_v55 = vmul.f32 %v3384_v34, %v9759_v37  ;;  %v9790_v49 = vadd.f32 %v9600_v8, %v9390_v26  ;;  %v9792_v18 = vpop.f32.mrb[126].mxu1  ;;  %v3765_v54 = vadd.f32 %v3637_v53, %v9739_v24 }
 0x7a7   : > { %7202 = vtanh.f32 %v3890_v23  ;;  %v3892_v15 = vmul.f32 0.7978846, %v3764_v16  ;;  %11864 = vst [vmem:[#allocation103_spill] sm:$0xff] %v9792_v18  ;;  %v9794_v44 = vpop.f32.mrb[126].mxu0  ;;  %v9796_v36 = vpop.eup %7192  ;;  %v3891_v1 = vmul.f32 0.7978846, %v3763_v27 }
 0x7a8   : > { %11861 = vst [vmem:[#allocation100_spill] sm:$0xff] %v9781_v28  ;;  %11863 = vst [vmem:[#allocation102_spill] sm:$0xff] %v9790_v49  ;;  %v3638_v10 = vmul.f32 0.044715, %v3510_v12  ;;  %v3383_v23 = vmul.f32 %v9781_v28, %v9781_v28  ;;  %v9801_v16 = vpop.f32.mrb[127].mxu1  ;;  %v9803_v34 = vpop.f32.mrb[127].mxu0  ;;  %v3385_v18 = vmul.f32 %v9790_v49, %v9790_v49 }
 0x7a9   : > { %11865 = vst [vmem:[#allocation104_spill] sm:$0xff] %v9794_v44  ;;  %11866 = vst [vmem:[#allocation105_spill] sm:$0xff] %v9801_v16  ;;  %7204 = vtanh.f32 %v3892_v15  ;;  %v3640_v8 = vmul.f32 0.044715, %v3512_v55  ;;  %v9809_v44 = vadd.f32 %v9612_v19, %v9380_v41  ;;  %v9811_v27 = vpop.eup %7194  ;;  %v3893_v12 = vmul.f32 0.7978846, %v3765_v54 }
 0x7aa   : > { %11867 = vst [vmem:[#allocation106_spill] sm:$0xff] %v9803_v34  ;;  %11868 = vst [vmem:[#allocation107_spill] sm:$0xff] %v9811_v27  ;;  %7206 = vtanh.f32 %v3891_v1  ;;  %v3766_v53 = vadd.f32 %v3638_v10, %v9754_v39  ;;  %v3511_v24 = vmul.f32 %v3383_v23, %v9781_v28  ;;  %v9815_v16 = vpop.eup %7196  ;;  %v3513_v55 = vmul.f32 %v3385_v18, %v9790_v49 }
 0x7ab   : > { %11869 = vst [vmem:[#allocation108_spill] sm:$0xff] %v9815_v16  ;;  %v3768_v15 = vadd.f32 %v3640_v8, %v9759_v37  ;;  %v3386_v34 = vmul.f32 %v9809_v44, %v9809_v44  ;;  %v9823_v19 = vadd.f32 %v9614_v33, %v9383_v51  ;;  %7208 = vtanh.f32 %v3893_v12  ;;  %v9832_v37 = vpop.f32.mrb[128].mxu1  ;;  %v9834_v16 = vpop.f32.mrb[128].mxu0 }
 0x7ac   : > { %v3894_v1 = vmul.f32 0.7978846, %v3766_v53  ;;  %v3639_v54 = vmul.f32 0.044715, %v3511_v24  ;;  %v9827_v10 = vadd.f32 %v9620_v31, %v9386_v56  ;;  %v3641_v39 = vmul.f32 0.044715, %v3513_v55 }
 0x7ad   : > { %v3896_v23 = vmul.f32 0.7978846, %v3768_v15  ;;  %v3514_v8 = vmul.f32 %v3386_v34, %v9809_v44  ;;  %v3388_v18 = vmul.f32 %v9823_v19, %v9823_v19  ;;  %11870 = vst [vmem:[#allocation109_spill] sm:$0xff] %v9832_v37  ;;  %11871 = vst [vmem:[#allocation110_spill] sm:$0xff] %v9834_v16  ;;  %v9843_v12 = vadd.f32 %v9622_v4, %v9390_v26  ;;  %v9845_v34 = vpop.f32.mrb[129].mxu1  ;;  %v9847_v53 = vpop.f32.mrb[129].mxu0 }
 0x7ae   : > { %v9836_v33 = vpop.eup %7198  ;;  %7210 = vtanh.f32 %v3894_v1  ;;  %v3767_v24 = vadd.f32 %v3639_v54, %v9781_v28  ;;  %v3387_v31 = vmul.f32 %v9827_v10, %v9827_v10  ;;  %11873 = vst [vmem:[#allocation112_spill] sm:$0xff] %v9845_v34  ;;  %11874 = vst [vmem:[#allocation113_spill] sm:$0xff] %v9847_v53  ;;  %v3769_v55 = vadd.f32 %v3641_v39, %v9790_v49  ;;  %v9853_v54 = vpop.f32.mrb[130].mxu1 }
 0x7af   : > { %11872 = vst [vmem:[#allocation111_spill] sm:$0xff] %v9836_v33  ;;  %v9849_v15 = vpop.eup %7200  ;;  %7212 = vtanh.f32 %v3896_v23  ;;  %v3642_v16 = vmul.f32 0.044715, %v3514_v8  ;;  %v3516_v1 = vmul.f32 %v3388_v18, %v9823_v19  ;;  %11876 = vst [vmem:[#allocation115_spill] sm:$0xff] %v9853_v54  ;;  %v9855_v28 = vpop.f32.mrb[130].mxu0  ;;  %v3389_v34 = vmul.f32 %v9843_v12, %v9843_v12 }
 0x7b0   : > { %11875 = vst [vmem:[#allocation114_spill] sm:$0xff] %v9849_v15  ;;  %11877 = vst [vmem:[#allocation116_spill] sm:$0xff] %v9855_v28  ;;  %v3895_v37 = vmul.f32 0.7978846, %v3767_v24  ;;  %v3515_v4 = vmul.f32 %v3387_v31, %v9827_v10  ;;  %v4119_v53 = vadd.f32 1.0, %v9512_v29  ;;  %v9861_v27 = vpop.f32.mrb[131].mxu1 }
 0x7b1   : > { %11878 = vst [vmem:[#allocation117_spill] sm:$0xff] %v9861_v27  ;;  %v9863_v23 = vpop.f32.mrb[131].mxu0  ;;  %v9865_v39 = vpop.eup %7202  ;;  %v3897_v8 = vmul.f32 0.7978846, %v3769_v55  ;;  %v3770_v18 = vadd.f32 %v3642_v16, %v9809_v44  ;;  %v3644_v49 = vmul.f32 0.044715, %v3516_v1  ;;  %v3517_v31 = vmul.f32 %v3389_v34, %v9843_v12 }
 0x7b2   : > { %11879 = vst [vmem:[#allocation118_spill] sm:$0xff] %v9863_v23  ;;  %v4123_v28 = vadd.f32 1.0, %v9533_v30  ;;  %7214 = vtanh.f32 %v3895_v37  ;;  %v3643_v24 = vmul.f32 0.044715, %v3515_v4  ;;  %v4247_v54 = vmul.f32 0.5, %v4119_v53  ;;  %v9880_v4 = vpop.f32.mrb[132].mxu1 }
 0x7b3   : > { %v9870_v15 = vpop.eup %7204  ;;  %7216 = vtanh.f32 %v3897_v8  ;;  %v3898_v29 = vmul.f32 0.7978846, %v3770_v18  ;;  %v3772_v27 = vadd.f32 %v3644_v49, %v9823_v19  ;;  %v3645_v16 = vmul.f32 0.044715, %v3517_v31  ;;  %v9882_v8 = vpop.f32.mrb[132].mxu0 }
 0x7b4   : > { %v4251_v23 = vmul.f32 0.5, %v4123_v28  ;;  %v9873_v33 = vpop.eup %7206  ;;  %v3771_v55 = vadd.f32 %v3643_v24, %v9827_v10  ;;  %v4375_v1 = vmul.f32 %v4247_v54, %v9399_v17  ;;  %v4121_v30 = vadd.f32 1.0, %v9514_v3  ;;  %v9891_v3 = vpop.f32.mrb[133].mxu1 }
 0x7b5   : > { %7218 = vtanh.f32 %v3898_v29  ;;  %v3900_v37 = vmul.f32 0.7978846, %v3772_v27  ;;  %v4125_v53 = vadd.f32 1.0, %v9542_v2  ;;  %v9884_v49 = vpop.eup %7208  ;;  %v3773_v18 = vadd.f32 %v3645_v16, %v9843_v12  ;;  %v9893_v27 = vpop.f32.mrb[133].mxu0 }
 0x7b6   : > { %v4379_v34 = vmul.f32 %v4251_v23, %v9419_v13  ;;  %v3899_v28 = vmul.f32 0.7978846, %v3771_v55  ;;  %v4249_v24 = vmul.f32 0.5, %v4121_v30  ;;  %v9889_v17 = vadd.f32 %v9652_v47, %v9380_v41  ;;  %11881 = vst [vmem:[#allocation120_spill] sm:$0xff] %v9893_v27  ;;  %v9899_v23 = vpop.f32.mrb[134].mxu1  ;;  %v9901_v31 = vpop.f32.mrb[134].mxu0 }
 0x7b7   : > { %7220 = vtanh.f32 %v3900_v37  ;;  %v4253_v2 = vmul.f32 0.5, %v4125_v53  ;;  %v9897_v54 = vadd.f32 %v9654_v42, %v9383_v51  ;;  %11883 = vst [vmem:[#allocation122_spill] sm:$0xff] %v9899_v23  ;;  %11884 = vst [vmem:[#allocation123_spill] sm:$0xff] %v9901_v31  ;;  %v3901_v47 = vmul.f32 0.7978846, %v3773_v18  ;;  %v9908_v30 = vpop.f32.mrb[135].mxu1 }
 0x7b8   : > { %11880 = vst [vmem:[#allocation119_spill] sm:$0xff] %v9889_v17  ;;  %v4503_v13 = vpack.c.bf16 %v4379_v34, %v4375_v1  ;;  %v9903_v29 = vpop.eup %7210  ;;  %7222 = vtanh.f32 %v3899_v28  ;;  %v4377_v55 = vmul.f32 %v4249_v24, %v9402_v45  ;;  %v3390_v16 = vmul.f32 %v9889_v17, %v9889_v17  ;;  %11885 = vst [vmem:[#allocation124_spill] sm:$0xff] %v9908_v30  ;;  %v9910_v1 = vpop.f32.mrb[135].mxu0 }
 0x7b9   : > { %11882 = vst [vmem:[#allocation121_spill] sm:$0xff] %v9897_v54  ;;  %11886 = vst [vmem:[#allocation125_spill] sm:$0xff] %v9910_v1  ;;  %v9912_v37 = vpop.eup %7212  ;;  %v4381_v42 = vmul.f32 %v4253_v2, %v9422_v61  ;;  %v3392_v34 = vmul.f32 %v9897_v54, %v9897_v54  ;;  %v9919_v53 = vadd.f32 %v9660_v48, %v9386_v56  ;;  %7224 = vtanh.f32 %v3901_v47 }
 0x7ba   : > { %4858 = vmatprep.mubr.bf16.mxu1 %v4503_v13  ;;  %v9923_v45 = vadd.f32 %v9662_v38, %v9390_v26  ;;  %v11887_v28 = vpack.c.bf16 %v9561_v57, %v9524_v43  ;;  %v3518_v18 = vmul.f32 %v3390_v16, %v9889_v17  ;;  %v9931_v61 = vadd.f32 %v9670_v52, %v9380_v41 }
 0x7bb   : > { %v9935_v24 = vadd.f32 %v9672_v14, %v9383_v51  ;;  %v4505_v48 = vpack.c.bf16 %v4381_v42, %v4377_v55  ;;  %v3520_v13 = vmul.f32 %v3392_v34, %v9897_v54  ;;  %v3391_v38 = vmul.f32 %v9919_v53, %v9919_v53  ;;  %v9962_v1 = vpop.f32.mrb[136].mxu0 }
 0x7bc   : > { %4859 = vmatmul.mubr.bf16.vlgmr.msra.gmra.mrb[160].mxu1 %v11887_v28  ;;  %11888 = vst [vmem:[#allocation126_spill] sm:$0xff] %v9931_v61  ;;  %v3393_v43 = vmul.f32 %v9923_v45, %v9923_v45  ;;  %v9942_v57 = vpop.eup %7214  ;;  %v3646_v2 = vmul.f32 0.044715, %v3518_v18  ;;  %v3394_v52 = vmul.f32 %v9931_v61, %v9931_v61  ;;  %v9950_v14 = vadd.f32 %v9679_v32, %v9386_v56  ;;  %v9960_v18 = vpop.f32.mrb[136].mxu1 }
 0x7bd   : > { %11889 = vst [vmem:[#allocation127_spill] sm:$0xff] %v9935_v24  ;;  %v3396_v47 = vmul.f32 %v9935_v24, %v9935_v24  ;;  %v9952_v55 = vpop.eup %7216  ;;  %5019 = vmatprep.mubr.bf16.mxu0 %v4505_v48  ;;  %v3648_v16 = vmul.f32 0.044715, %v3520_v13  ;;  %v3519_v42 = vmul.f32 %v3391_v38, %v9919_v53  ;;  %v9958_v28 = vadd.f32 %v9681_v35, %v9390_v26  ;;  %v9974_v35 = vpop.f32.mrb[137].mxu0 }
 0x7be   : > { %v3521_v34 = vmul.f32 %v3393_v43, %v9923_v45  ;;  %11891 = vst [vmem:[#allocation129_spill] sm:$0xff] %v9960_v18  ;;  %11892 = vst [vmem:[#allocation130_spill] sm:$0xff] %v9962_v1  ;;  %v11893_v32 = vpack.c.bf16 %v9569_v46, %v9536_v20  ;;  %v3774_v30 = vadd.f32 %v3646_v2, %v9889_v17  ;;  %v9972_v43 = vpop.f32.mrb[137].mxu1 }
 0x7bf   : > { %11890 = vst [vmem:[#allocation128_spill] sm:$0xff] %v9958_v28  ;;  %v3522_v48 = vmul.f32 %v3394_v52, %v9931_v61  ;;  %v3524_v13 = vmul.f32 %v3396_v47, %v9935_v24  ;;  %v3395_v38 = vmul.f32 %v9950_v14, %v9950_v14  ;;  %11894 = vst [vmem:[#allocation131_spill] sm:$0xff] %v9972_v43  ;;  %v9976_v18 = vpop.eup %7218  ;;  %v3647_v31 = vmul.f32 0.044715, %v3519_v42  ;;  %v9981_v2 = vpop.f32.mrb[138].mxu1 }
 0x7c0   : > { %5020 = vmatmul.mubr.bf16.vlgmr.msra.gmra.mrb[160].mxu0 %v11893_v32  ;;  %11895 = vst [vmem:[#allocation132_spill] sm:$0xff] %v9974_v35  ;;  %v3776_v1 = vadd.f32 %v3648_v16, %v9897_v54  ;;  %v3649_v20 = vmul.f32 0.044715, %v3521_v34  ;;  %v3397_v46 = vmul.f32 %v9958_v28, %v9958_v28  ;;  %11896 = vst [vmem:[#allocation133_spill] sm:$0xff] %v9981_v2  ;;  %v9983_v52 = vpop.f32.mrb[138].mxu0  ;;  %v9991_v34 = vpop.f32.mrb[139].mxu1 }
 0x7c1   : > { %11897 = vst [vmem:[#allocation134_spill] sm:$0xff] %v9983_v52  ;;  %v3902_v47 = vmul.f32 0.7978846, %v3774_v30  ;;  %v3650_v32 = vmul.f32 0.044715, %v3522_v48  ;;  %v3523_v43 = vmul.f32 %v3395_v38, %v9950_v14  ;;  %v9986_v23 = vpop.eup %7220  ;;  %v3775_v27 = vadd.f32 %v3647_v31, %v9919_v53  ;;  %11898 = vst [vmem:[#allocation135_spill] sm:$0xff] %v9991_v34 }
 0x7c2   : > { %v3652_v17 = vmul.f32 0.044715, %v3524_v13  ;;  %v3904_v35 = vmul.f32 0.7978846, %v3776_v1  ;;  %v3777_v16 = vadd.f32 %v3649_v20, %v9923_v45  ;;  %v3525_v42 = vmul.f32 %v3397_v46, %v9958_v28  ;;  %v9993_v54 = vpop.f32.mrb[139].mxu0  ;;  %v9995_v2 = vpop.eup %7222 }
 0x7c3   : > { %11899 = vst [vmem:[#allocation136_spill] sm:$0xff] %v9993_v54  ;;  %7226 = vtanh.f32 %v3902_v47  ;;  %v3778_v30 = vadd.f32 %v3650_v32, %v9931_v61  ;;  %v3651_v13 = vmul.f32 0.044715, %v3523_v43  ;;  %v3903_v1 = vmul.f32 0.7978846, %v3775_v27  ;;  %v9999_v52 = vpop.eup %7224  ;;  %v10006_v43 = vpop.f32.mrb[140].mxu1 }
 0x7c4   : > { %v3780_v48 = vadd.f32 %v3652_v17, %v9935_v24  ;;  %7228 = vtanh.f32 %v3904_v35  ;;  %v3905_v38 = vmul.f32 0.7978846, %v3777_v16  ;;  %v3653_v31 = vmul.f32 0.044715, %v3525_v42  ;;  %11900 = vst [vmem:[#allocation137_spill] sm:$0xff] %v10006_v43  ;;  %v10008_v27 = vpop.f32.mrb[140].mxu0 }
 0x7c5   : > { %v3906_v20 = vmul.f32 0.7978846, %v3778_v30  ;;  %v3779_v34 = vadd.f32 %v3651_v13, %v9950_v14  ;;  %v4127_v54 = vadd.f32 1.0, %v9602_v9  ;;  %7230 = vtanh.f32 %v3903_v1  ;;  %11901 = vst [vmem:[#allocation138_spill] sm:$0xff] %v10008_v27  ;;  %v10011_v30 = vpop.f32.mrb[141].mxu1 }
 0x7c6   : > { %v3908_v46 = vmul.f32 0.7978846, %v3780_v48  ;;  %v3781_v47 = vadd.f32 %v3653_v31, %v9958_v28  ;;  %v4131_v32 = vadd.f32 1.0, %v9664_v50  ;;  %v4129_v17 = vadd.f32 1.0, %v9616_v7  ;;  %11902 = vst [vmem:[#allocation139_spill] sm:$0xff] %v10011_v30  ;;  %v10013_v48 = vpop.f32.mrb[141].mxu0 }
 0x7c7   : > { %7232 = vtanh.f32 %v3905_v38  ;;  %v3907_v35 = vmul.f32 0.7978846, %v3779_v34  ;;  %v4255_v16 = vmul.f32 0.5, %v4127_v54  ;;  %v4133_v42 = vadd.f32 1.0, %v9688_v6  ;;  %11903 = vst [vmem:[#allocation140_spill] sm:$0xff] %v10013_v48  ;;  %v10015_v50 = vpop.f32.mrb[142].mxu1 }
 0x7c8   : > { %7234 = vtanh.f32 %v3906_v20  ;;  %v3909_v9 = vmul.f32 0.7978846, %v3781_v47  ;;  %v4259_v13 = vmul.f32 0.5, %v4131_v32  ;;  %v4257_v1 = vmul.f32 0.5, %v4129_v17  ;;  %11904 = vst [vmem:[#allocation141_spill] sm:$0xff] %v10015_v50  ;;  %v10017_v7 = vpop.f32.mrb[142].mxu0 }
 0x7c9   : > { %11905 = vst [vmem:[#allocation142_spill] sm:$0xff] %v10017_v7  ;;  %7236 = vtanh.f32 %v3908_v46  ;;  %v4383_v31 = vmul.f32 %v4255_v16, %v9457_v5  ;;  %v4261_v38 = vmul.f32 0.5, %v4133_v42  ;;  %v4126_v54 = vadd.f32 1.0, %v9580_v63  ;;  %v10021_v34 = vpop.f32.mrb[143].mxu1  ;;  %v10023_v6 = vpop.f32.mrb[143].mxu0  ;;  %v11908_v17 = vld [vmem:[#allocation68_spill] sm:$0xff] }
 0x7ca   : > { %11906 = vst [vmem:[#allocation143_spill] sm:$0xff] %v10021_v34  ;;  %11907 = vst [vmem:[#allocation144_spill] sm:$0xff] %v10023_v6  ;;  %7238 = vtanh.f32 %v3907_v35  ;;  %v4387_v20 = vmul.f32 %v4259_v13, %v9492_v58  ;;  %v4385_v47 = vmul.f32 %v4257_v1, %v9460_v21  ;;  %v4130_v32 = vadd.f32 1.0, %v9624_v59  ;;  %v11909_v50 = vld [vmem:[#allocation73_spill] sm:$0xff]  ;;  %v11912_v21 = vld [vmem:[#allocation64_spill] sm:$0xff] }
 0x7cb   : > { %7240 = vtanh.f32 %v3909_v9  ;;  %v4389_v7 = vmul.f32 %v4261_v38, %v11908_v17  ;;  %v4254_v46 = vmul.f32 0.5, %v4126_v54  ;;  %v4128_v5 = vadd.f32 1.0, %v11909_v50  ;;  %v11910_v63 = vld [vmem:[#allocation77_spill] sm:$0xff]  ;;  %v11913_v9 = vld [vmem:[#allocation86_spill] sm:$0xff]  ;;  %v11919_v17 = vld [vmem:[#allocation88_spill] sm:$0xff] }
 0x7cc   : > { %v4507_v16 = vpack.c.bf16 %v4387_v20, %v4383_v31  ;;  %v4258_v42 = vmul.f32 0.5, %v4130_v32  ;;  %v4132_v48 = vadd.f32 1.0, %v11910_v63  ;;  %v10033_v6 = vadd.f32 %v9711_v40, %v9380_v41  ;;  %v11916_v50 = vld [vmem:[#allocation66_spill] sm:$0xff]  ;;  %v11923_v63 = vld [vmem:[#allocation67_spill] sm:$0xff] }
 0x7cd   : > { %v10035_v35 = vpop.eup %7226  ;;  %v4509_v58 = vpack.c.bf16 %v4389_v7, %v4385_v47  ;;  %v4382_v13 = vmul.f32 %v4254_v46, %v11912_v21  ;;  %v4256_v59 = vmul.f32 0.5, %v4128_v5  ;;  %v10040_v1 = vadd.f32 %v11913_v9, %v9383_v51  ;;  %v11918_v7 = vld [vmem:[#allocation65_spill] sm:$0xff]  ;;  %v11921_v5 = vld [vmem:[#allocation90_spill] sm:$0xff] }
 0x7ce   : > { %11911 = vst [vmem:[#allocation68_spill] sm:$0xff] %v10033_v6  ;;  %v10042_v38 = vpop.eup %7228  ;;  %4866 = vmatprep.mubr.bf16.mxu1 %v4507_v16  ;;  %v4386_v31 = vmul.f32 %v4258_v42, %v11916_v50  ;;  %v4260_v54 = vmul.f32 0.5, %v4132_v48  ;;  %v3398_v40 = vmul.f32 %v10033_v6, %v10033_v6  ;;  %v10049_v20 = vadd.f32 %v9719_v62, %v9386_v56 }
 0x7cf   : > { %11914 = vst [vmem:[#allocation73_spill] sm:$0xff] %v10040_v1  ;;  %11915 = vst [vmem:[#allocation77_spill] sm:$0xff] %v10042_v38  ;;  %5027 = vmatprep.mubr.bf16.mxu0 %v4509_v58  ;;  %v4384_v47 = vmul.f32 %v4256_v59, %v11918_v7  ;;  %v3400_v32 = vmul.f32 %v10040_v1, %v10040_v1  ;;  %v10056_v46 = vadd.f32 %v11919_v17, %v9390_v26  ;;  %v10062_v16 = vpop.eup %7230  ;;  %v11924_v17 = vld [vmem:[#allocation91_spill] sm:$0xff] }
 0x7d0   : > { %11917 = vst [vmem:[#allocation64_spill] sm:$0xff] %v10049_v20  ;;  %v10060_v48 = vadd.f32 %v11921_v5, %v9380_v41  ;;  %v4506_v42 = vpack.c.bf16 %v4386_v31, %v4382_v13  ;;  %v4388_v62 = vmul.f32 %v4260_v54, %v11923_v63  ;;  %v3526_v58 = vmul.f32 %v3398_v40, %v10033_v6  ;;  %v11926_v63 = vld [vmem:[#allocation94_spill] sm:$0xff] }
 0x7d1   : > { %11920 = vst [vmem:[#allocation86_spill] sm:$0xff] %v10056_v46  ;;  %v3399_v21 = vmul.f32 %v10049_v20, %v10049_v20  ;;  %v10068_v59 = vpop.eup %7232  ;;  %v3528_v9 = vmul.f32 %v3400_v32, %v10040_v1  ;;  %v3401_v50 = vmul.f32 %v10056_v46, %v10056_v46  ;;  %v10077_v13 = vadd.f32 %v11924_v17, %v9383_v51 }
 0x7d2   : > { %11922 = vst [vmem:[#allocation66_spill] sm:$0xff] %v10060_v48  ;;  %v3402_v7 = vmul.f32 %v10060_v48, %v10060_v48  ;;  %v10079_v31 = vpop.eup %7234  ;;  %4867 = vmatmul.mubr.bf16.gmra.mrb[164].mxu1 %v4506_v42  ;;  %v4508_v54 = vpack.c.bf16 %v4388_v62, %v4384_v47  ;;  %v3654_v40 = vmul.f32 0.044715, %v3526_v58  ;;  %v10084_v32 = vadd.f32 %v11926_v63, %v9386_v56  ;;  %v11929_v58 = vld [vmem:[#allocation95_spill] sm:$0xff] }
 0x7d3   : > { %11925 = vst [vmem:[#allocation65_spill] sm:$0xff] %v10077_v13  ;;  %v3527_v5 = vmul.f32 %v3399_v21, %v10049_v20  ;;  %v10086_v34 = vpop.eup %7236  ;;  %v3656_v30 = vmul.f32 0.044715, %v3528_v9  ;;  %v3529_v27 = vmul.f32 %v3401_v50, %v10056_v46  ;;  %v3404_v17 = vmul.f32 %v10077_v13, %v10077_v13 }
 0x7d4   : > { %11927 = vst [vmem:[#allocation88_spill] sm:$0xff] %v10084_v32  ;;  %11928 = vst [vmem:[#allocation90_spill] sm:$0xff] %v10086_v34  ;;  %v3530_v43 = vmul.f32 %v3402_v7, %v10060_v48  ;;  %v10092_v24 = vpop.eup %7238  ;;  %5028 = vmatmul.mubr.bf16.gmra.mrb[164].mxu0 %v4508_v54  ;;  %v3782_v47 = vadd.f32 %v3654_v40, %v10033_v6  ;;  %v3403_v62 = vmul.f32 %v10084_v32, %v10084_v32 }
 0x7d5   : > { %v3655_v42 = vmul.f32 0.044715, %v3527_v5  ;;  %v10099_v21 = vadd.f32 %v11929_v58, %v9390_v26  ;;  %v10101_v9 = vpop.eup %7240  ;;  %v3784_v50 = vadd.f32 %v3656_v30, %v10040_v1  ;;  %v3657_v7 = vmul.f32 0.044715, %v3529_v27 }
 0x7d6   : > { %v3658_v63 = vmul.f32 0.044715, %v3530_v43  ;;  %v3532_v61 = vmul.f32 %v3404_v17, %v10077_v13  ;;  %v3910_v28 = vmul.f32 0.7978846, %v3782_v47  ;;  %v3531_v40 = vmul.f32 %v3403_v62, %v10084_v32 }
 0x7d7   : > { %11930 = vst [vmem:[#allocation67_spill] sm:$0xff] %v10099_v21  ;;  %v3783_v54 = vadd.f32 %v3655_v42, %v10049_v20  ;;  %v3405_v5 = vmul.f32 %v10099_v21, %v10099_v21  ;;  %v3912_v6 = vmul.f32 0.7978846, %v3784_v50  ;;  %v3785_v58 = vadd.f32 %v3657_v7, %v10056_v46  ;;  %v11931_v50 = vld [vmem:[#allocation92_spill] sm:$0xff] }
 0x7d8   : > { %v3786_v34 = vadd.f32 %v3658_v63, %v10060_v48  ;;  %v3660_v38 = vmul.f32 0.044715, %v3532_v61  ;;  %7242 = vtanh.f32 %v3910_v28  ;;  %v3659_v27 = vmul.f32 0.044715, %v3531_v40  ;;  %v11932_v28 = vld [vmem:[#allocation96_spill] sm:$0xff] }
 0x7d9   : > { %v3911_v30 = vmul.f32 0.7978846, %v3783_v54  ;;  %v3533_v43 = vmul.f32 %v3405_v5, %v10099_v21  ;;  %7244 = vtanh.f32 %v3912_v6  ;;  %v3913_v17 = vmul.f32 0.7978846, %v3785_v58 }
 0x7da   : > { %v3914_v47 = vmul.f32 0.7978846, %v3786_v34  ;;  %v3788_v42 = vadd.f32 %v3660_v38, %v10077_v13  ;;  %v3787_v62 = vadd.f32 %v3659_v27, %v10084_v32  ;;  %v4135_v20 = vadd.f32 1.0, %v11931_v50 }
 0x7db   : > { %7246 = vtanh.f32 %v3911_v30  ;;  %v3661_v1 = vmul.f32 0.044715, %v3533_v43  ;;  %v4139_v61 = vadd.f32 1.0, %v9775_v25  ;;  %v4137_v63 = vadd.f32 1.0, %v11932_v28  ;;  %v11933_v30 = vld [vmem:[#allocation71_spill] sm:$0xff]  ;;  %v11934_v43 = vld [vmem:[#allocation84_spill] sm:$0xff] }
 0x7dc   : > { %7248 = vtanh.f32 %v3913_v17  ;;  %v3916_v7 = vmul.f32 0.7978846, %v3788_v42  ;;  %v3915_v54 = vmul.f32 0.7978846, %v3787_v62  ;;  %v4263_v40 = vmul.f32 0.5, %v4135_v20  ;;  %v11935_v42 = vld [vmem:[#allocation76_spill] sm:$0xff] }
 0x7dd   : > { %7250 = vtanh.f32 %v3914_v47  ;;  %v3789_v6 = vadd.f32 %v3661_v1, %v10099_v21  ;;  %v4267_v34 = vmul.f32 0.5, %v4139_v61  ;;  %v4141_v38 = vadd.f32 1.0, %v9796_v36  ;;  %v11936_v28 = vld [vmem:[#allocation72_spill] sm:$0xff]  ;;  %v11937_v20 = vld [vmem:[#allocation89_spill] sm:$0xff] }
 0x7de   : > { %7252 = vtanh.f32 %v3916_v7  ;;  %v4265_v5 = vmul.f32 0.5, %v4137_v63  ;;  %v4391_v27 = vmul.f32 %v4263_v40, %v11933_v30  ;;  %v4134_v17 = vadd.f32 1.0, %v11934_v43  ;;  %v11938_v63 = vld [vmem:[#allocation78_spill] sm:$0xff] }
 0x7df   : > { %7254 = vtanh.f32 %v3915_v54  ;;  %v3917_v58 = vmul.f32 0.7978846, %v3789_v6  ;;  %v4395_v25 = vmul.f32 %v4267_v34, %v11935_v42  ;;  %v4269_v50 = vmul.f32 0.5, %v4141_v38  ;;  %v11940_v38 = vld [vmem:[#allocation69_spill] sm:$0xff] }
 0x7e0   : > { %v4393_v47 = vmul.f32 %v4265_v5, %v11936_v28  ;;  %v4138_v62 = vadd.f32 1.0, %v9761_v22  ;;  %v4262_v1 = vmul.f32 0.5, %v4134_v17  ;;  %v4136_v7 = vadd.f32 1.0, %v11937_v20  ;;  %v11948_v20 = vld [vmem:[#allocation75_spill] sm:$0xff] }
 0x7e1   : > { %7256 = vtanh.f32 %v3917_v58  ;;  %v4140_v36 = vadd.f32 1.0, %v9766_v0  ;;  %v4511_v61 = vpack.c.bf16 %v4395_v25, %v4391_v27  ;;  %v4397_v54 = vmul.f32 %v4269_v50, %v11938_v63  ;;  %v11941_v58 = vld [vmem:[#allocation99_spill] sm:$0xff]  ;;  %v11944_v27 = vld [vmem:[#allocation74_spill] sm:$0xff]  ;;  %v11945_v25 = vld [vmem:[#allocation101_spill] sm:$0xff] }
 0x7e2   : > { %v4266_v6 = vmul.f32 0.5, %v4138_v62  ;;  %v10129_v40 = vadd.f32 %v9771_v60, %v9380_v41  ;;  %v10131_v34 = vpop.eup %7242  ;;  %v4390_v5 = vmul.f32 %v4262_v1, %v11940_v38  ;;  %v4264_v30 = vmul.f32 0.5, %v4136_v7  ;;  %v11947_v62 = vld [vmem:[#allocation70_spill] sm:$0xff]  ;;  %v11950_v38 = vld [vmem:[#allocation103_spill] sm:$0xff] }
 0x7e3   : > { %v4268_v22 = vmul.f32 0.5, %v4140_v36  ;;  %v10136_v43 = vadd.f32 %v11941_v58, %v9383_v51  ;;  %v10138_v17 = vpop.eup %7244  ;;  %4874 = vmatprep.mubr.bf16.mxu1 %v4511_v61  ;;  %v4513_v0 = vpack.c.bf16 %v4397_v54, %v4393_v47  ;;  %v10145_v50 = vadd.f32 %v11945_v25, %v9386_v56 }
 0x7e4   : > { %11939 = vst [vmem:[#allocation91_spill] sm:$0xff] %v10129_v40  ;;  %11943 = vst [vmem:[#allocation95_spill] sm:$0xff] %v10138_v17  ;;  %v4394_v42 = vmul.f32 %v4266_v6, %v11944_v27  ;;  %v3406_v60 = vmul.f32 %v10129_v40, %v10129_v40  ;;  %v4392_v1 = vmul.f32 %v4264_v30, %v11947_v62 }
 0x7e5   : > { %11942 = vst [vmem:[#allocation94_spill] sm:$0xff] %v10136_v43  ;;  %11946 = vst [vmem:[#allocation92_spill] sm:$0xff] %v10145_v50  ;;  %v10147_v28 = vpop.eup %7246  ;;  %v4396_v7 = vmul.f32 %v4268_v22, %v11948_v20  ;;  %v3408_v36 = vmul.f32 %v10136_v43, %v10136_v43  ;;  %v10155_v47 = vadd.f32 %v9785_v11, %v9390_v26  ;;  %5035 = vmatprep.mubr.bf16.mxu0 %v4513_v0  ;;  %v11953_v0 = vld [vmem:[#allocation104_spill] sm:$0xff] }
 0x7e6   : > { %v10157_v61 = vpop.eup %7248  ;;  %v4510_v63 = vpack.c.bf16 %v4394_v42, %v4390_v5  ;;  %v3534_v54 = vmul.f32 %v3406_v60, %v10129_v40  ;;  %v3407_v6 = vmul.f32 %v10145_v50, %v10145_v50  ;;  %v10164_v30 = vadd.f32 %v11950_v38, %v9380_v41 }
 0x7e7   : > { %11949 = vst [vmem:[#allocation96_spill] sm:$0xff] %v10155_v47  ;;  %v10166_v22 = vpop.eup %7250  ;;  %v4512_v58 = vpack.c.bf16 %v4396_v7, %v4392_v1  ;;  %v3536_v27 = vmul.f32 %v3408_v36, %v10136_v43  ;;  %v3409_v11 = vmul.f32 %v10155_v47, %v10155_v47  ;;  %v10173_v5 = vadd.f32 %v11953_v0, %v9383_v51  ;;  %v11956_v1 = vld [vmem:[#allocation105_spill] sm:$0xff] }
 0x7e8   : > { %11951 = vst [vmem:[#allocation71_spill] sm:$0xff] %v10164_v30  ;;  %11952 = vst [vmem:[#allocation84_spill] sm:$0xff] %v10166_v22  ;;  %v10175_v42 = vpop.eup %7252  ;;  %4875 = vmatmul.mubr.bf16.gmra.mrb[168].mxu1 %v4510_v63  ;;  %v3662_v60 = vmul.f32 0.044715, %v3534_v54  ;;  %v3535_v25 = vmul.f32 %v3407_v6, %v10145_v50  ;;  %v3410_v62 = vmul.f32 %v10164_v30, %v10164_v30  ;;  %v11958_v63 = vld [vmem:[#allocation106_spill] sm:$0xff] }
 0x7e9   : > { %11954 = vst [vmem:[#allocation76_spill] sm:$0xff] %v10173_v5  ;;  %11955 = vst [vmem:[#allocation72_spill] sm:$0xff] %v10175_v42  ;;  %v10182_v20 = vadd.f32 %v11956_v1, %v9386_v56  ;;  %v10184_v7 = vpop.eup %7254  ;;  %5036 = vmatmul.mubr.bf16.gmra.mrb[168].mxu0 %v4512_v58  ;;  %v3664_v36 = vmul.f32 0.044715, %v3536_v27  ;;  %v3537_v38 = vmul.f32 %v3409_v11, %v10155_v47 }
 0x7ea   : > { %v3412_v0 = vmul.f32 %v10173_v5, %v10173_v5  ;;  %v10191_v54 = vadd.f32 %v11958_v63, %v9390_v26  ;;  %v3790_v6 = vadd.f32 %v3662_v60, %v10129_v40  ;;  %v3663_v13 = vmul.f32 0.044715, %v3535_v25 }
 0x7eb   : > { %11957 = vst [vmem:[#allocation89_spill] sm:$0xff] %v10182_v20  ;;  %v3538_v48 = vmul.f32 %v3410_v62, %v10164_v30  ;;  %v3411_v1 = vmul.f32 %v10182_v20, %v10182_v20  ;;  %v10197_v21 = vpop.eup %7256  ;;  %v3792_v58 = vadd.f32 %v3664_v36, %v10136_v43  ;;  %v3665_v27 = vmul.f32 0.044715, %v3537_v38 }
 0x7ec   : > { %11959 = vst [vmem:[#allocation78_spill] sm:$0xff] %v10191_v54  ;;  %v3540_v11 = vmul.f32 %v3412_v0, %v10173_v5  ;;  %v3413_v42 = vmul.f32 %v10191_v54, %v10191_v54  ;;  %v3918_v63 = vmul.f32 0.7978846, %v3790_v6  ;;  %v3791_v17 = vadd.f32 %v3663_v13, %v10145_v50 }
 0x7ed   : > { %v3666_v60 = vmul.f32 0.044715, %v3538_v48  ;;  %v3539_v25 = vmul.f32 %v3411_v1, %v10182_v20  ;;  %v3920_v62 = vmul.f32 0.7978846, %v3792_v58  ;;  %v3793_v40 = vadd.f32 %v3665_v27, %v10155_v47  ;;  %v11960_v1 = vld [vmem:[#allocation111_spill] sm:$0xff] }
 0x7ee   : > { %v3668_v46 = vmul.f32 0.044715, %v3540_v11  ;;  %v3541_v22 = vmul.f32 %v3413_v42, %v10191_v54  ;;  %7258 = vtanh.f32 %v3918_v63  ;;  %v3919_v36 = vmul.f32 0.7978846, %v3791_v17 }
 0x7ef   : > { %v3794_v38 = vadd.f32 %v3666_v60, %v10164_v30  ;;  %v3667_v0 = vmul.f32 0.044715, %v3539_v25  ;;  %7260 = vtanh.f32 %v3920_v62  ;;  %v3921_v43 = vmul.f32 0.7978846, %v3793_v40  ;;  %v11961_v60 = vld [vmem:[#allocation114_spill] sm:$0xff]  ;;  %v11962_v62 = vld [vmem:[#allocation81_spill] sm:$0xff] }
 0x7f0   : > { %v3796_v6 = vadd.f32 %v3668_v46, %v10173_v5  ;;  %v3669_v32 = vmul.f32 0.044715, %v3541_v22  ;;  %7262 = vtanh.f32 %v3919_v36  ;;  %v4143_v58 = vadd.f32 1.0, %v11960_v1 }
 0x7f1   : > { %v3922_v48 = vmul.f32 0.7978846, %v3794_v38  ;;  %v3795_v13 = vadd.f32 %v3667_v0, %v10182_v20  ;;  %7264 = vtanh.f32 %v3921_v43  ;;  %v4147_v17 = vadd.f32 1.0, %v9873_v33  ;;  %v11963_v43 = vld [vmem:[#allocation107_spill] sm:$0xff] }
 0x7f2   : > { %v3924_v27 = vmul.f32 0.7978846, %v3796_v6  ;;  %v3797_v42 = vadd.f32 %v3669_v32, %v10191_v54  ;;  %v4271_v63 = vmul.f32 0.5, %v4143_v58  ;;  %v4145_v40 = vadd.f32 1.0, %v11961_v60  ;;  %v11964_v32 = vld [vmem:[#allocation87_spill] sm:$0xff] }
 0x7f3   : > { %7266 = vtanh.f32 %v3922_v48  ;;  %v3923_v11 = vmul.f32 0.7978846, %v3795_v13  ;;  %v4275_v22 = vmul.f32 0.5, %v4147_v17  ;;  %v4149_v25 = vadd.f32 1.0, %v9884_v49  ;;  %v11965_v13 = vld [vmem:[#allocation82_spill] sm:$0xff] }
 0x7f4   : > { %7268 = vtanh.f32 %v3924_v27  ;;  %v3925_v46 = vmul.f32 0.7978846, %v3797_v42  ;;  %v4399_v36 = vmul.f32 %v4271_v63, %v11962_v62  ;;  %v4273_v38 = vmul.f32 0.5, %v4145_v40  ;;  %v11966_v27 = vld [vmem:[#allocation108_spill] sm:$0xff]  ;;  %v11968_v40 = vld [vmem:[#allocation109_spill] sm:$0xff] }
 0x7f5   : > { %7270 = vtanh.f32 %v3923_v11  ;;  %v4142_v0 = vadd.f32 1.0, %v11963_v43  ;;  %v4403_v6 = vmul.f32 %v4275_v22, %v11964_v32  ;;  %v4277_v33 = vmul.f32 0.5, %v4149_v25  ;;  %v11967_v11 = vld [vmem:[#allocation93_spill] sm:$0xff]  ;;  %v11971_v22 = vld [vmem:[#allocation79_spill] sm:$0xff] }
 0x7f6   : > { %7272 = vtanh.f32 %v3925_v46  ;;  %v4146_v48 = vadd.f32 1.0, %v9865_v39  ;;  %v4401_v1 = vmul.f32 %v4273_v38, %v11965_v13  ;;  %v4144_v42 = vadd.f32 1.0, %v11966_v27  ;;  %v11972_v38 = vld [vmem:[#allocation110_spill] sm:$0xff]  ;;  %v11977_v27 = vld [vmem:[#allocation80_spill] sm:$0xff] }
 0x7f7   : > { %v4270_v58 = vmul.f32 0.5, %v4142_v0  ;;  %v4148_v17 = vadd.f32 1.0, %v9870_v15  ;;  %v4515_v49 = vpack.c.bf16 %v4403_v6, %v4399_v36  ;;  %v4405_v60 = vmul.f32 %v4277_v33, %v11967_v11  ;;  %v11975_v36 = vld [vmem:[#allocation83_spill] sm:$0xff] }
 0x7f8   : > { %v4274_v63 = vmul.f32 0.5, %v4146_v48  ;;  %v10225_v62 = vadd.f32 %v11968_v40, %v9380_v41  ;;  %v10227_v46 = vpop.eup %7258  ;;  %v4272_v39 = vmul.f32 0.5, %v4144_v42  ;;  %v10232_v0 = vadd.f32 %v11972_v38, %v9383_v51  ;;  %v11976_v48 = vld [vmem:[#allocation112_spill] sm:$0xff] }
 0x7f9   : > { %11970 = vst [vmem:[#allocation99_spill] sm:$0xff] %v10227_v46  ;;  %v4398_v25 = vmul.f32 %v4270_v58, %v11971_v22  ;;  %v4276_v43 = vmul.f32 0.5, %v4148_v17  ;;  %v10234_v32 = vpop.eup %7260  ;;  %4882 = vmatprep.mubr.bf16.mxu1 %v4515_v49  ;;  %v4517_v15 = vpack.c.bf16 %v4405_v60, %v4401_v1  ;;  %v10241_v13 = vadd.f32 %v11976_v48, %v9386_v56  ;;  %v11978_v17 = vld [vmem:[#allocation85_spill] sm:$0xff] }
 0x7fa   : > { %11969 = vst [vmem:[#allocation69_spill] sm:$0xff] %v10225_v62  ;;  %11973 = vst [vmem:[#allocation74_spill] sm:$0xff] %v10232_v0  ;;  %v4402_v6 = vmul.f32 %v4274_v63, %v11975_v36  ;;  %v3414_v33 = vmul.f32 %v10225_v62, %v10225_v62  ;;  %v10243_v58 = vpop.eup %7262  ;;  %v4400_v42 = vmul.f32 %v4272_v39, %v11977_v27  ;;  %v11979_v1 = vld [vmem:[#allocation113_spill] sm:$0xff]  ;;  %v11980_v39 = vld [vmem:[#allocation115_spill] sm:$0xff] }
 0x7fb   : > { %11974 = vst [vmem:[#allocation101_spill] sm:$0xff] %v10234_v32  ;;  %v4404_v11 = vmul.f32 %v4276_v43, %v11978_v17  ;;  %v3416_v40 = vmul.f32 %v10232_v0, %v10232_v0  ;;  %v10251_v49 = vadd.f32 %v11979_v1, %v9390_v26  ;;  %v10253_v60 = vpop.eup %7264  ;;  %5043 = vmatprep.mubr.bf16.mxu0 %v4517_v15  ;;  %v11982_v15 = vld [vmem:[#allocation116_spill] sm:$0xff] }
 0x7fc   : > { %v4514_v63 = vpack.c.bf16 %v4402_v6, %v4398_v25  ;;  %v3542_v22 = vmul.f32 %v3414_v33, %v10225_v62  ;;  %v3415_v38 = vmul.f32 %v10241_v13, %v10241_v13  ;;  %v10260_v36 = vadd.f32 %v11980_v39, %v9380_v41 }
 0x7fd   : > { %v10262_v43 = vpop.eup %7266  ;;  %v4516_v48 = vpack.c.bf16 %v4404_v11, %v4400_v42  ;;  %v3544_v27 = vmul.f32 %v3416_v40, %v10232_v0  ;;  %v3417_v17 = vmul.f32 %v10251_v49, %v10251_v49  ;;  %v10269_v25 = vadd.f32 %v11982_v15, %v9383_v51  ;;  %v11984_v42 = vld [vmem:[#allocation117_spill] sm:$0xff] }
 0x7fe   : > { %11981 = vst [vmem:[#allocation70_spill] sm:$0xff] %v10262_v43  ;;  %v10271_v6 = vpop.eup %7268  ;;  %4883 = vmatmul.mubr.bf16.gmra.mrb[172].mxu1 %v4514_v63  ;;  %v3670_v33 = vmul.f32 0.044715, %v3542_v22  ;;  %v3543_v1 = vmul.f32 %v3415_v38, %v10241_v13  ;;  %v3418_v39 = vmul.f32 %v10260_v36, %v10260_v36  ;;  %v10278_v11 = vadd.f32 %v11984_v42, %v9386_v56  ;;  %v11985_v63 = vld [vmem:[#allocation118_spill] sm:$0xff] }
 0x7ff   : > { %11983 = vst [vmem:[#allocation75_spill] sm:$0xff] %v10271_v6  ;;  %v10280_v40 = vpop.eup %7270  ;;  %5044 = vmatmul.mubr.bf16.gmra.mrb[172].mxu0 %v4516_v48  ;;  %v3672_v5 = vmul.f32 0.044715, %v3544_v27  ;;  %v3545_v15 = vmul.f32 %v3417_v17, %v10251_v49  ;;  %v3420_v30 = vmul.f32 %v10269_v25, %v10269_v25  ;;  %v10287_v22 = vadd.f32 %v11985_v63, %v9390_v26 }
 0x800   : > { %v10289_v38 = vpop.eup %7272  ;;  %v3798_v54 = vadd.f32 %v3670_v33, %v10225_v62  ;;  %v3671_v6 = vmul.f32 0.044715, %v3543_v1  ;;  %v3546_v42 = vmul.f32 %v3418_v39, %v10260_v36  ;;  %v3419_v48 = vmul.f32 %v10278_v11, %v10278_v11 }
 0x801   : > { %v3800_v27 = vadd.f32 %v3672_v5, %v10232_v0  ;;  %v3673_v17 = vmul.f32 0.044715, %v3545_v15  ;;  %v3548_v32 = vmul.f32 %v3420_v30, %v10269_v25  ;;  %v3421_v47 = vmul.f32 %v10287_v22, %v10287_v22 }
 0x802   : > { %v3926_v63 = vmul.f32 0.7978846, %v3798_v54  ;;  %v3799_v43 = vadd.f32 %v3671_v6, %v10241_v13  ;;  %v3674_v20 = vmul.f32 0.044715, %v3546_v42  ;;  %v3547_v33 = vmul.f32 %v3419_v48, %v10278_v11 }
 0x803   : > { %v3928_v1 = vmul.f32 0.7978846, %v3800_v27  ;;  %v3801_v39 = vadd.f32 %v3673_v17, %v10251_v49  ;;  %v3676_v62 = vmul.f32 0.044715, %v3548_v32  ;;  %v3549_v46 = vmul.f32 %v3421_v47, %v10287_v22 }
 0x804   : > { %7274 = vtanh.f32 %v3926_v63  ;;  %v3927_v5 = vmul.f32 0.7978846, %v3799_v43  ;;  %v3802_v15 = vadd.f32 %v3674_v20, %v10260_v36  ;;  %v3675_v30 = vmul.f32 0.044715, %v3547_v33  ;;  %v11986_v33 = vld [vmem:[#allocation100_spill] sm:$0xff] }
 0x805   : > { %7276 = vtanh.f32 %v3928_v1  ;;  %v3929_v0 = vmul.f32 0.7978846, %v3801_v39  ;;  %v3804_v54 = vadd.f32 %v3676_v62, %v10269_v25  ;;  %v3677_v50 = vmul.f32 0.044715, %v3549_v46 }
 0x806   : > { %7278 = vtanh.f32 %v3927_v5  ;;  %v3930_v6 = vmul.f32 0.7978846, %v3802_v15  ;;  %v3803_v42 = vadd.f32 %v3675_v30, %v10278_v11  ;;  %v4151_v48 = vadd.f32 1.0, %v9942_v57  ;;  %v11987_v5 = vld [vmem:[#allocation102_spill] sm:$0xff] }
 0x807   : > { %7280 = vtanh.f32 %v3929_v0  ;;  %v3932_v32 = vmul.f32 0.7978846, %v3804_v54  ;;  %v3805_v47 = vadd.f32 %v3677_v50, %v10287_v22  ;;  %v4155_v43 = vadd.f32 1.0, %v9995_v2 }
 0x808   : > { %7282 = vtanh.f32 %v3930_v6  ;;  %v3931_v20 = vmul.f32 0.7978846, %v3803_v42  ;;  %v4279_v27 = vmul.f32 0.5, %v4151_v48  ;;  %v4153_v17 = vadd.f32 1.0, %v9952_v55 }
 0x809   : > { %7284 = vtanh.f32 %v3932_v32  ;;  %v3933_v62 = vmul.f32 0.7978846, %v3805_v47  ;;  %v4283_v46 = vmul.f32 0.5, %v4155_v43  ;;  %v4157_v63 = vadd.f32 1.0, %v9999_v52 }
 0x80a   : > { %7286 = vtanh.f32 %v3931_v20  ;;  %v4407_v1 = vmul.f32 %v4279_v27, %v11986_v33  ;;  %v4281_v57 = vmul.f32 0.5, %v4153_v17  ;;  %v4150_v0 = vadd.f32 1.0, %v9903_v29  ;;  %v11991_v17 = vld [vmem:[#allocation98_spill] sm:$0xff] }
 0x80b   : > { %7288 = vtanh.f32 %v3933_v62  ;;  %v4411_v50 = vmul.f32 %v4283_v46, %v9827_v10  ;;  %v4285_v2 = vmul.f32 0.5, %v4157_v63  ;;  %v4154_v39 = vadd.f32 1.0, %v9976_v18  ;;  %v11989_v10 = vld [vmem:[#allocation97_spill] sm:$0xff]  ;;  %v11992_v63 = vld [vmem:[#allocation120_spill] sm:$0xff] }
 0x80c   : > { %v4409_v15 = vmul.f32 %v4281_v57, %v11987_v5  ;;  %v4278_v55 = vmul.f32 0.5, %v4150_v0  ;;  %v4152_v30 = vadd.f32 1.0, %v9912_v37  ;;  %v4156_v54 = vadd.f32 1.0, %v9986_v23  ;;  %v11993_v0 = vld [vmem:[#allocation122_spill] sm:$0xff] }
 0x80d   : > { %v4519_v52 = vpack.c.bf16 %v4411_v50, %v4407_v1  ;;  %v4413_v6 = vmul.f32 %v4285_v2, %v9843_v12  ;;  %v4282_v42 = vmul.f32 0.5, %v4154_v39  ;;  %v10321_v29 = vadd.f32 %v9880_v4, %v9380_v41 }
 0x80e   : > { %v10323_v48 = vpop.eup %7274  ;;  %v4406_v32 = vmul.f32 %v4278_v55, %v11989_v10  ;;  %v4280_v18 = vmul.f32 0.5, %v4152_v30  ;;  %v4284_v47 = vmul.f32 0.5, %v4156_v54  ;;  %v10328_v43 = vadd.f32 %v9882_v8, %v9383_v51 }
 0x80f   : > { %11988 = vst [vmem:[#allocation103_spill] sm:$0xff] %v10321_v29  ;;  %v10330_v37 = vpop.eup %7276  ;;  %4890 = vmatprep.mubr.bf16.mxu1 %v4519_v52  ;;  %v4521_v23 = vpack.c.bf16 %v4413_v6, %v4409_v15  ;;  %v4410_v12 = vmul.f32 %v4282_v42, %v9809_v44  ;;  %v3422_v4 = vmul.f32 %v10321_v29, %v10321_v29  ;;  %v11995_v15 = vld [vmem:[#allocation123_spill] sm:$0xff]  ;;  %v11997_v42 = vld [vmem:[#allocation124_spill] sm:$0xff] }
 0x810   : > { %11990 = vst [vmem:[#allocation104_spill] sm:$0xff] %v10328_v43  ;;  %v10337_v20 = vadd.f32 %v9891_v3, %v9386_v56  ;;  %v10339_v27 = vpop.eup %7278  ;;  %v4408_v62 = vmul.f32 %v4280_v18, %v11991_v17  ;;  %v4412_v8 = vmul.f32 %v4284_v47, %v9823_v19  ;;  %v3424_v46 = vmul.f32 %v10328_v43, %v10328_v43  ;;  %v10378_v18 = vpop.f32.mrb[144].mxu0  ;;  %v12000_v17 = vld [vmem:[#allocation125_spill] sm:$0xff] }
 0x811   : > { %v10347_v33 = vadd.f32 %v11992_v63, %v9390_v26  ;;  %v10349_v44 = vpop.eup %7280  ;;  %5051 = vmatprep.mubr.bf16.mxu0 %v4521_v23  ;;  %v4518_v1 = vpack.c.bf16 %v4410_v12, %v4406_v32  ;;  %v3550_v3 = vmul.f32 %v3422_v4, %v10321_v29  ;;  %v10356_v50 = vadd.f32 %v11993_v0, %v9380_v41  ;;  %v10376_v32 = vpop.f32.mrb[144].mxu1 }
 0x812   : > { %v3423_v57 = vmul.f32 %v10337_v20, %v10337_v20  ;;  %v10358_v19 = vpop.eup %7282  ;;  %v4520_v2 = vpack.c.bf16 %v4412_v8, %v4408_v62  ;;  %v3552_v39 = vmul.f32 %v3424_v46, %v10328_v43  ;;  %v10365_v55 = vadd.f32 %v11995_v15, %v9383_v51  ;;  %11998 = vst [vmem:[#allocation111_spill] sm:$0xff] %v10376_v32  ;;  %v10389_v8 = vpop.f32.mrb[145].mxu1 }
 0x813   : > { %11994 = vst [vmem:[#allocation105_spill] sm:$0xff] %v10356_v50  ;;  %v3425_v5 = vmul.f32 %v10347_v33, %v10347_v33  ;;  %v10367_v30 = vpop.eup %7284  ;;  %4891 = vmatmul.mubr.bf16.gmra.mrb[176].mxu1 %v4518_v1  ;;  %v3678_v54 = vmul.f32 0.044715, %v3550_v3  ;;  %v3426_v6 = vmul.f32 %v10356_v50, %v10356_v50  ;;  %v10374_v10 = vadd.f32 %v11997_v42, %v9386_v56  ;;  %v10391_v46 = vpop.f32.mrb[145].mxu0 }
 0x814   : > { %11996 = vst [vmem:[#allocation106_spill] sm:$0xff] %v10365_v55  ;;  %v3551_v52 = vmul.f32 %v3423_v57, %v10337_v20  ;;  %11999 = vst [vmem:[#allocation114_spill] sm:$0xff] %v10378_v18  ;;  %v10380_v47 = vpop.eup %7286  ;;  %5052 = vmatmul.mubr.bf16.gmra.mrb[176].mxu0 %v4520_v2  ;;  %v3680_v23 = vmul.f32 0.044715, %v3552_v39  ;;  %v3428_v4 = vmul.f32 %v10365_v55, %v10365_v55  ;;  %v10399_v2 = vpop.f32.mrb[146].mxu1 }
 0x815   : > { %v3553_v12 = vmul.f32 %v3425_v5, %v10347_v33  ;;  %v10387_v62 = vadd.f32 %v12000_v17, %v9390_v26  ;;  %12002 = vst [vmem:[#allocation107_spill] sm:$0xff] %v10389_v8  ;;  %12003 = vst [vmem:[#allocation87_spill] sm:$0xff] %v10391_v46  ;;  %v10393_v63 = vpop.eup %7288  ;;  %v3806_v1 = vadd.f32 %v3678_v54, %v10321_v29  ;;  %v10401_v39 = vpop.f32.mrb[146].mxu0 }
 0x816   : > { %v3679_v3 = vmul.f32 0.044715, %v3551_v52  ;;  %v3554_v57 = vmul.f32 %v3426_v6, %v10356_v50  ;;  %v3427_v0 = vmul.f32 %v10374_v10, %v10374_v10  ;;  %12004 = vst [vmem:[#allocation82_spill] sm:$0xff] %v10399_v2  ;;  %12005 = vst [vmem:[#allocation108_spill] sm:$0xff] %v10401_v39  ;;  %v3808_v5 = vadd.f32 %v3680_v23, %v10328_v43  ;;  %v10407_v46 = vpop.f32.mrb[147].mxu1  ;;  %v10409_v54 = vpop.f32.mrb[147].mxu0 }
 0x817   : > { %12001 = vst [vmem:[#allocation81_spill] sm:$0xff] %v10387_v62  ;;  %v3681_v15 = vmul.f32 0.044715, %v3553_v12  ;;  %v3556_v42 = vmul.f32 %v3428_v4, %v10365_v55  ;;  %v3429_v17 = vmul.f32 %v10387_v62, %v10387_v62  ;;  %12006 = vst [vmem:[#allocation93_spill] sm:$0xff] %v10407_v46  ;;  %v3934_v52 = vmul.f32 0.7978846, %v3806_v1 }
 0x818   : > { %12007 = vst [vmem:[#allocation109_spill] sm:$0xff] %v10409_v54  ;;  %v3807_v6 = vadd.f32 %v3679_v3, %v10337_v20  ;;  %v3682_v8 = vmul.f32 0.044715, %v3554_v57  ;;  %v3555_v2 = vmul.f32 %v3427_v0, %v10374_v10  ;;  %v3936_v18 = vmul.f32 0.7978846, %v3808_v5  ;;  %v10419_v5 = vpop.f32.mrb[148].mxu1 }
 0x819   : > { %v3809_v39 = vadd.f32 %v3681_v15, %v10347_v33  ;;  %v3684_v23 = vmul.f32 0.044715, %v3556_v42  ;;  %v3557_v12 = vmul.f32 %v3429_v17, %v10387_v62  ;;  %7290 = vtanh.f32 %v3934_v52  ;;  %12008 = vst [vmem:[#allocation79_spill] sm:$0xff] %v10419_v5  ;;  %v10421_v15 = vpop.f32.mrb[148].mxu0 }
 0x81a   : > { %v3935_v4 = vmul.f32 0.7978846, %v3807_v6  ;;  %v3810_v32 = vadd.f32 %v3682_v8, %v10356_v50  ;;  %v3683_v43 = vmul.f32 0.044715, %v3555_v2  ;;  %7292 = vtanh.f32 %v3936_v18  ;;  %12009 = vst [vmem:[#allocation110_spill] sm:$0xff] %v10421_v15  ;;  %v10425_v2 = vpop.f32.mrb[149].mxu1 }
 0x81b   : > { %v3937_v46 = vmul.f32 0.7978846, %v3809_v39  ;;  %v3812_v1 = vadd.f32 %v3684_v23, %v10365_v55  ;;  %v3685_v54 = vmul.f32 0.044715, %v3557_v12  ;;  %v4159_v0 = vadd.f32 1.0, %v10062_v16  ;;  %12010 = vst [vmem:[#allocation83_spill] sm:$0xff] %v10425_v2 }
 0x81c   : > { %7294 = vtanh.f32 %v3935_v4  ;;  %v3938_v3 = vmul.f32 0.7978846, %v3810_v32  ;;  %v3811_v57 = vadd.f32 %v3683_v43, %v10374_v10  ;;  %v4163_v18 = vadd.f32 1.0, %v10092_v24  ;;  %v10427_v39 = vpop.f32.mrb[149].mxu0  ;;  %v10430_v16 = vpop.f32.mrb[150].mxu1 }
 0x81d   : > { %7296 = vtanh.f32 %v3937_v46  ;;  %v3940_v42 = vmul.f32 0.7978846, %v3812_v1  ;;  %v3813_v8 = vadd.f32 %v3685_v54, %v10387_v62  ;;  %12011 = vst [vmem:[#allocation112_spill] sm:$0xff] %v10427_v39  ;;  %v4287_v17 = vmul.f32 0.5, %v4159_v0  ;;  %12012 = vst [vmem:[#allocation80_spill] sm:$0xff] %v10430_v16  ;;  %v10432_v52 = vpop.f32.mrb[150].mxu0 }
 0x81e   : > { %7298 = vtanh.f32 %v3938_v3  ;;  %v3939_v32 = vmul.f32 0.7978846, %v3811_v57  ;;  %v4161_v43 = vadd.f32 1.0, %v10068_v59  ;;  %12013 = vst [vmem:[#allocation85_spill] sm:$0xff] %v10432_v52  ;;  %v4291_v6 = vmul.f32 0.5, %v4163_v18  ;;  %v10435_v23 = vpop.f32.mrb[151].mxu1 }
 0x81f   : > { %7300 = vtanh.f32 %v3940_v42  ;;  %v3941_v46 = vmul.f32 0.7978846, %v3813_v8  ;;  %v4165_v54 = vadd.f32 1.0, %v10101_v9  ;;  %12014 = vst [vmem:[#allocation113_spill] sm:$0xff] %v10435_v23  ;;  %v10437_v24 = vpop.f32.mrb[151].mxu0  ;;  %v4415_v12 = vmul.f32 %v4287_v17, %v9919_v53  ;;  %v12016_v9 = vld [vmem:[#allocation77_spill] sm:$0xff] }
 0x820   : > { %12015 = vst [vmem:[#allocation115_spill] sm:$0xff] %v10437_v24  ;;  %7302 = vtanh.f32 %v3939_v32  ;;  %v4289_v4 = vmul.f32 0.5, %v4161_v43  ;;  %v4158_v1 = vadd.f32 1.0, %v10035_v35  ;;  %v4419_v59 = vmul.f32 %v4291_v6, %v9950_v14  ;;  %v12017_v18 = vld [vmem:[#allocation90_spill] sm:$0xff]  ;;  %v12018_v32 = vld [vmem:[#allocation128_spill] sm:$0xff]  ;;  %v12019_v17 = vld [vmem:[#allocation129_spill] sm:$0xff] }
 0x821   : > { %7304 = vtanh.f32 %v3941_v46  ;;  %v4293_v3 = vmul.f32 0.5, %v4165_v54  ;;  %v4162_v57 = vadd.f32 1.0, %v10079_v31  ;;  %v4160_v8 = vadd.f32 1.0, %v12016_v9  ;;  %v12021_v14 = vld [vmem:[#allocation119_spill] sm:$0xff] }
 0x822   : > { %v4417_v0 = vmul.f32 %v4289_v4, %v9923_v45  ;;  %v4286_v42 = vmul.f32 0.5, %v4158_v1  ;;  %v4164_v23 = vadd.f32 1.0, %v12017_v18  ;;  %v4523_v24 = vpack.c.bf16 %v4419_v59, %v4415_v12  ;;  %v12022_v45 = vld [vmem:[#allocation130_spill] sm:$0xff]  ;;  %v10458_v4 = vpop.f32.mrb[152].mxu1  ;;  %v10460_v12 = vpop.f32.mrb[152].mxu0 }
 0x823   : > { %v4421_v52 = vmul.f32 %v4293_v3, %v12018_v32  ;;  %v4290_v53 = vmul.f32 0.5, %v4162_v57  ;;  %v10449_v35 = vadd.f32 %v12019_v17, %v9380_v41  ;;  %v10451_v43 = vpop.eup %7290  ;;  %v4288_v31 = vmul.f32 0.5, %v4160_v8  ;;  %12024 = vst [vmem:[#allocation118_spill] sm:$0xff] %v10458_v4  ;;  %12025 = vst [vmem:[#allocation100_spill] sm:$0xff] %v10460_v12  ;;  %v12026_v3 = vld [vmem:[#allocation126_spill] sm:$0xff]  ;;  %v10471_v8 = vpop.f32.mrb[153].mxu1 }
 0x824   : > { %v4414_v46 = vmul.f32 %v4286_v42, %v12021_v14  ;;  %v4292_v6 = vmul.f32 0.5, %v4164_v23  ;;  %v10456_v54 = vadd.f32 %v12022_v45, %v9383_v51  ;;  %v10462_v1 = vpop.eup %7292  ;;  %4898 = vmatprep.mubr.bf16.mxu1 %v4523_v24  ;;  %v12027_v42 = vld [vmem:[#allocation131_spill] sm:$0xff]  ;;  %12028 = vst [vmem:[#allocation102_spill] sm:$0xff] %v10471_v8  ;;  %v10473_v18 = vpop.f32.mrb[153].mxu0  ;;  %v12030_v17 = vld [vmem:[#allocation121_spill] sm:$0xff] }
 0x825   : > { %12020 = vst [vmem:[#allocation116_spill] sm:$0xff] %v10449_v35  ;;  %v4525_v59 = vpack.c.bf16 %v4421_v52, %v4417_v0  ;;  %v4418_v57 = vmul.f32 %v4290_v53, %v12026_v3  ;;  %v3430_v9 = vmul.f32 %v10449_v35, %v10449_v35  ;;  %v10469_v23 = vadd.f32 %v12027_v42, %v9386_v56  ;;  %v12031_v45 = vld [vmem:[#allocation127_spill] sm:$0xff]  ;;  %v12032_v0 = vld [vmem:[#allocation132_spill] sm:$0xff]  ;;  %v10485_v3 = vpop.f32.mrb[154].mxu1  ;;  %v10487_v42 = vpop.f32.mrb[154].mxu0 }
 0x826   : > { %12023 = vst [vmem:[#allocation117_spill] sm:$0xff] %v10456_v54  ;;  %12029 = vst [vmem:[#allocation97_spill] sm:$0xff] %v10473_v18  ;;  %v10475_v32 = vpop.eup %7294  ;;  %v4416_v14 = vmul.f32 %v4288_v31, %v12030_v17  ;;  %v4420_v24 = vmul.f32 %v4292_v6, %v12031_v45  ;;  %v3432_v52 = vmul.f32 %v10456_v54, %v10456_v54  ;;  %v12036_v6 = vld [vmem:[#allocation133_spill] sm:$0xff]  ;;  %v10498_v45 = vpop.f32.mrb[155].mxu1 }
 0x827   : > { %v10483_v53 = vadd.f32 %v12032_v0, %v9390_v26  ;;  %12034 = vst [vmem:[#allocation120_spill] sm:$0xff] %v10485_v3  ;;  %12035 = vst [vmem:[#allocation122_spill] sm:$0xff] %v10487_v42  ;;  %v10489_v8 = vpop.eup %7296  ;;  %5059 = vmatprep.mubr.bf16.mxu0 %v4525_v59  ;;  %v4522_v18 = vpack.c.bf16 %v4418_v57, %v4414_v46  ;;  %v3558_v12 = vmul.f32 %v3430_v9, %v10449_v35  ;;  %v10500_v0 = vpop.f32.mrb[155].mxu0  ;;  %v12040_v59 = vld [vmem:[#allocation134_spill] sm:$0xff] }
 0x828   : > { %v3431_v31 = vmul.f32 %v10469_v23, %v10469_v23  ;;  %v10496_v17 = vadd.f32 %v12036_v6, %v9380_v41  ;;  %12038 = vst [vmem:[#allocation124_spill] sm:$0xff] %v10498_v45  ;;  %12039 = vst [vmem:[#allocation125_spill] sm:$0xff] %v10500_v0  ;;  %v10502_v3 = vpop.eup %7298  ;;  %v4524_v42 = vpack.c.bf16 %v4420_v24, %v4416_v14  ;;  %v12042_v14 = vld [vmem:[#allocation135_spill] sm:$0xff] }
 0x829   : > { %12033 = vst [vmem:[#allocation98_spill] sm:$0xff] %v10483_v53  ;;  %v3560_v4 = vmul.f32 %v3432_v52, %v10456_v54  ;;  %v3433_v46 = vmul.f32 %v10483_v53, %v10483_v53  ;;  %v10509_v57 = vadd.f32 %v12040_v59, %v9383_v51  ;;  %v10511_v9 = vpop.eup %7300  ;;  %4899 = vmatmul.mubr.bf16.gmra.mrb[180].mxu1 %v4522_v18  ;;  %v3686_v6 = vmul.f32 0.044715, %v3558_v12  ;;  %v12043_v12 = vld [vmem:[#allocation136_spill] sm:$0xff] }
 0x82a   : > { %12037 = vst [vmem:[#allocation123_spill] sm:$0xff] %v10496_v17  ;;  %v3559_v45 = vmul.f32 %v3431_v31, %v10469_v23  ;;  %v3434_v0 = vmul.f32 %v10496_v17, %v10496_v17  ;;  %v10518_v24 = vadd.f32 %v12042_v14, %v9386_v56  ;;  %v10520_v52 = vpop.eup %7302  ;;  %5060 = vmatmul.mubr.bf16.gmra.mrb[180].mxu0 %v4524_v42 }
 0x82b   : > { %12041 = vst [vmem:[#allocation77_spill] sm:$0xff] %v10509_v57  ;;  %v3688_v16 = vmul.f32 0.044715, %v3560_v4  ;;  %v3561_v59 = vmul.f32 %v3433_v46, %v10483_v53  ;;  %v3436_v39 = vmul.f32 %v10509_v57, %v10509_v57  ;;  %v10527_v18 = vadd.f32 %v12043_v12, %v9390_v26  ;;  %v10529_v31 = vpop.eup %7304 }
 0x82c   : > { %v3814_v2 = vadd.f32 %v3686_v6, %v10449_v35  ;;  %v3687_v15 = vmul.f32 0.044715, %v3559_v45  ;;  %v3562_v14 = vmul.f32 %v3434_v0, %v10496_v17  ;;  %v3435_v42 = vmul.f32 %v10518_v24, %v10518_v24  ;;  %v10541_v45 = vpop.f32.mrb[156].mxu1  ;;  %v10543_v0 = vpop.f32.mrb[156].mxu0 }
 0x82d   : > { %12044 = vst [vmem:[#allocation90_spill] sm:$0xff] %v10527_v18  ;;  %v3816_v4 = vadd.f32 %v3688_v16, %v10456_v54  ;;  %v3689_v46 = vmul.f32 0.044715, %v3561_v59  ;;  %v3564_v5 = vmul.f32 %v3436_v39, %v10509_v57  ;;  %v3437_v55 = vmul.f32 %v10527_v18, %v10527_v18  ;;  %12045 = vst [vmem:[#allocation128_spill] sm:$0xff] %v10541_v45  ;;  %v10547_v39 = vpop.f32.mrb[157].mxu1  ;;  %v10549_v54 = vpop.f32.mrb[157].mxu0 }
 0x82e   : > { %v3942_v12 = vmul.f32 0.7978846, %v3814_v2  ;;  %v3815_v50 = vadd.f32 %v3687_v15, %v10469_v23  ;;  %v3690_v29 = vmul.f32 0.044715, %v3562_v14  ;;  %v3563_v6 = vmul.f32 %v3435_v42, %v10518_v24  ;;  %12046 = vst [vmem:[#allocation129_spill] sm:$0xff] %v10543_v0  ;;  %12047 = vst [vmem:[#allocation119_spill] sm:$0xff] %v10547_v39 }
 0x82f   : > { %v3944_v35 = vmul.f32 0.7978846, %v3816_v4  ;;  %v3817_v62 = vadd.f32 %v3689_v46, %v10483_v53  ;;  %v3692_v16 = vmul.f32 0.044715, %v3564_v5  ;;  %v3565_v59 = vmul.f32 %v3437_v55, %v10527_v18  ;;  %12048 = vst [vmem:[#allocation130_spill] sm:$0xff] %v10549_v54  ;;  %v10552_v42 = vpop.f32.mrb[158].mxu1 }
 0x830   : > { %7306 = vtanh.f32 %v3942_v12  ;;  %v3943_v2 = vmul.f32 0.7978846, %v3815_v50  ;;  %v3818_v15 = vadd.f32 %v3690_v29, %v10496_v17  ;;  %v3691_v14 = vmul.f32 0.044715, %v3563_v6  ;;  %12049 = vst [vmem:[#allocation126_spill] sm:$0xff] %v10552_v42  ;;  %v10554_v45 = vpop.f32.mrb[158].mxu0 }
 0x831   : > { %12050 = vst [vmem:[#allocation131_spill] sm:$0xff] %v10554_v45  ;;  %7308 = vtanh.f32 %v3944_v35  ;;  %v3945_v4 = vmul.f32 0.7978846, %v3817_v62  ;;  %v3820_v46 = vadd.f32 %v3692_v16, %v10509_v57  ;;  %v3693_v5 = vmul.f32 0.044715, %v3565_v59  ;;  %v10557_v0 = vpop.f32.mrb[159].mxu1 }
 0x832   : > { %12051 = vst [vmem:[#allocation121_spill] sm:$0xff] %v10557_v0  ;;  %v10559_v55 = vpop.f32.mrb[159].mxu0  ;;  %7310 = vtanh.f32 %v3943_v2  ;;  %v3946_v54 = vmul.f32 0.7978846, %v3818_v15  ;;  %v3819_v50 = vadd.f32 %v3691_v14, %v10518_v24  ;;  %v4167_v29 = vadd.f32 1.0, %v10147_v28  ;;  %v12053_v15 = vld [vmem:[#allocation64_spill] sm:$0xff] }
 0x833   : > { %12052 = vst [vmem:[#allocation127_spill] sm:$0xff] %v10559_v55  ;;  %7312 = vtanh.f32 %v3945_v4  ;;  %v3948_v12 = vmul.f32 0.7978846, %v3820_v46  ;;  %v3821_v6 = vadd.f32 %v3693_v5, %v10527_v18  ;;  %v4171_v35 = vadd.f32 1.0, %v10184_v7  ;;  %v12054_v46 = vld [vmem:[#allocation88_spill] sm:$0xff] }
 0x834   : > { %7314 = vtanh.f32 %v3946_v54  ;;  %v3947_v62 = vmul.f32 0.7978846, %v3819_v50  ;;  %v4295_v16 = vmul.f32 0.5, %v4167_v29  ;;  %v4169_v59 = vadd.f32 1.0, %v10157_v61  ;;  %v12055_v54 = vld [vmem:[#allocation84_spill] sm:$0xff]  ;;  %v12056_v29 = vld [vmem:[#allocation86_spill] sm:$0xff] }
 0x835   : > { %7316 = vtanh.f32 %v3948_v12  ;;  %v3949_v0 = vmul.f32 0.7978846, %v3821_v6  ;;  %v4299_v55 = vmul.f32 0.5, %v4171_v35  ;;  %v4173_v2 = vadd.f32 1.0, %v10197_v21  ;;  %v12057_v12 = vld [vmem:[#allocation95_spill] sm:$0xff]  ;;  %v12058_v35 = vld [vmem:[#allocation72_spill] sm:$0xff] }
 0x836   : > { %7318 = vtanh.f32 %v3947_v62  ;;  %v4423_v14 = vmul.f32 %v4295_v16, %v12053_v15  ;;  %v4297_v28 = vmul.f32 0.5, %v4169_v59  ;;  %v4166_v4 = vadd.f32 1.0, %v10131_v34  ;;  %v12059_v62 = vld [vmem:[#allocation67_spill] sm:$0xff]  ;;  %v12060_v59 = vld [vmem:[#allocation137_spill] sm:$0xff] }
 0x837   : > { %7320 = vtanh.f32 %v3949_v0  ;;  %v4427_v5 = vmul.f32 %v4299_v55, %v12054_v46  ;;  %v4301_v7 = vmul.f32 0.5, %v4173_v2  ;;  %v4170_v50 = vadd.f32 1.0, %v12055_v54  ;;  %v12062_v55 = vld [vmem:[#allocation68_spill] sm:$0xff] }
 0x838   : > { %v4425_v45 = vmul.f32 %v4297_v28, %v12056_v29  ;;  %v4294_v61 = vmul.f32 0.5, %v4166_v4  ;;  %v4168_v6 = vadd.f32 1.0, %v12057_v12  ;;  %v4172_v42 = vadd.f32 1.0, %v12058_v35  ;;  %v12063_v28 = vld [vmem:[#allocation138_spill] sm:$0xff]  ;;  %v12067_v29 = vld [vmem:[#allocation139_spill] sm:$0xff]  ;;  %v12069_v35 = vld [vmem:[#allocation65_spill] sm:$0xff] }
 0x839   : > { %v4527_v21 = vpack.c.bf16 %v4427_v5, %v4423_v14  ;;  %v4429_v39 = vmul.f32 %v4301_v7, %v12059_v62  ;;  %v4298_v16 = vmul.f32 0.5, %v4170_v50  ;;  %v10577_v34 = vadd.f32 %v12060_v59, %v9380_v41  ;;  %v12066_v5 = vld [vmem:[#allocation66_spill] sm:$0xff] }
 0x83a   : > { %v10579_v0 = vpop.eup %7306  ;;  %v4422_v2 = vmul.f32 %v4294_v61, %v12062_v55  ;;  %v4296_v15 = vmul.f32 0.5, %v4168_v6  ;;  %v4300_v46 = vmul.f32 0.5, %v4172_v42  ;;  %v10584_v4 = vadd.f32 %v12063_v28, %v9383_v51  ;;  %v12068_v42 = vld [vmem:[#allocation73_spill] sm:$0xff] }
 0x83b   : > { %12061 = vst [vmem:[#allocation132_spill] sm:$0xff] %v10577_v34  ;;  %v10586_v54 = vpop.eup %7308  ;;  %4906 = vmatprep.mubr.bf16.mxu1 %v4527_v21  ;;  %v4529_v14 = vpack.c.bf16 %v4429_v39, %v4425_v45  ;;  %v4426_v7 = vmul.f32 %v4298_v16, %v12066_v5  ;;  %v3438_v50 = vmul.f32 %v10577_v34, %v10577_v34  ;;  %v12070_v45 = vld [vmem:[#allocation140_spill] sm:$0xff] }
 0x83c   : > { %12064 = vst [vmem:[#allocation133_spill] sm:$0xff] %v10584_v4  ;;  %12065 = vst [vmem:[#allocation134_spill] sm:$0xff] %v10586_v54  ;;  %v10593_v12 = vadd.f32 %v12067_v29, %v9386_v56  ;;  %v10595_v61 = vpop.eup %7310  ;;  %v4424_v6 = vmul.f32 %v4296_v15, %v12068_v42  ;;  %v4428_v62 = vmul.f32 %v4300_v46, %v12069_v35  ;;  %v12071_v15 = vld [vmem:[#allocation141_spill] sm:$0xff] }
 0x83d   : > { %v3440_v59 = vmul.f32 %v10584_v4, %v10584_v4  ;;  %v10603_v39 = vadd.f32 %v12070_v45, %v9390_v26  ;;  %v10605_v21 = vpop.eup %7312  ;;  %5067 = vmatprep.mubr.bf16.mxu0 %v4529_v14  ;;  %v4526_v16 = vpack.c.bf16 %v4426_v7, %v4422_v2  ;;  %v3566_v55 = vmul.f32 %v3438_v50, %v10577_v34  ;;  %v12072_v14 = vld [vmem:[#allocation142_spill] sm:$0xff] }
 0x83e   : > { %v3439_v28 = vmul.f32 %v10593_v12, %v10593_v12  ;;  %v10612_v5 = vadd.f32 %v12071_v15, %v9380_v41  ;;  %v10614_v46 = vpop.eup %7314  ;;  %v4528_v29 = vpack.c.bf16 %v4428_v62, %v4424_v6  ;;  %v10621_v2 = vadd.f32 %v12072_v14, %v9383_v51  ;;  %v12074_v6 = vld [vmem:[#allocation143_spill] sm:$0xff] }
 0x83f   : > { %v3568_v42 = vmul.f32 %v3440_v59, %v10584_v4  ;;  %v3441_v35 = vmul.f32 %v10603_v39, %v10603_v39  ;;  %v10623_v7 = vpop.eup %7316  ;;  %4907 = vmatmul.mubr.bf16.gmra.mrb[184].mxu1 %v4526_v16  ;;  %v3694_v50 = vmul.f32 0.044715, %v3566_v55  ;;  %v10630_v62 = vadd.f32 %v12074_v6, %v9386_v56  ;;  %v12075_v16 = vld [vmem:[#allocation144_spill] sm:$0xff] }
 0x840   : > { %12073 = vst [vmem:[#allocation135_spill] sm:$0xff] %v10623_v7  ;;  %v3567_v45 = vmul.f32 %v3439_v28, %v10593_v12  ;;  %v3442_v15 = vmul.f32 %v10612_v5, %v10612_v5  ;;  %v10632_v59 = vpop.eup %7318  ;;  %5068 = vmatmul.mubr.bf16.gmra.mrb[184].mxu0 %v4528_v29  ;;  %v3444_v51 = vmul.f32 %v10621_v2, %v10621_v2 }
 0x841   : > { %v3696_v41 = vmul.f32 0.044715, %v3568_v42  ;;  %v3569_v14 = vmul.f32 %v3441_v35, %v10603_v39  ;;  %v10639_v55 = vadd.f32 %v12075_v16, %v9390_v26  ;;  %v10641_v28 = vpop.eup %7320  ;;  %v3822_v57 = vadd.f32 %v3694_v50, %v10577_v34 }
 0x842   : > { %v3695_v17 = vmul.f32 0.044715, %v3567_v45  ;;  %v3570_v6 = vmul.f32 %v3442_v15, %v10612_v5  ;;  %v3443_v29 = vmul.f32 %v10630_v62, %v10630_v62  ;;  %v3572_v56 = vmul.f32 %v3444_v51, %v10621_v2 }
 0x843   : > { %v3824_v42 = vadd.f32 %v3696_v41, %v10584_v4  ;;  %v3697_v35 = vmul.f32 0.044715, %v3569_v14  ;;  %v3445_v18 = vmul.f32 %v10639_v55, %v10639_v55  ;;  %v3950_v16 = vmul.f32 0.7978846, %v3822_v57 }
 0x844   : > { %v3823_v26 = vadd.f32 %v3695_v17, %v10593_v12  ;;  %v3698_v7 = vmul.f32 0.044715, %v3570_v6  ;;  %v3571_v50 = vmul.f32 %v3443_v29, %v10630_v62  ;;  %v3700_v34 = vmul.f32 0.044715, %v3572_v56 }
 0x845   : > { %v3952_v45 = vmul.f32 0.7978846, %v3824_v42  ;;  %v3825_v15 = vadd.f32 %v3697_v35, %v10603_v39  ;;  %v3573_v54 = vmul.f32 %v3445_v18, %v10639_v55  ;;  %7322 = vtanh.f32 %v3950_v16 }
 0x846   : > { %v3951_v41 = vmul.f32 0.7978846, %v3823_v26  ;;  %v3826_v14 = vadd.f32 %v3698_v7, %v10612_v5  ;;  %v3699_v51 = vmul.f32 0.044715, %v3571_v50  ;;  %v3828_v57 = vadd.f32 %v3700_v34, %v10621_v2  ;;  %v12076_v50 = vld [vmem:[#allocation92_spill] sm:$0xff] }
 0x847   : > { %7324 = vtanh.f32 %v3952_v45  ;;  %v3953_v4 = vmul.f32 0.7978846, %v3825_v15  ;;  %v3701_v53 = vmul.f32 0.044715, %v3573_v54  ;;  %v4175_v29 = vadd.f32 1.0, %v10243_v58 }
 0x848   : > { %7326 = vtanh.f32 %v3951_v41  ;;  %v3954_v17 = vmul.f32 0.7978846, %v3826_v14  ;;  %v3827_v6 = vadd.f32 %v3699_v51, %v10630_v62  ;;  %v3956_v56 = vmul.f32 0.7978846, %v3828_v57  ;;  %v12079_v14 = vld [vmem:[#allocation70_spill] sm:$0xff]  ;;  %v12080_v57 = vld [vmem:[#allocation96_spill] sm:$0xff] }
 0x849   : > { %7328 = vtanh.f32 %v3953_v4  ;;  %v3829_v18 = vadd.f32 %v3701_v53, %v10639_v55  ;;  %v4179_v26 = vadd.f32 1.0, %v10280_v40  ;;  %v4303_v42 = vmul.f32 0.5, %v4175_v29  ;;  %v12077_v4 = vld [vmem:[#allocation99_spill] sm:$0xff]  ;;  %v12078_v53 = vld [vmem:[#allocation89_spill] sm:$0xff] }
 0x84a   : > { %7330 = vtanh.f32 %v3954_v17  ;;  %v3955_v7 = vmul.f32 0.7978846, %v3827_v6  ;;  %v4177_v35 = vadd.f32 1.0, %v10253_v60  ;;  %v4181_v16 = vadd.f32 1.0, %v10289_v38  ;;  %v12081_v6 = vld [vmem:[#allocation101_spill] sm:$0xff] }
 0x84b   : > { %7332 = vtanh.f32 %v3956_v56  ;;  %v3957_v34 = vmul.f32 0.7978846, %v3829_v18  ;;  %v4307_v54 = vmul.f32 0.5, %v4179_v26  ;;  %v4431_v45 = vmul.f32 %v4303_v42, %v12076_v50  ;;  %v12082_v56 = vld [vmem:[#allocation75_spill] sm:$0xff]  ;;  %v12083_v26 = vld [vmem:[#allocation78_spill] sm:$0xff] }
 0x84c   : > { %7334 = vtanh.f32 %v3955_v7  ;;  %v4305_v58 = vmul.f32 0.5, %v4177_v35  ;;  %v4174_v15 = vadd.f32 1.0, %v12077_v4  ;;  %v4309_v40 = vmul.f32 0.5, %v4181_v16 }
 0x84d   : > { %7336 = vtanh.f32 %v3957_v34  ;;  %v4435_v41 = vmul.f32 %v4307_v54, %v12078_v53  ;;  %v4178_v51 = vadd.f32 1.0, %v12079_v14  ;;  %v4176_v29 = vadd.f32 1.0, %v12081_v6  ;;  %v12084_v34 = vld [vmem:[#allocation91_spill] sm:$0xff]  ;;  %v12087_v6 = vld [vmem:[#allocation76_spill] sm:$0xff] }
 0x84e   : > { %v4433_v17 = vmul.f32 %v4305_v58, %v12080_v57  ;;  %v4302_v60 = vmul.f32 0.5, %v4174_v15  ;;  %v4180_v18 = vadd.f32 1.0, %v12082_v56  ;;  %v4437_v7 = vmul.f32 %v4309_v40, %v12083_v26  ;;  %v12085_v14 = vld [vmem:[#allocation71_spill] sm:$0xff] }
 0x84f   : > { %v4531_v38 = vpack.c.bf16 %v4435_v41, %v4431_v45  ;;  %v4306_v42 = vmul.f32 0.5, %v4178_v51  ;;  %v4183_v35 = vadd.f32 1.0, %v10339_v27  ;;  %v10672_v50 = vpop.eup %7322  ;;  %v4304_v16 = vmul.f32 0.5, %v4176_v29  ;;  %v12086_v27 = vld [vmem:[#allocation94_spill] sm:$0xff] }
 0x850   : > { %v4430_v54 = vmul.f32 %v4302_v60, %v12084_v34  ;;  %v4308_v4 = vmul.f32 0.5, %v4180_v18  ;;  %v4187_v53 = vadd.f32 1.0, %v10380_v47  ;;  %v4533_v15 = vpack.c.bf16 %v4437_v7, %v4433_v17 }
 0x851   : > { %v10676_v58 = vpop.eup %7324  ;;  %4914 = vmatprep.mubr.bf16.mxu1 %v4531_v38  ;;  %v4434_v57 = vmul.f32 %v4306_v42, %v12085_v14  ;;  %v4311_v45 = vmul.f32 0.5, %v4183_v35  ;;  %v4185_v41 = vadd.f32 1.0, %v10349_v44  ;;  %v4432_v51 = vmul.f32 %v4304_v16, %v12086_v27 }
 0x852   : > { %v10680_v40 = vpop.eup %7326  ;;  %v4436_v56 = vmul.f32 %v4308_v4, %v12087_v6  ;;  %v4315_v60 = vmul.f32 0.5, %v4187_v53  ;;  %v4189_v29 = vadd.f32 1.0, %v10393_v63  ;;  %5075 = vmatprep.mubr.bf16.mxu0 %v4533_v15  ;;  %v4182_v26 = vadd.f32 1.0, %v10323_v48 }
 0x853   : > { %v10685_v18 = vpop.eup %7328  ;;  %v4530_v47 = vpack.c.bf16 %v4434_v57, %v4430_v54  ;;  %v4439_v17 = vmul.f32 %v4311_v45, %v10241_v13  ;;  %v4313_v38 = vmul.f32 0.5, %v4185_v41  ;;  %v4186_v34 = vadd.f32 1.0, %v10358_v19  ;;  %v12088_v57 = vld [vmem:[#allocation69_spill] sm:$0xff] }
 0x854   : > { %v10689_v7 = vpop.eup %7330  ;;  %v4532_v44 = vpack.c.bf16 %v4436_v56, %v4432_v51  ;;  %v4443_v42 = vmul.f32 %v4315_v60, %v10278_v11  ;;  %v4317_v35 = vmul.f32 0.5, %v4189_v29  ;;  %v4310_v4 = vmul.f32 0.5, %v4182_v26  ;;  %v12089_v56 = vld [vmem:[#allocation74_spill] sm:$0xff] }
 0x855   : > { %v10693_v16 = vpop.eup %7332  ;;  %4915 = vmatmul.mubr.bf16.gmra.mrb[188].mxu1 %v4530_v47  ;;  %v4441_v63 = vmul.f32 %v4313_v38, %v10251_v49  ;;  %v4184_v54 = vadd.f32 1.0, %v10330_v37  ;;  %v4188_v13 = vadd.f32 1.0, %v10367_v30  ;;  %v4314_v11 = vmul.f32 0.5, %v4186_v34 }
 0x856   : > { %v10698_v53 = vpop.eup %7334  ;;  %5076 = vmatmul.mubr.bf16.gmra.mrb[188].mxu0 %v4532_v44  ;;  %v4535_v48 = vpack.c.bf16 %v4443_v42, %v4439_v17  ;;  %v4445_v15 = vmul.f32 %v4317_v35, %v10287_v22  ;;  %v4191_v14 = vadd.f32 1.0, %v10475_v32  ;;  %v4438_v45 = vmul.f32 %v4310_v4, %v12088_v57 }
 0x857   : > { %v10702_v19 = vpop.eup %7336  ;;  %v4312_v41 = vmul.f32 0.5, %v4184_v54  ;;  %v4316_v49 = vmul.f32 0.5, %v4188_v13  ;;  %v4195_v27 = vadd.f32 1.0, %v10520_v52  ;;  %v4442_v30 = vmul.f32 %v4314_v11, %v10260_v36  ;;  %v12091_v54 = vld [vmem:[#allocation103_spill] sm:$0xff] }
 0x858   : > { %4922 = vmatprep.mubr.bf16.mxu1 %v4535_v48  ;;  %v4537_v37 = vpack.c.bf16 %v4445_v15, %v4441_v63  ;;  %v4319_v51 = vmul.f32 0.5, %v4191_v14  ;;  %v4193_v6 = vadd.f32 1.0, %v10489_v8  ;;  %v4197_v29 = vadd.f32 1.0, %v10529_v31  ;;  %v12090_v63 = vld [vmem:[#allocation81_spill] sm:$0xff]  ;;  %v12093_v14 = vld [vmem:[#allocation104_spill] sm:$0xff] }
 0x859   : > { %v4440_v22 = vmul.f32 %v4312_v41, %v12089_v56  ;;  %v4444_v60 = vmul.f32 %v4316_v49, %v10269_v25  ;;  %v4323_v32 = vmul.f32 0.5, %v4195_v27  ;;  %v4534_v47 = vpack.c.bf16 %v4442_v30, %v4438_v45  ;;  %v12092_v15 = vld [vmem:[#allocation105_spill] sm:$0xff]  ;;  %v12094_v45 = vld [vmem:[#allocation106_spill] sm:$0xff] }
 0x85a   : > { %5083 = vmatprep.mubr.bf16.mxu0 %v4537_v37  ;;  %v4447_v17 = vmul.f32 %v4319_v51, %v10337_v20  ;;  %v4321_v38 = vmul.f32 0.5, %v4193_v6  ;;  %v4190_v52 = vadd.f32 1.0, %v10451_v43  ;;  %v4325_v44 = vmul.f32 0.5, %v4197_v29  ;;  %v12096_v29 = vld [vmem:[#allocation134_spill] sm:$0xff] }
 0x85b   : > { %v4536_v26 = vpack.c.bf16 %v4444_v60, %v4440_v22  ;;  %v4451_v36 = vmul.f32 %v4323_v32, %v10374_v10  ;;  %v4194_v8 = vadd.f32 1.0, %v10502_v3  ;;  %v4192_v25 = vadd.f32 1.0, %v10462_v1  ;;  %v12095_v22 = vld [vmem:[#allocation98_spill] sm:$0xff] }
 0x85c   : > { %v4449_v42 = vmul.f32 %v4321_v38, %v10347_v33  ;;  %v4318_v35 = vmul.f32 0.5, %v4190_v52  ;;  %v4196_v31 = vadd.f32 1.0, %v10511_v9  ;;  %v4453_v20 = vmul.f32 %v4325_v44, %v12090_v63  ;;  %v12098_v52 = vld [vmem:[#allocation90_spill] sm:$0xff]  ;;  %v12101_v63 = vld [vmem:[#allocation117_spill] sm:$0xff] }
 0x85d   : > { %4923 = vmatmul.mubr.bf16.gmra.mrb[192].mxu1 %v4534_v47  ;;  %v4539_v34 = vpack.c.bf16 %v4451_v36, %v4447_v17  ;;  %v4322_v4 = vmul.f32 0.5, %v4194_v8  ;;  %v4199_v43 = vadd.f32 1.0, %v10595_v61  ;;  %v4320_v13 = vmul.f32 0.5, %v4192_v25  ;;  %v12097_v17 = vld [vmem:[#allocation135_spill] sm:$0xff] }
 0x85e   : > { %5084 = vmatmul.mubr.bf16.gmra.mrb[192].mxu0 %v4536_v26  ;;  %v4446_v10 = vmul.f32 %v4318_v35, %v12091_v54  ;;  %v4324_v48 = vmul.f32 0.5, %v4196_v31  ;;  %v4203_v3 = vadd.f32 1.0, %v10632_v59  ;;  %v4541_v33 = vpack.c.bf16 %v4453_v20, %v4449_v42  ;;  %v12100_v35 = vld [vmem:[#allocation123_spill] sm:$0xff] }
 0x85f   : > { %4930 = vmatprep.mubr.bf16.mxu1 %v4539_v34  ;;  %v4450_v1 = vmul.f32 %v4322_v4, %v12092_v15  ;;  %v4327_v11 = vmul.f32 0.5, %v4199_v43  ;;  %v4201_v9 = vadd.f32 1.0, %v10605_v21  ;;  %v4448_v57 = vmul.f32 %v4320_v13, %v12093_v14  ;;  %v12102_v4 = vld [vmem:[#allocation77_spill] sm:$0xff] }
 0x860   : > { %v4452_v41 = vmul.f32 %v4324_v48, %v12094_v45  ;;  %v4331_v49 = vmul.f32 0.5, %v4203_v3  ;;  %v4205_v61 = vadd.f32 1.0, %v10641_v28  ;;  %5091 = vmatprep.mubr.bf16.mxu0 %v4541_v33  ;;  %v4198_v59 = vadd.f32 1.0, %v10579_v0  ;;  %v12099_v0 = vld [vmem:[#allocation116_spill] sm:$0xff] }
 0x861   : > { %v4538_v27 = vpack.c.bf16 %v4450_v1, %v4446_v10  ;;  %v4455_v37 = vmul.f32 %v4327_v11, %v10469_v23  ;;  %v4329_v30 = vmul.f32 0.5, %v4201_v9  ;;  %v4202_v21 = vadd.f32 1.0, %v10614_v46  ;;  %v12103_v45 = vld [vmem:[#allocation60_spill] sm:$0xff] }
 0x862   : > { %v4540_v51 = vpack.c.bf16 %v4452_v41, %v4448_v57  ;;  %v4459_v6 = vmul.f32 %v4331_v49, %v10518_v24  ;;  %v4333_v56 = vmul.f32 0.5, %v4205_v61  ;;  %v4326_v32 = vmul.f32 0.5, %v4198_v59  ;;  %v12104_v41 = vld [vmem:[#allocation111_spill] sm:$0xff]  ;;  %v12105_v49 = vld [vmem:[#allocation132_spill] sm:$0xff] }
 0x863   : > { %v4457_v60 = vmul.f32 %v4329_v30, %v12095_v22  ;;  %v4200_v47 = vadd.f32 1.0, %v12096_v29  ;;  %v4204_v28 = vadd.f32 1.0, %v12097_v17  ;;  %v4330_v23 = vmul.f32 0.5, %v4202_v21  ;;  %v12108_v30 = vld [vmem:[#allocation62_spill] sm:$0xff]  ;;  %v12109_v59 = vld [vmem:[#allocation107_spill] sm:$0xff] }
 0x864   : > { %v4543_v38 = vpack.c.bf16 %v4459_v6, %v4455_v37  ;;  %v4461_v26 = vmul.f32 %v4333_v56, %v12098_v52  ;;  %v4207_v36 = vadd.f32 1.0, %v10680_v40  ;;  %v4454_v44 = vmul.f32 %v4326_v32, %v12099_v0  ;;  %v12107_v37 = vld [vmem:[#allocation114_spill] sm:$0xff]  ;;  %v12110_v6 = vld [vmem:[#allocation133_spill] sm:$0xff]  ;;  %v12111_v29 = vld [vmem:[#allocation63_spill] sm:$0xff] }
 0x865   : > { %4931 = vmatmul.mubr.bf16.gmra.mrb[196].mxu1 %v4538_v27  ;;  %v4328_v24 = vmul.f32 0.5, %v4200_v47  ;;  %v4332_v8 = vmul.f32 0.5, %v4204_v28  ;;  %v4211_v46 = vadd.f32 1.0, %v10698_v53  ;;  %v4458_v25 = vmul.f32 %v4330_v23, %v12100_v35  ;;  %v12112_v47 = vld [vmem:[#allocation87_spill] sm:$0xff]  ;;  %v12113_v52 = vld [vmem:[#allocation82_spill] sm:$0xff] }
 0x866   : > { %5092 = vmatmul.mubr.bf16.gmra.mrb[196].mxu0 %v4540_v51  ;;  %4938 = vmatprep.mubr.bf16.mxu1 %v4543_v38  ;;  %v4545_v42 = vpack.c.bf16 %v4461_v26, %v4457_v60  ;;  %v4335_v31 = vmul.f32 0.5, %v4207_v36  ;;  %v4209_v34 = vadd.f32 1.0, %v10685_v18  ;;  %v4213_v54 = vadd.f32 1.0, %v10702_v19  ;;  %v12114_v26 = vld [vmem:[#allocation108_spill] sm:$0xff] }
 0x867   : > { %v4456_v20 = vmul.f32 %v4328_v24, %v12101_v63  ;;  %v4460_v43 = vmul.f32 %v4332_v8, %v12102_v4  ;;  %v4339_v40 = vmul.f32 0.5, %v4211_v46  ;;  %v4542_v10 = vpack.c.bf16 %v4458_v25, %v4454_v44  ;;  %v12115_v24 = vld [vmem:[#allocation93_spill] sm:$0xff] }
 0x868   : > { %5099 = vmatprep.mubr.bf16.mxu0 %v4545_v42  ;;  %v4463_v13 = vmul.f32 %v4335_v31, %v10593_v12  ;;  %v4337_v53 = vmul.f32 0.5, %v4209_v34  ;;  %v4206_v48 = vadd.f32 1.0, %v10672_v50  ;;  %v4341_v15 = vmul.f32 0.5, %v4213_v54  ;;  %v12116_v25 = vld [vmem:[#allocation109_spill] sm:$0xff] }
 0x869   : > { %v4544_v3 = vpack.c.bf16 %v4460_v43, %v4456_v20  ;;  %v4467_v33 = vmul.f32 %v4339_v40, %v10630_v62  ;;  %v4210_v18 = vadd.f32 1.0, %v10689_v7  ;;  %v4208_v9 = vadd.f32 1.0, %v10676_v58  ;;  %v12106_v7 = vld [vmem:[#allocation61_spill] sm:$0xff] }
 0x86a   : > { %v4465_v1 = vmul.f32 %v4337_v53, %v10603_v39  ;;  %v4334_v11 = vmul.f32 0.5, %v4206_v48  ;;  %v4212_v19 = vadd.f32 1.0, %v10693_v16  ;;  %v4469_v57 = vmul.f32 %v4341_v15, %v10639_v55 }
 0x86b   : > { %v4547_v14 = vpack.c.bf16 %v4467_v33, %v4463_v13  ;;  %v4338_v12 = vmul.f32 0.5, %v4210_v18  ;;  %v10753_v50 = vadd.f32 %v12104_v41, %v12103_v45  ;;  %v4336_v61 = vmul.f32 0.5, %v4208_v9 }
 0x86c   : > { %v4462_v62 = vmul.f32 %v4334_v11, %v12105_v49  ;;  %v4340_v27 = vmul.f32 0.5, %v4212_v19  ;;  %v10758_v39 = vadd.f32 %v12107_v37, %v12106_v7  ;;  %v4549_v58 = vpack.c.bf16 %v4469_v57, %v4465_v1 }
 0x86d   : > { %4939 = vmatmul.mubr.bf16.gmra.mrb[200].mxu1 %v4542_v10  ;;  %v4466_v16 = vmul.f32 %v4338_v12, %v10612_v5  ;;  %v3446_v55 = vmul.f32 %v10753_v50, %v10753_v50  ;;  %v10765_v51 = vadd.f32 %v12109_v59, %v12108_v30  ;;  %v4464_v56 = vmul.f32 %v4336_v61, %v12110_v6 }
 0x86e   : > { %5100 = vmatmul.mubr.bf16.gmra.mrb[200].mxu0 %v4544_v3  ;;  %4946 = vmatprep.mubr.bf16.mxu1 %v4547_v14  ;;  %v4468_v21 = vmul.f32 %v4340_v27, %v10621_v2  ;;  %v3448_v22 = vmul.f32 %v10758_v39, %v10758_v39  ;;  %v10776_v17 = vadd.f32 %v12112_v47, %v12111_v29 }
 0x86f   : > { %5107 = vmatprep.mubr.bf16.mxu0 %v4549_v58  ;;  %v4546_v60 = vpack.c.bf16 %v4466_v16, %v4462_v62  ;;  %v3574_v5 = vmul.f32 %v3446_v55, %v10753_v50  ;;  %v3447_v32 = vmul.f32 %v10765_v51, %v10765_v51  ;;  %v10781_v2 = vadd.f32 %v12113_v52, %v12103_v45  ;;  %v12117_v62 = vld [vmem:[#allocation79_spill] sm:$0xff]  ;;  %v12118_v16 = vld [vmem:[#allocation110_spill] sm:$0xff] }
 0x870   : > { %v4548_v28 = vpack.c.bf16 %v4468_v21, %v4464_v56  ;;  %v3576_v38 = vmul.f32 %v3448_v22, %v10758_v39  ;;  %v10785_v23 = vadd.f32 %v12114_v26, %v12106_v7  ;;  %v3449_v44 = vmul.f32 %v10776_v17, %v10776_v17  ;;  %v12119_v56 = vld [vmem:[#allocation83_spill] sm:$0xff] }
 0x871   : > { %v3702_v36 = vmul.f32 0.044715, %v3574_v5  ;;  %v3575_v0 = vmul.f32 %v3447_v32, %v10765_v51  ;;  %v10792_v8 = vadd.f32 %v12115_v24, %v12108_v30  ;;  %v3450_v42 = vmul.f32 %v10781_v2, %v10781_v2  ;;  %v12120_v5 = vld [vmem:[#allocation112_spill] sm:$0xff] }
 0x872   : > { %v3704_v46 = vmul.f32 0.044715, %v3576_v38  ;;  %v3452_v35 = vmul.f32 %v10785_v23, %v10785_v23  ;;  %v10800_v31 = vadd.f32 %v12116_v25, %v12111_v29  ;;  %v3577_v20 = vmul.f32 %v3449_v44, %v10776_v17  ;;  %v12121_v38 = vld [vmem:[#allocation80_spill] sm:$0xff] }
 0x873   : > { %v3830_v34 = vadd.f32 %v3702_v36, %v10753_v50  ;;  %v3703_v63 = vmul.f32 0.044715, %v3575_v0  ;;  %v3451_v4 = vmul.f32 %v10792_v8, %v10792_v8  ;;  %v3578_v40 = vmul.f32 %v3450_v42, %v10781_v2  ;;  %v12122_v0 = vld [vmem:[#allocation85_spill] sm:$0xff] }
 0x874   : > { %v3832_v43 = vadd.f32 %v3704_v46, %v10758_v39  ;;  %v3580_v54 = vmul.f32 %v3452_v35, %v10785_v23  ;;  %v3453_v10 = vmul.f32 %v10800_v31, %v10800_v31  ;;  %v3705_v48 = vmul.f32 0.044715, %v3577_v20 }
 0x875   : > { %4947 = vmatmul.mubr.bf16.gmra.mrb[204].mxu1 %v4546_v60  ;;  %v3958_v13 = vmul.f32 0.7978846, %v3830_v34  ;;  %v3831_v53 = vadd.f32 %v3703_v63, %v10765_v51  ;;  %v3579_v3 = vmul.f32 %v3451_v4, %v10792_v8  ;;  %v3706_v15 = vmul.f32 0.044715, %v3578_v40  ;;  %v12123_v63 = vld [vmem:[#allocation113_spill] sm:$0xff] }
 0x876   : > { %5108 = vmatmul.mubr.bf16.gmra.mrb[204].mxu0 %v4548_v28  ;;  %v3960_v33 = vmul.f32 0.7978846, %v3832_v43  ;;  %v3708_v18 = vmul.f32 0.044715, %v3580_v54  ;;  %v3581_v1 = vmul.f32 %v3453_v10, %v10800_v31  ;;  %v3833_v9 = vadd.f32 %v3705_v48, %v10776_v17  ;;  %v12124_v10 = vld [vmem:[#allocation115_spill] sm:$0xff] }
 0x877   : > { %7338 = vtanh.f32 %v3958_v13  ;;  %v3959_v11 = vmul.f32 0.7978846, %v3831_v53  ;;  %v3707_v19 = vmul.f32 0.044715, %v3579_v3  ;;  %v3834_v14 = vadd.f32 %v3706_v15, %v10781_v2 }
 0x878   : > { %7340 = vtanh.f32 %v3960_v33  ;;  %v3836_v57 = vadd.f32 %v3708_v18, %v10785_v23  ;;  %v3709_v12 = vmul.f32 0.044715, %v3581_v1  ;;  %v3961_v41 = vmul.f32 0.7978846, %v3833_v9 }
 0x879   : > { %7342 = vtanh.f32 %v3959_v11  ;;  %v3835_v49 = vadd.f32 %v3707_v19, %v10792_v8  ;;  %v10820_v61 = vadd.f32 %v12117_v62, %v12103_v45  ;;  %v3962_v27 = vmul.f32 0.7978846, %v3834_v14 }
 0x87a   : > { %v3964_v37 = vmul.f32 0.7978846, %v3836_v57  ;;  %v3837_v58 = vadd.f32 %v3709_v12, %v10800_v31  ;;  %v10825_v55 = vadd.f32 %v12118_v16, %v12106_v7  ;;  %7344 = vtanh.f32 %v3961_v41 }
 0x87b   : > { %v3963_v59 = vmul.f32 0.7978846, %v3835_v49  ;;  %v3454_v6 = vmul.f32 %v10820_v61, %v10820_v61  ;;  %v10831_v21 = vadd.f32 %v12119_v56, %v12108_v30  ;;  %7346 = vtanh.f32 %v3962_v27 }
 0x87c   : > { %v3965_v22 = vmul.f32 0.7978846, %v3837_v58  ;;  %v3456_v60 = vmul.f32 %v10825_v55, %v10825_v55  ;;  %v10837_v32 = vadd.f32 %v12120_v5, %v12111_v29  ;;  %7348 = vtanh.f32 %v3964_v37  ;;  %v12125_v5 = vld [vmem:[#allocation118_spill] sm:$0xff] }
 0x87d   : > { %v3582_v47 = vmul.f32 %v3454_v6, %v10820_v61  ;;  %v3455_v28 = vmul.f32 %v10831_v21, %v10831_v21  ;;  %v10844_v52 = vadd.f32 %v12121_v38, %v12103_v45  ;;  %7350 = vtanh.f32 %v3963_v59 }
 0x87e   : > { %v3584_v26 = vmul.f32 %v3456_v60, %v10825_v55  ;;  %v3457_v36 = vmul.f32 %v10837_v32, %v10837_v32  ;;  %v10851_v44 = vadd.f32 %v12122_v0, %v12106_v7  ;;  %7352 = vtanh.f32 %v3965_v22 }
 0x87f   : > { %v3710_v24 = vmul.f32 0.044715, %v3582_v47  ;;  %v3583_v46 = vmul.f32 %v3455_v28, %v10831_v21  ;;  %v3458_v42 = vmul.f32 %v10844_v52, %v10844_v52  ;;  %v10861_v20 = vadd.f32 %v12123_v63, %v12108_v30 }
 0x880   : > { %v3712_v35 = vmul.f32 0.044715, %v3584_v26  ;;  %v3585_v25 = vmul.f32 %v3457_v36, %v10837_v32  ;;  %v3460_v34 = vmul.f32 %v10851_v44, %v10851_v44  ;;  %v10869_v13 = vadd.f32 %v12124_v10, %v12111_v29  ;;  %v12127_v36 = vld [vmem:[#allocation100_spill] sm:$0xff] }
 0x881   : > { %v10863_v4 = vpop.eup %7338  ;;  %v3838_v43 = vadd.f32 %v3710_v24, %v10820_v61  ;;  %v3711_v40 = vmul.f32 0.044715, %v3583_v46  ;;  %v3586_v54 = vmul.f32 %v3458_v42, %v10844_v52  ;;  %v3459_v15 = vmul.f32 %v10861_v20, %v10861_v20 }
 0x882   : > { %v10871_v53 = vpop.eup %7340  ;;  %v3840_v48 = vadd.f32 %v3712_v35, %v10825_v55  ;;  %v3713_v3 = vmul.f32 0.044715, %v3585_v25  ;;  %v3588_v33 = vmul.f32 %v3460_v34, %v10851_v44  ;;  %v3461_v19 = vmul.f32 %v10869_v13, %v10869_v13  ;;  %v12129_v35 = vld [vmem:[#allocation102_spill] sm:$0xff] }
 0x883   : > { %v10877_v18 = vpop.eup %7342  ;;  %v3966_v1 = vmul.f32 0.7978846, %v3838_v43  ;;  %v3839_v11 = vadd.f32 %v3711_v40, %v10831_v21  ;;  %v3714_v9 = vmul.f32 0.044715, %v3586_v54  ;;  %v3587_v41 = vmul.f32 %v3459_v15, %v10861_v20  ;;  %v12130_v43 = vld [vmem:[#allocation97_spill] sm:$0xff] }
 0x884   : > { %v3968_v14 = vmul.f32 0.7978846, %v3840_v48  ;;  %v3841_v57 = vadd.f32 %v3713_v3, %v10837_v32  ;;  %v3716_v12 = vmul.f32 0.044715, %v3588_v33  ;;  %v10884_v49 = vpop.eup %7344  ;;  %v3589_v37 = vmul.f32 %v3461_v19, %v10869_v13  ;;  %v12131_v3 = vld [vmem:[#allocation120_spill] sm:$0xff] }
 0x885   : > { %7354 = vtanh.f32 %v3966_v1  ;;  %v3967_v62 = vmul.f32 0.7978846, %v3839_v11  ;;  %v3842_v27 = vadd.f32 %v3714_v9, %v10844_v52  ;;  %v10888_v58 = vpop.eup %7346  ;;  %v3715_v6 = vmul.f32 0.044715, %v3587_v41  ;;  %v12133_v11 = vld [vmem:[#allocation122_spill] sm:$0xff] }
 0x886   : > { %7356 = vtanh.f32 %v3968_v14  ;;  %v3969_v16 = vmul.f32 0.7978846, %v3841_v57  ;;  %v3844_v59 = vadd.f32 %v3716_v12, %v10851_v44  ;;  %v10891_v56 = vpop.eup %7348  ;;  %v3717_v60 = vmul.f32 0.044715, %v3589_v37 }
 0x887   : > { %7358 = vtanh.f32 %v3967_v62  ;;  %v3970_v22 = vmul.f32 0.7978846, %v3842_v27  ;;  %v10895_v47 = vadd.f32 %v12125_v5, %v12103_v45  ;;  %v10897_v28 = vpop.eup %7350  ;;  %v3843_v26 = vadd.f32 %v3715_v6, %v10861_v20  ;;  %v12135_v27 = vld [vmem:[#allocation124_spill] sm:$0xff] }
 0x888   : > { %7360 = vtanh.f32 %v3969_v16  ;;  %v3972_v38 = vmul.f32 0.7978846, %v3844_v59  ;;  %v10902_v0 = vadd.f32 %v12127_v36, %v12106_v7  ;;  %v10904_v24 = vpop.eup %7352  ;;  %v3845_v46 = vadd.f32 %v3717_v60, %v10869_v13  ;;  %v12136_v60 = vld [vmem:[#allocation125_spill] sm:$0xff] }
 0x889   : > { %12126 = vst [vmem:[#allocation136_spill] sm:$0xff] %v10895_v47  ;;  %7362 = vtanh.f32 %v3970_v22  ;;  %v3462_v42 = vmul.f32 %v10895_v47, %v10895_v47  ;;  %v10911_v25 = vadd.f32 %v12129_v35, %v12108_v30  ;;  %v3971_v34 = vmul.f32 0.7978846, %v3843_v26 }
 0x88a   : > { %12128 = vst [vmem:[#allocation64_spill] sm:$0xff] %v10902_v0  ;;  %7364 = vtanh.f32 %v3972_v38  ;;  %v3464_v63 = vmul.f32 %v10902_v0, %v10902_v0  ;;  %v10917_v40 = vadd.f32 %v12130_v43, %v12111_v29  ;;  %v3973_v54 = vmul.f32 0.7978846, %v3845_v46 }
 0x88b   : > { %v3590_v10 = vmul.f32 %v3462_v42, %v10895_v47  ;;  %v3463_v48 = vmul.f32 %v10911_v25, %v10911_v25  ;;  %v10924_v33 = vadd.f32 %v12131_v3, %v12103_v45  ;;  %7366 = vtanh.f32 %v3971_v34 }
 0x88c   : > { %v3592_v15 = vmul.f32 %v3464_v63, %v10902_v0  ;;  %v3465_v1 = vmul.f32 %v10917_v40, %v10917_v40  ;;  %v10931_v9 = vadd.f32 %v12133_v11, %v12106_v7  ;;  %7368 = vtanh.f32 %v3973_v54 }
 0x88d   : > { %12132 = vst [vmem:[#allocation88_spill] sm:$0xff] %v10924_v33  ;;  %v3718_v19 = vmul.f32 0.044715, %v3590_v10  ;;  %v3591_v14 = vmul.f32 %v3463_v48, %v10911_v25  ;;  %v3466_v57 = vmul.f32 %v10924_v33, %v10924_v33  ;;  %v10941_v37 = vadd.f32 %v12135_v27, %v12108_v30 }
 0x88e   : > { %12134 = vst [vmem:[#allocation84_spill] sm:$0xff] %v10931_v9  ;;  %v3720_v12 = vmul.f32 0.044715, %v3592_v15  ;;  %v3593_v41 = vmul.f32 %v3465_v1, %v10917_v40  ;;  %v3468_v62 = vmul.f32 %v10931_v9, %v10931_v9  ;;  %v10949_v5 = vadd.f32 %v12136_v60, %v12111_v29 }
 0x88f   : > { %v10943_v16 = vpop.eup %7354  ;;  %v3846_v59 = vadd.f32 %v3718_v19, %v10895_v47  ;;  %v3719_v6 = vmul.f32 0.044715, %v3591_v14  ;;  %v3594_v22 = vmul.f32 %v3466_v57, %v10924_v33  ;;  %v3467_v42 = vmul.f32 %v10941_v37, %v10941_v37 }
 0x890   : > { %v10951_v38 = vpop.eup %7356  ;;  %v3848_v26 = vadd.f32 %v3720_v12, %v10902_v0  ;;  %v3721_v36 = vmul.f32 0.044715, %v3593_v41  ;;  %v3596_v46 = vmul.f32 %v3468_v62, %v10931_v9  ;;  %v3469_v54 = vmul.f32 %v10949_v5, %v10949_v5  ;;  %v10970_v12 = vpop.f32.mrb[160].mxu1 }
 0x891   : > { %v10957_v35 = vpop.eup %7358  ;;  %v3974_v34 = vmul.f32 0.7978846, %v3846_v59  ;;  %v3847_v63 = vadd.f32 %v3719_v6, %v10911_v25  ;;  %v3722_v43 = vmul.f32 0.044715, %v3594_v22  ;;  %v3595_v1 = vmul.f32 %v3467_v42, %v10941_v37  ;;  %12137 = vst [vmem:[#allocation86_spill] sm:$0xff] %v10970_v12  ;;  %v10975_v6 = vpop.f32.mrb[161].mxu1 }
 0x892   : > { %v10962_v10 = vpop.eup %7360  ;;  %v3976_v48 = vmul.f32 0.7978846, %v3848_v26  ;;  %v3849_v3 = vadd.f32 %v3721_v36, %v10917_v40  ;;  %v3724_v15 = vmul.f32 0.044715, %v3596_v46  ;;  %v3597_v57 = vmul.f32 %v3469_v54, %v10949_v5  ;;  %12138 = vst [vmem:[#allocation95_spill] sm:$0xff] %v10975_v6  ;;  %v12139_v26 = vld [vmem:[#allocation128_spill] sm:$0xff] }
 0x893   : > { %v10966_v11 = vpop.eup %7362  ;;  %7370 = vtanh.f32 %v3974_v34  ;;  %v3975_v19 = vmul.f32 0.7978846, %v3847_v63  ;;  %v3850_v14 = vadd.f32 %v3722_v43, %v10924_v33  ;;  %v3723_v59 = vmul.f32 0.044715, %v3595_v1  ;;  %v10981_v46 = vpop.f32.mrb[162].mxu1  ;;  %v12142_v43 = vld [vmem:[#allocation129_spill] sm:$0xff] }
 0x894   : > { %v10972_v41 = vpop.eup %7364  ;;  %7372 = vtanh.f32 %v3976_v48  ;;  %v3977_v62 = vmul.f32 0.7978846, %v3849_v3  ;;  %v3852_v27 = vadd.f32 %v3724_v15, %v10931_v9  ;;  %v3725_v60 = vmul.f32 0.044715, %v3597_v57  ;;  %12141 = vst [vmem:[#allocation67_spill] sm:$0xff] %v10981_v46  ;;  %v10990_v48 = vpop.f32.mrb[163].mxu1 }
 0x895   : > { %7374 = vtanh.f32 %v3975_v19  ;;  %v3978_v22 = vmul.f32 0.7978846, %v3850_v14  ;;  %v10979_v36 = vadd.f32 %v12139_v26, %v12103_v45  ;;  %v10983_v42 = vpop.eup %7366  ;;  %v3851_v63 = vadd.f32 %v3723_v59, %v10941_v37  ;;  %12144 = vst [vmem:[#allocation68_spill] sm:$0xff] %v10990_v48  ;;  %v12145_v19 = vld [vmem:[#allocation119_spill] sm:$0xff]  ;;  %v11001_v57 = vpop.f32.mrb[160].mxu0  ;;  %v12148_v59 = vld [vmem:[#allocation130_spill] sm:$0xff] }
 0x896   : > { %7376 = vtanh.f32 %v3977_v62  ;;  %v3980_v34 = vmul.f32 0.7978846, %v3852_v27  ;;  %v10988_v54 = vadd.f32 %v12142_v43, %v12106_v7  ;;  %v10992_v3 = vpop.eup %7368  ;;  %v3853_v15 = vadd.f32 %v3725_v60, %v10949_v5  ;;  %12147 = vst [vmem:[#allocation66_spill] sm:$0xff] %v11001_v57  ;;  %v12151_v48 = vld [vmem:[#allocation126_spill] sm:$0xff] }
 0x897   : > { %12140 = vst [vmem:[#allocation72_spill] sm:$0xff] %v10979_v36  ;;  %7378 = vtanh.f32 %v3978_v22  ;;  %v3470_v1 = vmul.f32 %v10979_v36, %v10979_v36  ;;  %v10999_v14 = vadd.f32 %v12145_v19, %v12108_v30  ;;  %v3979_v62 = vmul.f32 0.7978846, %v3851_v63  ;;  %v11009_v22 = vpop.f32.mrb[161].mxu0 }
 0x898   : > { %12143 = vst [vmem:[#allocation137_spill] sm:$0xff] %v10988_v54  ;;  %7380 = vtanh.f32 %v3980_v34  ;;  %v3472_v27 = vmul.f32 %v10988_v54, %v10988_v54  ;;  %v11007_v26 = vadd.f32 %v12148_v59, %v12111_v29  ;;  %12150 = vst [vmem:[#allocation73_spill] sm:$0xff] %v11009_v22  ;;  %v3981_v60 = vmul.f32 0.7978846, %v3853_v15  ;;  %v11018_v34 = vpop.f32.mrb[162].mxu0  ;;  %v12153_v22 = vld [vmem:[#allocation131_spill] sm:$0xff] }
 0x899   : > { %12146 = vst [vmem:[#allocation138_spill] sm:$0xff] %v10999_v14  ;;  %v3598_v43 = vmul.f32 %v3470_v1, %v10979_v36  ;;  %v3471_v19 = vmul.f32 %v10999_v14, %v10999_v14  ;;  %v11016_v46 = vadd.f32 %v12151_v48, %v12103_v45  ;;  %12152 = vst [vmem:[#allocation65_spill] sm:$0xff] %v11018_v34  ;;  %7382 = vtanh.f32 %v3979_v62  ;;  %v11027_v1 = vpop.f32.mrb[163].mxu0  ;;  %v12155_v34 = vld [vmem:[#allocation121_spill] sm:$0xff] }
 0x89a   : > { %12149 = vst [vmem:[#allocation139_spill] sm:$0xff] %v11007_v26  ;;  %v3600_v63 = vmul.f32 %v3472_v27, %v10988_v54  ;;  %v3473_v59 = vmul.f32 %v11007_v26, %v11007_v26  ;;  %v11025_v15 = vadd.f32 %v12153_v22, %v12106_v7  ;;  %12154 = vst [vmem:[#allocation140_spill] sm:$0xff] %v11027_v1  ;;  %7384 = vtanh.f32 %v3981_v60 }
 0x89b   : > { %v3726_v57 = vmul.f32 0.044715, %v3598_v43  ;;  %v3599_v6 = vmul.f32 %v3471_v19, %v10999_v14  ;;  %v3474_v45 = vmul.f32 %v11016_v46, %v11016_v46  ;;  %v11037_v12 = vadd.f32 %v12155_v34, %v12108_v30  ;;  %v12156_v19 = vld [vmem:[#allocation127_spill] sm:$0xff] }
 0x89c   : > { %v3728_v48 = vmul.f32 0.044715, %v3600_v63  ;;  %v3601_v62 = vmul.f32 %v3473_v59, %v11007_v26  ;;  %v3476_v27 = vmul.f32 %v11025_v15, %v11025_v15  ;;  %v11045_v1 = vadd.f32 %v12156_v19, %v12111_v29 }
 0x89d   : > { %v11039_v7 = vpop.eup %7370  ;;  %v3854_v22 = vadd.f32 %v3726_v57, %v10979_v36  ;;  %v3727_v60 = vmul.f32 0.044715, %v3599_v6  ;;  %v3602_v43 = vmul.f32 %v3474_v45, %v11016_v46  ;;  %v3475_v30 = vmul.f32 %v11037_v12, %v11037_v12 }
 0x89e   : > { %v11047_v63 = vpop.eup %7372  ;;  %v3856_v59 = vadd.f32 %v3728_v48, %v10988_v54  ;;  %v3729_v9 = vmul.f32 0.044715, %v3601_v62  ;;  %v3604_v0 = vmul.f32 %v3476_v27, %v11025_v15  ;;  %v3477_v29 = vmul.f32 %v11045_v1, %v11045_v1 }
 0x89f   : > { %v11053_v34 = vpop.eup %7374  ;;  %v3982_v57 = vmul.f32 0.7978846, %v3854_v22  ;;  %v3855_v6 = vadd.f32 %v3727_v60, %v10999_v14  ;;  %v3730_v45 = vmul.f32 0.044715, %v3602_v43  ;;  %v3603_v27 = vmul.f32 %v3475_v30, %v11037_v12 }
 0x8a0   : > { %v11058_v19 = vpop.eup %7376  ;;  %v3984_v36 = vmul.f32 0.7978846, %v3856_v59  ;;  %v3857_v48 = vadd.f32 %v3729_v9, %v11007_v26  ;;  %v3732_v62 = vmul.f32 0.044715, %v3604_v0  ;;  %v3605_v60 = vmul.f32 %v3477_v29, %v11045_v1 }
 0x8a1   : > { %v11062_v54 = vpop.eup %7378  ;;  %7386 = vtanh.f32 %v3982_v57  ;;  %v3983_v33 = vmul.f32 0.7978846, %v3855_v6  ;;  %v3858_v22 = vadd.f32 %v3730_v45, %v11016_v46  ;;  %v3731_v59 = vmul.f32 0.044715, %v3603_v27 }
 0x8a2   : > { %v11066_v43 = vpop.eup %7380  ;;  %7388 = vtanh.f32 %v3984_v36  ;;  %v3985_v14 = vmul.f32 0.7978846, %v3857_v48  ;;  %v3860_v47 = vadd.f32 %v3732_v62, %v11025_v15  ;;  %v3733_v0 = vmul.f32 0.044715, %v3605_v60 }
 0x8a3   : > { %7390 = vtanh.f32 %v3983_v33  ;;  %v3986_v9 = vmul.f32 0.7978846, %v3858_v22  ;;  %v4215_v30 = vadd.f32 1.0, %v10877_v18  ;;  %v11070_v26 = vpop.eup %7382  ;;  %v3859_v6 = vadd.f32 %v3731_v59, %v11037_v12 }
 0x8a4   : > { %7392 = vtanh.f32 %v3985_v14  ;;  %v3988_v57 = vmul.f32 0.7978846, %v3860_v47  ;;  %v4219_v45 = vadd.f32 1.0, %v10897_v28  ;;  %v11074_v29 = vpop.eup %7384  ;;  %v3861_v36 = vadd.f32 %v3733_v0, %v11045_v1 }
 0x8a5   : > { %7394 = vtanh.f32 %v3986_v9  ;;  %v4343_v48 = vmul.f32 0.5, %v4215_v30  ;;  %v4217_v33 = vadd.f32 1.0, %v10884_v49  ;;  %v3987_v62 = vmul.f32 0.7978846, %v3859_v6 }
 0x8a6   : > { %7396 = vtanh.f32 %v3988_v57  ;;  %v4347_v27 = vmul.f32 0.5, %v4219_v45  ;;  %v4221_v18 = vadd.f32 1.0, %v10904_v24  ;;  %v3989_v22 = vmul.f32 0.7978846, %v3861_v36  ;;  %v11087_v45 = vpop.f32.mrb[164].mxu1 }
 0x8a7   : > { %v4471_v47 = vmul.f32 %v4343_v48, %v10765_v51  ;;  %v4345_v14 = vmul.f32 0.5, %v4217_v33  ;;  %v4214_v60 = vadd.f32 1.0, %v10863_v4  ;;  %7398 = vtanh.f32 %v3987_v62  ;;  %v11094_v48 = vpop.f32.mrb[165].mxu1 }
 0x8a8   : > { %v4475_v28 = vmul.f32 %v4347_v27, %v10792_v8  ;;  %v4349_v59 = vmul.f32 0.5, %v4221_v18  ;;  %v4218_v9 = vadd.f32 1.0, %v10888_v58  ;;  %7400 = vtanh.f32 %v3989_v22  ;;  %v11100_v27 = vpop.f32.mrb[164].mxu0  ;;  %v11102_v18 = vpop.f32.mrb[166].mxu1 }
 0x8a9   : > { %v4473_v49 = vmul.f32 %v4345_v14, %v10776_v17  ;;  %v4342_v0 = vmul.f32 0.5, %v4214_v60  ;;  %v4216_v30 = vadd.f32 1.0, %v10871_v53  ;;  %v4220_v51 = vadd.f32 1.0, %v10891_v56  ;;  %v11108_v14 = vpop.f32.mrb[165].mxu0  ;;  %v11110_v60 = vpop.f32.mrb[167].mxu1 }
 0x8aa   : > { %v4551_v57 = vpack.c.bf16 %v4475_v28, %v4471_v47  ;;  %v4477_v24 = vmul.f32 %v4349_v59, %v10800_v31  ;;  %v4346_v6 = vmul.f32 0.5, %v4218_v9  ;;  %v4223_v58 = vadd.f32 1.0, %v10957_v35 }
 0x8ab   : > { %v11089_v4 = vpop.eup %7386  ;;  %v4470_v8 = vmul.f32 %v4342_v0, %v10753_v50  ;;  %v4344_v36 = vmul.f32 0.5, %v4216_v30  ;;  %v4227_v17 = vadd.f32 1.0, %v10983_v42  ;;  %v4348_v56 = vmul.f32 0.5, %v4220_v51 }
 0x8ac   : > { %v11096_v53 = vpop.eup %7388  ;;  %4954 = vmatprep.mubr.bf16.mxu1 %v4551_v57  ;;  %v4553_v31 = vpack.c.bf16 %v4477_v24, %v4473_v49  ;;  %v4474_v33 = vmul.f32 %v4346_v6, %v10781_v2  ;;  %v4225_v62 = vadd.f32 1.0, %v10962_v10  ;;  %v4351_v42 = vmul.f32 0.5, %v4223_v58  ;;  %v11116_v49 = vpop.f32.mrb[166].mxu0 }
 0x8ad   : > { %v11104_v50 = vpop.eup %7390  ;;  %v4472_v35 = vmul.f32 %v4344_v36, %v10758_v39  ;;  %v4355_v22 = vmul.f32 0.5, %v4227_v17  ;;  %v4229_v47 = vadd.f32 1.0, %v10992_v3  ;;  %v4476_v28 = vmul.f32 %v4348_v56, %v10785_v23  ;;  %v11123_v24 = vpop.f32.mrb[167].mxu0 }
 0x8ae   : > { %v11112_v2 = vpop.eup %7392  ;;  %5115 = vmatprep.mubr.bf16.mxu0 %v4553_v31  ;;  %v4550_v10 = vpack.c.bf16 %v4474_v33, %v4470_v8  ;;  %v4353_v59 = vmul.f32 0.5, %v4225_v62  ;;  %v4222_v9 = vadd.f32 1.0, %v10943_v16  ;;  %v4479_v0 = vmul.f32 %v4351_v42, %v10831_v21 }
 0x8af   : > { %v11118_v39 = vpop.eup %7394  ;;  %v4483_v3 = vmul.f32 %v4355_v22, %v10861_v20  ;;  %v4357_v30 = vmul.f32 0.5, %v4229_v47  ;;  %v4226_v57 = vadd.f32 1.0, %v10966_v11  ;;  %v4552_v23 = vpack.c.bf16 %v4476_v28, %v4472_v35 }
 0x8b0   : > { %v11125_v6 = vpop.eup %7396  ;;  %4955 = vmatmul.mubr.bf16.gmra.mrb[208].mxu1 %v4550_v10  ;;  %v4481_v51 = vmul.f32 %v4353_v59, %v10837_v32  ;;  %v4350_v16 = vmul.f32 0.5, %v4222_v9  ;;  %v4224_v8 = vadd.f32 1.0, %v10951_v38  ;;  %v4228_v20 = vadd.f32 1.0, %v10972_v41 }
 0x8b1   : > { %v4555_v36 = vpack.c.bf16 %v4483_v3, %v4479_v0  ;;  %v4485_v58 = vmul.f32 %v4357_v30, %v10869_v13  ;;  %v4354_v21 = vmul.f32 0.5, %v4226_v57  ;;  %v7399_v17 = vpop.eup %7398  ;;  %5116 = vmatmul.mubr.bf16.gmra.mrb[208].mxu0 %v4552_v23  ;;  %v4231_v33 = vadd.f32 1.0, %v11053_v34  ;;  %v12157_v57 = vld [vmem:[#allocation136_spill] sm:$0xff] }
 0x8b2   : > { %v4478_v11 = vmul.f32 %v4350_v16, %v10820_v61  ;;  %v4352_v31 = vmul.f32 0.5, %v4224_v8  ;;  %v4235_v56 = vadd.f32 1.0, %v11070_v26  ;;  %v7401_v62 = vpop.eup %7400  ;;  %v4356_v35 = vmul.f32 0.5, %v4228_v20 }
 0x8b3   : > { %4962 = vmatprep.mubr.bf16.mxu1 %v4555_v36  ;;  %v4557_v32 = vpack.c.bf16 %v4485_v58, %v4481_v51  ;;  %v4482_v38 = vmul.f32 %v4354_v21, %v10844_v52  ;;  %v4233_v13 = vadd.f32 1.0, %v11058_v19  ;;  %v4359_v41 = vmul.f32 0.5, %v4231_v33  ;;  %v12159_v36 = vld [vmem:[#allocation64_spill] sm:$0xff] }
 0x8b4   : > { %v4480_v42 = vmul.f32 %v4352_v31, %v10825_v55  ;;  %v4363_v22 = vmul.f32 0.5, %v4235_v56  ;;  %v4237_v47 = vadd.f32 1.0, %v11074_v29  ;;  %v4484_v34 = vmul.f32 %v4356_v35, %v10851_v44 }
 0x8b5   : > { %5123 = vmatprep.mubr.bf16.mxu0 %v4557_v32  ;;  %v4554_v61 = vpack.c.bf16 %v4482_v38, %v4478_v11  ;;  %v4361_v10 = vmul.f32 0.5, %v4233_v13  ;;  %v4230_v26 = vadd.f32 1.0, %v11039_v7  ;;  %v4487_v28 = vmul.f32 %v4359_v41, %v10911_v25  ;;  %v12160_v11 = vld [vmem:[#allocation84_spill] sm:$0xff]  ;;  %v12162_v13 = vld [vmem:[#allocation139_spill] sm:$0xff] }
 0x8b6   : > { %v4491_v52 = vmul.f32 %v4363_v22, %v10941_v37  ;;  %v4365_v59 = vmul.f32 0.5, %v4237_v47  ;;  %v4234_v19 = vadd.f32 1.0, %v11062_v54  ;;  %v4556_v9 = vpack.c.bf16 %v4484_v34, %v4480_v42 }
 0x8b7   : > { %v4489_v55 = vmul.f32 %v4361_v10, %v10917_v40  ;;  %v4358_v0 = vmul.f32 0.5, %v4230_v26  ;;  %v4232_v29 = vadd.f32 1.0, %v11047_v63  ;;  %v4236_v7 = vadd.f32 1.0, %v11066_v43  ;;  %v12158_v40 = vld [vmem:[#allocation88_spill] sm:$0xff] }
 0x8b8   : > { %4963 = vmatmul.mubr.bf16.gmra.mrb[212].mxu1 %v4554_v61  ;;  %v4559_v3 = vpack.c.bf16 %v4491_v52, %v4487_v28  ;;  %v4493_v44 = vmul.f32 %v4365_v59, %v10949_v5  ;;  %v4362_v30 = vmul.f32 0.5, %v4234_v19  ;;  %v4239_v37 = vadd.f32 1.0, %v11104_v50  ;;  %v12163_v10 = vld [vmem:[#allocation72_spill] sm:$0xff]  ;;  %v11163_v28 = vld [vmem:[%s8107_s29] sm:$0x3f] }
 0x8b9   : > { %v4486_v25 = vmul.f32 %v4358_v0, %v12157_v57  ;;  %v4360_v23 = vmul.f32 0.5, %v4232_v29  ;;  %v4243_v51 = vadd.f32 1.0, %v7399_v17  ;;  %5124 = vmatmul.mubr.bf16.gmra.mrb[212].mxu0 %v4556_v9  ;;  %v4364_v8 = vmul.f32 0.5, %v4236_v7  ;;  %v12161_v17 = vld [vmem:[#allocation138_spill] sm:$0xff] }
 0x8ba   : > { %4970 = vmatprep.mubr.bf16.mxu1 %v4559_v3  ;;  %v4561_v54 = vpack.c.bf16 %v4493_v44, %v4489_v55  ;;  %v4490_v16 = vmul.f32 %v4362_v30, %v12158_v40  ;;  %v4241_v63 = vadd.f32 1.0, %v11112_v2  ;;  %v4367_v5 = vmul.f32 0.5, %v4239_v37  ;;  %v12166_v19 = vld [vmem:[#allocation86_spill] sm:$0xff]  ;;  %v12169_v44 = vld [vmem:[#allocation73_spill] sm:$0xff] }
 0x8bb   : > { %v4488_v58 = vmul.f32 %v4360_v23, %v12159_v36  ;;  %v4371_v21 = vmul.f32 0.5, %v4243_v51  ;;  %v4245_v20 = vadd.f32 1.0, %v7401_v62  ;;  %v4492_v31 = vmul.f32 %v4364_v8, %v12160_v11  ;;  %v6279_v34 = vpop.f32.mrb[168].mxu1  ;;  %v12168_v3 = vld [vmem:[#allocation66_spill] sm:$0xff]  ;;  %v12171_v51 = vld [vmem:[#allocation67_spill] sm:$0xff]  ;;  %v12174_v8 = vld [vmem:[#allocation140_spill] sm:$0xff] }
 0x8bc   : > { %5131 = vmatprep.mubr.bf16.mxu0 %v4561_v54  ;;  %v4558_v43 = vpack.c.bf16 %v4490_v16, %v4486_v25  ;;  %v4369_v33 = vmul.f32 0.5, %v4241_v63  ;;  %v4238_v50 = vadd.f32 1.0, %v11089_v4  ;;  %v4495_v56 = vmul.f32 %v4367_v5, %v12161_v17  ;;  %v6391_v55 = vpop.f32.mrb[168].mxu0  ;;  %v12170_v25 = vld [vmem:[#allocation137_spill] sm:$0xff]  ;;  %v12172_v54 = vld [vmem:[#allocation68_spill] sm:$0xff] }
 0x8bd   : > { %v4499_v32 = vmul.f32 %v4371_v21, %v11037_v12  ;;  %v4373_v38 = vmul.f32 0.5, %v4245_v20  ;;  %v4242_v2 = vadd.f32 1.0, %v11118_v39  ;;  %v4560_v35 = vpack.c.bf16 %v4492_v31, %v4488_v58  ;;  %v12164_v39 = vld [vmem:[#allocation27_spill] sm:$0xff]  ;;  %v6392_v7 = vpop.f32.mrb[169].mxu0  ;;  %v12173_v16 = vld [vmem:[#allocation65_spill] sm:$0xff] }
 0x8be   : > { %v4497_v42 = vmul.f32 %v4369_v33, %v12162_v13  ;;  %v4366_v41 = vmul.f32 0.5, %v4238_v50  ;;  %v4240_v62 = vadd.f32 1.0, %v11096_v53  ;;  %v4244_v4 = vadd.f32 1.0, %v11125_v6  ;;  %v12167_v53 = vld [vmem:[#allocation95_spill] sm:$0xff]  ;;  %v6394_v36 = vpop.f32.mrb[170].mxu0 }
 0x8bf   : > { %v4563_v22 = vpack.c.bf16 %v4499_v32, %v4495_v56  ;;  %v4501_v47 = vmul.f32 %v4373_v38, %v11045_v1  ;;  %v4370_v61 = vmul.f32 0.5, %v4242_v2  ;;  %v12165_v52 = vsub.s32 3, %v12164_v39  ;;  %v6280_v1 = vpop.f32.mrb[169].mxu1 }
 0x8c0   : > { %4971 = vmatmul.mubr.bf16.gmra.mrb[216].mxu1 %v4558_v43  ;;  %v4494_v26 = vmul.f32 %v4366_v41, %v12163_v10  ;;  %v4368_v12 = vmul.f32 0.5, %v4240_v62  ;;  %v6269_v9 = vadd.f32 %v12167_v53, %v12166_v19  ;;  %v4372_v29 = vmul.f32 0.5, %v4244_v4  ;;  %v6282_v57 = vpop.f32.mrb[170].mxu1  ;;  %v6395_v43 = vpop.f32.mrb[171].mxu0  ;;  %v12178_v4 = vld [vmem:[#allocation31_spill] sm:$0xff] }
 0x8c1   : > { %v11168_v59 = vrot.slane %v11163_v28, %v12165_v52  ;;  %4978 = vmatprep.mubr.bf16.mxu1 %v4563_v22  ;;  %v4565_v0 = vpack.c.bf16 %v4501_v47, %v4497_v42  ;;  %v4498_v6 = vmul.f32 %v4370_v61, %v11016_v46  ;;  %v6381_v30 = vadd.f32 %v12169_v44, %v12168_v3  ;;  %v6283_v58 = vpop.f32.mrb[171].mxu1  ;;  %v12177_v47 = vld [vmem:[#allocation30_spill] sm:$0xff]  ;;  %v12179_v52 = vld [vmem:[#allocation32_spill] sm:$0xff] }
 0x8c2   : > { %5132 = vmatmul.mubr.bf16.gmra.mrb[216].mxu0 %v4560_v35  ;;  %v4496_v23 = vmul.f32 %v4368_v12, %v12170_v25  ;;  %v6272_v40 = vadd.f32 %v12172_v54, %v12171_v51  ;;  %v6384_v63 = vadd.f32 %v12174_v8, %v12173_v16  ;;  %v4500_v5 = vmul.f32 %v4372_v29, %v11025_v15  ;;  %v12181_v8 = vld [vmem:[#allocation34_spill] sm:$0xff] }
 0x8c3   : > { %v4861_v37 = vadd.f32 %v6269_v9, %v11168_v59  ;;  %5139 = vmatprep.mubr.bf16.mxu0 %v4565_v0  ;;  %v4562_v46 = vpack.c.bf16 %v4498_v6, %v4494_v26  ;;  %v6275_v21 = vadd.f32 %v11094_v48, %v11087_v45  ;;  %v6387_v20 = vadd.f32 %v11108_v14, %v11100_v27  ;;  %v12175_v45 = vld [vmem:[#allocation28_spill] sm:$0xff]  ;;  %v12180_v6 = vld [vmem:[#allocation33_spill] sm:$0xff] }
 0x8c4   : > { %v4864_v31 = vadd.f32 %v6272_v40, %v11168_v59  ;;  %v6278_v33 = vadd.f32 %v11110_v60, %v11102_v18  ;;  %v6390_v50 = vadd.f32 %v11123_v24, %v11116_v49  ;;  %v4564_v17 = vpack.c.bf16 %v4500_v5, %v4496_v23  ;;  %v12176_v60 = vld [vmem:[#allocation29_spill] sm:$0xff] }
 0x8c5   : > { %v5022_v11 = vadd.f32 %v6381_v30, %v4861_v37  ;;  %v4869_v56 = vadd.f32 %v6275_v21, %v11168_v59  ;;  %v6281_v15 = vadd.f32 %v6280_v1, %v6279_v34  ;;  %v6393_v32 = vadd.f32 %v6392_v7, %v6391_v55 }
 0x8c6   : > { %v5025_v38 = vadd.f32 %v6384_v63, %v4864_v31  ;;  %v4872_v27 = vadd.f32 %v6278_v33, %v11168_v59  ;;  %v6284_v14 = vadd.f32 %v6283_v58, %v6282_v57  ;;  %v6396_v13 = vadd.f32 %v6395_v43, %v6394_v36  ;;  %v12182_v36 = vld [vmem:[#allocation35_spill] sm:$0xff] }
 0x8c7   : > { %v11193_v48 = vadd.f32 %v5022_v11, %v12175_v45  ;;  %v5030_v2 = vadd.f32 %v6387_v20, %v4869_v56  ;;  %v4877_v35 = vadd.f32 %v6281_v15, %v11168_v59 }
 0x8c8   : > { %4979 = vmatmul.mubr.bf16.gmra.mrb[220].mxu1 %v4562_v46  ;;  %v5033_v18 = vadd.f32 %v6390_v50, %v4872_v27  ;;  %v11199_v49 = vadd.f32 %v5025_v38, %v12176_v60  ;;  %v4880_v42 = vadd.f32 %v6284_v14, %v11168_v59 }
 0x8c9   : > { %5180 = vadd.xlane.f32.xlu0 %v11193_v48  ;;  %v5038_v24 = vadd.f32 %v6393_v32, %v4877_v35  ;;  %v5276_v41 = vmul.f32 %v11193_v48, %v11193_v48  ;;  %v11208_v61 = vadd.f32 %v5030_v2, %v12177_v47  ;;  %v12183_v35 = vld [vmem:[#allocation36_spill] sm:$0xff] }
 0x8ca   : > { %5140 = vmatmul.mubr.bf16.gmra.mrb[220].mxu0 %v4564_v17  ;;  %5182 = vadd.xlane.f32.xlu1 %v11199_v49  ;;  %v5041_v62 = vadd.f32 %v6396_v13, %v4880_v42  ;;  %v5277_v22 = vmul.f32 %v11199_v49, %v11199_v49  ;;  %v11211_v34 = vadd.f32 %v5033_v18, %v12178_v4  ;;  %v12184_v18 = vld [vmem:[#allocation37_spill] sm:$0xff] }
 0x8cb   : > { %v5278_v10 = vmul.f32 %v11208_v61, %v11208_v61  ;;  %v11220_v19 = vadd.f32 %v5038_v24, %v12179_v52 }
 0x8cc   : > { %v5279_v12 = vmul.f32 %v11211_v34, %v11211_v34  ;;  %v11223_v29 = vadd.f32 %v5041_v62, %v12180_v6 }
 0x8cd   : > { %5308 = vadd.xlane.f32.xlu0 %v5276_v41  ;;  %v5280_v54 = vmul.f32 %v11220_v19, %v11220_v19 }
 0x8ce   : > { %5310 = vadd.xlane.f32.xlu1 %v5277_v22  ;;  %v5281_v16 = vmul.f32 %v11223_v29, %v11223_v29 }
 0x8d1   : > { %5184 = vadd.xlane.f32.xlu0 %v11208_v61  ;;  %v6285_v26 = vpop.f32.mrb[172].mxu1 }
 0x8d2   : > { %5186 = vadd.xlane.f32.xlu1 %v11211_v34  ;;  %v6397_v53 = vpop.f32.mrb[172].mxu0  ;;  %v6286_v9 = vpop.f32.mrb[173].mxu1 }
 0x8d3   : > { %v6287_v55 = vadd.f32 %v6286_v9, %v6285_v26  ;;  %v6398_v1 = vpop.f32.mrb[173].mxu0  ;;  %v6288_v0 = vpop.f32.mrb[174].mxu1 }
 0x8d4   : > { %v6399_v3 = vadd.f32 %v6398_v1, %v6397_v53  ;;  %v6400_v44 = vpop.f32.mrb[174].mxu0  ;;  %v6289_v30 = vpop.f32.mrb[175].mxu1 }
 0x8d5   : > { %5312 = vadd.xlane.f32.xlu0 %v5278_v10  ;;  %v4885_v7 = vadd.f32 %v6287_v55, %v11168_v59  ;;  %v6290_v57 = vadd.f32 %v6289_v30, %v6288_v0  ;;  %v6401_v25 = vpop.f32.mrb[175].mxu0 }
 0x8d6   : > { %5314 = vadd.xlane.f32.xlu1 %v5279_v12  ;;  %v6402_v23 = vadd.f32 %v6401_v25, %v6400_v44  ;;  %v12185_v44 = vld [vmem:[#allocation38_spill] sm:$0xff] }
 0x8d7   : > { %v5046_v37 = vadd.f32 %v6399_v3, %v4885_v7  ;;  %v4888_v51 = vadd.f32 %v6290_v57, %v11168_v59  ;;  %v12186_v7 = vld [vmem:[#allocation39_spill] sm:$0xff] }
 0x8d9   : > { %5188 = vadd.xlane.f32.xlu0 %v11220_v19  ;;  %v5049_v40 = vadd.f32 %v6402_v23, %v4888_v51  ;;  %v11234_v63 = vadd.f32 %v5046_v37, %v12181_v8 }
 0x8da   : > { %5190 = vadd.xlane.f32.xlu1 %v11223_v29 }
 0x8db   : > { %v11237_v58 = vadd.f32 %v5049_v40, %v12182_v36  ;;  %v5282_v46 = vmul.f32 %v11234_v63, %v11234_v63 }
 0x8dd   : > { %5316 = vadd.xlane.f32.xlu0 %v5280_v54  ;;  %v5283_v5 = vmul.f32 %v11237_v58, %v11237_v58 }
 0x8de   : > { %5318 = vadd.xlane.f32.xlu1 %v5281_v16 }
 0x8e1   : > { %5192 = vadd.xlane.f32.xlu0 %v11234_v63 }
 0x8e2   : > { %5194 = vadd.xlane.f32.xlu1 %v11237_v58 }
 0x8e5   : > { %5320 = vadd.xlane.f32.xlu0 %v5282_v46 }
 0x8e6   : > { %5322 = vadd.xlane.f32.xlu1 %v5283_v5  ;;  %v6291_v21 = vpop.f32.mrb[176].mxu1 }
 0x8e7   : > { %v6403_v20 = vpop.f32.mrb[176].mxu0  ;;  %v6292_v43 = vpop.f32.mrb[177].mxu1 }
 0x8e8   : > { %v6293_v11 = vadd.f32 %v6292_v43, %v6291_v21  ;;  %v6404_v31 = vpop.f32.mrb[177].mxu0  ;;  %v6294_v33 = vpop.f32.mrb[178].mxu1 }
 0x8e9   : > { %v6405_v50 = vadd.f32 %v6404_v31, %v6403_v20  ;;  %v6406_v17 = vpop.f32.mrb[178].mxu0  ;;  %v6295_v56 = vpop.f32.mrb[179].mxu1 }
 0x8ea   : > { %v4893_v15 = vadd.f32 %v6293_v11, %v11168_v59  ;;  %v6296_v32 = vadd.f32 %v6295_v56, %v6294_v33  ;;  %v6407_v38 = vpop.f32.mrb[179].mxu0 }
 0x8eb   : > { %v6408_v45 = vadd.f32 %v6407_v38, %v6406_v17  ;;  %v12187_v17 = vld [vmem:[#allocation40_spill] sm:$0xff] }
 0x8ec   : > { %v5054_v27 = vadd.f32 %v6405_v50, %v4893_v15  ;;  %v4896_v14 = vadd.f32 %v6296_v32, %v11168_v59  ;;  %v12188_v15 = vld [vmem:[#allocation41_spill] sm:$0xff] }
 0x8ee   : > { %v5057_v2 = vadd.f32 %v6408_v45, %v4896_v14  ;;  %v11248_v13 = vadd.f32 %v5054_v27, %v12183_v35 }
 0x8f0   : > { %5196 = vadd.xlane.f32.xlu0 %v11248_v13  ;;  %v11252_v60 = vadd.f32 %v5057_v2, %v12184_v18  ;;  %v5284_v24 = vmul.f32 %v11248_v13, %v11248_v13 }
 0x8f2   : > { %5198 = vadd.xlane.f32.xlu1 %v11252_v60  ;;  %v5285_v42 = vmul.f32 %v11252_v60, %v11252_v60 }
 0x8f4   : > { %5324 = vadd.xlane.f32.xlu0 %v5284_v24 }
 0x8f6   : > { %5326 = vadd.xlane.f32.xlu1 %v5285_v42 }
 0x8fc   : > { %v6297_v41 = vpop.f32.mrb[180].mxu1 }
 0x8fd   : > { %v6409_v62 = vpop.f32.mrb[180].mxu0  ;;  %v6298_v22 = vpop.f32.mrb[181].mxu1 }
 0x8fe   : > { %v6299_v47 = vadd.f32 %v6298_v22, %v6297_v41  ;;  %v6410_v4 = vpop.f32.mrb[181].mxu0  ;;  %v6300_v10 = vpop.f32.mrb[182].mxu1 }
 0x8ff   : > { %v6411_v26 = vadd.f32 %v6410_v4, %v6409_v62  ;;  %v6412_v12 = vpop.f32.mrb[182].mxu0  ;;  %v6301_v52 = vpop.f32.mrb[183].mxu1 }
 0x900   : > { %v4901_v53 = vadd.f32 %v6299_v47, %v11168_v59  ;;  %v6302_v9 = vadd.f32 %v6301_v52, %v6300_v10  ;;  %v6413_v55 = vpop.f32.mrb[183].mxu0 }
 0x901   : > { %v6414_v1 = vadd.f32 %v6413_v55, %v6412_v12 }
 0x902   : > { %v5062_v0 = vadd.f32 %v6411_v26, %v4901_v53  ;;  %v4904_v6 = vadd.f32 %v6302_v9, %v11168_v59  ;;  %v12189_v9 = vld [vmem:[#allocation42_spill] sm:$0xff] }
 0x904   : > { %v5065_v3 = vadd.f32 %v6414_v1, %v4904_v6  ;;  %v11262_v30 = vadd.f32 %v5062_v0, %v12185_v44 }
 0x906   : > { %5200 = vadd.xlane.f32.xlu0 %v11262_v30  ;;  %v11266_v57 = vadd.f32 %v5065_v3, %v12186_v7  ;;  %v5286_v25 = vmul.f32 %v11262_v30, %v11262_v30  ;;  %v12190_v7 = vld [vmem:[#allocation43_spill] sm:$0xff] }
 0x908   : > { %5202 = vadd.xlane.f32.xlu1 %v11266_v57  ;;  %v5287_v23 = vmul.f32 %v11266_v57, %v11266_v57 }
 0x90a   : > { %5328 = vadd.xlane.f32.xlu0 %v5286_v25 }
 0x90c   : > { %5330 = vadd.xlane.f32.xlu1 %v5287_v23 }
 0x912   : > { %v6303_v37 = vpop.f32.mrb[184].mxu1 }
 0x913   : > { %v6415_v51 = vpop.f32.mrb[184].mxu0  ;;  %v6304_v54 = vpop.f32.mrb[185].mxu1 }
 0x914   : > { %v6305_v40 = vadd.f32 %v6304_v54, %v6303_v37  ;;  %v6416_v16 = vpop.f32.mrb[185].mxu0  ;;  %v6306_v8 = vpop.f32.mrb[186].mxu1 }
 0x915   : > { %v6417_v36 = vadd.f32 %v6416_v16, %v6415_v51  ;;  %v6418_v46 = vpop.f32.mrb[186].mxu0  ;;  %v6307_v5 = vpop.f32.mrb[187].mxu1 }
 0x916   : > { %v4909_v21 = vadd.f32 %v6305_v40, %v11168_v59  ;;  %v6308_v20 = vadd.f32 %v6307_v5, %v6306_v8  ;;  %v6419_v43 = vpop.f32.mrb[187].mxu0 }
 0x917   : > { %v6420_v11 = vadd.f32 %v6419_v43, %v6418_v46 }
 0x918   : > { %v5070_v31 = vadd.f32 %v6417_v36, %v4909_v21  ;;  %v4912_v33 = vadd.f32 %v6308_v20, %v11168_v59 }
 0x91a   : > { %v5073_v50 = vadd.f32 %v6420_v11, %v4912_v33  ;;  %v11276_v56 = vadd.f32 %v5070_v31, %v12187_v17  ;;  %v12191_v11 = vld [vmem:[#allocation44_spill] sm:$0xff] }
 0x91c   : > { %5204 = vadd.xlane.f32.xlu0 %v11276_v56  ;;  %v11280_v32 = vadd.f32 %v5073_v50, %v12188_v15  ;;  %v5288_v38 = vmul.f32 %v11276_v56, %v11276_v56 }
 0x91e   : > { %5206 = vadd.xlane.f32.xlu1 %v11280_v32  ;;  %v5289_v45 = vmul.f32 %v11280_v32, %v11280_v32 }
 0x920   : > { %5332 = vadd.xlane.f32.xlu0 %v5288_v38 }
 0x922   : > { %5334 = vadd.xlane.f32.xlu1 %v5289_v45  ;;  %v12192_v45 = vld [vmem:[#allocation45_spill] sm:$0xff] }
 0x928   : > { %v6309_v27 = vpop.f32.mrb[188].mxu1 }
 0x929   : > { %v6421_v14 = vpop.f32.mrb[188].mxu0  ;;  %v6310_v2 = vpop.f32.mrb[189].mxu1 }
 0x92a   : > { %v6311_v35 = vadd.f32 %v6310_v2, %v6309_v27  ;;  %v6422_v18 = vpop.f32.mrb[189].mxu0  ;;  %v6312_v24 = vpop.f32.mrb[190].mxu1 }
 0x92b   : > { %v6423_v42 = vadd.f32 %v6422_v18, %v6421_v14  ;;  %v6424_v41 = vpop.f32.mrb[190].mxu0  ;;  %v6313_v62 = vpop.f32.mrb[191].mxu1 }
 0x92c   : > { %v4917_v22 = vadd.f32 %v6311_v35, %v11168_v59  ;;  %v6314_v47 = vadd.f32 %v6313_v62, %v6312_v24  ;;  %v6425_v4 = vpop.f32.mrb[191].mxu0 }
 0x92d   : > { %v6426_v10 = vadd.f32 %v6425_v4, %v6424_v41 }
 0x92e   : > { %v5078_v26 = vadd.f32 %v6423_v42, %v4917_v22  ;;  %v4920_v12 = vadd.f32 %v6314_v47, %v11168_v59 }
 0x930   : > { %v5081_v52 = vadd.f32 %v6426_v10, %v4920_v12  ;;  %v6315_v53 = vpop.f32.mrb[192].mxu1  ;;  %v11290_v55 = vadd.f32 %v5078_v26, %v12189_v9  ;;  %v12193_v12 = vld [vmem:[#allocation46_spill] sm:$0xff] }
 0x931   : > { %v6427_v1 = vpop.f32.mrb[192].mxu0  ;;  %v6316_v0 = vpop.f32.mrb[193].mxu1 }
 0x932   : > { %v6317_v6 = vadd.f32 %v6316_v0, %v6315_v53  ;;  %v6428_v3 = vpop.f32.mrb[193].mxu0  ;;  %v6318_v44 = vpop.f32.mrb[194].mxu1  ;;  %5208 = vadd.xlane.f32.xlu0 %v11290_v55  ;;  %v11294_v25 = vadd.f32 %v5081_v52, %v12190_v7  ;;  %v5290_v8 = vmul.f32 %v11290_v55, %v11290_v55 }
 0x933   : > { %v6429_v23 = vadd.f32 %v6428_v3, %v6427_v1  ;;  %v6430_v37 = vpop.f32.mrb[194].mxu0  ;;  %v6319_v51 = vpop.f32.mrb[195].mxu1  ;;  %v12194_v3 = vld [vmem:[#allocation47_spill] sm:$0xff] }
 0x934   : > { %v4925_v54 = vadd.f32 %v6317_v6, %v11168_v59  ;;  %v6320_v40 = vadd.f32 %v6319_v51, %v6318_v44  ;;  %v6431_v16 = vpop.f32.mrb[195].mxu0  ;;  %5210 = vadd.xlane.f32.xlu1 %v11294_v25  ;;  %v5291_v21 = vmul.f32 %v11294_v25, %v11294_v25 }
 0x935   : > { %v6432_v36 = vadd.f32 %v6431_v16, %v6430_v37 }
 0x936   : > { %v5086_v46 = vadd.f32 %v6429_v23, %v4925_v54  ;;  %v4928_v5 = vadd.f32 %v6320_v40, %v11168_v59  ;;  %5336 = vadd.xlane.f32.xlu0 %v5290_v8 }
 0x938   : > { %v5089_v20 = vadd.f32 %v6432_v36, %v4928_v5  ;;  %v6321_v43 = vpop.f32.mrb[196].mxu1  ;;  %5338 = vadd.xlane.f32.xlu1 %v5291_v21  ;;  %v11304_v31 = vadd.f32 %v5086_v46, %v12191_v11 }
 0x939   : > { %v6433_v33 = vpop.f32.mrb[196].mxu0  ;;  %v6322_v50 = vpop.f32.mrb[197].mxu1 }
 0x93a   : > { %v6323_v17 = vadd.f32 %v6322_v50, %v6321_v43  ;;  %v6434_v15 = vpop.f32.mrb[197].mxu0  ;;  %v6324_v38 = vpop.f32.mrb[198].mxu1  ;;  %5212 = vadd.xlane.f32.xlu0 %v11304_v31  ;;  %v11308_v27 = vadd.f32 %v5089_v20, %v12192_v45  ;;  %v5292_v41 = vmul.f32 %v11304_v31, %v11304_v31  ;;  %v12195_v43 = vld [vmem:[#allocation48_spill] sm:$0xff]  ;;  %v12196_v45 = vld [vmem:[#allocation49_spill] sm:$0xff] }
 0x93b   : > { %v6435_v14 = vadd.f32 %v6434_v15, %v6433_v33  ;;  %v6436_v2 = vpop.f32.mrb[198].mxu0  ;;  %v6325_v35 = vpop.f32.mrb[199].mxu1 }
 0x93c   : > { %v4933_v18 = vadd.f32 %v6323_v17, %v11168_v59  ;;  %v6326_v24 = vadd.f32 %v6325_v35, %v6324_v38  ;;  %v6437_v42 = vpop.f32.mrb[199].mxu0  ;;  %5214 = vadd.xlane.f32.xlu1 %v11308_v27  ;;  %v5293_v4 = vmul.f32 %v11308_v27, %v11308_v27 }
 0x93d   : > { %v6438_v62 = vadd.f32 %v6437_v42, %v6436_v2 }
 0x93e   : > { %v5094_v22 = vadd.f32 %v6435_v14, %v4933_v18  ;;  %v4936_v47 = vadd.f32 %v6326_v24, %v11168_v59  ;;  %5340 = vadd.xlane.f32.xlu0 %v5292_v41 }
 0x940   : > { %v5097_v10 = vadd.f32 %v6438_v62, %v4936_v47  ;;  %v6327_v26 = vpop.f32.mrb[200].mxu1  ;;  %5342 = vadd.xlane.f32.xlu1 %v5293_v4  ;;  %v11318_v52 = vadd.f32 %v5094_v22, %v12193_v12  ;;  %v12197_v12 = vld [vmem:[#allocation50_spill] sm:$0xff] }
 0x941   : > { %v6439_v53 = vpop.f32.mrb[200].mxu0  ;;  %v6328_v9 = vpop.f32.mrb[201].mxu1 }
 0x942   : > { %v6329_v1 = vadd.f32 %v6328_v9, %v6327_v26  ;;  %v6440_v0 = vpop.f32.mrb[201].mxu0  ;;  %v6330_v6 = vpop.f32.mrb[202].mxu1  ;;  %5216 = vadd.xlane.f32.xlu0 %v11318_v52  ;;  %v11322_v44 = vadd.f32 %v5097_v10, %v12194_v3  ;;  %v5294_v16 = vmul.f32 %v11318_v52, %v11318_v52  ;;  %v12198_v9 = vld [vmem:[#allocation51_spill] sm:$0xff] }
 0x943   : > { %v6441_v7 = vadd.f32 %v6440_v0, %v6439_v53  ;;  %v6442_v23 = vpop.f32.mrb[202].mxu0  ;;  %v6331_v37 = vpop.f32.mrb[203].mxu1 }
 0x944   : > { %v4941_v51 = vadd.f32 %v6329_v1, %v11168_v59  ;;  %v6332_v54 = vadd.f32 %v6331_v37, %v6330_v6  ;;  %v6443_v40 = vpop.f32.mrb[203].mxu0  ;;  %5218 = vadd.xlane.f32.xlu1 %v11322_v44  ;;  %v5295_v5 = vmul.f32 %v11322_v44, %v11322_v44 }
 0x945   : > { %v6444_v8 = vadd.f32 %v6443_v40, %v6442_v23 }
 0x946   : > { %v5102_v36 = vadd.f32 %v6441_v7, %v4941_v51  ;;  %v4944_v46 = vadd.f32 %v6332_v54, %v11168_v59  ;;  %5344 = vadd.xlane.f32.xlu0 %v5294_v16 }
 0x948   : > { %v5105_v21 = vadd.f32 %v6444_v8, %v4944_v46  ;;  %v6333_v20 = vpop.f32.mrb[204].mxu1  ;;  %5346 = vadd.xlane.f32.xlu1 %v5295_v5  ;;  %v11332_v11 = vadd.f32 %v5102_v36, %v12195_v43 }
 0x949   : > { %v6445_v33 = vpop.f32.mrb[204].mxu0  ;;  %v6334_v50 = vpop.f32.mrb[205].mxu1 }
 0x94a   : > { %v6335_v17 = vadd.f32 %v6334_v50, %v6333_v20  ;;  %v6446_v15 = vpop.f32.mrb[205].mxu0  ;;  %v6336_v38 = vpop.f32.mrb[206].mxu1  ;;  %5220 = vadd.xlane.f32.xlu0 %v11332_v11  ;;  %v11336_v14 = vadd.f32 %v5105_v21, %v12196_v45  ;;  %v5296_v62 = vmul.f32 %v11332_v11, %v11332_v11 }
 0x94b   : > { %v6447_v2 = vadd.f32 %v6446_v15, %v6445_v33  ;;  %v6448_v35 = vpop.f32.mrb[206].mxu0  ;;  %v6337_v18 = vpop.f32.mrb[207].mxu1 }
 0x94c   : > { %v4949_v24 = vadd.f32 %v6335_v17, %v11168_v59  ;;  %v6338_v42 = vadd.f32 %v6337_v18, %v6336_v38  ;;  %v6449_v41 = vpop.f32.mrb[207].mxu0  ;;  %5222 = vadd.xlane.f32.xlu1 %v11336_v14  ;;  %v5297_v10 = vmul.f32 %v11336_v14, %v11336_v14 }
 0x94d   : > { %v6450_v22 = vadd.f32 %v6449_v41, %v6448_v35 }
 0x94e   : > { %v5110_v47 = vadd.f32 %v6447_v2, %v4949_v24  ;;  %v4952_v4 = vadd.f32 %v6338_v42, %v11168_v59  ;;  %5348 = vadd.xlane.f32.xlu0 %v5296_v62  ;;  %v5598_v42 = vsub.s32 4, %v12164_v39 }
 0x950   : > { %v5113_v26 = vadd.f32 %v6450_v22, %v4952_v4  ;;  %5350 = vadd.xlane.f32.xlu1 %v5297_v10  ;;  %v11346_v53 = vadd.f32 %v5110_v47, %v12197_v12  ;;  %v11366_v12 = vrot.slane %v11163_v28, %v5598_v42 }
 0x952   : > { %5224 = vadd.xlane.f32.xlu0 %v11346_v53  ;;  %v11350_v1 = vadd.f32 %v5113_v26, %v12198_v9  ;;  %v5298_v0 = vmul.f32 %v11346_v53, %v11346_v53  ;;  %v5634_v9 = vsub.s32 5, %v12164_v39 }
 0x954   : > { %5226 = vadd.xlane.f32.xlu1 %v11350_v1  ;;  %v5299_v3 = vmul.f32 %v11350_v1, %v11350_v1 }
 0x956   : > { %v5181_v6 = vpop.xlane.xlu0 %5180  ;;  %5352 = vadd.xlane.f32.xlu0 %v5298_v0 }
 0x957   : > { %v5244_v7 = vmul.f32 0.0078125, %v5181_v6  ;;  %v5183_v23 = vpop.xlane.xlu1 %5182 }
 0x958   : > { %5354 = vadd.xlane.f32.xlu1 %v5299_v3  ;;  %v5245_v37 = vmul.f32 0.0078125, %v5183_v23 }
 0x959   : > { %v5404_v54 = vmul.f32 %v5244_v7, %v5244_v7  ;;  %v5468_v26 = vsub.f32 %v11193_v48, %v5244_v7 }
 0x95a   : > { %v5309_v51 = vpop.xlane.xlu0 %5308  ;;  %v5405_v8 = vmul.f32 %v5245_v37, %v5245_v37 }
 0x95b   : > { %v5372_v40 = vmul.f32 0.0078125, %v5309_v51  ;;  %v5311_v16 = vpop.xlane.xlu1 %5310 }
 0x95c   : > { %v5373_v46 = vmul.f32 0.0078125, %v5311_v16 }
 0x95d   : > { %v5436_v36 = vsub.f32 %v5372_v40, %v5404_v54  ;;  %v5469_v54 = vsub.f32 %v11199_v49, %v5245_v37 }
 0x95e   : > { %v5185_v5 = vpop.xlane.xlu0 %5184  ;;  %v5437_v20 = vsub.f32 %v5373_v46, %v5405_v8  ;;  %v11373_v46 = vrot.slane %v11163_v28, %v5634_v9 }
 0x95f   : > { %v5500_v21 = vadd.f32 1e-05, %v5436_v36  ;;  %v5246_v43 = vmul.f32 0.0078125, %v5185_v5  ;;  %v5187_v33 = vpop.xlane.xlu1 %5186 }
 0x960   : > { %v5501_v50 = vadd.f32 1e-05, %v5437_v20  ;;  %v11357_v17 = vmul.f32 0.0078125, %v5187_v33 }
 0x961   : > { %7402 = vrsqrt.f32 %v5500_v21  ;;  %v5406_v38 = vmul.f32 %v5246_v43, %v5246_v43  ;;  %v5470_v28 = vsub.f32 %v11208_v61, %v5246_v43 }
 0x962   : > { %v5313_v15 = vpop.xlane.xlu0 %5312  ;;  %7404 = vrsqrt.f32 %v5501_v50  ;;  %v5407_v35 = vmul.f32 %v11357_v17, %v11357_v17 }
 0x963   : > { %v5374_v45 = vmul.f32 0.0078125, %v5313_v15  ;;  %v5315_v2 = vpop.xlane.xlu1 %5314 }
 0x964   : > { %v5375_v24 = vmul.f32 0.0078125, %v5315_v2 }
 0x965   : > { %v5438_v18 = vsub.f32 %v5374_v45, %v5406_v38 }
 0x966   : > { %v5189_v41 = vpop.xlane.xlu0 %5188  ;;  %v5439_v22 = vsub.f32 %v5375_v24, %v5407_v35 }
 0x967   : > { %v5502_v62 = vadd.f32 1e-05, %v5438_v18  ;;  %v11362_v47 = vmul.f32 0.0078125, %v5189_v41  ;;  %v5191_v4 = vpop.xlane.xlu1 %5190 }
 0x968   : > { %v5503_v10 = vadd.f32 1e-05, %v5439_v22  ;;  %v5249_v0 = vmul.f32 0.0078125, %v5191_v4 }
 0x969   : > { %7406 = vrsqrt.f32 %v5502_v62  ;;  %v5408_v23 = vmul.f32 %v11362_v47, %v11362_v47  ;;  %v5471_v62 = vsub.f32 %v11211_v34, %v11357_v17  ;;  %v5472_v17 = vsub.f32 %v11220_v19, %v11362_v47 }
 0x96a   : > { %v5317_v6 = vpop.xlane.xlu0 %5316  ;;  %7408 = vrsqrt.f32 %v5503_v10  ;;  %v5409_v36 = vmul.f32 %v5249_v0, %v5249_v0 }
 0x96b   : > { %v7403_v3 = vpop.eup %7402  ;;  %v5376_v51 = vmul.f32 0.0078125, %v5317_v6  ;;  %v5319_v16 = vpop.xlane.xlu1 %5318 }
 0x96c   : > { %v5564_v40 = vmul.f32 %v7403_v3, %v5468_v26  ;;  %v7405_v8 = vpop.eup %7404  ;;  %v5377_v7 = vmul.f32 0.0078125, %v5319_v16 }
 0x96d   : > { %v5440_v48 = vsub.f32 %v5376_v51, %v5408_v23  ;;  %v5565_v5 = vmul.f32 %v7405_v8, %v5469_v54 }
 0x96e   : > { %v5600_v39 = vmul.f32 %v11366_v12, %v5564_v40  ;;  %v5193_v21 = vpop.xlane.xlu0 %5192  ;;  %v5441_v33 = vsub.f32 %v5377_v7, %v5409_v36  ;;  %v5473_v36 = vsub.f32 %v11223_v29, %v5249_v0 }
 0x96f   : > { %v5504_v20 = vadd.f32 1e-05, %v5440_v48  ;;  %v5250_v50 = vmul.f32 0.0078125, %v5193_v21  ;;  %v5601_v15 = vmul.f32 %v11366_v12, %v5565_v5  ;;  %v5195_v38 = vpop.xlane.xlu1 %5194 }
 0x970   : > { %v5505_v49 = vadd.f32 1e-05, %v5441_v33  ;;  %v11378_v37 = vadd.f32 %v11373_v46, %v5600_v39  ;;  %v5251_v2 = vmul.f32 0.0078125, %v5195_v38 }
 0x971   : > { %7410 = vrsqrt.f32 %v5504_v20  ;;  %v5637_v45 = vadd.f32 %v11373_v46, %v5601_v15  ;;  %v5410_v24 = vmul.f32 %v5250_v50, %v5250_v50  ;;  %v5474_v19 = vsub.f32 %v11234_v63, %v5250_v50 }
 0x972   : > { %v5321_v35 = vpop.xlane.xlu0 %5320  ;;  %7412 = vrsqrt.f32 %v5505_v49  ;;  %v5411_v26 = vmul.f32 %v5251_v2, %v5251_v2 }
 0x973   : > { %v7407_v18 = vpop.eup %7406  ;;  %v5378_v42 = vmul.f32 0.0078125, %v5321_v35  ;;  %v5668_v41 = vpack.c.bf16 %v5637_v45, %v11378_v37  ;;  %v5323_v4 = vpop.xlane.xlu1 %5322  ;;  %v5475_v45 = vsub.f32 %v11237_v58, %v5251_v2 }
 0x974   : > { %v5566_v22 = vmul.f32 %v7407_v18, %v5470_v28  ;;  %v7409_v10 = vpop.eup %7408  ;;  %v5379_v6 = vmul.f32 0.0078125, %v5323_v4 }
 0x975   : > { %v5442_v9 = vsub.f32 %v5378_v42, %v5410_v24  ;;  %5684 = vst [vmem:[#allocation2] sm:$0xff] %v5668_v41  ;;  %v5567_v43 = vmul.f32 %v7409_v10, %v5471_v62 }
 0x976   : > { %v5602_v61 = vmul.f32 %v11366_v12, %v5566_v22  ;;  %v5443_v23 = vsub.f32 %v5379_v6, %v5411_v26 }
 0x977   : > { %v5506_v3 = vadd.f32 1e-05, %v5442_v9  ;;  %v5603_v51 = vmul.f32 %v11366_v12, %v5567_v43 }
 0x978   : > { %v5507_v54 = vadd.f32 1e-05, %v5443_v23  ;;  %v5638_v40 = vadd.f32 %v11373_v46, %v5602_v61 }
 0x979   : > { %7414 = vrsqrt.f32 %v5506_v3  ;;  %v5639_v34 = vadd.f32 %v11373_v46, %v5603_v51 }
 0x97a   : > { %7416 = vrsqrt.f32 %v5507_v54 }
 0x97b   : > { %v7411_v16 = vpop.eup %7410  ;;  %v5669_v8 = vpack.c.bf16 %v5639_v34, %v5638_v40 }
 0x97c   : > { %v5568_v48 = vmul.f32 %v7411_v16, %v5472_v17  ;;  %v7413_v7 = vpop.eup %7412 }
 0x97d   : > { %5685 = vst [vmem:[#allocation2 + $0x8] sm:$0xff] %v5669_v8  ;;  %v5569_v5 = vmul.f32 %v7413_v7, %v5473_v36  ;;  %v5197_v20 = vpop.xlane.xlu0 %5196 }
 0x97e   : > { %v5604_v39 = vmul.f32 %v11366_v12, %v5568_v48  ;;  %v11397_v38 = vmul.f32 0.0078125, %v5197_v20 }
 0x97f   : > { %v5605_v21 = vmul.f32 %v11366_v12, %v5569_v5  ;;  %v5199_v49 = vpop.xlane.xlu1 %5198 }
 0x980   : > { %v5640_v33 = vadd.f32 %v11373_v46, %v5604_v39  ;;  %v11400_v24 = vmul.f32 0.0078125, %v5199_v49  ;;  %v5412_v9 = vmul.f32 %v11397_v38, %v11397_v38 }
 0x981   : > { %v5641_v15 = vadd.f32 %v11373_v46, %v5605_v21  ;;  %v5325_v42 = vpop.xlane.xlu0 %5324  ;;  %v12199_v21 = vld [vmem:[#allocation52_spill] sm:$0xff] }
 0x982   : > { %v5380_v63 = vmul.f32 0.0078125, %v5325_v42  ;;  %v5413_v51 = vmul.f32 %v11400_v24, %v11400_v24 }
 0x983   : > { %v7415_v47 = vpop.eup %7414  ;;  %v6339_v29 = vpop.f32.mrb[208].mxu1  ;;  %v5670_v0 = vpack.c.bf16 %v5641_v15, %v5640_v33 }
 0x984   : > { %v5570_v28 = vmul.f32 %v7415_v47, %v5474_v19  ;;  %v7417_v35 = vpop.eup %7416  ;;  %v6340_v18 = vpop.f32.mrb[209].mxu1  ;;  %v5444_v54 = vsub.f32 %v5380_v63, %v5412_v9 }
 0x985   : > { %v6451_v41 = vpop.f32.mrb[208].mxu0  ;;  %v6341_v62 = vadd.f32 %v6340_v18, %v6339_v29  ;;  %v6342_v22 = vpop.f32.mrb[210].mxu1  ;;  %5686 = vst [vmem:[#allocation2 + $0x10] sm:$0xff] %v5670_v0  ;;  %v5571_v4 = vmul.f32 %v7417_v35, %v5475_v45  ;;  %v12200_v0 = vld [vmem:[#allocation53_spill] sm:$0xff] }
 0x986   : > { %v6452_v50 = vpop.f32.mrb[209].mxu0  ;;  %v6343_v10 = vpop.f32.mrb[211].mxu1  ;;  %v5606_v26 = vmul.f32 %v11366_v12, %v5570_v28  ;;  %v5508_v48 = vadd.f32 1e-05, %v5444_v54  ;;  %v12202_v54 = vld [vmem:[#allocation55_spill] sm:$0xff] }
 0x987   : > { %v4957_v58 = vadd.f32 %v6341_v62, %v11168_v59  ;;  %v6453_v2 = vadd.f32 %v6452_v50, %v6451_v41  ;;  %v6454_v6 = vpop.f32.mrb[210].mxu0  ;;  %v6344_v61 = vadd.f32 %v6343_v10, %v6342_v22  ;;  %v5327_v43 = vpop.xlane.xlu1 %5326  ;;  %v5607_v23 = vmul.f32 %v11366_v12, %v5571_v4 }
 0x988   : > { %v6455_v3 = vpop.f32.mrb[211].mxu0  ;;  %v5381_v40 = vmul.f32 0.0078125, %v5327_v43  ;;  %v5642_v8 = vadd.f32 %v11373_v46, %v5606_v26  ;;  %7418 = vrsqrt.f32 %v5508_v48 }
 0x989   : > { %v5118_v34 = vadd.f32 %v6453_v2, %v4957_v58  ;;  %v4960_v17 = vadd.f32 %v6344_v61, %v11168_v59  ;;  %v6456_v16 = vadd.f32 %v6455_v3, %v6454_v6  ;;  %v5643_v36 = vadd.f32 %v11373_v46, %v5607_v23  ;;  %v12201_v2 = vld [vmem:[#allocation54_spill] sm:$0xff] }
 0x98a   : > { %v5445_v7 = vsub.f32 %v5381_v40, %v5413_v51  ;;  %v5476_v51 = vsub.f32 %v11248_v13, %v11397_v38  ;;  %v5477_v38 = vsub.f32 %v11252_v60, %v11400_v24  ;;  %v12203_v60 = vld [vmem:[#allocation56_spill] sm:$0xff] }
 0x98b   : > { %v5121_v39 = vadd.f32 %v6456_v16, %v4960_v17  ;;  %v6345_v5 = vpop.f32.mrb[212].mxu1  ;;  %v11413_v20 = vadd.f32 %v5118_v34, %v12199_v21  ;;  %v5671_v15 = vpack.c.bf16 %v5643_v36, %v5642_v8 }
 0x98c   : > { %v6346_v33 = vpop.f32.mrb[213].mxu1  ;;  %v5509_v19 = vadd.f32 1e-05, %v5445_v7  ;;  %v6457_v47 = vpop.f32.mrb[212].mxu0 }
 0x98d   : > { %v6347_v49 = vadd.f32 %v6346_v33, %v6345_v5  ;;  %v6348_v29 = vpop.f32.mrb[214].mxu1  ;;  %5228 = vadd.xlane.f32.xlu0 %v11413_v20  ;;  %v11417_v45 = vadd.f32 %v5121_v39, %v12200_v0  ;;  %v6458_v28 = vpop.f32.mrb[213].mxu0  ;;  %5687 = vst [vmem:[#allocation2 + $0x18] sm:$0xff] %v5671_v15  ;;  %v5300_v22 = vmul.f32 %v11413_v20, %v11413_v20 }
 0x98e   : > { %v6349_v35 = vpop.f32.mrb[215].mxu1  ;;  %7420 = vrsqrt.f32 %v5509_v19  ;;  %v6459_v42 = vadd.f32 %v6458_v28, %v6457_v47  ;;  %v6460_v41 = vpop.f32.mrb[214].mxu0 }
 0x98f   : > { %v4965_v18 = vadd.f32 %v6347_v49, %v11168_v59  ;;  %v6350_v62 = vadd.f32 %v6349_v35, %v6348_v29  ;;  %5230 = vadd.xlane.f32.xlu1 %v11417_v45  ;;  %v6461_v4 = vpop.f32.mrb[215].mxu0  ;;  %v5301_v26 = vmul.f32 %v11417_v45, %v11417_v45 }
 0x990   : > { %v6462_v10 = vadd.f32 %v6461_v4, %v6460_v41 }
 0x991   : > { %v5126_v63 = vadd.f32 %v6459_v42, %v4965_v18  ;;  %v4968_v50 = vadd.f32 %v6350_v62, %v11168_v59  ;;  %5356 = vadd.xlane.f32.xlu0 %v5300_v22 }
 0x992   : > { %v7419_v34 = vpop.eup %7418 }
 0x993   : > { %v5129_v9 = vadd.f32 %v6462_v10, %v4968_v50  ;;  %v6351_v58 = vpop.f32.mrb[216].mxu1  ;;  %5358 = vadd.xlane.f32.xlu1 %v5301_v26  ;;  %v11427_v6 = vadd.f32 %v5126_v63, %v12201_v2  ;;  %v5572_v5 = vmul.f32 %v7419_v34, %v5476_v51  ;;  %v5201_v21 = vpop.xlane.xlu0 %5200  ;;  %v12204_v2 = vld [vmem:[#allocation57_spill] sm:$0xff] }
 0x994   : > { %v6352_v61 = vpop.f32.mrb[217].mxu1  ;;  %v11441_v15 = vmul.f32 0.0078125, %v5201_v21 }
 0x995   : > { %v6463_v43 = vpop.f32.mrb[216].mxu0  ;;  %v6353_v3 = vadd.f32 %v6352_v61, %v6351_v58  ;;  %v6354_v23 = vpop.f32.mrb[218].mxu1  ;;  %5232 = vadd.xlane.f32.xlu0 %v11427_v6  ;;  %v11433_v40 = vadd.f32 %v5129_v9, %v12202_v54  ;;  %v5302_v8 = vmul.f32 %v11427_v6, %v11427_v6  ;;  %v5608_v28 = vmul.f32 %v11366_v12, %v5572_v5 }
 0x996   : > { %v6464_v17 = vpop.f32.mrb[217].mxu0  ;;  %v6355_v16 = vpop.f32.mrb[219].mxu1  ;;  %v5414_v63 = vmul.f32 %v11441_v15, %v11441_v15 }
 0x997   : > { %v4973_v36 = vadd.f32 %v6353_v3, %v11168_v59  ;;  %v6465_v48 = vadd.f32 %v6464_v17, %v6463_v43  ;;  %v6466_v7 = vpop.f32.mrb[218].mxu0  ;;  %v6356_v39 = vadd.f32 %v6355_v16, %v6354_v23  ;;  %5234 = vadd.xlane.f32.xlu1 %v11433_v40  ;;  %v5203_v19 = vpop.xlane.xlu1 %5202  ;;  %v5303_v0 = vmul.f32 %v11433_v40, %v11433_v40 }
 0x998   : > { %v7421_v33 = vpop.eup %7420  ;;  %v6467_v13 = vpop.f32.mrb[219].mxu0  ;;  %v11447_v18 = vmul.f32 0.0078125, %v5203_v19  ;;  %v5644_v3 = vadd.f32 %v11373_v46, %v5608_v28 }
 0x999   : > { %v5134_v47 = vadd.f32 %v6465_v48, %v4973_v36  ;;  %v4976_v49 = vadd.f32 %v6356_v39, %v11168_v59  ;;  %v6468_v29 = vadd.f32 %v6467_v13, %v6466_v7  ;;  %5360 = vadd.xlane.f32.xlu0 %v5302_v8  ;;  %v5573_v35 = vmul.f32 %v7421_v33, %v5477_v38  ;;  %v5329_v62 = vpop.xlane.xlu0 %5328 }
 0x99a   : > { %v5382_v50 = vmul.f32 0.0078125, %v5329_v62  ;;  %v5415_v34 = vmul.f32 %v11447_v18, %v11447_v18  ;;  %v5478_v62 = vsub.f32 %v11262_v30, %v11441_v15 }
 0x99b   : > { %v5137_v42 = vadd.f32 %v6468_v29, %v4976_v49  ;;  %5362 = vadd.xlane.f32.xlu1 %v5303_v0  ;;  %v6357_v41 = vpop.f32.mrb[220].mxu1  ;;  %v11450_v24 = vadd.f32 %v5134_v47, %v12203_v60  ;;  %v5609_v22 = vmul.f32 %v11366_v12, %v5573_v35  ;;  %v5331_v10 = vpop.xlane.xlu1 %5330  ;;  %v12205_v0 = vld [vmem:[#allocation58_spill] sm:$0xff]  ;;  %v12206_v35 = vld [vmem:[#allocation59_spill] sm:$0xff] }
 0x99c   : > { %v6358_v4 = vpop.f32.mrb[221].mxu1  ;;  %v5383_v43 = vmul.f32 0.0078125, %v5331_v10  ;;  %v5446_v17 = vsub.f32 %v5382_v50, %v5414_v63  ;;  %v5479_v50 = vsub.f32 %v11266_v57, %v11447_v18 }
 0x99d   : > { %v6469_v26 = vpop.f32.mrb[220].mxu0  ;;  %v6359_v9 = vadd.f32 %v6358_v4, %v6357_v41  ;;  %5236 = vadd.xlane.f32.xlu0 %v11450_v24  ;;  %v6360_v58 = vpop.f32.mrb[222].mxu1  ;;  %v11457_v61 = vadd.f32 %v5137_v42, %v12204_v2  ;;  %v5645_v23 = vadd.f32 %v11373_v46, %v5609_v22  ;;  %v5304_v7 = vmul.f32 %v11450_v24, %v11450_v24 }
 0x99e   : > { %v6470_v51 = vpop.f32.mrb[221].mxu0  ;;  %v6361_v54 = vpop.f32.mrb[223].mxu1  ;;  %v5510_v21 = vadd.f32 1e-05, %v5446_v17  ;;  %v5447_v33 = vsub.f32 %v5383_v43, %v5415_v34 }
 0x99f   : > { %v4981_v16 = vadd.f32 %v6359_v9, %v11168_v59  ;;  %v6471_v8 = vadd.f32 %v6470_v51, %v6469_v26  ;;  %v6472_v36 = vpop.f32.mrb[222].mxu0  ;;  %v6362_v48 = vadd.f32 %v6361_v54, %v6360_v58  ;;  %5238 = vadd.xlane.f32.xlu1 %v11457_v61  ;;  %v5672_v39 = vpack.c.bf16 %v5645_v23, %v5644_v3 }
 0x9a0   : > { %v6473_v5 = vpop.f32.mrb[223].mxu0  ;;  %v5305_v47 = vmul.f32 %v11457_v61, %v11457_v61  ;;  %7422 = vrsqrt.f32 %v5510_v21  ;;  %v5511_v49 = vadd.f32 1e-05, %v5447_v33 }
 0x9a1   : > { %v5142_v13 = vadd.f32 %v6471_v8, %v4981_v16  ;;  %v4984_v38 = vadd.f32 %v6362_v48, %v11168_v59  ;;  %v6474_v19 = vadd.f32 %v6473_v5, %v6472_v36  ;;  %5364 = vadd.xlane.f32.xlu0 %v5304_v7  ;;  %5688 = vst [vmem:[#allocation2 + $0x20] sm:$0xff] %v5672_v39 }
 0x9a2   : > { %7424 = vrsqrt.f32 %v5511_v49 }
 0x9a3   : > { %v5145_v29 = vadd.f32 %v6474_v19, %v4984_v38  ;;  %5366 = vadd.xlane.f32.xlu1 %v5305_v47  ;;  %v11471_v28 = vadd.f32 %v5142_v13, %v12205_v0 }
 0x9a5   : > { %5240 = vadd.xlane.f32.xlu0 %v11471_v28  ;;  %v11475_v42 = vadd.f32 %v5145_v29, %v12206_v35  ;;  %v5306_v59 = vmul.f32 %v11471_v28, %v11471_v28 }
 0x9a7   : > { %5242 = vadd.xlane.f32.xlu1 %v11475_v42  ;;  %v5307_v41 = vmul.f32 %v11475_v42, %v11475_v42 }
 0x9a9   : > { %5368 = vadd.xlane.f32.xlu0 %v5306_v59  ;;  %v5205_v60 = vpop.xlane.xlu0 %5204 }
 0x9aa   : > { %v7423_v22 = vpop.eup %7422  ;;  %v5256_v4 = vmul.f32 0.0078125, %v5205_v60 }
 0x9ab   : > { %5370 = vadd.xlane.f32.xlu1 %v5307_v41  ;;  %v5207_v63 = vpop.xlane.xlu1 %5206  ;;  %v5574_v10 = vmul.f32 %v7423_v22, %v5478_v62 }
 0x9ac   : > { %v5257_v26 = vmul.f32 0.0078125, %v5207_v63  ;;  %v7425_v9 = vpop.eup %7424  ;;  %v5416_v3 = vmul.f32 %v5256_v4, %v5256_v4  ;;  %v5480_v48 = vsub.f32 %v11276_v56, %v5256_v4 }
 0x9ad   : > { %v5333_v58 = vpop.xlane.xlu0 %5332  ;;  %v5610_v2 = vmul.f32 %v11366_v12, %v5574_v10  ;;  %v5575_v43 = vmul.f32 %v7425_v9, %v5479_v50 }
 0x9ae   : > { %v5384_v23 = vmul.f32 0.0078125, %v5333_v58  ;;  %v5417_v30 = vmul.f32 %v5257_v26, %v5257_v26  ;;  %v5481_v5 = vsub.f32 %v11280_v32, %v5257_v26 }
 0x9af   : > { %v5335_v51 = vpop.xlane.xlu1 %5334  ;;  %v5611_v54 = vmul.f32 %v11366_v12, %v5575_v43  ;;  %v5646_v17 = vadd.f32 %v11373_v46, %v5610_v2 }
 0x9b0   : > { %v5385_v15 = vmul.f32 0.0078125, %v5335_v51  ;;  %v5448_v34 = vsub.f32 %v5384_v23, %v5416_v3 }
 0x9b1   : > { %v5647_v16 = vadd.f32 %v11373_v46, %v5611_v54 }
 0x9b2   : > { %v5449_v57 = vsub.f32 %v5385_v15, %v5417_v30  ;;  %v5512_v18 = vadd.f32 1e-05, %v5448_v34 }
 0x9b3   : > { %v5673_v8 = vpack.c.bf16 %v5647_v16, %v5646_v17 }
 0x9b4   : > { %v5513_v36 = vadd.f32 1e-05, %v5449_v57  ;;  %7426 = vrsqrt.f32 %v5512_v18 }
 0x9b5   : > { %5689 = vst [vmem:[#allocation2 + $0x28] sm:$0xff] %v5673_v8 }
 0x9b6   : > { %7428 = vrsqrt.f32 %v5513_v36 }
 0x9be   : > { %v7427_v39 = vpop.eup %7426 }
 0x9bf   : > { %v5209_v7 = vpop.xlane.xlu0 %5208  ;;  %v5576_v13 = vmul.f32 %v7427_v39, %v5480_v48 }
 0x9c0   : > { %v5258_v21 = vmul.f32 0.0078125, %v5209_v7  ;;  %v7429_v33 = vpop.eup %7428 }
 0x9c1   : > { %v5211_v38 = vpop.xlane.xlu1 %5210  ;;  %v5577_v19 = vmul.f32 %v7429_v33, %v5481_v5  ;;  %v5612_v49 = vmul.f32 %v11366_v12, %v5576_v13 }
 0x9c2   : > { %v5259_v47 = vmul.f32 0.0078125, %v5211_v38  ;;  %v5418_v35 = vmul.f32 %v5258_v21, %v5258_v21  ;;  %v5482_v36 = vsub.f32 %v11290_v55, %v5258_v21 }
 0x9c3   : > { %v5337_v29 = vpop.xlane.xlu0 %5336  ;;  %v5613_v0 = vmul.f32 %v11366_v12, %v5577_v19  ;;  %v5648_v56 = vadd.f32 %v11373_v46, %v5612_v49 }
 0x9c4   : > { %v5386_v59 = vmul.f32 0.0078125, %v5337_v29  ;;  %v5419_v41 = vmul.f32 %v5259_v47, %v5259_v47  ;;  %v5483_v13 = vsub.f32 %v11294_v25, %v5259_v47 }
 0x9c5   : > { %v5339_v60 = vpop.xlane.xlu1 %5338  ;;  %v5649_v62 = vadd.f32 %v11373_v46, %v5613_v0 }
 0x9c6   : > { %v5450_v32 = vsub.f32 %v5386_v59, %v5418_v35  ;;  %v5387_v22 = vmul.f32 0.0078125, %v5339_v60 }
 0x9c7   : > { %v5213_v4 = vpop.xlane.xlu0 %5212  ;;  %v5674_v63 = vpack.c.bf16 %v5649_v62, %v5648_v56 }
 0x9c8   : > { %v5514_v50 = vadd.f32 1e-05, %v5450_v32  ;;  %v5451_v10 = vsub.f32 %v5387_v22, %v5419_v41  ;;  %v5260_v26 = vmul.f32 0.0078125, %v5213_v4 }
 0x9c9   : > { %v5215_v9 = vpop.xlane.xlu1 %5214  ;;  %5690 = vst [vmem:[#allocation2 + $0x30] sm:$0xff] %v5674_v63 }
 0x9ca   : > { %7430 = vrsqrt.f32 %v5514_v50  ;;  %v5515_v58 = vadd.f32 1e-05, %v5451_v10  ;;  %v5261_v2 = vmul.f32 0.0078125, %v5215_v9  ;;  %v5420_v3 = vmul.f32 %v5260_v26, %v5260_v26 }
 0x9cb   : > { %v5341_v43 = vpop.xlane.xlu0 %5340  ;;  %v5484_v4 = vsub.f32 %v11304_v31, %v5260_v26 }
 0x9cc   : > { %7432 = vrsqrt.f32 %v5515_v58  ;;  %v5388_v23 = vmul.f32 0.0078125, %v5341_v43  ;;  %v5421_v54 = vmul.f32 %v5261_v2, %v5261_v2 }
 0x9cd   : > { %v5343_v51 = vpop.xlane.xlu1 %5342 }
 0x9ce   : > { %v5452_v30 = vsub.f32 %v5388_v23, %v5420_v3  ;;  %v5389_v15 = vmul.f32 0.0078125, %v5343_v51  ;;  %v5485_v3 = vsub.f32 %v11308_v27, %v5261_v2 }
 0x9cf   : > { %v5217_v34 = vpop.xlane.xlu0 %5216 }
 0x9d0   : > { %v5516_v17 = vadd.f32 1e-05, %v5452_v30  ;;  %v5453_v16 = vsub.f32 %v5389_v15, %v5421_v54  ;;  %v11496_v57 = vmul.f32 0.0078125, %v5217_v34 }
 0x9d1   : > { %v5219_v18 = vpop.xlane.xlu1 %5218 }
 0x9d2   : > { %7434 = vrsqrt.f32 %v5516_v17  ;;  %v5517_v8 = vadd.f32 1e-05, %v5453_v16  ;;  %v11499_v48 = vmul.f32 0.0078125, %v5219_v18  ;;  %v5422_v5 = vmul.f32 %v11496_v57, %v11496_v57 }
 0x9d3   : > { %v5345_v7 = vpop.xlane.xlu0 %5344 }
 0x9d4   : > { %v7431_v39 = vpop.eup %7430  ;;  %7436 = vrsqrt.f32 %v5517_v8  ;;  %v5390_v33 = vmul.f32 0.0078125, %v5345_v7  ;;  %v5423_v29 = vmul.f32 %v11499_v48, %v11499_v48 }
 0x9d5   : > { %v5578_v38 = vmul.f32 %v7431_v39, %v5482_v36  ;;  %v5347_v19 = vpop.xlane.xlu1 %5346 }
 0x9d6   : > { %v7433_v49 = vpop.eup %7432  ;;  %v5454_v0 = vsub.f32 %v5390_v33, %v5422_v5  ;;  %v5391_v35 = vmul.f32 0.0078125, %v5347_v19  ;;  %v5486_v5 = vsub.f32 %v11318_v52, %v11496_v57 }
 0x9d7   : > { %v5614_v55 = vmul.f32 %v11366_v12, %v5578_v38  ;;  %v5579_v21 = vmul.f32 %v7433_v49, %v5483_v13  ;;  %v5221_v59 = vpop.xlane.xlu0 %5220 }
 0x9d8   : > { %v5518_v41 = vadd.f32 1e-05, %v5454_v0  ;;  %v5455_v60 = vsub.f32 %v5391_v35, %v5423_v29  ;;  %v11507_v56 = vmul.f32 0.0078125, %v5221_v59  ;;  %v5487_v0 = vsub.f32 %v11322_v44, %v11499_v48 }
 0x9d9   : > { %v5615_v62 = vmul.f32 %v11366_v12, %v5579_v21  ;;  %v5223_v32 = vpop.xlane.xlu1 %5222  ;;  %v5650_v47 = vadd.f32 %v11373_v46, %v5614_v55 }
 0x9da   : > { %7438 = vrsqrt.f32 %v5518_v41  ;;  %v5519_v25 = vadd.f32 1e-05, %v5455_v60  ;;  %v5265_v63 = vmul.f32 0.0078125, %v5223_v32  ;;  %v5424_v9 = vmul.f32 %v11507_v56, %v11507_v56 }
 0x9db   : > { %v5651_v22 = vadd.f32 %v11373_v46, %v5615_v62  ;;  %v5349_v50 = vpop.xlane.xlu0 %5348  ;;  %v5488_v48 = vsub.f32 %v11332_v11, %v11507_v56 }
 0x9dc   : > { %v7435_v10 = vpop.eup %7434  ;;  %7440 = vrsqrt.f32 %v5519_v25  ;;  %v5392_v58 = vmul.f32 0.0078125, %v5349_v50  ;;  %v5425_v30 = vmul.f32 %v5265_v63, %v5265_v63 }
 0x9dd   : > { %v5675_v43 = vpack.c.bf16 %v5651_v22, %v5650_v47  ;;  %v5580_v23 = vmul.f32 %v7435_v10, %v5484_v4  ;;  %v5351_v51 = vpop.xlane.xlu1 %5350  ;;  %v5489_v10 = vsub.f32 %v11336_v14, %v5265_v63 }
 0x9de   : > { %v7437_v54 = vpop.eup %7436  ;;  %v5456_v15 = vsub.f32 %v5392_v58, %v5424_v9  ;;  %v5393_v34 = vmul.f32 0.0078125, %v5351_v51 }
 0x9df   : > { %5691 = vst [vmem:[#allocation2 + $0x38] sm:$0xff] %v5675_v43  ;;  %v5616_v31 = vmul.f32 %v11366_v12, %v5580_v23  ;;  %v5581_v26 = vmul.f32 %v7437_v54, %v5485_v3  ;;  %v5225_v17 = vpop.xlane.xlu0 %5224 }
 0x9e0   : > { %v5520_v16 = vadd.f32 1e-05, %v5456_v15  ;;  %v5457_v18 = vsub.f32 %v5393_v34, %v5425_v30  ;;  %v5266_v8 = vmul.f32 0.0078125, %v5225_v17 }
 0x9e1   : > { %v5617_v36 = vmul.f32 %v11366_v12, %v5581_v26  ;;  %v5227_v7 = vpop.xlane.xlu1 %5226  ;;  %v11519_v27 = vadd.f32 %v11373_v46, %v5616_v31 }
 0x9e2   : > { %7442 = vrsqrt.f32 %v5520_v16  ;;  %v5521_v39 = vadd.f32 1e-05, %v5457_v18  ;;  %v5267_v33 = vmul.f32 0.0078125, %v5227_v7  ;;  %v5426_v19 = vmul.f32 %v5266_v8, %v5266_v8 }
 0x9e3   : > { %v5653_v2 = vadd.f32 %v11373_v46, %v5617_v36  ;;  %v5353_v13 = vpop.xlane.xlu0 %5352  ;;  %v5490_v30 = vsub.f32 %v11346_v53, %v5266_v8 }
 0x9e4   : > { %v7439_v38 = vpop.eup %7438  ;;  %7444 = vrsqrt.f32 %v5521_v39  ;;  %v5394_v49 = vmul.f32 0.0078125, %v5353_v13  ;;  %v5427_v59 = vmul.f32 %v5267_v33, %v5267_v33  ;;  %v5491_v15 = vsub.f32 %v11350_v1, %v5267_v33 }
 0x9e5   : > { %v5676_v29 = vpack.c.bf16 %v5653_v2, %v11519_v27  ;;  %v5582_v35 = vmul.f32 %v7439_v38, %v5486_v5  ;;  %v5355_v55 = vpop.xlane.xlu1 %5354 }
 0x9e6   : > { %v7441_v21 = vpop.eup %7440  ;;  %v5458_v41 = vsub.f32 %v5394_v49, %v5426_v19  ;;  %v5395_v60 = vmul.f32 0.0078125, %v5355_v55 }
 0x9e7   : > { %5692 = vst [vmem:[#allocation2 + $0x40] sm:$0xff] %v5676_v29  ;;  %v5618_v52 = vmul.f32 %v11366_v12, %v5582_v35  ;;  %v5583_v57 = vmul.f32 %v7441_v21, %v5487_v0 }
 0x9e8   : > { %v5522_v62 = vadd.f32 1e-05, %v5458_v41  ;;  %v5459_v32 = vsub.f32 %v5395_v60, %v5427_v59 }
 0x9e9   : > { %v5619_v25 = vmul.f32 %v11366_v12, %v5583_v57  ;;  %v5654_v22 = vadd.f32 %v11373_v46, %v5618_v52 }
 0x9ea   : > { %7446 = vrsqrt.f32 %v5522_v62  ;;  %v5523_v47 = vadd.f32 1e-05, %v5459_v32 }
 0x9eb   : > { %v5655_v44 = vadd.f32 %v11373_v46, %v5619_v25 }
 0x9ec   : > { %v7443_v4 = vpop.eup %7442  ;;  %7448 = vrsqrt.f32 %v5523_v47 }
 0x9ed   : > { %v5677_v50 = vpack.c.bf16 %v5655_v44, %v5654_v22  ;;  %v5584_v9 = vmul.f32 %v7443_v4, %v5488_v48 }
 0x9ee   : > { %v7445_v58 = vpop.eup %7444 }
 0x9ef   : > { %5693 = vst [vmem:[#allocation2 + $0x48] sm:$0xff] %v5677_v50  ;;  %v5620_v43 = vmul.f32 %v11366_v12, %v5584_v9  ;;  %v5585_v3 = vmul.f32 %v7445_v58, %v5489_v10 }
 0x9f1   : > { %v5621_v23 = vmul.f32 %v11366_v12, %v5585_v3  ;;  %v5656_v51 = vadd.f32 %v11373_v46, %v5620_v43 }
 0x9f3   : > { %v5657_v54 = vadd.f32 %v11373_v46, %v5621_v23 }
 0x9f4   : > { %v7447_v11 = vpop.eup %7446 }
 0x9f5   : > { %v5678_v56 = vpack.c.bf16 %v5657_v54, %v5656_v51  ;;  %v5586_v34 = vmul.f32 %v7447_v11, %v5490_v30 }
 0x9f6   : > { %v7449_v14 = vpop.eup %7448 }
 0x9f7   : > { %5694 = vst [vmem:[#allocation2 + $0x50] sm:$0xff] %v5678_v56  ;;  %v5622_v63 = vmul.f32 %v11366_v12, %v5586_v34  ;;  %v5587_v31 = vmul.f32 %v7449_v14, %v5491_v15 }
 0x9f9   : > { %v5623_v26 = vmul.f32 %v11366_v12, %v5587_v31  ;;  %v5658_v17 = vadd.f32 %v11373_v46, %v5622_v63 }
 0x9fb   : > { %v5659_v16 = vadd.f32 %v11373_v46, %v5623_v26 }
 0x9fd   : > { %v5679_v18 = vpack.c.bf16 %v5659_v16, %v5658_v17 }
 0x9ff   : > { %5695 = vst [vmem:[#allocation2 + $0x58] sm:$0xff] %v5679_v18 }
 0xa1a   : > { %v5229_v36 = vpop.xlane.xlu0 %5228 }
 0xa1b   : > { %v5268_v53 = vmul.f32 0.0078125, %v5229_v36 }
 0xa1c   : > { %v5231_v8 = vpop.xlane.xlu1 %5230 }
 0xa1d   : > { %v5269_v7 = vmul.f32 0.0078125, %v5231_v8  ;;  %v5428_v1 = vmul.f32 %v5268_v53, %v5268_v53  ;;  %v5492_v50 = vsub.f32 %v11413_v20, %v5268_v53 }
 0xa1e   : > { %v5357_v39 = vpop.xlane.xlu0 %5356 }
 0xa1f   : > { %v5396_v2 = vmul.f32 0.0078125, %v5357_v39  ;;  %v5429_v33 = vmul.f32 %v5269_v7, %v5269_v7  ;;  %v5493_v23 = vsub.f32 %v11417_v45, %v5269_v7 }
 0xa20   : > { %v5359_v5 = vpop.xlane.xlu1 %5358 }
 0xa21   : > { %v5460_v13 = vsub.f32 %v5396_v2, %v5428_v1  ;;  %v5397_v38 = vmul.f32 0.0078125, %v5359_v5 }
 0xa22   : > { %v5233_v19 = vpop.xlane.xlu0 %5232 }
 0xa23   : > { %v5524_v49 = vadd.f32 1e-05, %v5460_v13  ;;  %v5461_v29 = vsub.f32 %v5397_v38, %v5429_v33  ;;  %v5270_v0 = vmul.f32 0.0078125, %v5233_v19 }
 0xa24   : > { %v5235_v35 = vpop.xlane.xlu1 %5234 }
 0xa25   : > { %7450 = vrsqrt.f32 %v5524_v49  ;;  %v5525_v55 = vadd.f32 1e-05, %v5461_v29  ;;  %v5271_v21 = vmul.f32 0.0078125, %v5235_v35  ;;  %v5430_v41 = vmul.f32 %v5270_v0, %v5270_v0 }
 0xa26   : > { %v5361_v59 = vpop.xlane.xlu0 %5360  ;;  %v5494_v53 = vsub.f32 %v11427_v6, %v5270_v0 }
 0xa27   : > { %7452 = vrsqrt.f32 %v5525_v55  ;;  %v5398_v60 = vmul.f32 0.0078125, %v5361_v59  ;;  %v5431_v57 = vmul.f32 %v5271_v21, %v5271_v21  ;;  %v5495_v33 = vsub.f32 %v11433_v40, %v5271_v21 }
 0xa28   : > { %v5363_v52 = vpop.xlane.xlu1 %5362 }
 0xa29   : > { %v5462_v62 = vsub.f32 %v5398_v60, %v5430_v41  ;;  %v5399_v32 = vmul.f32 0.0078125, %v5363_v52 }
 0xa2a   : > { %v5237_v25 = vpop.xlane.xlu0 %5236 }
 0xa2b   : > { %v5526_v47 = vadd.f32 1e-05, %v5462_v62  ;;  %v5463_v22 = vsub.f32 %v5399_v32, %v5431_v57  ;;  %v5272_v44 = vmul.f32 0.0078125, %v5237_v25 }
 0xa2c   : > { %v5239_v48 = vpop.xlane.xlu1 %5238 }
 0xa2d   : > { %7454 = vrsqrt.f32 %v5526_v47  ;;  %v5527_v4 = vadd.f32 1e-05, %v5463_v22  ;;  %v5273_v10 = vmul.f32 0.0078125, %v5239_v48  ;;  %v5432_v43 = vmul.f32 %v5272_v44, %v5272_v44 }
 0xa2e   : > { %v5365_v9 = vpop.xlane.xlu0 %5364  ;;  %v5496_v21 = vsub.f32 %v11450_v24, %v5272_v44 }
 0xa2f   : > { %v7451_v58 = vpop.eup %7450  ;;  %7456 = vrsqrt.f32 %v5527_v4  ;;  %v5400_v3 = vmul.f32 0.0078125, %v5365_v9  ;;  %v5433_v11 = vmul.f32 %v5273_v10, %v5273_v10  ;;  %v5497_v32 = vsub.f32 %v11457_v61, %v5273_v10 }
 0xa30   : > { %v5588_v51 = vmul.f32 %v7451_v58, %v5492_v50  ;;  %v5367_v54 = vpop.xlane.xlu1 %5366 }
 0xa31   : > { %v7453_v30 = vpop.eup %7452  ;;  %v5464_v56 = vsub.f32 %v5400_v3, %v5432_v43  ;;  %v5401_v15 = vmul.f32 0.0078125, %v5367_v54 }
 0xa32   : > { %v5624_v34 = vmul.f32 %v11366_v12, %v5588_v51  ;;  %v5589_v14 = vmul.f32 %v7453_v30, %v5493_v23  ;;  %v5241_v63 = vpop.xlane.xlu0 %5240 }
 0xa33   : > { %v5528_v31 = vadd.f32 1e-05, %v5464_v56  ;;  %v5465_v20 = vsub.f32 %v5401_v15, %v5433_v11  ;;  %v5274_v26 = vmul.f32 0.0078125, %v5241_v63  ;;  %v7760_v56 = vmov (!%p6121_p12), 0.0   ;;  %v7485_v15 = vld [vmem:[#allocation12 + $0x10] sm:$0xff] (!%p6121_p12)  }
 0xa34   : > { %v5625_v17 = vmul.f32 %v11366_v12, %v5589_v14  ;;  %v5243_v16 = vpop.xlane.xlu1 %5242  ;;  %v5660_v45 = vadd.f32 %v11373_v46, %v5624_v34  ;;  %6708 = vmatprep.subr.bf16.mxu0 (!%p6121_p12), %v7760_v56  ;;  %6724 = vmatprep.mubr.msk.bf16.mxu0 (!%p6121_p12), %vm7761_vm0, %v7760_v56  ;;  %v5705_v34 = vpack.c.bf16 (!%p6121_p12), %v11519_v27, %v11519_v27  ;;  %v7488_v14 = vld [vmem:[#allocation12 + $0x28] sm:$0xff] (!%p6121_p12)   ;;  %v6122_v27 = vld [vmem:[%s12207_s13] ss:$0 sm:$0xff] (!%p6121_p12) }
 0xa35   : > { %7458 = vrsqrt.f32 %v5528_v31  ;;  %v5529_v18 = vadd.f32 1e-05, %v5465_v20  ;;  %v5275_v8 = vmul.f32 0.0078125, %v5243_v16  ;;  %v5434_v1 = vmul.f32 %v5274_v26, %v5274_v26  ;;  %v7489_v20 = vld [vmem:[#allocation12 + $0x30] sm:$0xff] (!%p6121_p12)   ;;  %v7490_v16 = vld [vmem:[#allocation12 + $0x38] sm:$0xff] (!%p6121_p12)  }
 0xa36   : > { %v5661_v36 = vadd.f32 %v11373_v46, %v5625_v17  ;;  %v5369_v7 = vpop.xlane.xlu0 %5368  ;;  %v5498_v58 = vsub.f32 %v11471_v28, %v5274_v26  ;;  %v7483_v28 = vld [vmem:[#allocation12] sm:$0xff] (!%p6121_p12)   ;;  %v5704_v63 = vpack.c.bf16 (!%p6121_p12), %v11378_v37, %v11378_v37  ;;  %v5732_v31 = vunpack.c.l.b16 (!%p6121_p12), %v5705_v34 }
 0xa37   : > { %v7455_v39 = vpop.eup %7454  ;;  %7460 = vrsqrt.f32 %v5529_v18  ;;  %v5402_v2 = vmul.f32 0.0078125, %v5369_v7  ;;  %v5435_v49 = vmul.f32 %v5275_v8, %v5275_v8  ;;  %v5499_v43 = vsub.f32 %v11475_v42, %v5275_v8  ;;  %6709 = vmatpush3.bf16.msra.mxu0 (!%p6121_p12), %v7483_v28  ;;  %v7484_v42 = vld [vmem:[#allocation12 + $0x8] sm:$0xff] (!%p6121_p12)  }
 0xa38   : > { %v5680_v5 = vpack.c.bf16 %v5661_v36, %v5660_v45  ;;  %v5590_v13 = vmul.f32 %v7455_v39, %v5494_v53  ;;  %v5371_v38 = vpop.xlane.xlu1 %5370  ;;  %6710 = vmatprep.subr.bf16.mxu0 (!%p6121_p12), %v7760_v56  ;;  %v5731_v26 = vunpack.c.l.b16 (!%p6121_p12), %v5704_v63  ;;  %v5733_v17 = vrot.slane (!%p6121_p12), %v5732_v31, 7 }
 0xa39   : > { %v7457_v19 = vpop.eup %7456  ;;  %v5466_v29 = vsub.f32 %v5402_v2, %v5434_v1  ;;  %v5403_v35 = vmul.f32 0.0078125, %v5371_v38 }
 0xa3a   : > { %5696 = vst [vmem:[#allocation2 + $0x60] sm:$0xff] %v5680_v5  ;;  %v5626_v55 = vmul.f32 %v11366_v12, %v5590_v13  ;;  %v5591_v59 = vmul.f32 %v7457_v19, %v5495_v33  ;;  %v5735_v18 = vsel (!%p6121_p12), %vm5734_vm1, %v5733_v17, %v5731_v26 }
 0xa3b   : > { %v5530_v6 = vadd.f32 1e-05, %v5466_v29  ;;  %v5467_v0 = vsub.f32 %v5403_v35, %v5435_v49  ;;  %6711 = vmatpush3.bf16.msra.mxu0 (!%p6121_p12), %v7484_v42  ;;  %v5736_v45 = vpack.c.b16 (!%p6121_p12), %v5735_v18, %v5735_v18 }
 0xa3c   : > { %v5627_v41 = vmul.f32 %v11366_v12, %v5591_v59  ;;  %v5662_v52 = vadd.f32 %v11373_v46, %v5626_v55  ;;  %6712 = vmatprep.subr.bf16.mxu0 (!%p6121_p12), %v7760_v56 }
 0xa3d   : > { %7462 = vrsqrt.f32 %v5530_v6  ;;  %v5531_v60 = vadd.f32 1e-05, %v5467_v0 }
 0xa3e   : > { %v5663_v40 = vadd.f32 %v11373_v46, %v5627_v41 }
 0xa3f   : > { %v7459_v57 = vpop.eup %7458  ;;  %7464 = vrsqrt.f32 %v5531_v60  ;;  %6713 = vmatpush3.bf16.msra.mxu0 (!%p6121_p12), %v7485_v15 }
 0xa40   : > { %v5681_v62 = vpack.c.bf16 %v5663_v40, %v5662_v52  ;;  %v5592_v25 = vmul.f32 %v7459_v57, %v5496_v21  ;;  %6714 = vmatprep.subr.bf16.mxu0 (!%p6121_p12), %v7760_v56 }
 0xa41   : > { %v7461_v47 = vpop.eup %7460 }
 0xa42   : > { %5697 = vst [vmem:[#allocation2 + $0x68] sm:$0xff] %v5681_v62  ;;  %v5628_v22 = vmul.f32 %v11366_v12, %v5592_v25  ;;  %v5593_v48 = vmul.f32 %v7461_v47, %v5497_v32 }
 0xa44   : > { %v5629_v4 = vmul.f32 %v11366_v12, %v5593_v48  ;;  %v5664_v50 = vadd.f32 %v11373_v46, %v5628_v22 }
 0xa46   : > { %v5665_v9 = vadd.f32 %v11373_v46, %v5629_v4 }
 0xa47   : > { %v7463_v24 = vpop.eup %7462 }
 0xa48   : > { %v5682_v44 = vpack.c.bf16 %v5665_v9, %v5664_v50  ;;  %v5594_v3 = vmul.f32 %v7463_v24, %v5498_v58 }
 0xa49   : > { %v7465_v61 = vpop.eup %7464 }
 0xa4a   : > { %5698 = vst [vmem:[#allocation2 + $0x70] sm:$0xff] %v5682_v44  ;;  %v5630_v10 = vmul.f32 %v11366_v12, %v5594_v3  ;;  %v5595_v23 = vmul.f32 %v7465_v61, %v5499_v43 }
 0xa4c   : > { %v5631_v51 = vmul.f32 %v11366_v12, %v5595_v23  ;;  %v5666_v54 = vadd.f32 %v11373_v46, %v5630_v10  ;;  %5703 = sbr.rel (%p6121_p12) target bundleno = 2871 (0xb37), region = 92  ;;  %v7486_v12 = vld [vmem:[#allocation12 + $0x18] sm:$0xff] (!%p6121_p12)  }
 0xa4d   : > { %6715 = vmatpush3.bf16.msra.mxu0 (!%p6121_p12), %v7486_v12 }
 0xa4e   : > { %v5667_v30 = vadd.f32 %v11373_v46, %v5631_v51  ;;  %v7487_v46 = vld [vmem:[#allocation12 + $0x20] sm:$0xff] (!%p6121_p12)   ;;  %6716 = vmatprep.subr.bf16.mxu0 (!%p6121_p12), %v7760_v56 }
 0xa50   : > { %v5683_v11 = vpack.c.bf16 %v5667_v30, %v5666_v54 }
 0xa51   : > { %6717 = vmatpush3.bf16.msra.mxu0 (!%p6121_p12), %v7487_v46 }
 0xa52   : > { %5699 = vst [vmem:[#allocation2 + $0x78] sm:$0xff] %v5683_v11  ;;  %6718 = vmatprep.subr.bf16.mxu0 (!%p6121_p12), %v7760_v56 }
 0xa55   : > { %6719 = vmatpush3.bf16.msra.mxu0 %v7488_v14 }
 0xa56   : > { %6720 = vmatprep.subr.bf16.mxu0 %v7760_v56 }
 0xa59   : > { %6721 = vmatpush3.bf16.msra.mxu0 %v7489_v20 }
 0xa5a   : > { %6722 = vmatprep.subr.bf16.mxu0 %v7760_v56 }
 0xa5d   : > { %6723 = vmatpush3.bf16.msra.mxu0 %v7490_v16 }
 0xa60   : > { %6725 = vmatmul.mubr.bf16.vlgmr.msra.gmra.mrb[0].mxu0 %v5736_v45 }
 0xb33   : > { %v5820_v37 = vpop.f32.mrb[0].mxu0 }
 0xb34   : > { %v5821_v36 = vadd.f32 %v6122_v27, %v5820_v37  ;;  %v6726_v53 = vpop.f32.mrb[1].mxu0 }
 0xb35   : > { %v5823_v8 = vpop.f32.mrb[2].mxu0 }
 0xb36   : > { %5826 = vst [vmem:[#allocation13] sm:$0x3] %v5821_v36  ;;  %v6727_v7 = vpop.f32.mrb[3].mxu0 }
 0xb37 PF: > { %p6788_p5 = scmp.eq.s32.totalorder %s7842_s21, 1  ;;  %s7762_s27 = smov [#allocation13]  }
 0xb38   : > { %s5834_s24 = sshll.u32 %s7762_s27, 4  ;;  %s5835_s24 = int_to_ptr.vmem [resolvable:$true] %s5834_s24 }
 0xb39   : > { %s7665_s30 = scalar_lea.vmem %s5835_s24, 32  ;;  %p7672_p13 = scmp.lt.s32.totalorder %s5835_s24, %s5835_s24 }
 0xb3a   : > { %p7666_p10 = scmp.ne.s32.totalorder %s5835_s24, %s7665_s30  ;;  %p7673_p9 = scmp.lt.s32.totalorder %s7665_s30, %s7665_s30 }
 0xb3c   : > { %p7667_p11 = pnand %p7666_p10, %p6788_p5  ;;  %p7674_p0 = por %p7673_p9, %p7672_p13 }
 0xb3e   : > { %p7668_p1 = pneg %p7667_p11 }
 0xb40   : > { %p7675_p8 = pnand %p7674_p0, %p7668_p1 }
 0xb42   : > { %7678 = shalt.err (!%p7675_p8)
}
 0xb43   : > { %s12208_s15 = sld [smem:[#allocation150_spill]] }
 0xb49   : > { %s7679_s10 = scalar_lea.hbm %s12208_s15, 32 }
 0xb4a   : > { %p7680_p2 = scmp.ne.s32.totalorder %s12208_s15, %s7679_s10  ;;  %p7685_p3 = scmp.lt.u32.totalorder %s7679_s10, %s12208_s15 }
 0xb4c   : > { %p7681_p6 = pnand %p7680_p2, %p6788_p5 }
 0xb4e   : > { %p7682_p4 = pneg %p7681_p6 }
 0xb50   : > { %p7687_p7 = pnand %p7685_p3, %p7682_p4 }
 0xb52   : > { %7690 = shalt.err (!%p7687_p7)
}
 0xb53   : > { %6764 = dma.vmem_to_hbm [thread:$0]  (%p6788_p5), %s5835_s24, 32, %s12208_s15, [#allocation6]  }
 0xb54   : > { %7728 = dma.done.wait (%p6788_p5), [#allocation6], 32  }
 0xb55   : > { %7730 = vsyncadd (%p6788_p5), [#allocation6], 4294967264 }
 0xb56 PF: > { %s12209_s20 = sld [smem:[#allocation25_spill]]  ;;  %s12210_s23 = sld [smem:[#allocation24_spill]] }
 0xb57   : > { %s12211_s19 = sld [smem:[#allocation26_spill]]  ;;  %s12212_s17 = smov %s7737_s18 }
 0xb5c   : > { %p28_p12 = scmp.ge.s32.totalorder %s12209_s20, 4   ;;  %s12213_s18 = smov %s12210_s23 }
 0xb5e   :  { %30 = sbr.rel (!%p28_p12) target bundleno = 15 (0xf), region = 159 }
 0xb65   :  { %5847 = vsyncpa [#allocation5], 1 }
 0xb66   :  { %5849 = vsyncpa [#allocation5 + $0x1], 1 }
 0xb67   :  { %5850 = vsyncpa [#allocation8], 1 }
 0xb68   :  { %5852 = vsyncpa [#allocation8 + $0x1], 1 }
 0xb69   :  { %5853 = vsyncpa [#allocation11], 1 }
 0xb6a   :  { %5855 = vsyncpa [#allocation11 + $0x1], 1 }
 0xb6b   :  { %5856 = vsyncpa [#allocation6], 1 }
 0xb6c   :  { %5858 = vsyncpa [#allocation6 + $0x1], 1 }
 0xb6d   :  { %5859 = vsyncmov [#allocation3] }
 0xb70   :  { %s5860_s21 = vpop.sfrf %5859 }
 0xb71   :  { %p6135_p5 = scmp.ne.s32.totalorder %s5860_s21, 0 }
 0xb73   :  { %5864 = shalt.err (%p6135_p5)  }

</bundles_post_ra>
